<compile_context>
chip_gen: v7x
topology: tpu7x:2x2x1
jax: 0.10.0
libtpu: 0.0.40
codegen_flags: <defaults>
</compile_context>

<pallas_src>
import functools

import numpy as np

import jax
import jax.numpy as jnp
from jax.experimental import pallas as pl
from jax.experimental.pallas import tpu as pltpu

PRIMITIVES = [
    "none",
    "max_pool_3x3",
    "avg_pool_3x3",
    "skip_connect",
    "sep_conv_3x3",
    "sep_conv_5x5",
    "dil_conv_3x3",
    "dil_conv_5x5",
]

BN_EPS = 1e-5

# Tap offsets (dy, dx):
_OFFS_33 = [(dy, dx) for dy in (-1, 0, 1) for dx in (-1, 0, 1)]          # 3x3, d=1
_OFFS_55 = [(dy, dx) for dy in range(-2, 3) for dx in range(-2, 3)]      # 5x5, d=1
_OFFS_55D2 = [(dy, dx) for dy in (-4, -2, 0, 2, 4) for dx in (-4, -2, 0, 2, 4)]  # 5x5, d=2


def _build_masks(H, W):
    """Position-only constants, packed into one [n_rows, H*W] f32 array:
    per-offset validity masks (1.0 valid / 0.0 padded) and, as the last row,
    the avg-pool reciprocal valid-count (count_include_pad=False)."""
    yy, xx = np.meshgrid(np.arange(H), np.arange(W), indexing="ij")
    offs = sorted(set(_OFFS_55) | set(_OFFS_55D2))
    rows, off_idx = [], {}
    for (dy, dx) in offs:
        if (dy, dx) == (0, 0):
            continue
        valid = ((yy + dy >= 0) & (yy + dy < H) & (xx + dx >= 0) & (xx + dx < W))
        off_idx[(dy, dx)] = len(rows)
        rows.append(valid.reshape(-1).astype(np.float32))
    cnt = np.zeros((H, W), np.float32)
    for (dy, dx) in _OFFS_33:
        cnt += ((yy + dy >= 0) & (yy + dy < H) & (xx + dx >= 0) & (xx + dx < W))
    inv_cnt_idx = len(rows)
    rows.append((1.0 / cnt).reshape(-1).astype(np.float32))
    return np.stack(rows, axis=0), off_idx, inv_cnt_idx


# ----------------------------------------------------------------------------
# Fused MixedOp kernel.  Per-edge view: [R, HW] with R = N*C rows (sublanes)
# and HW = H*W lane-dense columns (2 full 128-lane tiles per row here).
# ----------------------------------------------------------------------------
def _mixed_op_kernel(wgt_ref, masks_ref, share_ref, x_ref,
                     s3_dw1_ref, s3_pw1_ref, s3_dw2_ref, s3_pw2_ref,
                     s5_dw1_ref, s5_pw1_ref, s5_dw2_ref, s5_pw2_ref,
                     d3_dw_ref, d3_pw_ref, d5_dw_ref, d5_pw_ref,
                     o_ref, *, H, W, N, C, eps, off_idx, inv_cnt_idx):
    R, HW = o_ref.shape
    x = x_ref[...]                       # [R, HW] f32
    w = wgt_ref[...]                     # [8, 1]  architecture weights
    share = share_ref[...]               # [R, R]  1.0 where rows share a channel

    # NOTE: pltpu.roll is circular over the HW axis of a single image row, so
    # every non-center tap MUST be masked by its validity row (done below);
    # rolls never mix rows (batch samples / channels) in this layout.
    def tap(g, dy, dx):
        s = dy * W + dx
        if s == 0:
            return g
        return pltpu.roll(g, shift=(-s) % HW, axis=1)

    def mrow(dy, dx):                    # [1, HW] validity mask (1.0 / 0.0)
        i = off_idx[(dy, dx)]
        return masks_ref[i:i + 1, :]

    def ztap(g, dy, dx):                 # zero-padded shifted tap
        if dy == 0 and dx == 0:
            return g
        return tap(g, dy, dx) * mrow(dy, dx)

    def mix(h, mat):                     # out[r, :] = sum_r' mat[r, r'] * h[r', :]
        acc = mat[:, 0:1] * h[0:1, :]
        for r in range(1, R):
            acc = acc + mat[:, r:r + 1] * h[r:r + 1, :]
        return acc

    inv_m = 1.0 / float(N * HW)

    def batchnorm(h, w_scale=1.0):
        # BatchNorm2d(affine=False), training mode: biased batch stats over
        # (N, H, W) per channel; `share` sums / replicates the per-row partial
        # sums across the N rows of each channel.  The architecture weight is
        # folded into the [R, 1] scale (rsqrt rides the EUP slot).
        s1 = mix(jnp.sum(h, axis=1, keepdims=True), share)
        s2 = mix(jnp.sum(h * h, axis=1, keepdims=True), share)
        mean = s1 * inv_m
        var = s2 * inv_m - mean * mean
        scale = w_scale * jax.lax.rsqrt(var + eps)
        return (h - mean) * scale

    # --- max_pool_3x3 / avg_pool_3x3 (share the 8 rolled taps of x) + BN ----
    mp = x
    ap = x
    for (dy, dx) in _OFFS_33:
        if (dy, dx) == (0, 0):
            continue
        t = tap(x, dy, dx)
        m = mrow(dy, dx)
        mp = jnp.maximum(mp, jnp.where(m > 0.5, t, -jnp.inf))   # implicit -inf pad
        ap = ap + t * m                                         # zero pad
    ap = ap * masks_ref[inv_cnt_idx:inv_cnt_idx + 1, :]         # count_include_pad=False
    b_max = batchnorm(mp, w[1:2, :])
    b_avg = batchnorm(ap, w[2:3, :])

    # --- shared first-stage depthwise taps of relu(x) ------------------------
    relu_x = jnp.maximum(x, 0.0)         # ReLU once; zero-pad == ReLU(0)
    s3_dw1 = s3_dw1_ref[...]
    s5_dw1 = s5_dw1_ref[...]
    d3_dw = d3_dw_ref[...]
    d5_dw = d5_dw_ref[...]

    acc_s3 = relu_x * s3_dw1[:, 4:5]     # center taps
    acc_s5 = relu_x * s5_dw1[:, 12:13]
    acc_d3 = relu_x * d3_dw[:, 4:5]
    acc_d5 = relu_x * d5_dw[:, 12:13]

    for (dy, dx) in _OFFS_55:            # {-2..2}^2 minus center: 24 shared taps
        if (dy, dx) == (0, 0):
            continue
        t = ztap(relu_x, dy, dx)         # computed once, feeds up to 4 branches
        if abs(dy) <= 1 and abs(dx) <= 1:
            i3 = (dy + 1) * 3 + (dx + 1)
            acc_s3 = acc_s3 + t * s3_dw1[:, i3:i3 + 1]
        i5 = (dy + 2) * 5 + (dx + 2)
        acc_s5 = acc_s5 + t * s5_dw1[:, i5:i5 + 1]
        if dy % 2 == 0 and dx % 2 == 0:
            j3 = (dy // 2 + 1) * 3 + (dx // 2 + 1)
            acc_d3 = acc_d3 + t * d3_dw[:, j3:j3 + 1]
            j5 = (dy // 2 + 2) * 5 + (dx // 2 + 2)
            acc_d5 = acc_d5 + t * d5_dw[:, j5:j5 + 1]

    for (dy, dx) in _OFFS_55D2:          # dil_conv_5x5 outer ring only
        if abs(dy) <= 2 and abs(dx) <= 2:
            continue
        t = ztap(relu_x, dy, dx)
        j5 = (dy // 2 + 2) * 5 + (dx // 2 + 2)
        acc_d5 = acc_d5 + t * d5_dw[:, j5:j5 + 1]

    # --- second depthwise stage of the separable convs -----------------------
    def depthwise(g, dw, k):
        half = (k - 1) // 2
        c = half * k + half
        acc = g * dw[:, c:c + 1]
        for dy in range(-half, half + 1):
            for dx in range(-half, half + 1):
                if (dy, dx) == (0, 0):
                    continue
                ti = (dy + half) * k + (dx + half)
                acc = acc + ztap(g, dy, dx) * dw[:, ti:ti + 1]
        return acc

    # 1x1 convs as per-row broadcast MACs against per-edge block-diagonal
    # [R, R] matrices (VPU; MXU would be idle at C = 4).
    h1 = jnp.maximum(batchnorm(mix(acc_s3, s3_pw1_ref[...])), 0.0)
    b_sep3 = batchnorm(mix(depthwise(h1, s3_dw2_ref[...], 3), s3_pw2_ref[...]),
                       w[4:5, :])

    h2 = jnp.maximum(batchnorm(mix(acc_s5, s5_pw1_ref[...])), 0.0)
    b_sep5 = batchnorm(mix(depthwise(h2, s5_dw2_ref[...], 5), s5_pw2_ref[...]),
                       w[5:6, :])

    b_dil3 = batchnorm(mix(acc_d3, d3_pw_ref[...]), w[6:7, :])
    b_dil5 = batchnorm(mix(acc_d5, d5_pw_ref[...]), w[7:8, :])

    # --- architecture-weighted mix ('none' branch contributes exactly 0) -----
    # TODO(synk): stride=2 variants (FactorizedReduce skip, strided pools/convs)
    # are not exercised for the chosen stride=1 configuration.
    o_ref[...] = (b_max + b_avg + w[3:4, :] * x +
                  b_sep3 + b_sep5 + b_dil3 + b_dil5)


# ----------------------------------------------------------------------------
# Wrappers.
# ----------------------------------------------------------------------------
def _mixed_op_edges(x, weights, params):
    """Batched MixedOp forward over E independent instances (DARTS cell edges).

    x:       [E, N, C, H, W]    weights: [E, len(PRIMITIVES)]
    params:  pytree with a leading E axis on every leaf (see init_params()).
    """
    E, N, C, H, W = x.shape
    R, HW = N * C, H * W
    P = len(PRIMITIVES)

    x_rm = x.astype(jnp.float32).reshape(E, R, HW)      # pure reshape, no transpose
    wgt = weights.astype(jnp.float32).reshape(E, P, 1)

    masks_np, off_idx, inv_cnt_idx = _build_masks(H, W)
    masks = jnp.asarray(masks_np)                                        # [n_rows, HW]
    share_np = (np.arange(R)[:, None] % C == np.arange(R)[None, :] % C)
    share = jnp.asarray(share_np.astype(np.float32))                     # [R, R]

    def rep_dw(dw):                       # [E, C, k*k] -> [E, R, k*k] (row r -> channel r%C)
        return jnp.tile(dw.astype(jnp.float32), (1, N, 1))

    def blk_pw(pw):                       # [E, C, C] -> per-edge block-diagonal [E, R, R]
        eye = jnp.eye(N, dtype=jnp.float32)
        return jnp.einsum("nm,eij->enimj", eye, pw.astype(jnp.float32)).reshape(E, R, R)

    operands = (
        wgt, masks, share, x_rm,
        rep_dw(params["sep3"]["dw1"]), blk_pw(params["sep3"]["pw1"]),
        rep_dw(params["sep3"]["dw2"]), blk_pw(params["sep3"]["pw2"]),
        rep_dw(params["sep5"]["dw1"]), blk_pw(params["sep5"]["pw1"]),
        rep_dw(params["sep5"]["dw2"]), blk_pw(params["sep5"]["pw2"]),
        rep_dw(params["dil3"]["dw"]), blk_pw(params["dil3"]["pw"]),
        rep_dw(params["dil5"]["dw"]), blk_pw(params["dil5"]["pw"]),
    )

    def edge_spec(trailing):              # per-edge operand: squeeze the E axis
        nd = len(trailing)
        return pl.BlockSpec((None,) + tuple(trailing),
                            lambda e, _nd=nd: (e,) + (0,) * _nd)

    def shared_spec(shape):               # edge-invariant constant (fetched once)
        nd = len(shape)
        return pl.BlockSpec(tuple(shape), lambda e, _nd=nd: (0,) * _nd)

    in_specs = [edge_spec((P, 1)), shared_spec(masks.shape),
                shared_spec((R, R)), edge_spec((R, HW))]
    in_specs += [edge_spec(op.shape[1:]) for op in operands[4:]]

    kern = functools.partial(_mixed_op_kernel, H=H, W=W, N=N, C=C, eps=BN_EPS,
                             off_idx=off_idx, inv_cnt_idx=inv_cnt_idx)

    out_rm = pl.pallas_call(
        kern,
        grid=(E,),                                          # one grid step per edge
        in_specs=in_specs,
        out_specs=edge_spec((R, HW)),
        out_shape=jax.ShapeDtypeStruct((E, R, HW), jnp.float32),
        compiler_params=pltpu.CompilerParams(
            dimension_semantics=("parallel",)),             # edges split across TCs (v7x)
    )(*operands)

    return out_rm.reshape(E, N, C, H, W)


def mixed_op_forward(x_nchw, weights, params):
    """MixedOp.forward(x, weights) for a single instance (matches the module)."""
    params_e = jax.tree_util.tree_map(lambda p: p[None], params)
    out = _mixed_op_edges(x_nchw[None], weights[None], params_e)
    return out[0]


# ----------------------------------------------------------------------------
# Deterministic synthetic parameters.
#   depthwise weights: [C, k*k] (per-channel taps, row-major (ky, kx))
#   pointwise weights: [Cout, Cin]
# ----------------------------------------------------------------------------
def init_params(key, C):
    def nrm(k, shape):
        return 0.1 * jax.random.normal(k, shape, jnp.float32)

    ks = jax.random.split(key, 12)
    return {
        "sep3": {"dw1": nrm(ks[0], (C, 9)),  "pw1": nrm(ks[1], (C, C)),
                 "dw2": nrm(ks[2], (C, 9)),  "pw2": nrm(ks[3], (C, C))},
        "sep5": {"dw1": nrm(ks[4], (C, 25)), "pw1": nrm(ks[5], (C, C)),
                 "dw2": nrm(ks[6], (C, 25)), "pw2": nrm(ks[7], (C, C))},
        "dil3": {"dw": nrm(ks[8], (C, 9)),   "pw": nrm(ks[9], (C, C))},
        "dil5": {"dw": nrm(ks[10], (C, 25)), "pw": nrm(ks[11], (C, C))},
    }


# ----------------------------------------------------------------------------
# Pure-JAX reference (independent NCHW implementation) for validation.
# ----------------------------------------------------------------------------
def _ref_mixed_op(x, weights, params, eps=BN_EPS):
    N, C, H, W = x.shape

    def bn(h):
        mean = jnp.mean(h, axis=(0, 2, 3), keepdims=True)
        var = jnp.mean((h - mean) ** 2, axis=(0, 2, 3), keepdims=True)
        return (h - mean) * jax.lax.rsqrt(var + eps)

    def dwconv(h, dw, k, d):
        pad = d * (k - 1) // 2
        hp = jnp.pad(h, ((0, 0), (0, 0), (pad, pad), (pad, pad)))
        out = jnp.zeros_like(h)
        for ky in range(k):
            for kx in range(k):
                sl = hp[:, :, ky * d:ky * d + H, kx * d:kx * d + W]
                out = out + sl * dw[:, ky * k + kx].reshape(1, C, 1, 1)
        return out

    def pwconv(h, pw):
        return jnp.einsum("oi,nihw->nohw", pw, h)

    relu = lambda v: jnp.maximum(v, 0.0)

    hp = jnp.pad(x, ((0, 0), (0, 0), (1, 1), (1, 1)), constant_values=-jnp.inf)
    mp = jnp.full_like(x, -jnp.inf)
    for ky in range(3):
        for kx in range(3):
            mp = jnp.maximum(mp, hp[:, :, ky:ky + H, kx:kx + W])

    hz = jnp.pad(x, ((0, 0), (0, 0), (1, 1), (1, 1)))
    ones = jnp.pad(jnp.ones((1, 1, H, W), x.dtype), ((0, 0), (0, 0), (1, 1), (1, 1)))
    s = jnp.zeros_like(x)
    cnt = jnp.zeros((1, 1, H, W), x.dtype)
    for ky in range(3):
        for kx in range(3):
            s = s + hz[:, :, ky:ky + H, kx:kx + W]
            cnt = cnt + ones[:, :, ky:ky + H, kx:kx + W]
    ap = s / cnt

    def sep(p, k):
        h = pwconv(dwconv(relu(x), p["dw1"], k, 1), p["pw1"])
        h = relu(bn(h))
        h = pwconv(dwconv(h, p["dw2"], k, 1), p["pw2"])
        return bn(h)

    def dil(p, k):
        return bn(pwconv(dwconv(relu(x), p["dw"], k, 2), p["pw"]))

    branches = [
        jnp.zeros_like(x),            # none
        bn(mp),                       # max_pool_3x3
        bn(ap),                       # avg_pool_3x3
        x,                            # skip_connect (stride=1 -> Identity)
        sep(params["sep3"], 3),       # sep_conv_3x3
        sep(params["sep5"], 5),       # sep_conv_5x5
        dil(params["dil3"], 3),       # dil_conv_3x3
        dil(params["dil5"], 5),       # dil_conv_5x5
    ]
    return sum(w * b for w, b in zip(weights, branches))


if __name__ == "__main__":
    key = jax.random.PRNGKey(0)
    kx, ka, kp = jax.random.split(key, 3)

    N, C, H, W = 2, 4, 16, 16
    x = jax.random.normal(kx, (N, C, H, W), jnp.float32)
    # architecture weights (one per primitive), e.g. softmax(alpha)
    alphas = jax.nn.softmax(jax.random.normal(ka, (len(PRIMITIVES),), jnp.float32))
    params = init_params(kp, C)

    fwd = jax.jit(lambda xx, ww: mixed_op_forward(xx, ww, params))
    out = fwd(x, alphas)
    jax.block_until_ready(out)

    assert out.shape == (N, C, H, W), out.shape
    assert bool(jnp.all(jnp.isfinite(out)))

    ref = _ref_mixed_op(x, alphas, params)
    err = float(jnp.max(jnp.abs(out - ref)))
    assert err < 2e-3, f"mismatch vs pure-JAX reference: max|diff| = {err}"

    print("KERNEL_OK")
</pallas_src>

<mosaic_0001>
module attributes {stable_mosaic.version = 11 : i64} {
  func.func @_mixed_op_kernel(%arg0: i32, %arg1: memref<1x8x1xf32, #tpu.memory_space<vmem>>, %arg2: memref<41x256xf32, #tpu.memory_space<vmem>>, %arg3: memref<8x8xf32, #tpu.memory_space<vmem>>, %arg4: memref<1x8x256xf32, #tpu.memory_space<vmem>>, %arg5: memref<1x8x9xf32, #tpu.memory_space<vmem>>, %arg6: memref<1x8x8xf32, #tpu.memory_space<vmem>>, %arg7: memref<1x8x9xf32, #tpu.memory_space<vmem>>, %arg8: memref<1x8x8xf32, #tpu.memory_space<vmem>>, %arg9: memref<1x8x25xf32, #tpu.memory_space<vmem>>, %arg10: memref<1x8x8xf32, #tpu.memory_space<vmem>>, %arg11: memref<1x8x25xf32, #tpu.memory_space<vmem>>, %arg12: memref<1x8x8xf32, #tpu.memory_space<vmem>>, %arg13: memref<1x8x9xf32, #tpu.memory_space<vmem>>, %arg14: memref<1x8x8xf32, #tpu.memory_space<vmem>>, %arg15: memref<1x8x25xf32, #tpu.memory_space<vmem>>, %arg16: memref<1x8x8xf32, #tpu.memory_space<vmem>>, %arg17: memref<1x8x256xf32, #tpu.memory_space<vmem>>) attributes {dimension_semantics = [#tpu.dimension_semantics<parallel>], iteration_bounds = array<i64: 1>, scalar_prefetch = 0 : i64, scratch_operands = 0 : i64, tpu.core_type = #tpu.core_type<tc>, window_params = [{transform_indices = @transform_0, window_bounds = array<i64: 1, 8, 1>}, {pipeline_mode = #tpu.pipeline_mode<synchronous>, transform_indices = @transform_1, window_bounds = array<i64: 41, 256>}, {pipeline_mode = #tpu.pipeline_mode<synchronous>, transform_indices = @transform_2, window_bounds = array<i64: 8, 8>}, {transform_indices = @transform_3, window_bounds = array<i64: 1, 8, 256>}, {transform_indices = @transform_4, window_bounds = array<i64: 1, 8, 9>}, {transform_indices = @transform_5, window_bounds = array<i64: 1, 8, 8>}, {transform_indices = @transform_6, window_bounds = array<i64: 1, 8, 9>}, {transform_indices = @transform_7, window_bounds = array<i64: 1, 8, 8>}, {transform_indices = @transform_8, window_bounds = array<i64: 1, 8, 25>}, {transform_indices = @transform_9, window_bounds = array<i64: 1, 8, 8>}, {transform_indices = @transform_10, window_bounds = array<i64: 1, 8, 25>}, {transform_indices = @transform_11, window_bounds = array<i64: 1, 8, 8>}, {transform_indices = @transform_12, window_bounds = array<i64: 1, 8, 9>}, {transform_indices = @transform_13, window_bounds = array<i64: 1, 8, 8>}, {transform_indices = @transform_14, window_bounds = array<i64: 1, 8, 25>}, {transform_indices = @transform_15, window_bounds = array<i64: 1, 8, 8>}, {transform_indices = @transform_16, window_bounds = array<i64: 1, 8, 256>}]} {
    %c0 = arith.constant 0 : index
    %c0_0 = arith.constant 0 : index
    %c0_1 = arith.constant 0 : index
    %0 = vector.load %arg4[%c0, %c0_0, %c0_1] : memref<1x8x256xf32, #tpu.memory_space<vmem>>, vector<1x8x256xf32>
    %1 = vector.shape_cast %0 : vector<1x8x256xf32> to vector<8x256xf32>
    %c0_2 = arith.constant 0 : index
    %c0_3 = arith.constant 0 : index
    %c0_4 = arith.constant 0 : index
    %2 = vector.load %arg1[%c0_2, %c0_3, %c0_4] : memref<1x8x1xf32, #tpu.memory_space<vmem>>, vector<1x8x1xf32>
    %3 = vector.shape_cast %2 : vector<1x8x1xf32> to vector<8x1xf32>
    %c0_5 = arith.constant 0 : index
    %c0_6 = arith.constant 0 : index
    %4 = vector.load %arg3[%c0_5, %c0_6] : memref<8x8xf32, #tpu.memory_space<vmem>>, vector<8x8xf32>
    %c17_i32 = arith.constant 17 : i32
    %5 = tpu.dynamic_rotate %1 by %c17_i32 dim 1 : vector<8x256xf32>, i32 -> vector<8x256xf32>
    %c13 = arith.constant 13 : index
    %c0_7 = arith.constant 0 : index
    %6 = vector.load %arg2[%c13, %c0_7] : memref<41x256xf32, #tpu.memory_space<vmem>>, vector<1x256xf32>
    %cst = arith.constant 5.000000e-01 : f32
    %7 = vector.broadcast %cst : f32 to vector<1x256xf32>
    %8 = arith.cmpf ogt, %6, %7 : vector<1x256xf32>
    %cst_8 = arith.constant 0xFF800000 : f32
    %9 = vector.shape_cast %8 : vector<1x256xi1> to vector<1x256xi1>
    %10 = vector.broadcast %9 : vector<1x256xi1> to vector<8x256xi1>
    %11 = vector.broadcast %cst_8 : f32 to vector<8x256xf32>
    %12 = arith.select %10, %5, %11 : vector<8x256xi1>, vector<8x256xf32>
    %13 = arith.maximumf %1, %12 : vector<8x256xf32>
    %14 = vector.broadcast %6 : vector<1x256xf32> to vector<8x256xf32>
    %15 = arith.mulf %5, %14 : vector<8x256xf32>
    %16 = arith.addf %1, %15 : vector<8x256xf32>
    %c16_i32 = arith.constant 16 : i32
    %17 = tpu.dynamic_rotate %1 by %c16_i32 dim 1 : vector<8x256xf32>, i32 -> vector<8x256xf32>
    %c14 = arith.constant 14 : index
    %c0_9 = arith.constant 0 : index
    %18 = vector.load %arg2[%c14, %c0_9] : memref<41x256xf32, #tpu.memory_space<vmem>>, vector<1x256xf32>
    %cst_10 = arith.constant 5.000000e-01 : f32
    %19 = vector.broadcast %cst_10 : f32 to vector<1x256xf32>
    %20 = arith.cmpf ogt, %18, %19 : vector<1x256xf32>
    %cst_11 = arith.constant 0xFF800000 : f32
    %21 = vector.shape_cast %20 : vector<1x256xi1> to vector<1x256xi1>
    %22 = vector.broadcast %21 : vector<1x256xi1> to vector<8x256xi1>
    %23 = vector.broadcast %cst_11 : f32 to vector<8x256xf32>
    %24 = arith.select %22, %17, %23 : vector<8x256xi1>, vector<8x256xf32>
    %25 = arith.maximumf %13, %24 : vector<8x256xf32>
    %26 = vector.broadcast %18 : vector<1x256xf32> to vector<8x256xf32>
    %27 = arith.mulf %17, %26 : vector<8x256xf32>
    %28 = arith.addf %16, %27 : vector<8x256xf32>
    %c15_i32 = arith.constant 15 : i32
    %29 = tpu.dynamic_rotate %1 by %c15_i32 dim 1 : vector<8x256xf32>, i32 -> vector<8x256xf32>
    %c15 = arith.constant 15 : index
    %c0_12 = arith.constant 0 : index
    %30 = vector.load %arg2[%c15, %c0_12] : memref<41x256xf32, #tpu.memory_space<vmem>>, vector<1x256xf32>
    %cst_13 = arith.constant 5.000000e-01 : f32
    %31 = vector.broadcast %cst_13 : f32 to vector<1x256xf32>
    %32 = arith.cmpf ogt, %30, %31 : vector<1x256xf32>
    %cst_14 = arith.constant 0xFF800000 : f32
    %33 = vector.shape_cast %32 : vector<1x256xi1> to vector<1x256xi1>
    %34 = vector.broadcast %33 : vector<1x256xi1> to vector<8x256xi1>
    %35 = vector.broadcast %cst_14 : f32 to vector<8x256xf32>
    %36 = arith.select %34, %29, %35 : vector<8x256xi1>, vector<8x256xf32>
    %37 = arith.maximumf %25, %36 : vector<8x256xf32>
    %38 = vector.broadcast %30 : vector<1x256xf32> to vector<8x256xf32>
    %39 = arith.mulf %29, %38 : vector<8x256xf32>
    %40 = arith.addf %28, %39 : vector<8x256xf32>
    %c1_i32 = arith.constant 1 : i32
    %41 = tpu.dynamic_rotate %1 by %c1_i32 dim 1 : vector<8x256xf32>, i32 -> vector<8x256xf32>
    %c19 = arith.constant 19 : index
    %c0_15 = arith.constant 0 : index
    %42 = vector.load %arg2[%c19, %c0_15] : memref<41x256xf32, #tpu.memory_space<vmem>>, vector<1x256xf32>
    %cst_16 = arith.constant 5.000000e-01 : f32
    %43 = vector.broadcast %cst_16 : f32 to vector<1x256xf32>
    %44 = arith.cmpf ogt, %42, %43 : vector<1x256xf32>
    %cst_17 = arith.constant 0xFF800000 : f32
    %45 = vector.shape_cast %44 : vector<1x256xi1> to vector<1x256xi1>
    %46 = vector.broadcast %45 : vector<1x256xi1> to vector<8x256xi1>
    %47 = vector.broadcast %cst_17 : f32 to vector<8x256xf32>
    %48 = arith.select %46, %41, %47 : vector<8x256xi1>, vector<8x256xf32>
    %49 = arith.maximumf %37, %48 : vector<8x256xf32>
    %50 = vector.broadcast %42 : vector<1x256xf32> to vector<8x256xf32>
    %51 = arith.mulf %41, %50 : vector<8x256xf32>
    %52 = arith.addf %40, %51 : vector<8x256xf32>
    %c255_i32 = arith.constant 255 : i32
    %53 = tpu.dynamic_rotate %1 by %c255_i32 dim 1 : vector<8x256xf32>, i32 -> vector<8x256xf32>
    %c20 = arith.constant 20 : index
    %c0_18 = arith.constant 0 : index
    %54 = vector.load %arg2[%c20, %c0_18] : memref<41x256xf32, #tpu.memory_space<vmem>>, vector<1x256xf32>
    %cst_19 = arith.constant 5.000000e-01 : f32
    %55 = vector.broadcast %cst_19 : f32 to vector<1x256xf32>
    %56 = arith.cmpf ogt, %54, %55 : vector<1x256xf32>
    %cst_20 = arith.constant 0xFF800000 : f32
    %57 = vector.shape_cast %56 : vector<1x256xi1> to vector<1x256xi1>
    %58 = vector.broadcast %57 : vector<1x256xi1> to vector<8x256xi1>
    %59 = vector.broadcast %cst_20 : f32 to vector<8x256xf32>
    %60 = arith.select %58, %53, %59 : vector<8x256xi1>, vector<8x256xf32>
    %61 = arith.maximumf %49, %60 : vector<8x256xf32>
    %62 = vector.broadcast %54 : vector<1x256xf32> to vector<8x256xf32>
    %63 = arith.mulf %53, %62 : vector<8x256xf32>
    %64 = arith.addf %52, %63 : vector<8x256xf32>
    %c241_i32 = arith.constant 241 : i32
    %65 = tpu.dynamic_rotate %1 by %c241_i32 dim 1 : vector<8x256xf32>, i32 -> vector<8x256xf32>
    %c24 = arith.constant 24 : index
    %c0_21 = arith.constant 0 : index
    %66 = vector.load %arg2[%c24, %c0_21] : memref<41x256xf32, #tpu.memory_space<vmem>>, vector<1x256xf32>
    %cst_22 = arith.constant 5.000000e-01 : f32
    %67 = vector.broadcast %cst_22 : f32 to vector<1x256xf32>
    %68 = arith.cmpf ogt, %66, %67 : vector<1x256xf32>
    %cst_23 = arith.constant 0xFF800000 : f32
    %69 = vector.shape_cast %68 : vector<1x256xi1> to vector<1x256xi1>
    %70 = vector.broadcast %69 : vector<1x256xi1> to vector<8x256xi1>
    %71 = vector.broadcast %cst_23 : f32 to vector<8x256xf32>
    %72 = arith.select %70, %65, %71 : vector<8x256xi1>, vector<8x256xf32>
    %73 = arith.maximumf %61, %72 : vector<8x256xf32>
    %74 = vector.broadcast %66 : vector<1x256xf32> to vector<8x256xf32>
    %75 = arith.mulf %65, %74 : vector<8x256xf32>
    %76 = arith.addf %64, %75 : vector<8x256xf32>
    %c240_i32 = arith.constant 240 : i32
    %77 = tpu.dynamic_rotate %1 by %c240_i32 dim 1 : vector<8x256xf32>, i32 -> vector<8x256xf32>
    %c25 = arith.constant 25 : index
    %c0_24 = arith.constant 0 : index
    %78 = vector.load %arg2[%c25, %c0_24] : memref<41x256xf32, #tpu.memory_space<vmem>>, vector<1x256xf32>
    %cst_25 = arith.constant 5.000000e-01 : f32
    %79 = vector.broadcast %cst_25 : f32 to vector<1x256xf32>
    %80 = arith.cmpf ogt, %78, %79 : vector<1x256xf32>
    %cst_26 = arith.constant 0xFF800000 : f32
    %81 = vector.shape_cast %80 : vector<1x256xi1> to vector<1x256xi1>
    %82 = vector.broadcast %81 : vector<1x256xi1> to vector<8x256xi1>
    %83 = vector.broadcast %cst_26 : f32 to vector<8x256xf32>
    %84 = arith.select %82, %77, %83 : vector<8x256xi1>, vector<8x256xf32>
    %85 = arith.maximumf %73, %84 : vector<8x256xf32>
    %86 = vector.broadcast %78 : vector<1x256xf32> to vector<8x256xf32>
    %87 = arith.mulf %77, %86 : vector<8x256xf32>
    %88 = arith.addf %76, %87 : vector<8x256xf32>
    %c239_i32 = arith.constant 239 : i32
    %89 = tpu.dynamic_rotate %1 by %c239_i32 dim 1 : vector<8x256xf32>, i32 -> vector<8x256xf32>
    %c26 = arith.constant 26 : index
    %c0_27 = arith.constant 0 : index
    %90 = vector.load %arg2[%c26, %c0_27] : memref<41x256xf32, #tpu.memory_space<vmem>>, vector<1x256xf32>
    %cst_28 = arith.constant 5.000000e-01 : f32
    %91 = vector.broadcast %cst_28 : f32 to vector<1x256xf32>
    %92 = arith.cmpf ogt, %90, %91 : vector<1x256xf32>
    %cst_29 = arith.constant 0xFF800000 : f32
    %93 = vector.shape_cast %92 : vector<1x256xi1> to vector<1x256xi1>
    %94 = vector.broadcast %93 : vector<1x256xi1> to vector<8x256xi1>
    %95 = vector.broadcast %cst_29 : f32 to vector<8x256xf32>
    %96 = arith.select %94, %89, %95 : vector<8x256xi1>, vector<8x256xf32>
    %97 = arith.maximumf %85, %96 : vector<8x256xf32>
    %98 = vector.broadcast %90 : vector<1x256xf32> to vector<8x256xf32>
    %99 = arith.mulf %89, %98 : vector<8x256xf32>
    %100 = arith.addf %88, %99 : vector<8x256xf32>
    %c40 = arith.constant 40 : index
    %c0_30 = arith.constant 0 : index
    %101 = vector.load %arg2[%c40, %c0_30] : memref<41x256xf32, #tpu.memory_space<vmem>>, vector<1x256xf32>
    %102 = vector.broadcast %101 : vector<1x256xf32> to vector<8x256xf32>
    %103 = arith.mulf %100, %102 : vector<8x256xf32>
    %104 = vector.extract_strided_slice %3 {offsets = [1, 0], sizes = [1, 1], strides = [1, 1]} : vector<8x1xf32> to vector<1x1xf32>
    %cst_31 = arith.constant dense<0.000000e+00> : vector<8xf32>
    %105 = vector.multi_reduction <add>, %97, %cst_31 [1] : vector<8x256xf32> to vector<8xf32>
    %106 = vector.shape_cast %105 : vector<8xf32> to vector<8x1xf32>
    %107 = vector.extract_strided_slice %4 {offsets = [0, 0], sizes = [8, 1], strides = [1, 1]} : vector<8x8xf32> to vector<8x1xf32>
    %108 = vector.extract_strided_slice %106 {offsets = [0, 0], sizes = [1, 1], strides = [1, 1]} : vector<8x1xf32> to vector<1x1xf32>
    %109 = vector.broadcast %108 : vector<1x1xf32> to vector<8x1xf32>
    %110 = arith.mulf %107, %109 : vector<8x1xf32>
    %111 = vector.extract_strided_slice %4 {offsets = [0, 1], sizes = [8, 1], strides = [1, 1]} : vector<8x8xf32> to vector<8x1xf32>
    %112 = vector.extract_strided_slice %106 {offsets = [1, 0], sizes = [1, 1], strides = [1, 1]} : vector<8x1xf32> to vector<1x1xf32>
    %113 = vector.broadcast %112 : vector<1x1xf32> to vector<8x1xf32>
    %114 = arith.mulf %111, %113 : vector<8x1xf32>
    %115 = arith.addf %110, %114 : vector<8x1xf32>
    %116 = vector.extract_strided_slice %4 {offsets = [0, 2], sizes = [8, 1], strides = [1, 1]} : vector<8x8xf32> to vector<8x1xf32>
    %117 = vector.extract_strided_slice %106 {offsets = [2, 0], sizes = [1, 1], strides = [1, 1]} : vector<8x1xf32> to vector<1x1xf32>
    %118 = vector.broadcast %117 : vector<1x1xf32> to vector<8x1xf32>
    %119 = arith.mulf %116, %118 : vector<8x1xf32>
    %120 = arith.addf %115, %119 : vector<8x1xf32>
    %121 = vector.extract_strided_slice %4 {offsets = [0, 3], sizes = [8, 1], strides = [1, 1]} : vector<8x8xf32> to vector<8x1xf32>
    %122 = vector.extract_strided_slice %106 {offsets = [3, 0], sizes = [1, 1], strides = [1, 1]} : vector<8x1xf32> to vector<1x1xf32>
    %123 = vector.broadcast %122 : vector<1x1xf32> to vector<8x1xf32>
    %124 = arith.mulf %121, %123 : vector<8x1xf32>
    %125 = arith.addf %120, %124 : vector<8x1xf32>
    %126 = vector.extract_strided_slice %4 {offsets = [0, 4], sizes = [8, 1], strides = [1, 1]} : vector<8x8xf32> to vector<8x1xf32>
    %127 = vector.extract_strided_slice %106 {offsets = [4, 0], sizes = [1, 1], strides = [1, 1]} : vector<8x1xf32> to vector<1x1xf32>
    %128 = vector.broadcast %127 : vector<1x1xf32> to vector<8x1xf32>
    %129 = arith.mulf %126, %128 : vector<8x1xf32>
    %130 = arith.addf %125, %129 : vector<8x1xf32>
    %131 = vector.extract_strided_slice %4 {offsets = [0, 5], sizes = [8, 1], strides = [1, 1]} : vector<8x8xf32> to vector<8x1xf32>
    %132 = vector.extract_strided_slice %106 {offsets = [5, 0], sizes = [1, 1], strides = [1, 1]} : vector<8x1xf32> to vector<1x1xf32>
    %133 = vector.broadcast %132 : vector<1x1xf32> to vector<8x1xf32>
    %134 = arith.mulf %131, %133 : vector<8x1xf32>
    %135 = arith.addf %130, %134 : vector<8x1xf32>
    %136 = vector.extract_strided_slice %4 {offsets = [0, 6], sizes = [8, 1], strides = [1, 1]} : vector<8x8xf32> to vector<8x1xf32>
    %137 = vector.extract_strided_slice %106 {offsets = [6, 0], sizes = [1, 1], strides = [1, 1]} : vector<8x1xf32> to vector<1x1xf32>
    %138 = vector.broadcast %137 : vector<1x1xf32> to vector<8x1xf32>
    %139 = arith.mulf %136, %138 : vector<8x1xf32>
    %140 = arith.addf %135, %139 : vector<8x1xf32>
    %141 = vector.extract_strided_slice %4 {offsets = [0, 7], sizes = [8, 1], strides = [1, 1]} : vector<8x8xf32> to vector<8x1xf32>
    %142 = vector.extract_strided_slice %106 {offsets = [7, 0], sizes = [1, 1], strides = [1, 1]} : vector<8x1xf32> to vector<1x1xf32>
    %143 = vector.broadcast %142 : vector<1x1xf32> to vector<8x1xf32>
    %144 = arith.mulf %141, %143 : vector<8x1xf32>
    %145 = arith.addf %140, %144 : vector<8x1xf32>
    %146 = arith.mulf %97, %97 : vector<8x256xf32>
    %cst_32 = arith.constant dense<0.000000e+00> : vector<8xf32>
    %147 = vector.multi_reduction <add>, %146, %cst_32 [1] : vector<8x256xf32> to vector<8xf32>
    %148 = vector.shape_cast %147 : vector<8xf32> to vector<8x1xf32>
    %149 = vector.extract_strided_slice %4 {offsets = [0, 0], sizes = [8, 1], strides = [1, 1]} : vector<8x8xf32> to vector<8x1xf32>
    %150 = vector.extract_strided_slice %148 {offsets = [0, 0], sizes = [1, 1], strides = [1, 1]} : vector<8x1xf32> to vector<1x1xf32>
    %151 = vector.broadcast %150 : vector<1x1xf32> to vector<8x1xf32>
    %152 = arith.mulf %149, %151 : vector<8x1xf32>
    %153 = vector.extract_strided_slice %4 {offsets = [0, 1], sizes = [8, 1], strides = [1, 1]} : vector<8x8xf32> to vector<8x1xf32>
    %154 = vector.extract_strided_slice %148 {offsets = [1, 0], sizes = [1, 1], strides = [1, 1]} : vector<8x1xf32> to vector<1x1xf32>
    %155 = vector.broadcast %154 : vector<1x1xf32> to vector<8x1xf32>
    %156 = arith.mulf %153, %155 : vector<8x1xf32>
    %157 = arith.addf %152, %156 : vector<8x1xf32>
    %158 = vector.extract_strided_slice %4 {offsets = [0, 2], sizes = [8, 1], strides = [1, 1]} : vector<8x8xf32> to vector<8x1xf32>
    %159 = vector.extract_strided_slice %148 {offsets = [2, 0], sizes = [1, 1], strides = [1, 1]} : vector<8x1xf32> to vector<1x1xf32>
    %160 = vector.broadcast %159 : vector<1x1xf32> to vector<8x1xf32>
    %161 = arith.mulf %158, %160 : vector<8x1xf32>
    %162 = arith.addf %157, %161 : vector<8x1xf32>
    %163 = vector.extract_strided_slice %4 {offsets = [0, 3], sizes = [8, 1], strides = [1, 1]} : vector<8x8xf32> to vector<8x1xf32>
    %164 = vector.extract_strided_slice %148 {offsets = [3, 0], sizes = [1, 1], strides = [1, 1]} : vector<8x1xf32> to vector<1x1xf32>
    %165 = vector.broadcast %164 : vector<1x1xf32> to vector<8x1xf32>
    %166 = arith.mulf %163, %165 : vector<8x1xf32>
    %167 = arith.addf %162, %166 : vector<8x1xf32>
    %168 = vector.extract_strided_slice %4 {offsets = [0, 4], sizes = [8, 1], strides = [1, 1]} : vector<8x8xf32> to vector<8x1xf32>
    %169 = vector.extract_strided_slice %148 {offsets = [4, 0], sizes = [1, 1], strides = [1, 1]} : vector<8x1xf32> to vector<1x1xf32>
    %170 = vector.broadcast %169 : vector<1x1xf32> to vector<8x1xf32>
    %171 = arith.mulf %168, %170 : vector<8x1xf32>
    %172 = arith.addf %167, %171 : vector<8x1xf32>
    %173 = vector.extract_strided_slice %4 {offsets = [0, 5], sizes = [8, 1], strides = [1, 1]} : vector<8x8xf32> to vector<8x1xf32>
    %174 = vector.extract_strided_slice %148 {offsets = [5, 0], sizes = [1, 1], strides = [1, 1]} : vector<8x1xf32> to vector<1x1xf32>
    %175 = vector.broadcast %174 : vector<1x1xf32> to vector<8x1xf32>
    %176 = arith.mulf %173, %175 : vector<8x1xf32>
    %177 = arith.addf %172, %176 : vector<8x1xf32>
    %178 = vector.extract_strided_slice %4 {offsets = [0, 6], sizes = [8, 1], strides = [1, 1]} : vector<8x8xf32> to vector<8x1xf32>
    %179 = vector.extract_strided_slice %148 {offsets = [6, 0], sizes = [1, 1], strides = [1, 1]} : vector<8x1xf32> to vector<1x1xf32>
    %180 = vector.broadcast %179 : vector<1x1xf32> to vector<8x1xf32>
    %181 = arith.mulf %178, %180 : vector<8x1xf32>
    %182 = arith.addf %177, %181 : vector<8x1xf32>
    %183 = vector.extract_strided_slice %4 {offsets = [0, 7], sizes = [8, 1], strides = [1, 1]} : vector<8x8xf32> to vector<8x1xf32>
    %184 = vector.extract_strided_slice %148 {offsets = [7, 0], sizes = [1, 1], strides = [1, 1]} : vector<8x1xf32> to vector<1x1xf32>
    %185 = vector.broadcast %184 : vector<1x1xf32> to vector<8x1xf32>
    %186 = arith.mulf %183, %185 : vector<8x1xf32>
    %187 = arith.addf %182, %186 : vector<8x1xf32>
    %cst_33 = arith.constant 0.001953125 : f32
    %188 = vector.broadcast %cst_33 : f32 to vector<8x1xf32>
    %189 = arith.mulf %145, %188 : vector<8x1xf32>
    %cst_34 = arith.constant 0.001953125 : f32
    %190 = vector.broadcast %cst_34 : f32 to vector<8x1xf32>
    %191 = arith.mulf %187, %190 : vector<8x1xf32>
    %192 = arith.mulf %189, %189 : vector<8x1xf32>
    %193 = arith.subf %191, %192 : vector<8x1xf32>
    %cst_35 = arith.constant 9.99999974E-6 : f32
    %194 = vector.broadcast %cst_35 : f32 to vector<8x1xf32>
    %195 = arith.addf %193, %194 : vector<8x1xf32>
    %196 = math.rsqrt %195 : vector<8x1xf32>
    %197 = vector.broadcast %104 : vector<1x1xf32> to vector<8x1xf32>
    %198 = arith.mulf %197, %196 : vector<8x1xf32>
    %199 = vector.broadcast %189 : vector<8x1xf32> to vector<8x256xf32>
    %200 = arith.subf %97, %199 : vector<8x256xf32>
    %201 = vector.broadcast %198 : vector<8x1xf32> to vector<8x256xf32>
    %202 = arith.mulf %200, %201 : vector<8x256xf32>
    %203 = vector.extract_strided_slice %3 {offsets = [2, 0], sizes = [1, 1], strides = [1, 1]} : vector<8x1xf32> to vector<1x1xf32>
    %cst_36 = arith.constant dense<0.000000e+00> : vector<8xf32>
    %204 = vector.multi_reduction <add>, %103, %cst_36 [1] : vector<8x256xf32> to vector<8xf32>
    %205 = vector.shape_cast %204 : vector<8xf32> to vector<8x1xf32>
    %206 = vector.extract_strided_slice %4 {offsets = [0, 0], sizes = [8, 1], strides = [1, 1]} : vector<8x8xf32> to vector<8x1xf32>
    %207 = vector.extract_strided_slice %205 {offsets = [0, 0], sizes = [1, 1], strides = [1, 1]} : vector<8x1xf32> to vector<1x1xf32>
    %208 = vector.broadcast %207 : vector<1x1xf32> to vector<8x1xf32>
    %209 = arith.mulf %206, %208 : vector<8x1xf32>
    %210 = vector.extract_strided_slice %4 {offsets = [0, 1], sizes = [8, 1], strides = [1, 1]} : vector<8x8xf32> to vector<8x1xf32>
    %211 = vector.extract_strided_slice %205 {offsets = [1, 0], sizes = [1, 1], strides = [1, 1]} : vector<8x1xf32> to vector<1x1xf32>
    %212 = vector.broadcast %211 : vector<1x1xf32> to vector<8x1xf32>
    %213 = arith.mulf %210, %212 : vector<8x1xf32>
    %214 = arith.addf %209, %213 : vector<8x1xf32>
    %215 = vector.extract_strided_slice %4 {offsets = [0, 2], sizes = [8, 1], strides = [1, 1]} : vector<8x8xf32> to vector<8x1xf32>
    %216 = vector.extract_strided_slice %205 {offsets = [2, 0], sizes = [1, 1], strides = [1, 1]} : vector<8x1xf32> to vector<1x1xf32>
    %217 = vector.broadcast %216 : vector<1x1xf32> to vector<8x1xf32>
    %218 = arith.mulf %215, %217 : vector<8x1xf32>
    %219 = arith.addf %214, %218 : vector<8x1xf32>
    %220 = vector.extract_strided_slice %4 {offsets = [0, 3], sizes = [8, 1], strides = [1, 1]} : vector<8x8xf32> to vector<8x1xf32>
    %221 = vector.extract_strided_slice %205 {offsets = [3, 0], sizes = [1, 1], strides = [1, 1]} : vector<8x1xf32> to vector<1x1xf32>
    %222 = vector.broadcast %221 : vector<1x1xf32> to vector<8x1xf32>
    %223 = arith.mulf %220, %222 : vector<8x1xf32>
    %224 = arith.addf %219, %223 : vector<8x1xf32>
    %225 = vector.extract_strided_slice %4 {offsets = [0, 4], sizes = [8, 1], strides = [1, 1]} : vector<8x8xf32> to vector<8x1xf32>
    %226 = vector.extract_strided_slice %205 {offsets = [4, 0], sizes = [1, 1], strides = [1, 1]} : vector<8x1xf32> to vector<1x1xf32>
    %227 = vector.broadcast %226 : vector<1x1xf32> to vector<8x1xf32>
    %228 = arith.mulf %225, %227 : vector<8x1xf32>
    %229 = arith.addf %224, %228 : vector<8x1xf32>
    %230 = vector.extract_strided_slice %4 {offsets = [0, 5], sizes = [8, 1], strides = [1, 1]} : vector<8x8xf32> to vector<8x1xf32>
    %231 = vector.extract_strided_slice %205 {offsets = [5, 0], sizes = [1, 1], strides = [1, 1]} : vector<8x1xf32> to vector<1x1xf32>
    %232 = vector.broadcast %231 : vector<1x1xf32> to vector<8x1xf32>
    %233 = arith.mulf %230, %232 : vector<8x1xf32>
    %234 = arith.addf %229, %233 : vector<8x1xf32>
    %235 = vector.extract_strided_slice %4 {offsets = [0, 6], sizes = [8, 1], strides = [1, 1]} : vector<8x8xf32> to vector<8x1xf32>
    %236 = vector.extract_strided_slice %205 {offsets = [6, 0], sizes = [1, 1], strides = [1, 1]} : vector<8x1xf32> to vector<1x1xf32>
    %237 = vector.broadcast %236 : vector<1x1xf32> to vector<8x1xf32>
    %238 = arith.mulf %235, %237 : vector<8x1xf32>
    %239 = arith.addf %234, %238 : vector<8x1xf32>
    %240 = vector.extract_strided_slice %4 {offsets = [0, 7], sizes = [8, 1], strides = [1, 1]} : vector<8x8xf32> to vector<8x1xf32>
    %241 = vector.extract_strided_slice %205 {offsets = [7, 0], sizes = [1, 1], strides = [1, 1]} : vector<8x1xf32> to vector<1x1xf32>
    %242 = vector.broadcast %241 : vector<1x1xf32> to vector<8x1xf32>
    %243 = arith.mulf %240, %242 : vector<8x1xf32>
    %244 = arith.addf %239, %243 : vector<8x1xf32>
    %245 = arith.mulf %103, %103 : vector<8x256xf32>
    %cst_37 = arith.constant dense<0.000000e+00> : vector<8xf32>
    %246 = vector.multi_reduction <add>, %245, %cst_37 [1] : vector<8x256xf32> to vector<8xf32>
    %247 = vector.shape_cast %246 : vector<8xf32> to vector<8x1xf32>
    %248 = vector.extract_strided_slice %4 {offsets = [0, 0], sizes = [8, 1], strides = [1, 1]} : vector<8x8xf32> to vector<8x1xf32>
    %249 = vector.extract_strided_slice %247 {offsets = [0, 0], sizes = [1, 1], strides = [1, 1]} : vector<8x1xf32> to vector<1x1xf32>
    %250 = vector.broadcast %249 : vector<1x1xf32> to vector<8x1xf32>
    %251 = arith.mulf %248, %250 : vector<8x1xf32>
    %252 = vector.extract_strided_slice %4 {offsets = [0, 1], sizes = [8, 1], strides = [1, 1]} : vector<8x8xf32> to vector<8x1xf32>
    %253 = vector.extract_strided_slice %247 {offsets = [1, 0], sizes = [1, 1], strides = [1, 1]} : vector<8x1xf32> to vector<1x1xf32>
    %254 = vector.broadcast %253 : vector<1x1xf32> to vector<8x1xf32>
    %255 = arith.mulf %252, %254 : vector<8x1xf32>
    %256 = arith.addf %251, %255 : vector<8x1xf32>
    %257 = vector.extract_strided_slice %4 {offsets = [0, 2], sizes = [8, 1], strides = [1, 1]} : vector<8x8xf32> to vector<8x1xf32>
    %258 = vector.extract_strided_slice %247 {offsets = [2, 0], sizes = [1, 1], strides = [1, 1]} : vector<8x1xf32> to vector<1x1xf32>
    %259 = vector.broadcast %258 : vector<1x1xf32> to vector<8x1xf32>
    %260 = arith.mulf %257, %259 : vector<8x1xf32>
    %261 = arith.addf %256, %260 : vector<8x1xf32>
    %262 = vector.extract_strided_slice %4 {offsets = [0, 3], sizes = [8, 1], strides = [1, 1]} : vector<8x8xf32> to vector<8x1xf32>
    %263 = vector.extract_strided_slice %247 {offsets = [3, 0], sizes = [1, 1], strides = [1, 1]} : vector<8x1xf32> to vector<1x1xf32>
    %264 = vector.broadcast %263 : vector<1x1xf32> to vector<8x1xf32>
    %265 = arith.mulf %262, %264 : vector<8x1xf32>
    %266 = arith.addf %261, %265 : vector<8x1xf32>
    %267 = vector.extract_strided_slice %4 {offsets = [0, 4], sizes = [8, 1], strides = [1, 1]} : vector<8x8xf32> to vector<8x1xf32>
    %268 = vector.extract_strided_slice %247 {offsets = [4, 0], sizes = [1, 1], strides = [1, 1]} : vector<8x1xf32> to vector<1x1xf32>
    %269 = vector.broadcast %268 : vector<1x1xf32> to vector<8x1xf32>
    %270 = arith.mulf %267, %269 : vector<8x1xf32>
    %271 = arith.addf %266, %270 : vector<8x1xf32>
    %272 = vector.extract_strided_slice %4 {offsets = [0, 5], sizes = [8, 1], strides = [1, 1]} : vector<8x8xf32> to vector<8x1xf32>
    %273 = vector.extract_strided_slice %247 {offsets = [5, 0], sizes = [1, 1], strides = [1, 1]} : vector<8x1xf32> to vector<1x1xf32>
    %274 = vector.broadcast %273 : vector<1x1xf32> to vector<8x1xf32>
    %275 = arith.mulf %272, %274 : vector<8x1xf32>
    %276 = arith.addf %271, %275 : vector<8x1xf32>
    %277 = vector.extract_strided_slice %4 {offsets = [0, 6], sizes = [8, 1], strides = [1, 1]} : vector<8x8xf32> to vector<8x1xf32>
    %278 = vector.extract_strided_slice %247 {offsets = [6, 0], sizes = [1, 1], strides = [1, 1]} : vector<8x1xf32> to vector<1x1xf32>
    %279 = vector.broadcast %278 : vector<1x1xf32> to vector<8x1xf32>
    %280 = arith.mulf %277, %279 : vector<8x1xf32>
    %281 = arith.addf %276, %280 : vector<8x1xf32>
    %282 = vector.extract_strided_slice %4 {offsets = [0, 7], sizes = [8, 1], strides = [1, 1]} : vector<8x8xf32> to vector<8x1xf32>
    %283 = vector.extract_strided_slice %247 {offsets = [7, 0], sizes = [1, 1], strides = [1, 1]} : vector<8x1xf32> to vector<1x1xf32>
    %284 = vector.broadcast %283 : vector<1x1xf32> to vector<8x1xf32>
    %285 = arith.mulf %282, %284 : vector<8x1xf32>
    %286 = arith.addf %281, %285 : vector<8x1xf32>
    %cst_38 = arith.constant 0.001953125 : f32
    %287 = vector.broadcast %cst_38 : f32 to vector<8x1xf32>
    %288 = arith.mulf %244, %287 : vector<8x1xf32>
    %cst_39 = arith.constant 0.001953125 : f32
    %289 = vector.broadcast %cst_39 : f32 to vector<8x1xf32>
    %290 = arith.mulf %286, %289 : vector<8x1xf32>
    %291 = arith.mulf %288, %288 : vector<8x1xf32>
    %292 = arith.subf %290, %291 : vector<8x1xf32>
    %cst_40 = arith.constant 9.99999974E-6 : f32
    %293 = vector.broadcast %cst_40 : f32 to vector<8x1xf32>
    %294 = arith.addf %292, %293 : vector<8x1xf32>
    %295 = math.rsqrt %294 : vector<8x1xf32>
    %296 = vector.broadcast %203 : vector<1x1xf32> to vector<8x1xf32>
    %297 = arith.mulf %296, %295 : vector<8x1xf32>
    %298 = vector.broadcast %288 : vector<8x1xf32> to vector<8x256xf32>
    %299 = arith.subf %103, %298 : vector<8x256xf32>
    %300 = vector.broadcast %297 : vector<8x1xf32> to vector<8x256xf32>
    %301 = arith.mulf %299, %300 : vector<8x256xf32>
    %cst_41 = arith.constant 0.000000e+00 : f32
    %302 = vector.broadcast %cst_41 : f32 to vector<8x256xf32>
    %303 = arith.maximumf %1, %302 : vector<8x256xf32>
    %c0_42 = arith.constant 0 : index
    %c0_43 = arith.constant 0 : index
    %c0_44 = arith.constant 0 : index
    %304 = vector.load %arg5[%c0_42, %c0_43, %c0_44] : memref<1x8x9xf32, #tpu.memory_space<vmem>>, vector<1x8x9xf32>
    %305 = vector.shape_cast %304 : vector<1x8x9xf32> to vector<8x9xf32>
    %c0_45 = arith.constant 0 : index
    %c0_46 = arith.constant 0 : index
    %c0_47 = arith.constant 0 : index
    %306 = vector.load %arg9[%c0_45, %c0_46, %c0_47] : memref<1x8x25xf32, #tpu.memory_space<vmem>>, vector<1x8x25xf32>
    %307 = vector.shape_cast %306 : vector<1x8x25xf32> to vector<8x25xf32>
    %c0_48 = arith.constant 0 : index
    %c0_49 = arith.constant 0 : index
    %c0_50 = arith.constant 0 : index
    %308 = vector.load %arg13[%c0_48, %c0_49, %c0_50] : memref<1x8x9xf32, #tpu.memory_space<vmem>>, vector<1x8x9xf32>
    %309 = vector.shape_cast %308 : vector<1x8x9xf32> to vector<8x9xf32>
    %c0_51 = arith.constant 0 : index
    %c0_52 = arith.constant 0 : index
    %c0_53 = arith.constant 0 : index
    %310 = vector.load %arg15[%c0_51, %c0_52, %c0_53] : memref<1x8x25xf32, #tpu.memory_space<vmem>>, vector<1x8x25xf32>
    %311 = vector.shape_cast %310 : vector<1x8x25xf32> to vector<8x25xf32>
    %312 = vector.extract_strided_slice %305 {offsets = [0, 4], sizes = [8, 1], strides = [1, 1]} : vector<8x9xf32> to vector<8x1xf32>
    %313 = vector.broadcast %312 : vector<8x1xf32> to vector<8x256xf32>
    %314 = arith.mulf %303, %313 : vector<8x256xf32>
    %315 = vector.extract_strided_slice %307 {offsets = [0, 12], sizes = [8, 1], strides = [1, 1]} : vector<8x25xf32> to vector<8x1xf32>
    %316 = vector.broadcast %315 : vector<8x1xf32> to vector<8x256xf32>
    %317 = arith.mulf %303, %316 : vector<8x256xf32>
    %318 = vector.extract_strided_slice %309 {offsets = [0, 4], sizes = [8, 1], strides = [1, 1]} : vector<8x9xf32> to vector<8x1xf32>
    %319 = vector.broadcast %318 : vector<8x1xf32> to vector<8x256xf32>
    %320 = arith.mulf %303, %319 : vector<8x256xf32>
    %321 = vector.extract_strided_slice %311 {offsets = [0, 12], sizes = [8, 1], strides = [1, 1]} : vector<8x25xf32> to vector<8x1xf32>
    %322 = vector.broadcast %321 : vector<8x1xf32> to vector<8x256xf32>
    %323 = arith.mulf %303, %322 : vector<8x256xf32>
    %c34_i32 = arith.constant 34 : i32
    %324 = tpu.dynamic_rotate %303 by %c34_i32 dim 1 : vector<8x256xf32>, i32 -> vector<8x256xf32>
    %c6 = arith.constant 6 : index
    %c0_54 = arith.constant 0 : index
    %325 = vector.load %arg2[%c6, %c0_54] : memref<41x256xf32, #tpu.memory_space<vmem>>, vector<1x256xf32>
    %326 = vector.broadcast %325 : vector<1x256xf32> to vector<8x256xf32>
    %327 = arith.mulf %324, %326 : vector<8x256xf32>
    %328 = vector.extract_strided_slice %307 {offsets = [0, 0], sizes = [8, 1], strides = [1, 1]} : vector<8x25xf32> to vector<8x1xf32>
    %329 = vector.broadcast %328 : vector<8x1xf32> to vector<8x256xf32>
    %330 = arith.mulf %327, %329 : vector<8x256xf32>
    %331 = arith.addf %317, %330 : vector<8x256xf32>
    %332 = vector.extract_strided_slice %309 {offsets = [0, 0], sizes = [8, 1], strides = [1, 1]} : vector<8x9xf32> to vector<8x1xf32>
    %333 = vector.broadcast %332 : vector<8x1xf32> to vector<8x256xf32>
    %334 = arith.mulf %327, %333 : vector<8x256xf32>
    %335 = arith.addf %320, %334 : vector<8x256xf32>
    %336 = vector.extract_strided_slice %311 {offsets = [0, 6], sizes = [8, 1], strides = [1, 1]} : vector<8x25xf32> to vector<8x1xf32>
    %337 = vector.broadcast %336 : vector<8x1xf32> to vector<8x256xf32>
    %338 = arith.mulf %327, %337 : vector<8x256xf32>
    %339 = arith.addf %323, %338 : vector<8x256xf32>
    %c33_i32 = arith.constant 33 : i32
    %340 = tpu.dynamic_rotate %303 by %c33_i32 dim 1 : vector<8x256xf32>, i32 -> vector<8x256xf32>
    %c7 = arith.constant 7 : index
    %c0_55 = arith.constant 0 : index
    %341 = vector.load %arg2[%c7, %c0_55] : memref<41x256xf32, #tpu.memory_space<vmem>>, vector<1x256xf32>
    %342 = vector.broadcast %341 : vector<1x256xf32> to vector<8x256xf32>
    %343 = arith.mulf %340, %342 : vector<8x256xf32>
    %344 = vector.extract_strided_slice %307 {offsets = [0, 1], sizes = [8, 1], strides = [1, 1]} : vector<8x25xf32> to vector<8x1xf32>
    %345 = vector.broadcast %344 : vector<8x1xf32> to vector<8x256xf32>
    %346 = arith.mulf %343, %345 : vector<8x256xf32>
    %347 = arith.addf %331, %346 : vector<8x256xf32>
    %c32_i32 = arith.constant 32 : i32
    %348 = tpu.dynamic_rotate %303 by %c32_i32 dim 1 : vector<8x256xf32>, i32 -> vector<8x256xf32>
    %c8 = arith.constant 8 : index
    %c0_56 = arith.constant 0 : index
    %349 = vector.load %arg2[%c8, %c0_56] : memref<41x256xf32, #tpu.memory_space<vmem>>, vector<1x256xf32>
    %350 = vector.broadcast %349 : vector<1x256xf32> to vector<8x256xf32>
    %351 = arith.mulf %348, %350 : vector<8x256xf32>
    %352 = vector.extract_strided_slice %307 {offsets = [0, 2], sizes = [8, 1], strides = [1, 1]} : vector<8x25xf32> to vector<8x1xf32>
    %353 = vector.broadcast %352 : vector<8x1xf32> to vector<8x256xf32>
    %354 = arith.mulf %351, %353 : vector<8x256xf32>
    %355 = arith.addf %347, %354 : vector<8x256xf32>
    %356 = vector.extract_strided_slice %309 {offsets = [0, 1], sizes = [8, 1], strides = [1, 1]} : vector<8x9xf32> to vector<8x1xf32>
    %357 = vector.broadcast %356 : vector<8x1xf32> to vector<8x256xf32>
    %358 = arith.mulf %351, %357 : vector<8x256xf32>
    %359 = arith.addf %335, %358 : vector<8x256xf32>
    %360 = vector.extract_strided_slice %311 {offsets = [0, 7], sizes = [8, 1], strides = [1, 1]} : vector<8x25xf32> to vector<8x1xf32>
    %361 = vector.broadcast %360 : vector<8x1xf32> to vector<8x256xf32>
    %362 = arith.mulf %351, %361 : vector<8x256xf32>
    %363 = arith.addf %339, %362 : vector<8x256xf32>
    %c31_i32 = arith.constant 31 : i32
    %364 = tpu.dynamic_rotate %303 by %c31_i32 dim 1 : vector<8x256xf32>, i32 -> vector<8x256xf32>
    %c9 = arith.constant 9 : index
    %c0_57 = arith.constant 0 : index
    %365 = vector.load %arg2[%c9, %c0_57] : memref<41x256xf32, #tpu.memory_space<vmem>>, vector<1x256xf32>
    %366 = vector.broadcast %365 : vector<1x256xf32> to vector<8x256xf32>
    %367 = arith.mulf %364, %366 : vector<8x256xf32>
    %368 = vector.extract_strided_slice %307 {offsets = [0, 3], sizes = [8, 1], strides = [1, 1]} : vector<8x25xf32> to vector<8x1xf32>
    %369 = vector.broadcast %368 : vector<8x1xf32> to vector<8x256xf32>
    %370 = arith.mulf %367, %369 : vector<8x256xf32>
    %371 = arith.addf %355, %370 : vector<8x256xf32>
    %c30_i32 = arith.constant 30 : i32
    %372 = tpu.dynamic_rotate %303 by %c30_i32 dim 1 : vector<8x256xf32>, i32 -> vector<8x256xf32>
    %c10 = arith.constant 10 : index
    %c0_58 = arith.constant 0 : index
    %373 = vector.load %arg2[%c10, %c0_58] : memref<41x256xf32, #tpu.memory_space<vmem>>, vector<1x256xf32>
    %374 = vector.broadcast %373 : vector<1x256xf32> to vector<8x256xf32>
    %375 = arith.mulf %372, %374 : vector<8x256xf32>
    %376 = vector.extract_strided_slice %307 {offsets = [0, 4], sizes = [8, 1], strides = [1, 1]} : vector<8x25xf32> to vector<8x1xf32>
    %377 = vector.broadcast %376 : vector<8x1xf32> to vector<8x256xf32>
    %378 = arith.mulf %375, %377 : vector<8x256xf32>
    %379 = arith.addf %371, %378 : vector<8x256xf32>
    %380 = vector.extract_strided_slice %309 {offsets = [0, 2], sizes = [8, 1], strides = [1, 1]} : vector<8x9xf32> to vector<8x1xf32>
    %381 = vector.broadcast %380 : vector<8x1xf32> to vector<8x256xf32>
    %382 = arith.mulf %375, %381 : vector<8x256xf32>
    %383 = arith.addf %359, %382 : vector<8x256xf32>
    %384 = vector.extract_strided_slice %311 {offsets = [0, 8], sizes = [8, 1], strides = [1, 1]} : vector<8x25xf32> to vector<8x1xf32>
    %385 = vector.broadcast %384 : vector<8x1xf32> to vector<8x256xf32>
    %386 = arith.mulf %375, %385 : vector<8x256xf32>
    %387 = arith.addf %363, %386 : vector<8x256xf32>
    %c18_i32 = arith.constant 18 : i32
    %388 = tpu.dynamic_rotate %303 by %c18_i32 dim 1 : vector<8x256xf32>, i32 -> vector<8x256xf32>
    %c12 = arith.constant 12 : index
    %c0_59 = arith.constant 0 : index
    %389 = vector.load %arg2[%c12, %c0_59] : memref<41x256xf32, #tpu.memory_space<vmem>>, vector<1x256xf32>
    %390 = vector.broadcast %389 : vector<1x256xf32> to vector<8x256xf32>
    %391 = arith.mulf %388, %390 : vector<8x256xf32>
    %392 = vector.extract_strided_slice %307 {offsets = [0, 5], sizes = [8, 1], strides = [1, 1]} : vector<8x25xf32> to vector<8x1xf32>
    %393 = vector.broadcast %392 : vector<8x1xf32> to vector<8x256xf32>
    %394 = arith.mulf %391, %393 : vector<8x256xf32>
    %395 = arith.addf %379, %394 : vector<8x256xf32>
    %c17_i32_60 = arith.constant 17 : i32
    %396 = tpu.dynamic_rotate %303 by %c17_i32_60 dim 1 : vector<8x256xf32>, i32 -> vector<8x256xf32>
    %c13_61 = arith.constant 13 : index
    %c0_62 = arith.constant 0 : index
    %397 = vector.load %arg2[%c13_61, %c0_62] : memref<41x256xf32, #tpu.memory_space<vmem>>, vector<1x256xf32>
    %398 = vector.broadcast %397 : vector<1x256xf32> to vector<8x256xf32>
    %399 = arith.mulf %396, %398 : vector<8x256xf32>
    %400 = vector.extract_strided_slice %305 {offsets = [0, 0], sizes = [8, 1], strides = [1, 1]} : vector<8x9xf32> to vector<8x1xf32>
    %401 = vector.broadcast %400 : vector<8x1xf32> to vector<8x256xf32>
    %402 = arith.mulf %399, %401 : vector<8x256xf32>
    %403 = arith.addf %314, %402 : vector<8x256xf32>
    %404 = vector.extract_strided_slice %307 {offsets = [0, 6], sizes = [8, 1], strides = [1, 1]} : vector<8x25xf32> to vector<8x1xf32>
    %405 = vector.broadcast %404 : vector<8x1xf32> to vector<8x256xf32>
    %406 = arith.mulf %399, %405 : vector<8x256xf32>
    %407 = arith.addf %395, %406 : vector<8x256xf32>
    %c16_i32_63 = arith.constant 16 : i32
    %408 = tpu.dynamic_rotate %303 by %c16_i32_63 dim 1 : vector<8x256xf32>, i32 -> vector<8x256xf32>
    %c14_64 = arith.constant 14 : index
    %c0_65 = arith.constant 0 : index
    %409 = vector.load %arg2[%c14_64, %c0_65] : memref<41x256xf32, #tpu.memory_space<vmem>>, vector<1x256xf32>
    %410 = vector.broadcast %409 : vector<1x256xf32> to vector<8x256xf32>
    %411 = arith.mulf %408, %410 : vector<8x256xf32>
    %412 = vector.extract_strided_slice %305 {offsets = [0, 1], sizes = [8, 1], strides = [1, 1]} : vector<8x9xf32> to vector<8x1xf32>
    %413 = vector.broadcast %412 : vector<8x1xf32> to vector<8x256xf32>
    %414 = arith.mulf %411, %413 : vector<8x256xf32>
    %415 = arith.addf %403, %414 : vector<8x256xf32>
    %416 = vector.extract_strided_slice %307 {offsets = [0, 7], sizes = [8, 1], strides = [1, 1]} : vector<8x25xf32> to vector<8x1xf32>
    %417 = vector.broadcast %416 : vector<8x1xf32> to vector<8x256xf32>
    %418 = arith.mulf %411, %417 : vector<8x256xf32>
    %419 = arith.addf %407, %418 : vector<8x256xf32>
    %c15_i32_66 = arith.constant 15 : i32
    %420 = tpu.dynamic_rotate %303 by %c15_i32_66 dim 1 : vector<8x256xf32>, i32 -> vector<8x256xf32>
    %c15_67 = arith.constant 15 : index
    %c0_68 = arith.constant 0 : index
    %421 = vector.load %arg2[%c15_67, %c0_68] : memref<41x256xf32, #tpu.memory_space<vmem>>, vector<1x256xf32>
    %422 = vector.broadcast %421 : vector<1x256xf32> to vector<8x256xf32>
    %423 = arith.mulf %420, %422 : vector<8x256xf32>
    %424 = vector.extract_strided_slice %305 {offsets = [0, 2], sizes = [8, 1], strides = [1, 1]} : vector<8x9xf32> to vector<8x1xf32>
    %425 = vector.broadcast %424 : vector<8x1xf32> to vector<8x256xf32>
    %426 = arith.mulf %423, %425 : vector<8x256xf32>
    %427 = arith.addf %415, %426 : vector<8x256xf32>
    %428 = vector.extract_strided_slice %307 {offsets = [0, 8], sizes = [8, 1], strides = [1, 1]} : vector<8x25xf32> to vector<8x1xf32>
    %429 = vector.broadcast %428 : vector<8x1xf32> to vector<8x256xf32>
    %430 = arith.mulf %423, %429 : vector<8x256xf32>
    %431 = arith.addf %419, %430 : vector<8x256xf32>
    %c14_i32 = arith.constant 14 : i32
    %432 = tpu.dynamic_rotate %303 by %c14_i32 dim 1 : vector<8x256xf32>, i32 -> vector<8x256xf32>
    %c16 = arith.constant 16 : index
    %c0_69 = arith.constant 0 : index
    %433 = vector.load %arg2[%c16, %c0_69] : memref<41x256xf32, #tpu.memory_space<vmem>>, vector<1x256xf32>
    %434 = vector.broadcast %433 : vector<1x256xf32> to vector<8x256xf32>
    %435 = arith.mulf %432, %434 : vector<8x256xf32>
    %436 = vector.extract_strided_slice %307 {offsets = [0, 9], sizes = [8, 1], strides = [1, 1]} : vector<8x25xf32> to vector<8x1xf32>
    %437 = vector.broadcast %436 : vector<8x1xf32> to vector<8x256xf32>
    %438 = arith.mulf %435, %437 : vector<8x256xf32>
    %439 = arith.addf %431, %438 : vector<8x256xf32>
    %c2_i32 = arith.constant 2 : i32
    %440 = tpu.dynamic_rotate %303 by %c2_i32 dim 1 : vector<8x256xf32>, i32 -> vector<8x256xf32>
    %c18 = arith.constant 18 : index
    %c0_70 = arith.constant 0 : index
    %441 = vector.load %arg2[%c18, %c0_70] : memref<41x256xf32, #tpu.memory_space<vmem>>, vector<1x256xf32>
    %442 = vector.broadcast %441 : vector<1x256xf32> to vector<8x256xf32>
    %443 = arith.mulf %440, %442 : vector<8x256xf32>
    %444 = vector.extract_strided_slice %307 {offsets = [0, 10], sizes = [8, 1], strides = [1, 1]} : vector<8x25xf32> to vector<8x1xf32>
    %445 = vector.broadcast %444 : vector<8x1xf32> to vector<8x256xf32>
    %446 = arith.mulf %443, %445 : vector<8x256xf32>
    %447 = arith.addf %439, %446 : vector<8x256xf32>
    %448 = vector.extract_strided_slice %309 {offsets = [0, 3], sizes = [8, 1], strides = [1, 1]} : vector<8x9xf32> to vector<8x1xf32>
    %449 = vector.broadcast %448 : vector<8x1xf32> to vector<8x256xf32>
    %450 = arith.mulf %443, %449 : vector<8x256xf32>
    %451 = arith.addf %383, %450 : vector<8x256xf32>
    %452 = vector.extract_strided_slice %311 {offsets = [0, 11], sizes = [8, 1], strides = [1, 1]} : vector<8x25xf32> to vector<8x1xf32>
    %453 = vector.broadcast %452 : vector<8x1xf32> to vector<8x256xf32>
    %454 = arith.mulf %443, %453 : vector<8x256xf32>
    %455 = arith.addf %387, %454 : vector<8x256xf32>
    %c1_i32_71 = arith.constant 1 : i32
    %456 = tpu.dynamic_rotate %303 by %c1_i32_71 dim 1 : vector<8x256xf32>, i32 -> vector<8x256xf32>
    %c19_72 = arith.constant 19 : index
    %c0_73 = arith.constant 0 : index
    %457 = vector.load %arg2[%c19_72, %c0_73] : memref<41x256xf32, #tpu.memory_space<vmem>>, vector<1x256xf32>
    %458 = vector.broadcast %457 : vector<1x256xf32> to vector<8x256xf32>
    %459 = arith.mulf %456, %458 : vector<8x256xf32>
    %460 = vector.extract_strided_slice %305 {offsets = [0, 3], sizes = [8, 1], strides = [1, 1]} : vector<8x9xf32> to vector<8x1xf32>
    %461 = vector.broadcast %460 : vector<8x1xf32> to vector<8x256xf32>
    %462 = arith.mulf %459, %461 : vector<8x256xf32>
    %463 = arith.addf %427, %462 : vector<8x256xf32>
    %464 = vector.extract_strided_slice %307 {offsets = [0, 11], sizes = [8, 1], strides = [1, 1]} : vector<8x25xf32> to vector<8x1xf32>
    %465 = vector.broadcast %464 : vector<8x1xf32> to vector<8x256xf32>
    %466 = arith.mulf %459, %465 : vector<8x256xf32>
    %467 = arith.addf %447, %466 : vector<8x256xf32>
    %c255_i32_74 = arith.constant 255 : i32
    %468 = tpu.dynamic_rotate %303 by %c255_i32_74 dim 1 : vector<8x256xf32>, i32 -> vector<8x256xf32>
    %c20_75 = arith.constant 20 : index
    %c0_76 = arith.constant 0 : index
    %469 = vector.load %arg2[%c20_75, %c0_76] : memref<41x256xf32, #tpu.memory_space<vmem>>, vector<1x256xf32>
    %470 = vector.broadcast %469 : vector<1x256xf32> to vector<8x256xf32>
    %471 = arith.mulf %468, %470 : vector<8x256xf32>
    %472 = vector.extract_strided_slice %305 {offsets = [0, 5], sizes = [8, 1], strides = [1, 1]} : vector<8x9xf32> to vector<8x1xf32>
    %473 = vector.broadcast %472 : vector<8x1xf32> to vector<8x256xf32>
    %474 = arith.mulf %471, %473 : vector<8x256xf32>
    %475 = arith.addf %463, %474 : vector<8x256xf32>
    %476 = vector.extract_strided_slice %307 {offsets = [0, 13], sizes = [8, 1], strides = [1, 1]} : vector<8x25xf32> to vector<8x1xf32>
    %477 = vector.broadcast %476 : vector<8x1xf32> to vector<8x256xf32>
    %478 = arith.mulf %471, %477 : vector<8x256xf32>
    %479 = arith.addf %467, %478 : vector<8x256xf32>
    %c254_i32 = arith.constant 254 : i32
    %480 = tpu.dynamic_rotate %303 by %c254_i32 dim 1 : vector<8x256xf32>, i32 -> vector<8x256xf32>
    %c21 = arith.constant 21 : index
    %c0_77 = arith.constant 0 : index
    %481 = vector.load %arg2[%c21, %c0_77] : memref<41x256xf32, #tpu.memory_space<vmem>>, vector<1x256xf32>
    %482 = vector.broadcast %481 : vector<1x256xf32> to vector<8x256xf32>
    %483 = arith.mulf %480, %482 : vector<8x256xf32>
    %484 = vector.extract_strided_slice %307 {offsets = [0, 14], sizes = [8, 1], strides = [1, 1]} : vector<8x25xf32> to vector<8x1xf32>
    %485 = vector.broadcast %484 : vector<8x1xf32> to vector<8x256xf32>
    %486 = arith.mulf %483, %485 : vector<8x256xf32>
    %487 = arith.addf %479, %486 : vector<8x256xf32>
    %488 = vector.extract_strided_slice %309 {offsets = [0, 5], sizes = [8, 1], strides = [1, 1]} : vector<8x9xf32> to vector<8x1xf32>
    %489 = vector.broadcast %488 : vector<8x1xf32> to vector<8x256xf32>
    %490 = arith.mulf %483, %489 : vector<8x256xf32>
    %491 = arith.addf %451, %490 : vector<8x256xf32>
    %492 = vector.extract_strided_slice %311 {offsets = [0, 13], sizes = [8, 1], strides = [1, 1]} : vector<8x25xf32> to vector<8x1xf32>
    %493 = vector.broadcast %492 : vector<8x1xf32> to vector<8x256xf32>
    %494 = arith.mulf %483, %493 : vector<8x256xf32>
    %495 = arith.addf %455, %494 : vector<8x256xf32>
    %c242_i32 = arith.constant 242 : i32
    %496 = tpu.dynamic_rotate %303 by %c242_i32 dim 1 : vector<8x256xf32>, i32 -> vector<8x256xf32>
    %c23 = arith.constant 23 : index
    %c0_78 = arith.constant 0 : index
    %497 = vector.load %arg2[%c23, %c0_78] : memref<41x256xf32, #tpu.memory_space<vmem>>, vector<1x256xf32>
    %498 = vector.broadcast %497 : vector<1x256xf32> to vector<8x256xf32>
    %499 = arith.mulf %496, %498 : vector<8x256xf32>
    %500 = vector.extract_strided_slice %307 {offsets = [0, 15], sizes = [8, 1], strides = [1, 1]} : vector<8x25xf32> to vector<8x1xf32>
    %501 = vector.broadcast %500 : vector<8x1xf32> to vector<8x256xf32>
    %502 = arith.mulf %499, %501 : vector<8x256xf32>
    %503 = arith.addf %487, %502 : vector<8x256xf32>
    %c241_i32_79 = arith.constant 241 : i32
    %504 = tpu.dynamic_rotate %303 by %c241_i32_79 dim 1 : vector<8x256xf32>, i32 -> vector<8x256xf32>
    %c24_80 = arith.constant 24 : index
    %c0_81 = arith.constant 0 : index
    %505 = vector.load %arg2[%c24_80, %c0_81] : memref<41x256xf32, #tpu.memory_space<vmem>>, vector<1x256xf32>
    %506 = vector.broadcast %505 : vector<1x256xf32> to vector<8x256xf32>
    %507 = arith.mulf %504, %506 : vector<8x256xf32>
    %508 = vector.extract_strided_slice %305 {offsets = [0, 6], sizes = [8, 1], strides = [1, 1]} : vector<8x9xf32> to vector<8x1xf32>
    %509 = vector.broadcast %508 : vector<8x1xf32> to vector<8x256xf32>
    %510 = arith.mulf %507, %509 : vector<8x256xf32>
    %511 = arith.addf %475, %510 : vector<8x256xf32>
    %512 = vector.extract_strided_slice %307 {offsets = [0, 16], sizes = [8, 1], strides = [1, 1]} : vector<8x25xf32> to vector<8x1xf32>
    %513 = vector.broadcast %512 : vector<8x1xf32> to vector<8x256xf32>
    %514 = arith.mulf %507, %513 : vector<8x256xf32>
    %515 = arith.addf %503, %514 : vector<8x256xf32>
    %c240_i32_82 = arith.constant 240 : i32
    %516 = tpu.dynamic_rotate %303 by %c240_i32_82 dim 1 : vector<8x256xf32>, i32 -> vector<8x256xf32>
    %c25_83 = arith.constant 25 : index
    %c0_84 = arith.constant 0 : index
    %517 = vector.load %arg2[%c25_83, %c0_84] : memref<41x256xf32, #tpu.memory_space<vmem>>, vector<1x256xf32>
    %518 = vector.broadcast %517 : vector<1x256xf32> to vector<8x256xf32>
    %519 = arith.mulf %516, %518 : vector<8x256xf32>
    %520 = vector.extract_strided_slice %305 {offsets = [0, 7], sizes = [8, 1], strides = [1, 1]} : vector<8x9xf32> to vector<8x1xf32>
    %521 = vector.broadcast %520 : vector<8x1xf32> to vector<8x256xf32>
    %522 = arith.mulf %519, %521 : vector<8x256xf32>
    %523 = arith.addf %511, %522 : vector<8x256xf32>
    %524 = vector.extract_strided_slice %307 {offsets = [0, 17], sizes = [8, 1], strides = [1, 1]} : vector<8x25xf32> to vector<8x1xf32>
    %525 = vector.broadcast %524 : vector<8x1xf32> to vector<8x256xf32>
    %526 = arith.mulf %519, %525 : vector<8x256xf32>
    %527 = arith.addf %515, %526 : vector<8x256xf32>
    %c239_i32_85 = arith.constant 239 : i32
    %528 = tpu.dynamic_rotate %303 by %c239_i32_85 dim 1 : vector<8x256xf32>, i32 -> vector<8x256xf32>
    %c26_86 = arith.constant 26 : index
    %c0_87 = arith.constant 0 : index
    %529 = vector.load %arg2[%c26_86, %c0_87] : memref<41x256xf32, #tpu.memory_space<vmem>>, vector<1x256xf32>
    %530 = vector.broadcast %529 : vector<1x256xf32> to vector<8x256xf32>
    %531 = arith.mulf %528, %530 : vector<8x256xf32>
    %532 = vector.extract_strided_slice %305 {offsets = [0, 8], sizes = [8, 1], strides = [1, 1]} : vector<8x9xf32> to vector<8x1xf32>
    %533 = vector.broadcast %532 : vector<8x1xf32> to vector<8x256xf32>
    %534 = arith.mulf %531, %533 : vector<8x256xf32>
    %535 = arith.addf %523, %534 : vector<8x256xf32>
    %536 = vector.extract_strided_slice %307 {offsets = [0, 18], sizes = [8, 1], strides = [1, 1]} : vector<8x25xf32> to vector<8x1xf32>
    %537 = vector.broadcast %536 : vector<8x1xf32> to vector<8x256xf32>
    %538 = arith.mulf %531, %537 : vector<8x256xf32>
    %539 = arith.addf %527, %538 : vector<8x256xf32>
    %c238_i32 = arith.constant 238 : i32
    %540 = tpu.dynamic_rotate %303 by %c238_i32 dim 1 : vector<8x256xf32>, i32 -> vector<8x256xf32>
    %c27 = arith.constant 27 : index
    %c0_88 = arith.constant 0 : index
    %541 = vector.load %arg2[%c27, %c0_88] : memref<41x256xf32, #tpu.memory_space<vmem>>, vector<1x256xf32>
    %542 = vector.broadcast %541 : vector<1x256xf32> to vector<8x256xf32>
    %543 = arith.mulf %540, %542 : vector<8x256xf32>
    %544 = vector.extract_strided_slice %307 {offsets = [0, 19], sizes = [8, 1], strides = [1, 1]} : vector<8x25xf32> to vector<8x1xf32>
    %545 = vector.broadcast %544 : vector<8x1xf32> to vector<8x256xf32>
    %546 = arith.mulf %543, %545 : vector<8x256xf32>
    %547 = arith.addf %539, %546 : vector<8x256xf32>
    %c226_i32 = arith.constant 226 : i32
    %548 = tpu.dynamic_rotate %303 by %c226_i32 dim 1 : vector<8x256xf32>, i32 -> vector<8x256xf32>
    %c29 = arith.constant 29 : index
    %c0_89 = arith.constant 0 : index
    %549 = vector.load %arg2[%c29, %c0_89] : memref<41x256xf32, #tpu.memory_space<vmem>>, vector<1x256xf32>
    %550 = vector.broadcast %549 : vector<1x256xf32> to vector<8x256xf32>
    %551 = arith.mulf %548, %550 : vector<8x256xf32>
    %552 = vector.extract_strided_slice %307 {offsets = [0, 20], sizes = [8, 1], strides = [1, 1]} : vector<8x25xf32> to vector<8x1xf32>
    %553 = vector.broadcast %552 : vector<8x1xf32> to vector<8x256xf32>
    %554 = arith.mulf %551, %553 : vector<8x256xf32>
    %555 = arith.addf %547, %554 : vector<8x256xf32>
    %556 = vector.extract_strided_slice %309 {offsets = [0, 6], sizes = [8, 1], strides = [1, 1]} : vector<8x9xf32> to vector<8x1xf32>
    %557 = vector.broadcast %556 : vector<8x1xf32> to vector<8x256xf32>
    %558 = arith.mulf %551, %557 : vector<8x256xf32>
    %559 = arith.addf %491, %558 : vector<8x256xf32>
    %560 = vector.extract_strided_slice %311 {offsets = [0, 16], sizes = [8, 1], strides = [1, 1]} : vector<8x25xf32> to vector<8x1xf32>
    %561 = vector.broadcast %560 : vector<8x1xf32> to vector<8x256xf32>
    %562 = arith.mulf %551, %561 : vector<8x256xf32>
    %563 = arith.addf %495, %562 : vector<8x256xf32>
    %c225_i32 = arith.constant 225 : i32
    %564 = tpu.dynamic_rotate %303 by %c225_i32 dim 1 : vector<8x256xf32>, i32 -> vector<8x256xf32>
    %c30 = arith.constant 30 : index
    %c0_90 = arith.constant 0 : index
    %565 = vector.load %arg2[%c30, %c0_90] : memref<41x256xf32, #tpu.memory_space<vmem>>, vector<1x256xf32>
    %566 = vector.broadcast %565 : vector<1x256xf32> to vector<8x256xf32>
    %567 = arith.mulf %564, %566 : vector<8x256xf32>
    %568 = vector.extract_strided_slice %307 {offsets = [0, 21], sizes = [8, 1], strides = [1, 1]} : vector<8x25xf32> to vector<8x1xf32>
    %569 = vector.broadcast %568 : vector<8x1xf32> to vector<8x256xf32>
    %570 = arith.mulf %567, %569 : vector<8x256xf32>
    %571 = arith.addf %555, %570 : vector<8x256xf32>
    %c224_i32 = arith.constant 224 : i32
    %572 = tpu.dynamic_rotate %303 by %c224_i32 dim 1 : vector<8x256xf32>, i32 -> vector<8x256xf32>
    %c31 = arith.constant 31 : index
    %c0_91 = arith.constant 0 : index
    %573 = vector.load %arg2[%c31, %c0_91] : memref<41x256xf32, #tpu.memory_space<vmem>>, vector<1x256xf32>
    %574 = vector.broadcast %573 : vector<1x256xf32> to vector<8x256xf32>
    %575 = arith.mulf %572, %574 : vector<8x256xf32>
    %576 = vector.extract_strided_slice %307 {offsets = [0, 22], sizes = [8, 1], strides = [1, 1]} : vector<8x25xf32> to vector<8x1xf32>
    %577 = vector.broadcast %576 : vector<8x1xf32> to vector<8x256xf32>
    %578 = arith.mulf %575, %577 : vector<8x256xf32>
    %579 = arith.addf %571, %578 : vector<8x256xf32>
    %580 = vector.extract_strided_slice %309 {offsets = [0, 7], sizes = [8, 1], strides = [1, 1]} : vector<8x9xf32> to vector<8x1xf32>
    %581 = vector.broadcast %580 : vector<8x1xf32> to vector<8x256xf32>
    %582 = arith.mulf %575, %581 : vector<8x256xf32>
    %583 = arith.addf %559, %582 : vector<8x256xf32>
    %584 = vector.extract_strided_slice %311 {offsets = [0, 17], sizes = [8, 1], strides = [1, 1]} : vector<8x25xf32> to vector<8x1xf32>
    %585 = vector.broadcast %584 : vector<8x1xf32> to vector<8x256xf32>
    %586 = arith.mulf %575, %585 : vector<8x256xf32>
    %587 = arith.addf %563, %586 : vector<8x256xf32>
    %c223_i32 = arith.constant 223 : i32
    %588 = tpu.dynamic_rotate %303 by %c223_i32 dim 1 : vector<8x256xf32>, i32 -> vector<8x256xf32>
    %c32 = arith.constant 32 : index
    %c0_92 = arith.constant 0 : index
    %589 = vector.load %arg2[%c32, %c0_92] : memref<41x256xf32, #tpu.memory_space<vmem>>, vector<1x256xf32>
    %590 = vector.broadcast %589 : vector<1x256xf32> to vector<8x256xf32>
    %591 = arith.mulf %588, %590 : vector<8x256xf32>
    %592 = vector.extract_strided_slice %307 {offsets = [0, 23], sizes = [8, 1], strides = [1, 1]} : vector<8x25xf32> to vector<8x1xf32>
    %593 = vector.broadcast %592 : vector<8x1xf32> to vector<8x256xf32>
    %594 = arith.mulf %591, %593 : vector<8x256xf32>
    %595 = arith.addf %579, %594 : vector<8x256xf32>
    %c222_i32 = arith.constant 222 : i32
    %596 = tpu.dynamic_rotate %303 by %c222_i32 dim 1 : vector<8x256xf32>, i32 -> vector<8x256xf32>
    %c33 = arith.constant 33 : index
    %c0_93 = arith.constant 0 : index
    %597 = vector.load %arg2[%c33, %c0_93] : memref<41x256xf32, #tpu.memory_space<vmem>>, vector<1x256xf32>
    %598 = vector.broadcast %597 : vector<1x256xf32> to vector<8x256xf32>
    %599 = arith.mulf %596, %598 : vector<8x256xf32>
    %600 = vector.extract_strided_slice %307 {offsets = [0, 24], sizes = [8, 1], strides = [1, 1]} : vector<8x25xf32> to vector<8x1xf32>
    %601 = vector.broadcast %600 : vector<8x1xf32> to vector<8x256xf32>
    %602 = arith.mulf %599, %601 : vector<8x256xf32>
    %603 = arith.addf %595, %602 : vector<8x256xf32>
    %604 = vector.extract_strided_slice %309 {offsets = [0, 8], sizes = [8, 1], strides = [1, 1]} : vector<8x9xf32> to vector<8x1xf32>
    %605 = vector.broadcast %604 : vector<8x1xf32> to vector<8x256xf32>
    %606 = arith.mulf %599, %605 : vector<8x256xf32>
    %607 = arith.addf %583, %606 : vector<8x256xf32>
    %608 = vector.extract_strided_slice %311 {offsets = [0, 18], sizes = [8, 1], strides = [1, 1]} : vector<8x25xf32> to vector<8x1xf32>
    %609 = vector.broadcast %608 : vector<8x1xf32> to vector<8x256xf32>
    %610 = arith.mulf %599, %609 : vector<8x256xf32>
    %611 = arith.addf %587, %610 : vector<8x256xf32>
    %c68_i32 = arith.constant 68 : i32
    %612 = tpu.dynamic_rotate %303 by %c68_i32 dim 1 : vector<8x256xf32>, i32 -> vector<8x256xf32>
    %c0_94 = arith.constant 0 : index
    %c0_95 = arith.constant 0 : index
    %613 = vector.load %arg2[%c0_94, %c0_95] : memref<41x256xf32, #tpu.memory_space<vmem>>, vector<1x256xf32>
    %614 = vector.broadcast %613 : vector<1x256xf32> to vector<8x256xf32>
    %615 = arith.mulf %612, %614 : vector<8x256xf32>
    %616 = vector.extract_strided_slice %311 {offsets = [0, 0], sizes = [8, 1], strides = [1, 1]} : vector<8x25xf32> to vector<8x1xf32>
    %617 = vector.broadcast %616 : vector<8x1xf32> to vector<8x256xf32>
    %618 = arith.mulf %615, %617 : vector<8x256xf32>
    %619 = arith.addf %611, %618 : vector<8x256xf32>
    %c66_i32 = arith.constant 66 : i32
    %620 = tpu.dynamic_rotate %303 by %c66_i32 dim 1 : vector<8x256xf32>, i32 -> vector<8x256xf32>
    %c1 = arith.constant 1 : index
    %c0_96 = arith.constant 0 : index
    %621 = vector.load %arg2[%c1, %c0_96] : memref<41x256xf32, #tpu.memory_space<vmem>>, vector<1x256xf32>
    %622 = vector.broadcast %621 : vector<1x256xf32> to vector<8x256xf32>
    %623 = arith.mulf %620, %622 : vector<8x256xf32>
    %624 = vector.extract_strided_slice %311 {offsets = [0, 1], sizes = [8, 1], strides = [1, 1]} : vector<8x25xf32> to vector<8x1xf32>
    %625 = vector.broadcast %624 : vector<8x1xf32> to vector<8x256xf32>
    %626 = arith.mulf %623, %625 : vector<8x256xf32>
    %627 = arith.addf %619, %626 : vector<8x256xf32>
    %c64_i32 = arith.constant 64 : i32
    %628 = tpu.dynamic_rotate %303 by %c64_i32 dim 1 : vector<8x256xf32>, i32 -> vector<8x256xf32>
    %c2 = arith.constant 2 : index
    %c0_97 = arith.constant 0 : index
    %629 = vector.load %arg2[%c2, %c0_97] : memref<41x256xf32, #tpu.memory_space<vmem>>, vector<1x256xf32>
    %630 = vector.broadcast %629 : vector<1x256xf32> to vector<8x256xf32>
    %631 = arith.mulf %628, %630 : vector<8x256xf32>
    %632 = vector.extract_strided_slice %311 {offsets = [0, 2], sizes = [8, 1], strides = [1, 1]} : vector<8x25xf32> to vector<8x1xf32>
    %633 = vector.broadcast %632 : vector<8x1xf32> to vector<8x256xf32>
    %634 = arith.mulf %631, %633 : vector<8x256xf32>
    %635 = arith.addf %627, %634 : vector<8x256xf32>
    %c62_i32 = arith.constant 62 : i32
    %636 = tpu.dynamic_rotate %303 by %c62_i32 dim 1 : vector<8x256xf32>, i32 -> vector<8x256xf32>
    %c3 = arith.constant 3 : index
    %c0_98 = arith.constant 0 : index
    %637 = vector.load %arg2[%c3, %c0_98] : memref<41x256xf32, #tpu.memory_space<vmem>>, vector<1x256xf32>
    %638 = vector.broadcast %637 : vector<1x256xf32> to vector<8x256xf32>
    %639 = arith.mulf %636, %638 : vector<8x256xf32>
    %640 = vector.extract_strided_slice %311 {offsets = [0, 3], sizes = [8, 1], strides = [1, 1]} : vector<8x25xf32> to vector<8x1xf32>
    %641 = vector.broadcast %640 : vector<8x1xf32> to vector<8x256xf32>
    %642 = arith.mulf %639, %641 : vector<8x256xf32>
    %643 = arith.addf %635, %642 : vector<8x256xf32>
    %c60_i32 = arith.constant 60 : i32
    %644 = tpu.dynamic_rotate %303 by %c60_i32 dim 1 : vector<8x256xf32>, i32 -> vector<8x256xf32>
    %c4 = arith.constant 4 : index
    %c0_99 = arith.constant 0 : index
    %645 = vector.load %arg2[%c4, %c0_99] : memref<41x256xf32, #tpu.memory_space<vmem>>, vector<1x256xf32>
    %646 = vector.broadcast %645 : vector<1x256xf32> to vector<8x256xf32>
    %647 = arith.mulf %644, %646 : vector<8x256xf32>
    %648 = vector.extract_strided_slice %311 {offsets = [0, 4], sizes = [8, 1], strides = [1, 1]} : vector<8x25xf32> to vector<8x1xf32>
    %649 = vector.broadcast %648 : vector<8x1xf32> to vector<8x256xf32>
    %650 = arith.mulf %647, %649 : vector<8x256xf32>
    %651 = arith.addf %643, %650 : vector<8x256xf32>
    %c36_i32 = arith.constant 36 : i32
    %652 = tpu.dynamic_rotate %303 by %c36_i32 dim 1 : vector<8x256xf32>, i32 -> vector<8x256xf32>
    %c5 = arith.constant 5 : index
    %c0_100 = arith.constant 0 : index
    %653 = vector.load %arg2[%c5, %c0_100] : memref<41x256xf32, #tpu.memory_space<vmem>>, vector<1x256xf32>
    %654 = vector.broadcast %653 : vector<1x256xf32> to vector<8x256xf32>
    %655 = arith.mulf %652, %654 : vector<8x256xf32>
    %656 = vector.extract_strided_slice %311 {offsets = [0, 5], sizes = [8, 1], strides = [1, 1]} : vector<8x25xf32> to vector<8x1xf32>
    %657 = vector.broadcast %656 : vector<8x1xf32> to vector<8x256xf32>
    %658 = arith.mulf %655, %657 : vector<8x256xf32>
    %659 = arith.addf %651, %658 : vector<8x256xf32>
    %c28_i32 = arith.constant 28 : i32
    %660 = tpu.dynamic_rotate %303 by %c28_i32 dim 1 : vector<8x256xf32>, i32 -> vector<8x256xf32>
    %c11 = arith.constant 11 : index
    %c0_101 = arith.constant 0 : index
    %661 = vector.load %arg2[%c11, %c0_101] : memref<41x256xf32, #tpu.memory_space<vmem>>, vector<1x256xf32>
    %662 = vector.broadcast %661 : vector<1x256xf32> to vector<8x256xf32>
    %663 = arith.mulf %660, %662 : vector<8x256xf32>
    %664 = vector.extract_strided_slice %311 {offsets = [0, 9], sizes = [8, 1], strides = [1, 1]} : vector<8x25xf32> to vector<8x1xf32>
    %665 = vector.broadcast %664 : vector<8x1xf32> to vector<8x256xf32>
    %666 = arith.mulf %663, %665 : vector<8x256xf32>
    %667 = arith.addf %659, %666 : vector<8x256xf32>
    %c4_i32 = arith.constant 4 : i32
    %668 = tpu.dynamic_rotate %303 by %c4_i32 dim 1 : vector<8x256xf32>, i32 -> vector<8x256xf32>
    %c17 = arith.constant 17 : index
    %c0_102 = arith.constant 0 : index
    %669 = vector.load %arg2[%c17, %c0_102] : memref<41x256xf32, #tpu.memory_space<vmem>>, vector<1x256xf32>
    %670 = vector.broadcast %669 : vector<1x256xf32> to vector<8x256xf32>
    %671 = arith.mulf %668, %670 : vector<8x256xf32>
    %672 = vector.extract_strided_slice %311 {offsets = [0, 10], sizes = [8, 1], strides = [1, 1]} : vector<8x25xf32> to vector<8x1xf32>
    %673 = vector.broadcast %672 : vector<8x1xf32> to vector<8x256xf32>
    %674 = arith.mulf %671, %673 : vector<8x256xf32>
    %675 = arith.addf %667, %674 : vector<8x256xf32>
    %c252_i32 = arith.constant 252 : i32
    %676 = tpu.dynamic_rotate %303 by %c252_i32 dim 1 : vector<8x256xf32>, i32 -> vector<8x256xf32>
    %c22 = arith.constant 22 : index
    %c0_103 = arith.constant 0 : index
    %677 = vector.load %arg2[%c22, %c0_103] : memref<41x256xf32, #tpu.memory_space<vmem>>, vector<1x256xf32>
    %678 = vector.broadcast %677 : vector<1x256xf32> to vector<8x256xf32>
    %679 = arith.mulf %676, %678 : vector<8x256xf32>
    %680 = vector.extract_strided_slice %311 {offsets = [0, 14], sizes = [8, 1], strides = [1, 1]} : vector<8x25xf32> to vector<8x1xf32>
    %681 = vector.broadcast %680 : vector<8x1xf32> to vector<8x256xf32>
    %682 = arith.mulf %679, %681 : vector<8x256xf32>
    %683 = arith.addf %675, %682 : vector<8x256xf32>
    %c228_i32 = arith.constant 228 : i32
    %684 = tpu.dynamic_rotate %303 by %c228_i32 dim 1 : vector<8x256xf32>, i32 -> vector<8x256xf32>
    %c28 = arith.constant 28 : index
    %c0_104 = arith.constant 0 : index
    %685 = vector.load %arg2[%c28, %c0_104] : memref<41x256xf32, #tpu.memory_space<vmem>>, vector<1x256xf32>
    %686 = vector.broadcast %685 : vector<1x256xf32> to vector<8x256xf32>
    %687 = arith.mulf %684, %686 : vector<8x256xf32>
    %688 = vector.extract_strided_slice %311 {offsets = [0, 15], sizes = [8, 1], strides = [1, 1]} : vector<8x25xf32> to vector<8x1xf32>
    %689 = vector.broadcast %688 : vector<8x1xf32> to vector<8x256xf32>
    %690 = arith.mulf %687, %689 : vector<8x256xf32>
    %691 = arith.addf %683, %690 : vector<8x256xf32>
    %c220_i32 = arith.constant 220 : i32
    %692 = tpu.dynamic_rotate %303 by %c220_i32 dim 1 : vector<8x256xf32>, i32 -> vector<8x256xf32>
    %c34 = arith.constant 34 : index
    %c0_105 = arith.constant 0 : index
    %693 = vector.load %arg2[%c34, %c0_105] : memref<41x256xf32, #tpu.memory_space<vmem>>, vector<1x256xf32>
    %694 = vector.broadcast %693 : vector<1x256xf32> to vector<8x256xf32>
    %695 = arith.mulf %692, %694 : vector<8x256xf32>
    %696 = vector.extract_strided_slice %311 {offsets = [0, 19], sizes = [8, 1], strides = [1, 1]} : vector<8x25xf32> to vector<8x1xf32>
    %697 = vector.broadcast %696 : vector<8x1xf32> to vector<8x256xf32>
    %698 = arith.mulf %695, %697 : vector<8x256xf32>
    %699 = arith.addf %691, %698 : vector<8x256xf32>
    %c196_i32 = arith.constant 196 : i32
    %700 = tpu.dynamic_rotate %303 by %c196_i32 dim 1 : vector<8x256xf32>, i32 -> vector<8x256xf32>
    %c35 = arith.constant 35 : index
    %c0_106 = arith.constant 0 : index
    %701 = vector.load %arg2[%c35, %c0_106] : memref<41x256xf32, #tpu.memory_space<vmem>>, vector<1x256xf32>
    %702 = vector.broadcast %701 : vector<1x256xf32> to vector<8x256xf32>
    %703 = arith.mulf %700, %702 : vector<8x256xf32>
    %704 = vector.extract_strided_slice %311 {offsets = [0, 20], sizes = [8, 1], strides = [1, 1]} : vector<8x25xf32> to vector<8x1xf32>
    %705 = vector.broadcast %704 : vector<8x1xf32> to vector<8x256xf32>
    %706 = arith.mulf %703, %705 : vector<8x256xf32>
    %707 = arith.addf %699, %706 : vector<8x256xf32>
    %c194_i32 = arith.constant 194 : i32
    %708 = tpu.dynamic_rotate %303 by %c194_i32 dim 1 : vector<8x256xf32>, i32 -> vector<8x256xf32>
    %c36 = arith.constant 36 : index
    %c0_107 = arith.constant 0 : index
    %709 = vector.load %arg2[%c36, %c0_107] : memref<41x256xf32, #tpu.memory_space<vmem>>, vector<1x256xf32>
    %710 = vector.broadcast %709 : vector<1x256xf32> to vector<8x256xf32>
    %711 = arith.mulf %708, %710 : vector<8x256xf32>
    %712 = vector.extract_strided_slice %311 {offsets = [0, 21], sizes = [8, 1], strides = [1, 1]} : vector<8x25xf32> to vector<8x1xf32>
    %713 = vector.broadcast %712 : vector<8x1xf32> to vector<8x256xf32>
    %714 = arith.mulf %711, %713 : vector<8x256xf32>
    %715 = arith.addf %707, %714 : vector<8x256xf32>
    %c192_i32 = arith.constant 192 : i32
    %716 = tpu.dynamic_rotate %303 by %c192_i32 dim 1 : vector<8x256xf32>, i32 -> vector<8x256xf32>
    %c37 = arith.constant 37 : index
    %c0_108 = arith.constant 0 : index
    %717 = vector.load %arg2[%c37, %c0_108] : memref<41x256xf32, #tpu.memory_space<vmem>>, vector<1x256xf32>
    %718 = vector.broadcast %717 : vector<1x256xf32> to vector<8x256xf32>
    %719 = arith.mulf %716, %718 : vector<8x256xf32>
    %720 = vector.extract_strided_slice %311 {offsets = [0, 22], sizes = [8, 1], strides = [1, 1]} : vector<8x25xf32> to vector<8x1xf32>
    %721 = vector.broadcast %720 : vector<8x1xf32> to vector<8x256xf32>
    %722 = arith.mulf %719, %721 : vector<8x256xf32>
    %723 = arith.addf %715, %722 : vector<8x256xf32>
    %c190_i32 = arith.constant 190 : i32
    %724 = tpu.dynamic_rotate %303 by %c190_i32 dim 1 : vector<8x256xf32>, i32 -> vector<8x256xf32>
    %c38 = arith.constant 38 : index
    %c0_109 = arith.constant 0 : index
    %725 = vector.load %arg2[%c38, %c0_109] : memref<41x256xf32, #tpu.memory_space<vmem>>, vector<1x256xf32>
    %726 = vector.broadcast %725 : vector<1x256xf32> to vector<8x256xf32>
    %727 = arith.mulf %724, %726 : vector<8x256xf32>
    %728 = vector.extract_strided_slice %311 {offsets = [0, 23], sizes = [8, 1], strides = [1, 1]} : vector<8x25xf32> to vector<8x1xf32>
    %729 = vector.broadcast %728 : vector<8x1xf32> to vector<8x256xf32>
    %730 = arith.mulf %727, %729 : vector<8x256xf32>
    %731 = arith.addf %723, %730 : vector<8x256xf32>
    %c188_i32 = arith.constant 188 : i32
    %732 = tpu.dynamic_rotate %303 by %c188_i32 dim 1 : vector<8x256xf32>, i32 -> vector<8x256xf32>
    %c39 = arith.constant 39 : index
    %c0_110 = arith.constant 0 : index
    %733 = vector.load %arg2[%c39, %c0_110] : memref<41x256xf32, #tpu.memory_space<vmem>>, vector<1x256xf32>
    %734 = vector.broadcast %733 : vector<1x256xf32> to vector<8x256xf32>
    %735 = arith.mulf %732, %734 : vector<8x256xf32>
    %736 = vector.extract_strided_slice %311 {offsets = [0, 24], sizes = [8, 1], strides = [1, 1]} : vector<8x25xf32> to vector<8x1xf32>
    %737 = vector.broadcast %736 : vector<8x1xf32> to vector<8x256xf32>
    %738 = arith.mulf %735, %737 : vector<8x256xf32>
    %739 = arith.addf %731, %738 : vector<8x256xf32>
    %c0_111 = arith.constant 0 : index
    %c0_112 = arith.constant 0 : index
    %c0_113 = arith.constant 0 : index
    %740 = vector.load %arg6[%c0_111, %c0_112, %c0_113] : memref<1x8x8xf32, #tpu.memory_space<vmem>>, vector<1x8x8xf32>
    %741 = vector.shape_cast %740 : vector<1x8x8xf32> to vector<8x8xf32>
    %742 = vector.extract_strided_slice %741 {offsets = [0, 0], sizes = [8, 1], strides = [1, 1]} : vector<8x8xf32> to vector<8x1xf32>
    %743 = vector.extract_strided_slice %535 {offsets = [0, 0], sizes = [1, 256], strides = [1, 1]} : vector<8x256xf32> to vector<1x256xf32>
    %744 = vector.broadcast %742 : vector<8x1xf32> to vector<8x256xf32>
    %745 = vector.broadcast %743 : vector<1x256xf32> to vector<8x256xf32>
    %746 = arith.mulf %744, %745 : vector<8x256xf32>
    %747 = vector.extract_strided_slice %741 {offsets = [0, 1], sizes = [8, 1], strides = [1, 1]} : vector<8x8xf32> to vector<8x1xf32>
    %748 = vector.extract_strided_slice %535 {offsets = [1, 0], sizes = [1, 256], strides = [1, 1]} : vector<8x256xf32> to vector<1x256xf32>
    %749 = vector.broadcast %747 : vector<8x1xf32> to vector<8x256xf32>
    %750 = vector.broadcast %748 : vector<1x256xf32> to vector<8x256xf32>
    %751 = arith.mulf %749, %750 : vector<8x256xf32>
    %752 = arith.addf %746, %751 : vector<8x256xf32>
    %753 = vector.extract_strided_slice %741 {offsets = [0, 2], sizes = [8, 1], strides = [1, 1]} : vector<8x8xf32> to vector<8x1xf32>
    %754 = vector.extract_strided_slice %535 {offsets = [2, 0], sizes = [1, 256], strides = [1, 1]} : vector<8x256xf32> to vector<1x256xf32>
    %755 = vector.broadcast %753 : vector<8x1xf32> to vector<8x256xf32>
    %756 = vector.broadcast %754 : vector<1x256xf32> to vector<8x256xf32>
    %757 = arith.mulf %755, %756 : vector<8x256xf32>
    %758 = arith.addf %752, %757 : vector<8x256xf32>
    %759 = vector.extract_strided_slice %741 {offsets = [0, 3], sizes = [8, 1], strides = [1, 1]} : vector<8x8xf32> to vector<8x1xf32>
    %760 = vector.extract_strided_slice %535 {offsets = [3, 0], sizes = [1, 256], strides = [1, 1]} : vector<8x256xf32> to vector<1x256xf32>
    %761 = vector.broadcast %759 : vector<8x1xf32> to vector<8x256xf32>
    %762 = vector.broadcast %760 : vector<1x256xf32> to vector<8x256xf32>
    %763 = arith.mulf %761, %762 : vector<8x256xf32>
    %764 = arith.addf %758, %763 : vector<8x256xf32>
    %765 = vector.extract_strided_slice %741 {offsets = [0, 4], sizes = [8, 1], strides = [1, 1]} : vector<8x8xf32> to vector<8x1xf32>
    %766 = vector.extract_strided_slice %535 {offsets = [4, 0], sizes = [1, 256], strides = [1, 1]} : vector<8x256xf32> to vector<1x256xf32>
    %767 = vector.broadcast %765 : vector<8x1xf32> to vector<8x256xf32>
    %768 = vector.broadcast %766 : vector<1x256xf32> to vector<8x256xf32>
    %769 = arith.mulf %767, %768 : vector<8x256xf32>
    %770 = arith.addf %764, %769 : vector<8x256xf32>
    %771 = vector.extract_strided_slice %741 {offsets = [0, 5], sizes = [8, 1], strides = [1, 1]} : vector<8x8xf32> to vector<8x1xf32>
    %772 = vector.extract_strided_slice %535 {offsets = [5, 0], sizes = [1, 256], strides = [1, 1]} : vector<8x256xf32> to vector<1x256xf32>
    %773 = vector.broadcast %771 : vector<8x1xf32> to vector<8x256xf32>
    %774 = vector.broadcast %772 : vector<1x256xf32> to vector<8x256xf32>
    %775 = arith.mulf %773, %774 : vector<8x256xf32>
    %776 = arith.addf %770, %775 : vector<8x256xf32>
    %777 = vector.extract_strided_slice %741 {offsets = [0, 6], sizes = [8, 1], strides = [1, 1]} : vector<8x8xf32> to vector<8x1xf32>
    %778 = vector.extract_strided_slice %535 {offsets = [6, 0], sizes = [1, 256], strides = [1, 1]} : vector<8x256xf32> to vector<1x256xf32>
    %779 = vector.broadcast %777 : vector<8x1xf32> to vector<8x256xf32>
    %780 = vector.broadcast %778 : vector<1x256xf32> to vector<8x256xf32>
    %781 = arith.mulf %779, %780 : vector<8x256xf32>
    %782 = arith.addf %776, %781 : vector<8x256xf32>
    %783 = vector.extract_strided_slice %741 {offsets = [0, 7], sizes = [8, 1], strides = [1, 1]} : vector<8x8xf32> to vector<8x1xf32>
    %784 = vector.extract_strided_slice %535 {offsets = [7, 0], sizes = [1, 256], strides = [1, 1]} : vector<8x256xf32> to vector<1x256xf32>
    %785 = vector.broadcast %783 : vector<8x1xf32> to vector<8x256xf32>
    %786 = vector.broadcast %784 : vector<1x256xf32> to vector<8x256xf32>
    %787 = arith.mulf %785, %786 : vector<8x256xf32>
    %788 = arith.addf %782, %787 : vector<8x256xf32>
    %cst_114 = arith.constant dense<0.000000e+00> : vector<8xf32>
    %789 = vector.multi_reduction <add>, %788, %cst_114 [1] : vector<8x256xf32> to vector<8xf32>
    %790 = vector.shape_cast %789 : vector<8xf32> to vector<8x1xf32>
    %791 = vector.extract_strided_slice %4 {offsets = [0, 0], sizes = [8, 1], strides = [1, 1]} : vector<8x8xf32> to vector<8x1xf32>
    %792 = vector.extract_strided_slice %790 {offsets = [0, 0], sizes = [1, 1], strides = [1, 1]} : vector<8x1xf32> to vector<1x1xf32>
    %793 = vector.broadcast %792 : vector<1x1xf32> to vector<8x1xf32>
    %794 = arith.mulf %791, %793 : vector<8x1xf32>
    %795 = vector.extract_strided_slice %4 {offsets = [0, 1], sizes = [8, 1], strides = [1, 1]} : vector<8x8xf32> to vector<8x1xf32>
    %796 = vector.extract_strided_slice %790 {offsets = [1, 0], sizes = [1, 1], strides = [1, 1]} : vector<8x1xf32> to vector<1x1xf32>
    %797 = vector.broadcast %796 : vector<1x1xf32> to vector<8x1xf32>
    %798 = arith.mulf %795, %797 : vector<8x1xf32>
    %799 = arith.addf %794, %798 : vector<8x1xf32>
    %800 = vector.extract_strided_slice %4 {offsets = [0, 2], sizes = [8, 1], strides = [1, 1]} : vector<8x8xf32> to vector<8x1xf32>
    %801 = vector.extract_strided_slice %790 {offsets = [2, 0], sizes = [1, 1], strides = [1, 1]} : vector<8x1xf32> to vector<1x1xf32>
    %802 = vector.broadcast %801 : vector<1x1xf32> to vector<8x1xf32>
    %803 = arith.mulf %800, %802 : vector<8x1xf32>
    %804 = arith.addf %799, %803 : vector<8x1xf32>
    %805 = vector.extract_strided_slice %4 {offsets = [0, 3], sizes = [8, 1], strides = [1, 1]} : vector<8x8xf32> to vector<8x1xf32>
    %806 = vector.extract_strided_slice %790 {offsets = [3, 0], sizes = [1, 1], strides = [1, 1]} : vector<8x1xf32> to vector<1x1xf32>
    %807 = vector.broadcast %806 : vector<1x1xf32> to vector<8x1xf32>
    %808 = arith.mulf %805, %807 : vector<8x1xf32>
    %809 = arith.addf %804, %808 : vector<8x1xf32>
    %810 = vector.extract_strided_slice %4 {offsets = [0, 4], sizes = [8, 1], strides = [1, 1]} : vector<8x8xf32> to vector<8x1xf32>
    %811 = vector.extract_strided_slice %790 {offsets = [4, 0], sizes = [1, 1], strides = [1, 1]} : vector<8x1xf32> to vector<1x1xf32>
    %812 = vector.broadcast %811 : vector<1x1xf32> to vector<8x1xf32>
    %813 = arith.mulf %810, %812 : vector<8x1xf32>
    %814 = arith.addf %809, %813 : vector<8x1xf32>
    %815 = vector.extract_strided_slice %4 {offsets = [0, 5], sizes = [8, 1], strides = [1, 1]} : vector<8x8xf32> to vector<8x1xf32>
    %816 = vector.extract_strided_slice %790 {offsets = [5, 0], sizes = [1, 1], strides = [1, 1]} : vector<8x1xf32> to vector<1x1xf32>
    %817 = vector.broadcast %816 : vector<1x1xf32> to vector<8x1xf32>
    %818 = arith.mulf %815, %817 : vector<8x1xf32>
    %819 = arith.addf %814, %818 : vector<8x1xf32>
    %820 = vector.extract_strided_slice %4 {offsets = [0, 6], sizes = [8, 1], strides = [1, 1]} : vector<8x8xf32> to vector<8x1xf32>
    %821 = vector.extract_strided_slice %790 {offsets = [6, 0], sizes = [1, 1], strides = [1, 1]} : vector<8x1xf32> to vector<1x1xf32>
    %822 = vector.broadcast %821 : vector<1x1xf32> to vector<8x1xf32>
    %823 = arith.mulf %820, %822 : vector<8x1xf32>
    %824 = arith.addf %819, %823 : vector<8x1xf32>
    %825 = vector.extract_strided_slice %4 {offsets = [0, 7], sizes = [8, 1], strides = [1, 1]} : vector<8x8xf32> to vector<8x1xf32>
    %826 = vector.extract_strided_slice %790 {offsets = [7, 0], sizes = [1, 1], strides = [1, 1]} : vector<8x1xf32> to vector<1x1xf32>
    %827 = vector.broadcast %826 : vector<1x1xf32> to vector<8x1xf32>
    %828 = arith.mulf %825, %827 : vector<8x1xf32>
    %829 = arith.addf %824, %828 : vector<8x1xf32>
    %830 = arith.mulf %788, %788 : vector<8x256xf32>
    %cst_115 = arith.constant dense<0.000000e+00> : vector<8xf32>
    %831 = vector.multi_reduction <add>, %830, %cst_115 [1] : vector<8x256xf32> to vector<8xf32>
    %832 = vector.shape_cast %831 : vector<8xf32> to vector<8x1xf32>
    %833 = vector.extract_strided_slice %4 {offsets = [0, 0], sizes = [8, 1], strides = [1, 1]} : vector<8x8xf32> to vector<8x1xf32>
    %834 = vector.extract_strided_slice %832 {offsets = [0, 0], sizes = [1, 1], strides = [1, 1]} : vector<8x1xf32> to vector<1x1xf32>
    %835 = vector.broadcast %834 : vector<1x1xf32> to vector<8x1xf32>
    %836 = arith.mulf %833, %835 : vector<8x1xf32>
    %837 = vector.extract_strided_slice %4 {offsets = [0, 1], sizes = [8, 1], strides = [1, 1]} : vector<8x8xf32> to vector<8x1xf32>
    %838 = vector.extract_strided_slice %832 {offsets = [1, 0], sizes = [1, 1], strides = [1, 1]} : vector<8x1xf32> to vector<1x1xf32>
    %839 = vector.broadcast %838 : vector<1x1xf32> to vector<8x1xf32>
    %840 = arith.mulf %837, %839 : vector<8x1xf32>
    %841 = arith.addf %836, %840 : vector<8x1xf32>
    %842 = vector.extract_strided_slice %4 {offsets = [0, 2], sizes = [8, 1], strides = [1, 1]} : vector<8x8xf32> to vector<8x1xf32>
    %843 = vector.extract_strided_slice %832 {offsets = [2, 0], sizes = [1, 1], strides = [1, 1]} : vector<8x1xf32> to vector<1x1xf32>
    %844 = vector.broadcast %843 : vector<1x1xf32> to vector<8x1xf32>
    %845 = arith.mulf %842, %844 : vector<8x1xf32>
    %846 = arith.addf %841, %845 : vector<8x1xf32>
    %847 = vector.extract_strided_slice %4 {offsets = [0, 3], sizes = [8, 1], strides = [1, 1]} : vector<8x8xf32> to vector<8x1xf32>
    %848 = vector.extract_strided_slice %832 {offsets = [3, 0], sizes = [1, 1], strides = [1, 1]} : vector<8x1xf32> to vector<1x1xf32>
    %849 = vector.broadcast %848 : vector<1x1xf32> to vector<8x1xf32>
    %850 = arith.mulf %847, %849 : vector<8x1xf32>
    %851 = arith.addf %846, %850 : vector<8x1xf32>
    %852 = vector.extract_strided_slice %4 {offsets = [0, 4], sizes = [8, 1], strides = [1, 1]} : vector<8x8xf32> to vector<8x1xf32>
    %853 = vector.extract_strided_slice %832 {offsets = [4, 0], sizes = [1, 1], strides = [1, 1]} : vector<8x1xf32> to vector<1x1xf32>
    %854 = vector.broadcast %853 : vector<1x1xf32> to vector<8x1xf32>
    %855 = arith.mulf %852, %854 : vector<8x1xf32>
    %856 = arith.addf %851, %855 : vector<8x1xf32>
    %857 = vector.extract_strided_slice %4 {offsets = [0, 5], sizes = [8, 1], strides = [1, 1]} : vector<8x8xf32> to vector<8x1xf32>
    %858 = vector.extract_strided_slice %832 {offsets = [5, 0], sizes = [1, 1], strides = [1, 1]} : vector<8x1xf32> to vector<1x1xf32>
    %859 = vector.broadcast %858 : vector<1x1xf32> to vector<8x1xf32>
    %860 = arith.mulf %857, %859 : vector<8x1xf32>
    %861 = arith.addf %856, %860 : vector<8x1xf32>
    %862 = vector.extract_strided_slice %4 {offsets = [0, 6], sizes = [8, 1], strides = [1, 1]} : vector<8x8xf32> to vector<8x1xf32>
    %863 = vector.extract_strided_slice %832 {offsets = [6, 0], sizes = [1, 1], strides = [1, 1]} : vector<8x1xf32> to vector<1x1xf32>
    %864 = vector.broadcast %863 : vector<1x1xf32> to vector<8x1xf32>
    %865 = arith.mulf %862, %864 : vector<8x1xf32>
    %866 = arith.addf %861, %865 : vector<8x1xf32>
    %867 = vector.extract_strided_slice %4 {offsets = [0, 7], sizes = [8, 1], strides = [1, 1]} : vector<8x8xf32> to vector<8x1xf32>
    %868 = vector.extract_strided_slice %832 {offsets = [7, 0], sizes = [1, 1], strides = [1, 1]} : vector<8x1xf32> to vector<1x1xf32>
    %869 = vector.broadcast %868 : vector<1x1xf32> to vector<8x1xf32>
    %870 = arith.mulf %867, %869 : vector<8x1xf32>
    %871 = arith.addf %866, %870 : vector<8x1xf32>
    %cst_116 = arith.constant 0.001953125 : f32
    %872 = vector.broadcast %cst_116 : f32 to vector<8x1xf32>
    %873 = arith.mulf %829, %872 : vector<8x1xf32>
    %cst_117 = arith.constant 0.001953125 : f32
    %874 = vector.broadcast %cst_117 : f32 to vector<8x1xf32>
    %875 = arith.mulf %871, %874 : vector<8x1xf32>
    %876 = arith.mulf %873, %873 : vector<8x1xf32>
    %877 = arith.subf %875, %876 : vector<8x1xf32>
    %cst_118 = arith.constant 9.99999974E-6 : f32
    %878 = vector.broadcast %cst_118 : f32 to vector<8x1xf32>
    %879 = arith.addf %877, %878 : vector<8x1xf32>
    %880 = math.rsqrt %879 : vector<8x1xf32>
    %cst_119 = arith.constant 1.000000e+00 : f32
    %881 = vector.broadcast %cst_119 : f32 to vector<8x1xf32>
    %882 = arith.mulf %881, %880 : vector<8x1xf32>
    %883 = vector.broadcast %873 : vector<8x1xf32> to vector<8x256xf32>
    %884 = arith.subf %788, %883 : vector<8x256xf32>
    %885 = vector.broadcast %882 : vector<8x1xf32> to vector<8x256xf32>
    %886 = arith.mulf %884, %885 : vector<8x256xf32>
    %cst_120 = arith.constant 0.000000e+00 : f32
    %887 = vector.broadcast %cst_120 : f32 to vector<8x256xf32>
    %888 = arith.maximumf %886, %887 : vector<8x256xf32>
    %c0_121 = arith.constant 0 : index
    %c0_122 = arith.constant 0 : index
    %c0_123 = arith.constant 0 : index
    %889 = vector.load %arg7[%c0_121, %c0_122, %c0_123] : memref<1x8x9xf32, #tpu.memory_space<vmem>>, vector<1x8x9xf32>
    %890 = vector.shape_cast %889 : vector<1x8x9xf32> to vector<8x9xf32>
    %891 = vector.extract_strided_slice %890 {offsets = [0, 4], sizes = [8, 1], strides = [1, 1]} : vector<8x9xf32> to vector<8x1xf32>
    %892 = vector.broadcast %891 : vector<8x1xf32> to vector<8x256xf32>
    %893 = arith.mulf %888, %892 : vector<8x256xf32>
    %c17_i32_124 = arith.constant 17 : i32
    %894 = tpu.dynamic_rotate %888 by %c17_i32_124 dim 1 : vector<8x256xf32>, i32 -> vector<8x256xf32>
    %c13_125 = arith.constant 13 : index
    %c0_126 = arith.constant 0 : index
    %895 = vector.load %arg2[%c13_125, %c0_126] : memref<41x256xf32, #tpu.memory_space<vmem>>, vector<1x256xf32>
    %896 = vector.broadcast %895 : vector<1x256xf32> to vector<8x256xf32>
    %897 = arith.mulf %894, %896 : vector<8x256xf32>
    %898 = vector.extract_strided_slice %890 {offsets = [0, 0], sizes = [8, 1], strides = [1, 1]} : vector<8x9xf32> to vector<8x1xf32>
    %899 = vector.broadcast %898 : vector<8x1xf32> to vector<8x256xf32>
    %900 = arith.mulf %897, %899 : vector<8x256xf32>
    %901 = arith.addf %893, %900 : vector<8x256xf32>
    %c16_i32_127 = arith.constant 16 : i32
    %902 = tpu.dynamic_rotate %888 by %c16_i32_127 dim 1 : vector<8x256xf32>, i32 -> vector<8x256xf32>
    %c14_128 = arith.constant 14 : index
    %c0_129 = arith.constant 0 : index
    %903 = vector.load %arg2[%c14_128, %c0_129] : memref<41x256xf32, #tpu.memory_space<vmem>>, vector<1x256xf32>
    %904 = vector.broadcast %903 : vector<1x256xf32> to vector<8x256xf32>
    %905 = arith.mulf %902, %904 : vector<8x256xf32>
    %906 = vector.extract_strided_slice %890 {offsets = [0, 1], sizes = [8, 1], strides = [1, 1]} : vector<8x9xf32> to vector<8x1xf32>
    %907 = vector.broadcast %906 : vector<8x1xf32> to vector<8x256xf32>
    %908 = arith.mulf %905, %907 : vector<8x256xf32>
    %909 = arith.addf %901, %908 : vector<8x256xf32>
    %c15_i32_130 = arith.constant 15 : i32
    %910 = tpu.dynamic_rotate %888 by %c15_i32_130 dim 1 : vector<8x256xf32>, i32 -> vector<8x256xf32>
    %c15_131 = arith.constant 15 : index
    %c0_132 = arith.constant 0 : index
    %911 = vector.load %arg2[%c15_131, %c0_132] : memref<41x256xf32, #tpu.memory_space<vmem>>, vector<1x256xf32>
    %912 = vector.broadcast %911 : vector<1x256xf32> to vector<8x256xf32>
    %913 = arith.mulf %910, %912 : vector<8x256xf32>
    %914 = vector.extract_strided_slice %890 {offsets = [0, 2], sizes = [8, 1], strides = [1, 1]} : vector<8x9xf32> to vector<8x1xf32>
    %915 = vector.broadcast %914 : vector<8x1xf32> to vector<8x256xf32>
    %916 = arith.mulf %913, %915 : vector<8x256xf32>
    %917 = arith.addf %909, %916 : vector<8x256xf32>
    %c1_i32_133 = arith.constant 1 : i32
    %918 = tpu.dynamic_rotate %888 by %c1_i32_133 dim 1 : vector<8x256xf32>, i32 -> vector<8x256xf32>
    %c19_134 = arith.constant 19 : index
    %c0_135 = arith.constant 0 : index
    %919 = vector.load %arg2[%c19_134, %c0_135] : memref<41x256xf32, #tpu.memory_space<vmem>>, vector<1x256xf32>
    %920 = vector.broadcast %919 : vector<1x256xf32> to vector<8x256xf32>
    %921 = arith.mulf %918, %920 : vector<8x256xf32>
    %922 = vector.extract_strided_slice %890 {offsets = [0, 3], sizes = [8, 1], strides = [1, 1]} : vector<8x9xf32> to vector<8x1xf32>
    %923 = vector.broadcast %922 : vector<8x1xf32> to vector<8x256xf32>
    %924 = arith.mulf %921, %923 : vector<8x256xf32>
    %925 = arith.addf %917, %924 : vector<8x256xf32>
    %c255_i32_136 = arith.constant 255 : i32
    %926 = tpu.dynamic_rotate %888 by %c255_i32_136 dim 1 : vector<8x256xf32>, i32 -> vector<8x256xf32>
    %c20_137 = arith.constant 20 : index
    %c0_138 = arith.constant 0 : index
    %927 = vector.load %arg2[%c20_137, %c0_138] : memref<41x256xf32, #tpu.memory_space<vmem>>, vector<1x256xf32>
    %928 = vector.broadcast %927 : vector<1x256xf32> to vector<8x256xf32>
    %929 = arith.mulf %926, %928 : vector<8x256xf32>
    %930 = vector.extract_strided_slice %890 {offsets = [0, 5], sizes = [8, 1], strides = [1, 1]} : vector<8x9xf32> to vector<8x1xf32>
    %931 = vector.broadcast %930 : vector<8x1xf32> to vector<8x256xf32>
    %932 = arith.mulf %929, %931 : vector<8x256xf32>
    %933 = arith.addf %925, %932 : vector<8x256xf32>
    %c241_i32_139 = arith.constant 241 : i32
    %934 = tpu.dynamic_rotate %888 by %c241_i32_139 dim 1 : vector<8x256xf32>, i32 -> vector<8x256xf32>
    %c24_140 = arith.constant 24 : index
    %c0_141 = arith.constant 0 : index
    %935 = vector.load %arg2[%c24_140, %c0_141] : memref<41x256xf32, #tpu.memory_space<vmem>>, vector<1x256xf32>
    %936 = vector.broadcast %935 : vector<1x256xf32> to vector<8x256xf32>
    %937 = arith.mulf %934, %936 : vector<8x256xf32>
    %938 = vector.extract_strided_slice %890 {offsets = [0, 6], sizes = [8, 1], strides = [1, 1]} : vector<8x9xf32> to vector<8x1xf32>
    %939 = vector.broadcast %938 : vector<8x1xf32> to vector<8x256xf32>
    %940 = arith.mulf %937, %939 : vector<8x256xf32>
    %941 = arith.addf %933, %940 : vector<8x256xf32>
    %c240_i32_142 = arith.constant 240 : i32
    %942 = tpu.dynamic_rotate %888 by %c240_i32_142 dim 1 : vector<8x256xf32>, i32 -> vector<8x256xf32>
    %c25_143 = arith.constant 25 : index
    %c0_144 = arith.constant 0 : index
    %943 = vector.load %arg2[%c25_143, %c0_144] : memref<41x256xf32, #tpu.memory_space<vmem>>, vector<1x256xf32>
    %944 = vector.broadcast %943 : vector<1x256xf32> to vector<8x256xf32>
    %945 = arith.mulf %942, %944 : vector<8x256xf32>
    %946 = vector.extract_strided_slice %890 {offsets = [0, 7], sizes = [8, 1], strides = [1, 1]} : vector<8x9xf32> to vector<8x1xf32>
    %947 = vector.broadcast %946 : vector<8x1xf32> to vector<8x256xf32>
    %948 = arith.mulf %945, %947 : vector<8x256xf32>
    %949 = arith.addf %941, %948 : vector<8x256xf32>
    %c239_i32_145 = arith.constant 239 : i32
    %950 = tpu.dynamic_rotate %888 by %c239_i32_145 dim 1 : vector<8x256xf32>, i32 -> vector<8x256xf32>
    %c26_146 = arith.constant 26 : index
    %c0_147 = arith.constant 0 : index
    %951 = vector.load %arg2[%c26_146, %c0_147] : memref<41x256xf32, #tpu.memory_space<vmem>>, vector<1x256xf32>
    %952 = vector.broadcast %951 : vector<1x256xf32> to vector<8x256xf32>
    %953 = arith.mulf %950, %952 : vector<8x256xf32>
    %954 = vector.extract_strided_slice %890 {offsets = [0, 8], sizes = [8, 1], strides = [1, 1]} : vector<8x9xf32> to vector<8x1xf32>
    %955 = vector.broadcast %954 : vector<8x1xf32> to vector<8x256xf32>
    %956 = arith.mulf %953, %955 : vector<8x256xf32>
    %957 = arith.addf %949, %956 : vector<8x256xf32>
    %c0_148 = arith.constant 0 : index
    %c0_149 = arith.constant 0 : index
    %c0_150 = arith.constant 0 : index
    %958 = vector.load %arg8[%c0_148, %c0_149, %c0_150] : memref<1x8x8xf32, #tpu.memory_space<vmem>>, vector<1x8x8xf32>
    %959 = vector.shape_cast %958 : vector<1x8x8xf32> to vector<8x8xf32>
    %960 = vector.extract_strided_slice %959 {offsets = [0, 0], sizes = [8, 1], strides = [1, 1]} : vector<8x8xf32> to vector<8x1xf32>
    %961 = vector.extract_strided_slice %957 {offsets = [0, 0], sizes = [1, 256], strides = [1, 1]} : vector<8x256xf32> to vector<1x256xf32>
    %962 = vector.broadcast %960 : vector<8x1xf32> to vector<8x256xf32>
    %963 = vector.broadcast %961 : vector<1x256xf32> to vector<8x256xf32>
    %964 = arith.mulf %962, %963 : vector<8x256xf32>
    %965 = vector.extract_strided_slice %959 {offsets = [0, 1], sizes = [8, 1], strides = [1, 1]} : vector<8x8xf32> to vector<8x1xf32>
    %966 = vector.extract_strided_slice %957 {offsets = [1, 0], sizes = [1, 256], strides = [1, 1]} : vector<8x256xf32> to vector<1x256xf32>
    %967 = vector.broadcast %965 : vector<8x1xf32> to vector<8x256xf32>
    %968 = vector.broadcast %966 : vector<1x256xf32> to vector<8x256xf32>
    %969 = arith.mulf %967, %968 : vector<8x256xf32>
    %970 = arith.addf %964, %969 : vector<8x256xf32>
    %971 = vector.extract_strided_slice %959 {offsets = [0, 2], sizes = [8, 1], strides = [1, 1]} : vector<8x8xf32> to vector<8x1xf32>
    %972 = vector.extract_strided_slice %957 {offsets = [2, 0], sizes = [1, 256], strides = [1, 1]} : vector<8x256xf32> to vector<1x256xf32>
    %973 = vector.broadcast %971 : vector<8x1xf32> to vector<8x256xf32>
    %974 = vector.broadcast %972 : vector<1x256xf32> to vector<8x256xf32>
    %975 = arith.mulf %973, %974 : vector<8x256xf32>
    %976 = arith.addf %970, %975 : vector<8x256xf32>
    %977 = vector.extract_strided_slice %959 {offsets = [0, 3], sizes = [8, 1], strides = [1, 1]} : vector<8x8xf32> to vector<8x1xf32>
    %978 = vector.extract_strided_slice %957 {offsets = [3, 0], sizes = [1, 256], strides = [1, 1]} : vector<8x256xf32> to vector<1x256xf32>
    %979 = vector.broadcast %977 : vector<8x1xf32> to vector<8x256xf32>
    %980 = vector.broadcast %978 : vector<1x256xf32> to vector<8x256xf32>
    %981 = arith.mulf %979, %980 : vector<8x256xf32>
    %982 = arith.addf %976, %981 : vector<8x256xf32>
    %983 = vector.extract_strided_slice %959 {offsets = [0, 4], sizes = [8, 1], strides = [1, 1]} : vector<8x8xf32> to vector<8x1xf32>
    %984 = vector.extract_strided_slice %957 {offsets = [4, 0], sizes = [1, 256], strides = [1, 1]} : vector<8x256xf32> to vector<1x256xf32>
    %985 = vector.broadcast %983 : vector<8x1xf32> to vector<8x256xf32>
    %986 = vector.broadcast %984 : vector<1x256xf32> to vector<8x256xf32>
    %987 = arith.mulf %985, %986 : vector<8x256xf32>
    %988 = arith.addf %982, %987 : vector<8x256xf32>
    %989 = vector.extract_strided_slice %959 {offsets = [0, 5], sizes = [8, 1], strides = [1, 1]} : vector<8x8xf32> to vector<8x1xf32>
    %990 = vector.extract_strided_slice %957 {offsets = [5, 0], sizes = [1, 256], strides = [1, 1]} : vector<8x256xf32> to vector<1x256xf32>
    %991 = vector.broadcast %989 : vector<8x1xf32> to vector<8x256xf32>
    %992 = vector.broadcast %990 : vector<1x256xf32> to vector<8x256xf32>
    %993 = arith.mulf %991, %992 : vector<8x256xf32>
    %994 = arith.addf %988, %993 : vector<8x256xf32>
    %995 = vector.extract_strided_slice %959 {offsets = [0, 6], sizes = [8, 1], strides = [1, 1]} : vector<8x8xf32> to vector<8x1xf32>
    %996 = vector.extract_strided_slice %957 {offsets = [6, 0], sizes = [1, 256], strides = [1, 1]} : vector<8x256xf32> to vector<1x256xf32>
    %997 = vector.broadcast %995 : vector<8x1xf32> to vector<8x256xf32>
    %998 = vector.broadcast %996 : vector<1x256xf32> to vector<8x256xf32>
    %999 = arith.mulf %997, %998 : vector<8x256xf32>
    %1000 = arith.addf %994, %999 : vector<8x256xf32>
    %1001 = vector.extract_strided_slice %959 {offsets = [0, 7], sizes = [8, 1], strides = [1, 1]} : vector<8x8xf32> to vector<8x1xf32>
    %1002 = vector.extract_strided_slice %957 {offsets = [7, 0], sizes = [1, 256], strides = [1, 1]} : vector<8x256xf32> to vector<1x256xf32>
    %1003 = vector.broadcast %1001 : vector<8x1xf32> to vector<8x256xf32>
    %1004 = vector.broadcast %1002 : vector<1x256xf32> to vector<8x256xf32>
    %1005 = arith.mulf %1003, %1004 : vector<8x256xf32>
    %1006 = arith.addf %1000, %1005 : vector<8x256xf32>
    %1007 = vector.extract_strided_slice %3 {offsets = [4, 0], sizes = [1, 1], strides = [1, 1]} : vector<8x1xf32> to vector<1x1xf32>
    %cst_151 = arith.constant dense<0.000000e+00> : vector<8xf32>
    %1008 = vector.multi_reduction <add>, %1006, %cst_151 [1] : vector<8x256xf32> to vector<8xf32>
    %1009 = vector.shape_cast %1008 : vector<8xf32> to vector<8x1xf32>
    %1010 = vector.extract_strided_slice %4 {offsets = [0, 0], sizes = [8, 1], strides = [1, 1]} : vector<8x8xf32> to vector<8x1xf32>
    %1011 = vector.extract_strided_slice %1009 {offsets = [0, 0], sizes = [1, 1], strides = [1, 1]} : vector<8x1xf32> to vector<1x1xf32>
    %1012 = vector.broadcast %1011 : vector<1x1xf32> to vector<8x1xf32>
    %1013 = arith.mulf %1010, %1012 : vector<8x1xf32>
    %1014 = vector.extract_strided_slice %4 {offsets = [0, 1], sizes = [8, 1], strides = [1, 1]} : vector<8x8xf32> to vector<8x1xf32>
    %1015 = vector.extract_strided_slice %1009 {offsets = [1, 0], sizes = [1, 1], strides = [1, 1]} : vector<8x1xf32> to vector<1x1xf32>
    %1016 = vector.broadcast %1015 : vector<1x1xf32> to vector<8x1xf32>
    %1017 = arith.mulf %1014, %1016 : vector<8x1xf32>
    %1018 = arith.addf %1013, %1017 : vector<8x1xf32>
    %1019 = vector.extract_strided_slice %4 {offsets = [0, 2], sizes = [8, 1], strides = [1, 1]} : vector<8x8xf32> to vector<8x1xf32>
    %1020 = vector.extract_strided_slice %1009 {offsets = [2, 0], sizes = [1, 1], strides = [1, 1]} : vector<8x1xf32> to vector<1x1xf32>
    %1021 = vector.broadcast %1020 : vector<1x1xf32> to vector<8x1xf32>
    %1022 = arith.mulf %1019, %1021 : vector<8x1xf32>
    %1023 = arith.addf %1018, %1022 : vector<8x1xf32>
    %1024 = vector.extract_strided_slice %4 {offsets = [0, 3], sizes = [8, 1], strides = [1, 1]} : vector<8x8xf32> to vector<8x1xf32>
    %1025 = vector.extract_strided_slice %1009 {offsets = [3, 0], sizes = [1, 1], strides = [1, 1]} : vector<8x1xf32> to vector<1x1xf32>
    %1026 = vector.broadcast %1025 : vector<1x1xf32> to vector<8x1xf32>
    %1027 = arith.mulf %1024, %1026 : vector<8x1xf32>
    %1028 = arith.addf %1023, %1027 : vector<8x1xf32>
    %1029 = vector.extract_strided_slice %4 {offsets = [0, 4], sizes = [8, 1], strides = [1, 1]} : vector<8x8xf32> to vector<8x1xf32>
    %1030 = vector.extract_strided_slice %1009 {offsets = [4, 0], sizes = [1, 1], strides = [1, 1]} : vector<8x1xf32> to vector<1x1xf32>
    %1031 = vector.broadcast %1030 : vector<1x1xf32> to vector<8x1xf32>
    %1032 = arith.mulf %1029, %1031 : vector<8x1xf32>
    %1033 = arith.addf %1028, %1032 : vector<8x1xf32>
    %1034 = vector.extract_strided_slice %4 {offsets = [0, 5], sizes = [8, 1], strides = [1, 1]} : vector<8x8xf32> to vector<8x1xf32>
    %1035 = vector.extract_strided_slice %1009 {offsets = [5, 0], sizes = [1, 1], strides = [1, 1]} : vector<8x1xf32> to vector<1x1xf32>
    %1036 = vector.broadcast %1035 : vector<1x1xf32> to vector<8x1xf32>
    %1037 = arith.mulf %1034, %1036 : vector<8x1xf32>
    %1038 = arith.addf %1033, %1037 : vector<8x1xf32>
    %1039 = vector.extract_strided_slice %4 {offsets = [0, 6], sizes = [8, 1], strides = [1, 1]} : vector<8x8xf32> to vector<8x1xf32>
    %1040 = vector.extract_strided_slice %1009 {offsets = [6, 0], sizes = [1, 1], strides = [1, 1]} : vector<8x1xf32> to vector<1x1xf32>
    %1041 = vector.broadcast %1040 : vector<1x1xf32> to vector<8x1xf32>
    %1042 = arith.mulf %1039, %1041 : vector<8x1xf32>
    %1043 = arith.addf %1038, %1042 : vector<8x1xf32>
    %1044 = vector.extract_strided_slice %4 {offsets = [0, 7], sizes = [8, 1], strides = [1, 1]} : vector<8x8xf32> to vector<8x1xf32>
    %1045 = vector.extract_strided_slice %1009 {offsets = [7, 0], sizes = [1, 1], strides = [1, 1]} : vector<8x1xf32> to vector<1x1xf32>
    %1046 = vector.broadcast %1045 : vector<1x1xf32> to vector<8x1xf32>
    %1047 = arith.mulf %1044, %1046 : vector<8x1xf32>
    %1048 = arith.addf %1043, %1047 : vector<8x1xf32>
    %1049 = arith.mulf %1006, %1006 : vector<8x256xf32>
    %cst_152 = arith.constant dense<0.000000e+00> : vector<8xf32>
    %1050 = vector.multi_reduction <add>, %1049, %cst_152 [1] : vector<8x256xf32> to vector<8xf32>
    %1051 = vector.shape_cast %1050 : vector<8xf32> to vector<8x1xf32>
    %1052 = vector.extract_strided_slice %4 {offsets = [0, 0], sizes = [8, 1], strides = [1, 1]} : vector<8x8xf32> to vector<8x1xf32>
    %1053 = vector.extract_strided_slice %1051 {offsets = [0, 0], sizes = [1, 1], strides = [1, 1]} : vector<8x1xf32> to vector<1x1xf32>
    %1054 = vector.broadcast %1053 : vector<1x1xf32> to vector<8x1xf32>
    %1055 = arith.mulf %1052, %1054 : vector<8x1xf32>
    %1056 = vector.extract_strided_slice %4 {offsets = [0, 1], sizes = [8, 1], strides = [1, 1]} : vector<8x8xf32> to vector<8x1xf32>
    %1057 = vector.extract_strided_slice %1051 {offsets = [1, 0], sizes = [1, 1], strides = [1, 1]} : vector<8x1xf32> to vector<1x1xf32>
    %1058 = vector.broadcast %1057 : vector<1x1xf32> to vector<8x1xf32>
    %1059 = arith.mulf %1056, %1058 : vector<8x1xf32>
    %1060 = arith.addf %1055, %1059 : vector<8x1xf32>
    %1061 = vector.extract_strided_slice %4 {offsets = [0, 2], sizes = [8, 1], strides = [1, 1]} : vector<8x8xf32> to vector<8x1xf32>
    %1062 = vector.extract_strided_slice %1051 {offsets = [2, 0], sizes = [1, 1], strides = [1, 1]} : vector<8x1xf32> to vector<1x1xf32>
    %1063 = vector.broadcast %1062 : vector<1x1xf32> to vector<8x1xf32>
    %1064 = arith.mulf %1061, %1063 : vector<8x1xf32>
    %1065 = arith.addf %1060, %1064 : vector<8x1xf32>
    %1066 = vector.extract_strided_slice %4 {offsets = [0, 3], sizes = [8, 1], strides = [1, 1]} : vector<8x8xf32> to vector<8x1xf32>
    %1067 = vector.extract_strided_slice %1051 {offsets = [3, 0], sizes = [1, 1], strides = [1, 1]} : vector<8x1xf32> to vector<1x1xf32>
    %1068 = vector.broadcast %1067 : vector<1x1xf32> to vector<8x1xf32>
    %1069 = arith.mulf %1066, %1068 : vector<8x1xf32>
    %1070 = arith.addf %1065, %1069 : vector<8x1xf32>
    %1071 = vector.extract_strided_slice %4 {offsets = [0, 4], sizes = [8, 1], strides = [1, 1]} : vector<8x8xf32> to vector<8x1xf32>
    %1072 = vector.extract_strided_slice %1051 {offsets = [4, 0], sizes = [1, 1], strides = [1, 1]} : vector<8x1xf32> to vector<1x1xf32>
    %1073 = vector.broadcast %1072 : vector<1x1xf32> to vector<8x1xf32>
    %1074 = arith.mulf %1071, %1073 : vector<8x1xf32>
    %1075 = arith.addf %1070, %1074 : vector<8x1xf32>
    %1076 = vector.extract_strided_slice %4 {offsets = [0, 5], sizes = [8, 1], strides = [1, 1]} : vector<8x8xf32> to vector<8x1xf32>
    %1077 = vector.extract_strided_slice %1051 {offsets = [5, 0], sizes = [1, 1], strides = [1, 1]} : vector<8x1xf32> to vector<1x1xf32>
    %1078 = vector.broadcast %1077 : vector<1x1xf32> to vector<8x1xf32>
    %1079 = arith.mulf %1076, %1078 : vector<8x1xf32>
    %1080 = arith.addf %1075, %1079 : vector<8x1xf32>
    %1081 = vector.extract_strided_slice %4 {offsets = [0, 6], sizes = [8, 1], strides = [1, 1]} : vector<8x8xf32> to vector<8x1xf32>
    %1082 = vector.extract_strided_slice %1051 {offsets = [6, 0], sizes = [1, 1], strides = [1, 1]} : vector<8x1xf32> to vector<1x1xf32>
    %1083 = vector.broadcast %1082 : vector<1x1xf32> to vector<8x1xf32>
    %1084 = arith.mulf %1081, %1083 : vector<8x1xf32>
    %1085 = arith.addf %1080, %1084 : vector<8x1xf32>
    %1086 = vector.extract_strided_slice %4 {offsets = [0, 7], sizes = [8, 1], strides = [1, 1]} : vector<8x8xf32> to vector<8x1xf32>
    %1087 = vector.extract_strided_slice %1051 {offsets = [7, 0], sizes = [1, 1], strides = [1, 1]} : vector<8x1xf32> to vector<1x1xf32>
    %1088 = vector.broadcast %1087 : vector<1x1xf32> to vector<8x1xf32>
    %1089 = arith.mulf %1086, %1088 : vector<8x1xf32>
    %1090 = arith.addf %1085, %1089 : vector<8x1xf32>
    %cst_153 = arith.constant 0.001953125 : f32
    %1091 = vector.broadcast %cst_153 : f32 to vector<8x1xf32>
    %1092 = arith.mulf %1048, %1091 : vector<8x1xf32>
    %cst_154 = arith.constant 0.001953125 : f32
    %1093 = vector.broadcast %cst_154 : f32 to vector<8x1xf32>
    %1094 = arith.mulf %1090, %1093 : vector<8x1xf32>
    %1095 = arith.mulf %1092, %1092 : vector<8x1xf32>
    %1096 = arith.subf %1094, %1095 : vector<8x1xf32>
    %cst_155 = arith.constant 9.99999974E-6 : f32
    %1097 = vector.broadcast %cst_155 : f32 to vector<8x1xf32>
    %1098 = arith.addf %1096, %1097 : vector<8x1xf32>
    %1099 = math.rsqrt %1098 : vector<8x1xf32>
    %1100 = vector.broadcast %1007 : vector<1x1xf32> to vector<8x1xf32>
    %1101 = arith.mulf %1100, %1099 : vector<8x1xf32>
    %1102 = vector.broadcast %1092 : vector<8x1xf32> to vector<8x256xf32>
    %1103 = arith.subf %1006, %1102 : vector<8x256xf32>
    %1104 = vector.broadcast %1101 : vector<8x1xf32> to vector<8x256xf32>
    %1105 = arith.mulf %1103, %1104 : vector<8x256xf32>
    %c0_156 = arith.constant 0 : index
    %c0_157 = arith.constant 0 : index
    %c0_158 = arith.constant 0 : index
    %1106 = vector.load %arg10[%c0_156, %c0_157, %c0_158] : memref<1x8x8xf32, #tpu.memory_space<vmem>>, vector<1x8x8xf32>
    %1107 = vector.shape_cast %1106 : vector<1x8x8xf32> to vector<8x8xf32>
    %1108 = vector.extract_strided_slice %1107 {offsets = [0, 0], sizes = [8, 1], strides = [1, 1]} : vector<8x8xf32> to vector<8x1xf32>
    %1109 = vector.extract_strided_slice %603 {offsets = [0, 0], sizes = [1, 256], strides = [1, 1]} : vector<8x256xf32> to vector<1x256xf32>
    %1110 = vector.broadcast %1108 : vector<8x1xf32> to vector<8x256xf32>
    %1111 = vector.broadcast %1109 : vector<1x256xf32> to vector<8x256xf32>
    %1112 = arith.mulf %1110, %1111 : vector<8x256xf32>
    %1113 = vector.extract_strided_slice %1107 {offsets = [0, 1], sizes = [8, 1], strides = [1, 1]} : vector<8x8xf32> to vector<8x1xf32>
    %1114 = vector.extract_strided_slice %603 {offsets = [1, 0], sizes = [1, 256], strides = [1, 1]} : vector<8x256xf32> to vector<1x256xf32>
    %1115 = vector.broadcast %1113 : vector<8x1xf32> to vector<8x256xf32>
    %1116 = vector.broadcast %1114 : vector<1x256xf32> to vector<8x256xf32>
    %1117 = arith.mulf %1115, %1116 : vector<8x256xf32>
    %1118 = arith.addf %1112, %1117 : vector<8x256xf32>
    %1119 = vector.extract_strided_slice %1107 {offsets = [0, 2], sizes = [8, 1], strides = [1, 1]} : vector<8x8xf32> to vector<8x1xf32>
    %1120 = vector.extract_strided_slice %603 {offsets = [2, 0], sizes = [1, 256], strides = [1, 1]} : vector<8x256xf32> to vector<1x256xf32>
    %1121 = vector.broadcast %1119 : vector<8x1xf32> to vector<8x256xf32>
    %1122 = vector.broadcast %1120 : vector<1x256xf32> to vector<8x256xf32>
    %1123 = arith.mulf %1121, %1122 : vector<8x256xf32>
    %1124 = arith.addf %1118, %1123 : vector<8x256xf32>
    %1125 = vector.extract_strided_slice %1107 {offsets = [0, 3], sizes = [8, 1], strides = [1, 1]} : vector<8x8xf32> to vector<8x1xf32>
    %1126 = vector.extract_strided_slice %603 {offsets = [3, 0], sizes = [1, 256], strides = [1, 1]} : vector<8x256xf32> to vector<1x256xf32>
    %1127 = vector.broadcast %1125 : vector<8x1xf32> to vector<8x256xf32>
    %1128 = vector.broadcast %1126 : vector<1x256xf32> to vector<8x256xf32>
    %1129 = arith.mulf %1127, %1128 : vector<8x256xf32>
    %1130 = arith.addf %1124, %1129 : vector<8x256xf32>
    %1131 = vector.extract_strided_slice %1107 {offsets = [0, 4], sizes = [8, 1], strides = [1, 1]} : vector<8x8xf32> to vector<8x1xf32>
    %1132 = vector.extract_strided_slice %603 {offsets = [4, 0], sizes = [1, 256], strides = [1, 1]} : vector<8x256xf32> to vector<1x256xf32>
    %1133 = vector.broadcast %1131 : vector<8x1xf32> to vector<8x256xf32>
    %1134 = vector.broadcast %1132 : vector<1x256xf32> to vector<8x256xf32>
    %1135 = arith.mulf %1133, %1134 : vector<8x256xf32>
    %1136 = arith.addf %1130, %1135 : vector<8x256xf32>
    %1137 = vector.extract_strided_slice %1107 {offsets = [0, 5], sizes = [8, 1], strides = [1, 1]} : vector<8x8xf32> to vector<8x1xf32>
    %1138 = vector.extract_strided_slice %603 {offsets = [5, 0], sizes = [1, 256], strides = [1, 1]} : vector<8x256xf32> to vector<1x256xf32>
    %1139 = vector.broadcast %1137 : vector<8x1xf32> to vector<8x256xf32>
    %1140 = vector.broadcast %1138 : vector<1x256xf32> to vector<8x256xf32>
    %1141 = arith.mulf %1139, %1140 : vector<8x256xf32>
    %1142 = arith.addf %1136, %1141 : vector<8x256xf32>
    %1143 = vector.extract_strided_slice %1107 {offsets = [0, 6], sizes = [8, 1], strides = [1, 1]} : vector<8x8xf32> to vector<8x1xf32>
    %1144 = vector.extract_strided_slice %603 {offsets = [6, 0], sizes = [1, 256], strides = [1, 1]} : vector<8x256xf32> to vector<1x256xf32>
    %1145 = vector.broadcast %1143 : vector<8x1xf32> to vector<8x256xf32>
    %1146 = vector.broadcast %1144 : vector<1x256xf32> to vector<8x256xf32>
    %1147 = arith.mulf %1145, %1146 : vector<8x256xf32>
    %1148 = arith.addf %1142, %1147 : vector<8x256xf32>
    %1149 = vector.extract_strided_slice %1107 {offsets = [0, 7], sizes = [8, 1], strides = [1, 1]} : vector<8x8xf32> to vector<8x1xf32>
    %1150 = vector.extract_strided_slice %603 {offsets = [7, 0], sizes = [1, 256], strides = [1, 1]} : vector<8x256xf32> to vector<1x256xf32>
    %1151 = vector.broadcast %1149 : vector<8x1xf32> to vector<8x256xf32>
    %1152 = vector.broadcast %1150 : vector<1x256xf32> to vector<8x256xf32>
    %1153 = arith.mulf %1151, %1152 : vector<8x256xf32>
    %1154 = arith.addf %1148, %1153 : vector<8x256xf32>
    %cst_159 = arith.constant dense<0.000000e+00> : vector<8xf32>
    %1155 = vector.multi_reduction <add>, %1154, %cst_159 [1] : vector<8x256xf32> to vector<8xf32>
    %1156 = vector.shape_cast %1155 : vector<8xf32> to vector<8x1xf32>
    %1157 = vector.extract_strided_slice %4 {offsets = [0, 0], sizes = [8, 1], strides = [1, 1]} : vector<8x8xf32> to vector<8x1xf32>
    %1158 = vector.extract_strided_slice %1156 {offsets = [0, 0], sizes = [1, 1], strides = [1, 1]} : vector<8x1xf32> to vector<1x1xf32>
    %1159 = vector.broadcast %1158 : vector<1x1xf32> to vector<8x1xf32>
    %1160 = arith.mulf %1157, %1159 : vector<8x1xf32>
    %1161 = vector.extract_strided_slice %4 {offsets = [0, 1], sizes = [8, 1], strides = [1, 1]} : vector<8x8xf32> to vector<8x1xf32>
    %1162 = vector.extract_strided_slice %1156 {offsets = [1, 0], sizes = [1, 1], strides = [1, 1]} : vector<8x1xf32> to vector<1x1xf32>
    %1163 = vector.broadcast %1162 : vector<1x1xf32> to vector<8x1xf32>
    %1164 = arith.mulf %1161, %1163 : vector<8x1xf32>
    %1165 = arith.addf %1160, %1164 : vector<8x1xf32>
    %1166 = vector.extract_strided_slice %4 {offsets = [0, 2], sizes = [8, 1], strides = [1, 1]} : vector<8x8xf32> to vector<8x1xf32>
    %1167 = vector.extract_strided_slice %1156 {offsets = [2, 0], sizes = [1, 1], strides = [1, 1]} : vector<8x1xf32> to vector<1x1xf32>
    %1168 = vector.broadcast %1167 : vector<1x1xf32> to vector<8x1xf32>
    %1169 = arith.mulf %1166, %1168 : vector<8x1xf32>
    %1170 = arith.addf %1165, %1169 : vector<8x1xf32>
    %1171 = vector.extract_strided_slice %4 {offsets = [0, 3], sizes = [8, 1], strides = [1, 1]} : vector<8x8xf32> to vector<8x1xf32>
    %1172 = vector.extract_strided_slice %1156 {offsets = [3, 0], sizes = [1, 1], strides = [1, 1]} : vector<8x1xf32> to vector<1x1xf32>
    %1173 = vector.broadcast %1172 : vector<1x1xf32> to vector<8x1xf32>
    %1174 = arith.mulf %1171, %1173 : vector<8x1xf32>
    %1175 = arith.addf %1170, %1174 : vector<8x1xf32>
    %1176 = vector.extract_strided_slice %4 {offsets = [0, 4], sizes = [8, 1], strides = [1, 1]} : vector<8x8xf32> to vector<8x1xf32>
    %1177 = vector.extract_strided_slice %1156 {offsets = [4, 0], sizes = [1, 1], strides = [1, 1]} : vector<8x1xf32> to vector<1x1xf32>
    %1178 = vector.broadcast %1177 : vector<1x1xf32> to vector<8x1xf32>
    %1179 = arith.mulf %1176, %1178 : vector<8x1xf32>
    %1180 = arith.addf %1175, %1179 : vector<8x1xf32>
    %1181 = vector.extract_strided_slice %4 {offsets = [0, 5], sizes = [8, 1], strides = [1, 1]} : vector<8x8xf32> to vector<8x1xf32>
    %1182 = vector.extract_strided_slice %1156 {offsets = [5, 0], sizes = [1, 1], strides = [1, 1]} : vector<8x1xf32> to vector<1x1xf32>
    %1183 = vector.broadcast %1182 : vector<1x1xf32> to vector<8x1xf32>
    %1184 = arith.mulf %1181, %1183 : vector<8x1xf32>
    %1185 = arith.addf %1180, %1184 : vector<8x1xf32>
    %1186 = vector.extract_strided_slice %4 {offsets = [0, 6], sizes = [8, 1], strides = [1, 1]} : vector<8x8xf32> to vector<8x1xf32>
    %1187 = vector.extract_strided_slice %1156 {offsets = [6, 0], sizes = [1, 1], strides = [1, 1]} : vector<8x1xf32> to vector<1x1xf32>
    %1188 = vector.broadcast %1187 : vector<1x1xf32> to vector<8x1xf32>
    %1189 = arith.mulf %1186, %1188 : vector<8x1xf32>
    %1190 = arith.addf %1185, %1189 : vector<8x1xf32>
    %1191 = vector.extract_strided_slice %4 {offsets = [0, 7], sizes = [8, 1], strides = [1, 1]} : vector<8x8xf32> to vector<8x1xf32>
    %1192 = vector.extract_strided_slice %1156 {offsets = [7, 0], sizes = [1, 1], strides = [1, 1]} : vector<8x1xf32> to vector<1x1xf32>
    %1193 = vector.broadcast %1192 : vector<1x1xf32> to vector<8x1xf32>
    %1194 = arith.mulf %1191, %1193 : vector<8x1xf32>
    %1195 = arith.addf %1190, %1194 : vector<8x1xf32>
    %1196 = arith.mulf %1154, %1154 : vector<8x256xf32>
    %cst_160 = arith.constant dense<0.000000e+00> : vector<8xf32>
    %1197 = vector.multi_reduction <add>, %1196, %cst_160 [1] : vector<8x256xf32> to vector<8xf32>
    %1198 = vector.shape_cast %1197 : vector<8xf32> to vector<8x1xf32>
    %1199 = vector.extract_strided_slice %4 {offsets = [0, 0], sizes = [8, 1], strides = [1, 1]} : vector<8x8xf32> to vector<8x1xf32>
    %1200 = vector.extract_strided_slice %1198 {offsets = [0, 0], sizes = [1, 1], strides = [1, 1]} : vector<8x1xf32> to vector<1x1xf32>
    %1201 = vector.broadcast %1200 : vector<1x1xf32> to vector<8x1xf32>
    %1202 = arith.mulf %1199, %1201 : vector<8x1xf32>
    %1203 = vector.extract_strided_slice %4 {offsets = [0, 1], sizes = [8, 1], strides = [1, 1]} : vector<8x8xf32> to vector<8x1xf32>
    %1204 = vector.extract_strided_slice %1198 {offsets = [1, 0], sizes = [1, 1], strides = [1, 1]} : vector<8x1xf32> to vector<1x1xf32>
    %1205 = vector.broadcast %1204 : vector<1x1xf32> to vector<8x1xf32>
    %1206 = arith.mulf %1203, %1205 : vector<8x1xf32>
    %1207 = arith.addf %1202, %1206 : vector<8x1xf32>
    %1208 = vector.extract_strided_slice %4 {offsets = [0, 2], sizes = [8, 1], strides = [1, 1]} : vector<8x8xf32> to vector<8x1xf32>
    %1209 = vector.extract_strided_slice %1198 {offsets = [2, 0], sizes = [1, 1], strides = [1, 1]} : vector<8x1xf32> to vector<1x1xf32>
    %1210 = vector.broadcast %1209 : vector<1x1xf32> to vector<8x1xf32>
    %1211 = arith.mulf %1208, %1210 : vector<8x1xf32>
    %1212 = arith.addf %1207, %1211 : vector<8x1xf32>
    %1213 = vector.extract_strided_slice %4 {offsets = [0, 3], sizes = [8, 1], strides = [1, 1]} : vector<8x8xf32> to vector<8x1xf32>
    %1214 = vector.extract_strided_slice %1198 {offsets = [3, 0], sizes = [1, 1], strides = [1, 1]} : vector<8x1xf32> to vector<1x1xf32>
    %1215 = vector.broadcast %1214 : vector<1x1xf32> to vector<8x1xf32>
    %1216 = arith.mulf %1213, %1215 : vector<8x1xf32>
    %1217 = arith.addf %1212, %1216 : vector<8x1xf32>
    %1218 = vector.extract_strided_slice %4 {offsets = [0, 4], sizes = [8, 1], strides = [1, 1]} : vector<8x8xf32> to vector<8x1xf32>
    %1219 = vector.extract_strided_slice %1198 {offsets = [4, 0], sizes = [1, 1], strides = [1, 1]} : vector<8x1xf32> to vector<1x1xf32>
    %1220 = vector.broadcast %1219 : vector<1x1xf32> to vector<8x1xf32>
    %1221 = arith.mulf %1218, %1220 : vector<8x1xf32>
    %1222 = arith.addf %1217, %1221 : vector<8x1xf32>
    %1223 = vector.extract_strided_slice %4 {offsets = [0, 5], sizes = [8, 1], strides = [1, 1]} : vector<8x8xf32> to vector<8x1xf32>
    %1224 = vector.extract_strided_slice %1198 {offsets = [5, 0], sizes = [1, 1], strides = [1, 1]} : vector<8x1xf32> to vector<1x1xf32>
    %1225 = vector.broadcast %1224 : vector<1x1xf32> to vector<8x1xf32>
    %1226 = arith.mulf %1223, %1225 : vector<8x1xf32>
    %1227 = arith.addf %1222, %1226 : vector<8x1xf32>
    %1228 = vector.extract_strided_slice %4 {offsets = [0, 6], sizes = [8, 1], strides = [1, 1]} : vector<8x8xf32> to vector<8x1xf32>
    %1229 = vector.extract_strided_slice %1198 {offsets = [6, 0], sizes = [1, 1], strides = [1, 1]} : vector<8x1xf32> to vector<1x1xf32>
    %1230 = vector.broadcast %1229 : vector<1x1xf32> to vector<8x1xf32>
    %1231 = arith.mulf %1228, %1230 : vector<8x1xf32>
    %1232 = arith.addf %1227, %1231 : vector<8x1xf32>
    %1233 = vector.extract_strided_slice %4 {offsets = [0, 7], sizes = [8, 1], strides = [1, 1]} : vector<8x8xf32> to vector<8x1xf32>
    %1234 = vector.extract_strided_slice %1198 {offsets = [7, 0], sizes = [1, 1], strides = [1, 1]} : vector<8x1xf32> to vector<1x1xf32>
    %1235 = vector.broadcast %1234 : vector<1x1xf32> to vector<8x1xf32>
    %1236 = arith.mulf %1233, %1235 : vector<8x1xf32>
    %1237 = arith.addf %1232, %1236 : vector<8x1xf32>
    %cst_161 = arith.constant 0.001953125 : f32
    %1238 = vector.broadcast %cst_161 : f32 to vector<8x1xf32>
    %1239 = arith.mulf %1195, %1238 : vector<8x1xf32>
    %cst_162 = arith.constant 0.001953125 : f32
    %1240 = vector.broadcast %cst_162 : f32 to vector<8x1xf32>
    %1241 = arith.mulf %1237, %1240 : vector<8x1xf32>
    %1242 = arith.mulf %1239, %1239 : vector<8x1xf32>
    %1243 = arith.subf %1241, %1242 : vector<8x1xf32>
    %cst_163 = arith.constant 9.99999974E-6 : f32
    %1244 = vector.broadcast %cst_163 : f32 to vector<8x1xf32>
    %1245 = arith.addf %1243, %1244 : vector<8x1xf32>
    %1246 = math.rsqrt %1245 : vector<8x1xf32>
    %cst_164 = arith.constant 1.000000e+00 : f32
    %1247 = vector.broadcast %cst_164 : f32 to vector<8x1xf32>
    %1248 = arith.mulf %1247, %1246 : vector<8x1xf32>
    %1249 = vector.broadcast %1239 : vector<8x1xf32> to vector<8x256xf32>
    %1250 = arith.subf %1154, %1249 : vector<8x256xf32>
    %1251 = vector.broadcast %1248 : vector<8x1xf32> to vector<8x256xf32>
    %1252 = arith.mulf %1250, %1251 : vector<8x256xf32>
    %cst_165 = arith.constant 0.000000e+00 : f32
    %1253 = vector.broadcast %cst_165 : f32 to vector<8x256xf32>
    %1254 = arith.maximumf %1252, %1253 : vector<8x256xf32>
    %c0_166 = arith.constant 0 : index
    %c0_167 = arith.constant 0 : index
    %c0_168 = arith.constant 0 : index
    %1255 = vector.load %arg11[%c0_166, %c0_167, %c0_168] : memref<1x8x25xf32, #tpu.memory_space<vmem>>, vector<1x8x25xf32>
    %1256 = vector.shape_cast %1255 : vector<1x8x25xf32> to vector<8x25xf32>
    %1257 = vector.extract_strided_slice %1256 {offsets = [0, 12], sizes = [8, 1], strides = [1, 1]} : vector<8x25xf32> to vector<8x1xf32>
    %1258 = vector.broadcast %1257 : vector<8x1xf32> to vector<8x256xf32>
    %1259 = arith.mulf %1254, %1258 : vector<8x256xf32>
    %c34_i32_169 = arith.constant 34 : i32
    %1260 = tpu.dynamic_rotate %1254 by %c34_i32_169 dim 1 : vector<8x256xf32>, i32 -> vector<8x256xf32>
    %c6_170 = arith.constant 6 : index
    %c0_171 = arith.constant 0 : index
    %1261 = vector.load %arg2[%c6_170, %c0_171] : memref<41x256xf32, #tpu.memory_space<vmem>>, vector<1x256xf32>
    %1262 = vector.broadcast %1261 : vector<1x256xf32> to vector<8x256xf32>
    %1263 = arith.mulf %1260, %1262 : vector<8x256xf32>
    %1264 = vector.extract_strided_slice %1256 {offsets = [0, 0], sizes = [8, 1], strides = [1, 1]} : vector<8x25xf32> to vector<8x1xf32>
    %1265 = vector.broadcast %1264 : vector<8x1xf32> to vector<8x256xf32>
    %1266 = arith.mulf %1263, %1265 : vector<8x256xf32>
    %1267 = arith.addf %1259, %1266 : vector<8x256xf32>
    %c33_i32_172 = arith.constant 33 : i32
    %1268 = tpu.dynamic_rotate %1254 by %c33_i32_172 dim 1 : vector<8x256xf32>, i32 -> vector<8x256xf32>
    %c7_173 = arith.constant 7 : index
    %c0_174 = arith.constant 0 : index
    %1269 = vector.load %arg2[%c7_173, %c0_174] : memref<41x256xf32, #tpu.memory_space<vmem>>, vector<1x256xf32>
    %1270 = vector.broadcast %1269 : vector<1x256xf32> to vector<8x256xf32>
    %1271 = arith.mulf %1268, %1270 : vector<8x256xf32>
    %1272 = vector.extract_strided_slice %1256 {offsets = [0, 1], sizes = [8, 1], strides = [1, 1]} : vector<8x25xf32> to vector<8x1xf32>
    %1273 = vector.broadcast %1272 : vector<8x1xf32> to vector<8x256xf32>
    %1274 = arith.mulf %1271, %1273 : vector<8x256xf32>
    %1275 = arith.addf %1267, %1274 : vector<8x256xf32>
    %c32_i32_175 = arith.constant 32 : i32
    %1276 = tpu.dynamic_rotate %1254 by %c32_i32_175 dim 1 : vector<8x256xf32>, i32 -> vector<8x256xf32>
    %c8_176 = arith.constant 8 : index
    %c0_177 = arith.constant 0 : index
    %1277 = vector.load %arg2[%c8_176, %c0_177] : memref<41x256xf32, #tpu.memory_space<vmem>>, vector<1x256xf32>
    %1278 = vector.broadcast %1277 : vector<1x256xf32> to vector<8x256xf32>
    %1279 = arith.mulf %1276, %1278 : vector<8x256xf32>
    %1280 = vector.extract_strided_slice %1256 {offsets = [0, 2], sizes = [8, 1], strides = [1, 1]} : vector<8x25xf32> to vector<8x1xf32>
    %1281 = vector.broadcast %1280 : vector<8x1xf32> to vector<8x256xf32>
    %1282 = arith.mulf %1279, %1281 : vector<8x256xf32>
    %1283 = arith.addf %1275, %1282 : vector<8x256xf32>
    %c31_i32_178 = arith.constant 31 : i32
    %1284 = tpu.dynamic_rotate %1254 by %c31_i32_178 dim 1 : vector<8x256xf32>, i32 -> vector<8x256xf32>
    %c9_179 = arith.constant 9 : index
    %c0_180 = arith.constant 0 : index
    %1285 = vector.load %arg2[%c9_179, %c0_180] : memref<41x256xf32, #tpu.memory_space<vmem>>, vector<1x256xf32>
    %1286 = vector.broadcast %1285 : vector<1x256xf32> to vector<8x256xf32>
    %1287 = arith.mulf %1284, %1286 : vector<8x256xf32>
    %1288 = vector.extract_strided_slice %1256 {offsets = [0, 3], sizes = [8, 1], strides = [1, 1]} : vector<8x25xf32> to vector<8x1xf32>
    %1289 = vector.broadcast %1288 : vector<8x1xf32> to vector<8x256xf32>
    %1290 = arith.mulf %1287, %1289 : vector<8x256xf32>
    %1291 = arith.addf %1283, %1290 : vector<8x256xf32>
    %c30_i32_181 = arith.constant 30 : i32
    %1292 = tpu.dynamic_rotate %1254 by %c30_i32_181 dim 1 : vector<8x256xf32>, i32 -> vector<8x256xf32>
    %c10_182 = arith.constant 10 : index
    %c0_183 = arith.constant 0 : index
    %1293 = vector.load %arg2[%c10_182, %c0_183] : memref<41x256xf32, #tpu.memory_space<vmem>>, vector<1x256xf32>
    %1294 = vector.broadcast %1293 : vector<1x256xf32> to vector<8x256xf32>
    %1295 = arith.mulf %1292, %1294 : vector<8x256xf32>
    %1296 = vector.extract_strided_slice %1256 {offsets = [0, 4], sizes = [8, 1], strides = [1, 1]} : vector<8x25xf32> to vector<8x1xf32>
    %1297 = vector.broadcast %1296 : vector<8x1xf32> to vector<8x256xf32>
    %1298 = arith.mulf %1295, %1297 : vector<8x256xf32>
    %1299 = arith.addf %1291, %1298 : vector<8x256xf32>
    %c18_i32_184 = arith.constant 18 : i32
    %1300 = tpu.dynamic_rotate %1254 by %c18_i32_184 dim 1 : vector<8x256xf32>, i32 -> vector<8x256xf32>
    %c12_185 = arith.constant 12 : index
    %c0_186 = arith.constant 0 : index
    %1301 = vector.load %arg2[%c12_185, %c0_186] : memref<41x256xf32, #tpu.memory_space<vmem>>, vector<1x256xf32>
    %1302 = vector.broadcast %1301 : vector<1x256xf32> to vector<8x256xf32>
    %1303 = arith.mulf %1300, %1302 : vector<8x256xf32>
    %1304 = vector.extract_strided_slice %1256 {offsets = [0, 5], sizes = [8, 1], strides = [1, 1]} : vector<8x25xf32> to vector<8x1xf32>
    %1305 = vector.broadcast %1304 : vector<8x1xf32> to vector<8x256xf32>
    %1306 = arith.mulf %1303, %1305 : vector<8x256xf32>
    %1307 = arith.addf %1299, %1306 : vector<8x256xf32>
    %c17_i32_187 = arith.constant 17 : i32
    %1308 = tpu.dynamic_rotate %1254 by %c17_i32_187 dim 1 : vector<8x256xf32>, i32 -> vector<8x256xf32>
    %c13_188 = arith.constant 13 : index
    %c0_189 = arith.constant 0 : index
    %1309 = vector.load %arg2[%c13_188, %c0_189] : memref<41x256xf32, #tpu.memory_space<vmem>>, vector<1x256xf32>
    %1310 = vector.broadcast %1309 : vector<1x256xf32> to vector<8x256xf32>
    %1311 = arith.mulf %1308, %1310 : vector<8x256xf32>
    %1312 = vector.extract_strided_slice %1256 {offsets = [0, 6], sizes = [8, 1], strides = [1, 1]} : vector<8x25xf32> to vector<8x1xf32>
    %1313 = vector.broadcast %1312 : vector<8x1xf32> to vector<8x256xf32>
    %1314 = arith.mulf %1311, %1313 : vector<8x256xf32>
    %1315 = arith.addf %1307, %1314 : vector<8x256xf32>
    %c16_i32_190 = arith.constant 16 : i32
    %1316 = tpu.dynamic_rotate %1254 by %c16_i32_190 dim 1 : vector<8x256xf32>, i32 -> vector<8x256xf32>
    %c14_191 = arith.constant 14 : index
    %c0_192 = arith.constant 0 : index
    %1317 = vector.load %arg2[%c14_191, %c0_192] : memref<41x256xf32, #tpu.memory_space<vmem>>, vector<1x256xf32>
    %1318 = vector.broadcast %1317 : vector<1x256xf32> to vector<8x256xf32>
    %1319 = arith.mulf %1316, %1318 : vector<8x256xf32>
    %1320 = vector.extract_strided_slice %1256 {offsets = [0, 7], sizes = [8, 1], strides = [1, 1]} : vector<8x25xf32> to vector<8x1xf32>
    %1321 = vector.broadcast %1320 : vector<8x1xf32> to vector<8x256xf32>
    %1322 = arith.mulf %1319, %1321 : vector<8x256xf32>
    %1323 = arith.addf %1315, %1322 : vector<8x256xf32>
    %c15_i32_193 = arith.constant 15 : i32
    %1324 = tpu.dynamic_rotate %1254 by %c15_i32_193 dim 1 : vector<8x256xf32>, i32 -> vector<8x256xf32>
    %c15_194 = arith.constant 15 : index
    %c0_195 = arith.constant 0 : index
    %1325 = vector.load %arg2[%c15_194, %c0_195] : memref<41x256xf32, #tpu.memory_space<vmem>>, vector<1x256xf32>
    %1326 = vector.broadcast %1325 : vector<1x256xf32> to vector<8x256xf32>
    %1327 = arith.mulf %1324, %1326 : vector<8x256xf32>
    %1328 = vector.extract_strided_slice %1256 {offsets = [0, 8], sizes = [8, 1], strides = [1, 1]} : vector<8x25xf32> to vector<8x1xf32>
    %1329 = vector.broadcast %1328 : vector<8x1xf32> to vector<8x256xf32>
    %1330 = arith.mulf %1327, %1329 : vector<8x256xf32>
    %1331 = arith.addf %1323, %1330 : vector<8x256xf32>
    %c14_i32_196 = arith.constant 14 : i32
    %1332 = tpu.dynamic_rotate %1254 by %c14_i32_196 dim 1 : vector<8x256xf32>, i32 -> vector<8x256xf32>
    %c16_197 = arith.constant 16 : index
    %c0_198 = arith.constant 0 : index
    %1333 = vector.load %arg2[%c16_197, %c0_198] : memref<41x256xf32, #tpu.memory_space<vmem>>, vector<1x256xf32>
    %1334 = vector.broadcast %1333 : vector<1x256xf32> to vector<8x256xf32>
    %1335 = arith.mulf %1332, %1334 : vector<8x256xf32>
    %1336 = vector.extract_strided_slice %1256 {offsets = [0, 9], sizes = [8, 1], strides = [1, 1]} : vector<8x25xf32> to vector<8x1xf32>
    %1337 = vector.broadcast %1336 : vector<8x1xf32> to vector<8x256xf32>
    %1338 = arith.mulf %1335, %1337 : vector<8x256xf32>
    %1339 = arith.addf %1331, %1338 : vector<8x256xf32>
    %c2_i32_199 = arith.constant 2 : i32
    %1340 = tpu.dynamic_rotate %1254 by %c2_i32_199 dim 1 : vector<8x256xf32>, i32 -> vector<8x256xf32>
    %c18_200 = arith.constant 18 : index
    %c0_201 = arith.constant 0 : index
    %1341 = vector.load %arg2[%c18_200, %c0_201] : memref<41x256xf32, #tpu.memory_space<vmem>>, vector<1x256xf32>
    %1342 = vector.broadcast %1341 : vector<1x256xf32> to vector<8x256xf32>
    %1343 = arith.mulf %1340, %1342 : vector<8x256xf32>
    %1344 = vector.extract_strided_slice %1256 {offsets = [0, 10], sizes = [8, 1], strides = [1, 1]} : vector<8x25xf32> to vector<8x1xf32>
    %1345 = vector.broadcast %1344 : vector<8x1xf32> to vector<8x256xf32>
    %1346 = arith.mulf %1343, %1345 : vector<8x256xf32>
    %1347 = arith.addf %1339, %1346 : vector<8x256xf32>
    %c1_i32_202 = arith.constant 1 : i32
    %1348 = tpu.dynamic_rotate %1254 by %c1_i32_202 dim 1 : vector<8x256xf32>, i32 -> vector<8x256xf32>
    %c19_203 = arith.constant 19 : index
    %c0_204 = arith.constant 0 : index
    %1349 = vector.load %arg2[%c19_203, %c0_204] : memref<41x256xf32, #tpu.memory_space<vmem>>, vector<1x256xf32>
    %1350 = vector.broadcast %1349 : vector<1x256xf32> to vector<8x256xf32>
    %1351 = arith.mulf %1348, %1350 : vector<8x256xf32>
    %1352 = vector.extract_strided_slice %1256 {offsets = [0, 11], sizes = [8, 1], strides = [1, 1]} : vector<8x25xf32> to vector<8x1xf32>
    %1353 = vector.broadcast %1352 : vector<8x1xf32> to vector<8x256xf32>
    %1354 = arith.mulf %1351, %1353 : vector<8x256xf32>
    %1355 = arith.addf %1347, %1354 : vector<8x256xf32>
    %c255_i32_205 = arith.constant 255 : i32
    %1356 = tpu.dynamic_rotate %1254 by %c255_i32_205 dim 1 : vector<8x256xf32>, i32 -> vector<8x256xf32>
    %c20_206 = arith.constant 20 : index
    %c0_207 = arith.constant 0 : index
    %1357 = vector.load %arg2[%c20_206, %c0_207] : memref<41x256xf32, #tpu.memory_space<vmem>>, vector<1x256xf32>
    %1358 = vector.broadcast %1357 : vector<1x256xf32> to vector<8x256xf32>
    %1359 = arith.mulf %1356, %1358 : vector<8x256xf32>
    %1360 = vector.extract_strided_slice %1256 {offsets = [0, 13], sizes = [8, 1], strides = [1, 1]} : vector<8x25xf32> to vector<8x1xf32>
    %1361 = vector.broadcast %1360 : vector<8x1xf32> to vector<8x256xf32>
    %1362 = arith.mulf %1359, %1361 : vector<8x256xf32>
    %1363 = arith.addf %1355, %1362 : vector<8x256xf32>
    %c254_i32_208 = arith.constant 254 : i32
    %1364 = tpu.dynamic_rotate %1254 by %c254_i32_208 dim 1 : vector<8x256xf32>, i32 -> vector<8x256xf32>
    %c21_209 = arith.constant 21 : index
    %c0_210 = arith.constant 0 : index
    %1365 = vector.load %arg2[%c21_209, %c0_210] : memref<41x256xf32, #tpu.memory_space<vmem>>, vector<1x256xf32>
    %1366 = vector.broadcast %1365 : vector<1x256xf32> to vector<8x256xf32>
    %1367 = arith.mulf %1364, %1366 : vector<8x256xf32>
    %1368 = vector.extract_strided_slice %1256 {offsets = [0, 14], sizes = [8, 1], strides = [1, 1]} : vector<8x25xf32> to vector<8x1xf32>
    %1369 = vector.broadcast %1368 : vector<8x1xf32> to vector<8x256xf32>
    %1370 = arith.mulf %1367, %1369 : vector<8x256xf32>
    %1371 = arith.addf %1363, %1370 : vector<8x256xf32>
    %c242_i32_211 = arith.constant 242 : i32
    %1372 = tpu.dynamic_rotate %1254 by %c242_i32_211 dim 1 : vector<8x256xf32>, i32 -> vector<8x256xf32>
    %c23_212 = arith.constant 23 : index
    %c0_213 = arith.constant 0 : index
    %1373 = vector.load %arg2[%c23_212, %c0_213] : memref<41x256xf32, #tpu.memory_space<vmem>>, vector<1x256xf32>
    %1374 = vector.broadcast %1373 : vector<1x256xf32> to vector<8x256xf32>
    %1375 = arith.mulf %1372, %1374 : vector<8x256xf32>
    %1376 = vector.extract_strided_slice %1256 {offsets = [0, 15], sizes = [8, 1], strides = [1, 1]} : vector<8x25xf32> to vector<8x1xf32>
    %1377 = vector.broadcast %1376 : vector<8x1xf32> to vector<8x256xf32>
    %1378 = arith.mulf %1375, %1377 : vector<8x256xf32>
    %1379 = arith.addf %1371, %1378 : vector<8x256xf32>
    %c241_i32_214 = arith.constant 241 : i32
    %1380 = tpu.dynamic_rotate %1254 by %c241_i32_214 dim 1 : vector<8x256xf32>, i32 -> vector<8x256xf32>
    %c24_215 = arith.constant 24 : index
    %c0_216 = arith.constant 0 : index
    %1381 = vector.load %arg2[%c24_215, %c0_216] : memref<41x256xf32, #tpu.memory_space<vmem>>, vector<1x256xf32>
    %1382 = vector.broadcast %1381 : vector<1x256xf32> to vector<8x256xf32>
    %1383 = arith.mulf %1380, %1382 : vector<8x256xf32>
    %1384 = vector.extract_strided_slice %1256 {offsets = [0, 16], sizes = [8, 1], strides = [1, 1]} : vector<8x25xf32> to vector<8x1xf32>
    %1385 = vector.broadcast %1384 : vector<8x1xf32> to vector<8x256xf32>
    %1386 = arith.mulf %1383, %1385 : vector<8x256xf32>
    %1387 = arith.addf %1379, %1386 : vector<8x256xf32>
    %c240_i32_217 = arith.constant 240 : i32
    %1388 = tpu.dynamic_rotate %1254 by %c240_i32_217 dim 1 : vector<8x256xf32>, i32 -> vector<8x256xf32>
    %c25_218 = arith.constant 25 : index
    %c0_219 = arith.constant 0 : index
    %1389 = vector.load %arg2[%c25_218, %c0_219] : memref<41x256xf32, #tpu.memory_space<vmem>>, vector<1x256xf32>
    %1390 = vector.broadcast %1389 : vector<1x256xf32> to vector<8x256xf32>
    %1391 = arith.mulf %1388, %1390 : vector<8x256xf32>
    %1392 = vector.extract_strided_slice %1256 {offsets = [0, 17], sizes = [8, 1], strides = [1, 1]} : vector<8x25xf32> to vector<8x1xf32>
    %1393 = vector.broadcast %1392 : vector<8x1xf32> to vector<8x256xf32>
    %1394 = arith.mulf %1391, %1393 : vector<8x256xf32>
    %1395 = arith.addf %1387, %1394 : vector<8x256xf32>
    %c239_i32_220 = arith.constant 239 : i32
    %1396 = tpu.dynamic_rotate %1254 by %c239_i32_220 dim 1 : vector<8x256xf32>, i32 -> vector<8x256xf32>
    %c26_221 = arith.constant 26 : index
    %c0_222 = arith.constant 0 : index
    %1397 = vector.load %arg2[%c26_221, %c0_222] : memref<41x256xf32, #tpu.memory_space<vmem>>, vector<1x256xf32>
    %1398 = vector.broadcast %1397 : vector<1x256xf32> to vector<8x256xf32>
    %1399 = arith.mulf %1396, %1398 : vector<8x256xf32>
    %1400 = vector.extract_strided_slice %1256 {offsets = [0, 18], sizes = [8, 1], strides = [1, 1]} : vector<8x25xf32> to vector<8x1xf32>
    %1401 = vector.broadcast %1400 : vector<8x1xf32> to vector<8x256xf32>
    %1402 = arith.mulf %1399, %1401 : vector<8x256xf32>
    %1403 = arith.addf %1395, %1402 : vector<8x256xf32>
    %c238_i32_223 = arith.constant 238 : i32
    %1404 = tpu.dynamic_rotate %1254 by %c238_i32_223 dim 1 : vector<8x256xf32>, i32 -> vector<8x256xf32>
    %c27_224 = arith.constant 27 : index
    %c0_225 = arith.constant 0 : index
    %1405 = vector.load %arg2[%c27_224, %c0_225] : memref<41x256xf32, #tpu.memory_space<vmem>>, vector<1x256xf32>
    %1406 = vector.broadcast %1405 : vector<1x256xf32> to vector<8x256xf32>
    %1407 = arith.mulf %1404, %1406 : vector<8x256xf32>
    %1408 = vector.extract_strided_slice %1256 {offsets = [0, 19], sizes = [8, 1], strides = [1, 1]} : vector<8x25xf32> to vector<8x1xf32>
    %1409 = vector.broadcast %1408 : vector<8x1xf32> to vector<8x256xf32>
    %1410 = arith.mulf %1407, %1409 : vector<8x256xf32>
    %1411 = arith.addf %1403, %1410 : vector<8x256xf32>
    %c226_i32_226 = arith.constant 226 : i32
    %1412 = tpu.dynamic_rotate %1254 by %c226_i32_226 dim 1 : vector<8x256xf32>, i32 -> vector<8x256xf32>
    %c29_227 = arith.constant 29 : index
    %c0_228 = arith.constant 0 : index
    %1413 = vector.load %arg2[%c29_227, %c0_228] : memref<41x256xf32, #tpu.memory_space<vmem>>, vector<1x256xf32>
    %1414 = vector.broadcast %1413 : vector<1x256xf32> to vector<8x256xf32>
    %1415 = arith.mulf %1412, %1414 : vector<8x256xf32>
    %1416 = vector.extract_strided_slice %1256 {offsets = [0, 20], sizes = [8, 1], strides = [1, 1]} : vector<8x25xf32> to vector<8x1xf32>
    %1417 = vector.broadcast %1416 : vector<8x1xf32> to vector<8x256xf32>
    %1418 = arith.mulf %1415, %1417 : vector<8x256xf32>
    %1419 = arith.addf %1411, %1418 : vector<8x256xf32>
    %c225_i32_229 = arith.constant 225 : i32
    %1420 = tpu.dynamic_rotate %1254 by %c225_i32_229 dim 1 : vector<8x256xf32>, i32 -> vector<8x256xf32>
    %c30_230 = arith.constant 30 : index
    %c0_231 = arith.constant 0 : index
    %1421 = vector.load %arg2[%c30_230, %c0_231] : memref<41x256xf32, #tpu.memory_space<vmem>>, vector<1x256xf32>
    %1422 = vector.broadcast %1421 : vector<1x256xf32> to vector<8x256xf32>
    %1423 = arith.mulf %1420, %1422 : vector<8x256xf32>
    %1424 = vector.extract_strided_slice %1256 {offsets = [0, 21], sizes = [8, 1], strides = [1, 1]} : vector<8x25xf32> to vector<8x1xf32>
    %1425 = vector.broadcast %1424 : vector<8x1xf32> to vector<8x256xf32>
    %1426 = arith.mulf %1423, %1425 : vector<8x256xf32>
    %1427 = arith.addf %1419, %1426 : vector<8x256xf32>
    %c224_i32_232 = arith.constant 224 : i32
    %1428 = tpu.dynamic_rotate %1254 by %c224_i32_232 dim 1 : vector<8x256xf32>, i32 -> vector<8x256xf32>
    %c31_233 = arith.constant 31 : index
    %c0_234 = arith.constant 0 : index
    %1429 = vector.load %arg2[%c31_233, %c0_234] : memref<41x256xf32, #tpu.memory_space<vmem>>, vector<1x256xf32>
    %1430 = vector.broadcast %1429 : vector<1x256xf32> to vector<8x256xf32>
    %1431 = arith.mulf %1428, %1430 : vector<8x256xf32>
    %1432 = vector.extract_strided_slice %1256 {offsets = [0, 22], sizes = [8, 1], strides = [1, 1]} : vector<8x25xf32> to vector<8x1xf32>
    %1433 = vector.broadcast %1432 : vector<8x1xf32> to vector<8x256xf32>
    %1434 = arith.mulf %1431, %1433 : vector<8x256xf32>
    %1435 = arith.addf %1427, %1434 : vector<8x256xf32>
    %c223_i32_235 = arith.constant 223 : i32
    %1436 = tpu.dynamic_rotate %1254 by %c223_i32_235 dim 1 : vector<8x256xf32>, i32 -> vector<8x256xf32>
    %c32_236 = arith.constant 32 : index
    %c0_237 = arith.constant 0 : index
    %1437 = vector.load %arg2[%c32_236, %c0_237] : memref<41x256xf32, #tpu.memory_space<vmem>>, vector<1x256xf32>
    %1438 = vector.broadcast %1437 : vector<1x256xf32> to vector<8x256xf32>
    %1439 = arith.mulf %1436, %1438 : vector<8x256xf32>
    %1440 = vector.extract_strided_slice %1256 {offsets = [0, 23], sizes = [8, 1], strides = [1, 1]} : vector<8x25xf32> to vector<8x1xf32>
    %1441 = vector.broadcast %1440 : vector<8x1xf32> to vector<8x256xf32>
    %1442 = arith.mulf %1439, %1441 : vector<8x256xf32>
    %1443 = arith.addf %1435, %1442 : vector<8x256xf32>
    %c222_i32_238 = arith.constant 222 : i32
    %1444 = tpu.dynamic_rotate %1254 by %c222_i32_238 dim 1 : vector<8x256xf32>, i32 -> vector<8x256xf32>
    %c33_239 = arith.constant 33 : index
    %c0_240 = arith.constant 0 : index
    %1445 = vector.load %arg2[%c33_239, %c0_240] : memref<41x256xf32, #tpu.memory_space<vmem>>, vector<1x256xf32>
    %1446 = vector.broadcast %1445 : vector<1x256xf32> to vector<8x256xf32>
    %1447 = arith.mulf %1444, %1446 : vector<8x256xf32>
    %1448 = vector.extract_strided_slice %1256 {offsets = [0, 24], sizes = [8, 1], strides = [1, 1]} : vector<8x25xf32> to vector<8x1xf32>
    %1449 = vector.broadcast %1448 : vector<8x1xf32> to vector<8x256xf32>
    %1450 = arith.mulf %1447, %1449 : vector<8x256xf32>
    %1451 = arith.addf %1443, %1450 : vector<8x256xf32>
    %c0_241 = arith.constant 0 : index
    %c0_242 = arith.constant 0 : index
    %c0_243 = arith.constant 0 : index
    %1452 = vector.load %arg12[%c0_241, %c0_242, %c0_243] : memref<1x8x8xf32, #tpu.memory_space<vmem>>, vector<1x8x8xf32>
    %1453 = vector.shape_cast %1452 : vector<1x8x8xf32> to vector<8x8xf32>
    %1454 = vector.extract_strided_slice %1453 {offsets = [0, 0], sizes = [8, 1], strides = [1, 1]} : vector<8x8xf32> to vector<8x1xf32>
    %1455 = vector.extract_strided_slice %1451 {offsets = [0, 0], sizes = [1, 256], strides = [1, 1]} : vector<8x256xf32> to vector<1x256xf32>
    %1456 = vector.broadcast %1454 : vector<8x1xf32> to vector<8x256xf32>
    %1457 = vector.broadcast %1455 : vector<1x256xf32> to vector<8x256xf32>
    %1458 = arith.mulf %1456, %1457 : vector<8x256xf32>
    %1459 = vector.extract_strided_slice %1453 {offsets = [0, 1], sizes = [8, 1], strides = [1, 1]} : vector<8x8xf32> to vector<8x1xf32>
    %1460 = vector.extract_strided_slice %1451 {offsets = [1, 0], sizes = [1, 256], strides = [1, 1]} : vector<8x256xf32> to vector<1x256xf32>
    %1461 = vector.broadcast %1459 : vector<8x1xf32> to vector<8x256xf32>
    %1462 = vector.broadcast %1460 : vector<1x256xf32> to vector<8x256xf32>
    %1463 = arith.mulf %1461, %1462 : vector<8x256xf32>
    %1464 = arith.addf %1458, %1463 : vector<8x256xf32>
    %1465 = vector.extract_strided_slice %1453 {offsets = [0, 2], sizes = [8, 1], strides = [1, 1]} : vector<8x8xf32> to vector<8x1xf32>
    %1466 = vector.extract_strided_slice %1451 {offsets = [2, 0], sizes = [1, 256], strides = [1, 1]} : vector<8x256xf32> to vector<1x256xf32>
    %1467 = vector.broadcast %1465 : vector<8x1xf32> to vector<8x256xf32>
    %1468 = vector.broadcast %1466 : vector<1x256xf32> to vector<8x256xf32>
    %1469 = arith.mulf %1467, %1468 : vector<8x256xf32>
    %1470 = arith.addf %1464, %1469 : vector<8x256xf32>
    %1471 = vector.extract_strided_slice %1453 {offsets = [0, 3], sizes = [8, 1], strides = [1, 1]} : vector<8x8xf32> to vector<8x1xf32>
    %1472 = vector.extract_strided_slice %1451 {offsets = [3, 0], sizes = [1, 256], strides = [1, 1]} : vector<8x256xf32> to vector<1x256xf32>
    %1473 = vector.broadcast %1471 : vector<8x1xf32> to vector<8x256xf32>
    %1474 = vector.broadcast %1472 : vector<1x256xf32> to vector<8x256xf32>
    %1475 = arith.mulf %1473, %1474 : vector<8x256xf32>
    %1476 = arith.addf %1470, %1475 : vector<8x256xf32>
    %1477 = vector.extract_strided_slice %1453 {offsets = [0, 4], sizes = [8, 1], strides = [1, 1]} : vector<8x8xf32> to vector<8x1xf32>
    %1478 = vector.extract_strided_slice %1451 {offsets = [4, 0], sizes = [1, 256], strides = [1, 1]} : vector<8x256xf32> to vector<1x256xf32>
    %1479 = vector.broadcast %1477 : vector<8x1xf32> to vector<8x256xf32>
    %1480 = vector.broadcast %1478 : vector<1x256xf32> to vector<8x256xf32>
    %1481 = arith.mulf %1479, %1480 : vector<8x256xf32>
    %1482 = arith.addf %1476, %1481 : vector<8x256xf32>
    %1483 = vector.extract_strided_slice %1453 {offsets = [0, 5], sizes = [8, 1], strides = [1, 1]} : vector<8x8xf32> to vector<8x1xf32>
    %1484 = vector.extract_strided_slice %1451 {offsets = [5, 0], sizes = [1, 256], strides = [1, 1]} : vector<8x256xf32> to vector<1x256xf32>
    %1485 = vector.broadcast %1483 : vector<8x1xf32> to vector<8x256xf32>
    %1486 = vector.broadcast %1484 : vector<1x256xf32> to vector<8x256xf32>
    %1487 = arith.mulf %1485, %1486 : vector<8x256xf32>
    %1488 = arith.addf %1482, %1487 : vector<8x256xf32>
    %1489 = vector.extract_strided_slice %1453 {offsets = [0, 6], sizes = [8, 1], strides = [1, 1]} : vector<8x8xf32> to vector<8x1xf32>
    %1490 = vector.extract_strided_slice %1451 {offsets = [6, 0], sizes = [1, 256], strides = [1, 1]} : vector<8x256xf32> to vector<1x256xf32>
    %1491 = vector.broadcast %1489 : vector<8x1xf32> to vector<8x256xf32>
    %1492 = vector.broadcast %1490 : vector<1x256xf32> to vector<8x256xf32>
    %1493 = arith.mulf %1491, %1492 : vector<8x256xf32>
    %1494 = arith.addf %1488, %1493 : vector<8x256xf32>
    %1495 = vector.extract_strided_slice %1453 {offsets = [0, 7], sizes = [8, 1], strides = [1, 1]} : vector<8x8xf32> to vector<8x1xf32>
    %1496 = vector.extract_strided_slice %1451 {offsets = [7, 0], sizes = [1, 256], strides = [1, 1]} : vector<8x256xf32> to vector<1x256xf32>
    %1497 = vector.broadcast %1495 : vector<8x1xf32> to vector<8x256xf32>
    %1498 = vector.broadcast %1496 : vector<1x256xf32> to vector<8x256xf32>
    %1499 = arith.mulf %1497, %1498 : vector<8x256xf32>
    %1500 = arith.addf %1494, %1499 : vector<8x256xf32>
    %1501 = vector.extract_strided_slice %3 {offsets = [5, 0], sizes = [1, 1], strides = [1, 1]} : vector<8x1xf32> to vector<1x1xf32>
    %cst_244 = arith.constant dense<0.000000e+00> : vector<8xf32>
    %1502 = vector.multi_reduction <add>, %1500, %cst_244 [1] : vector<8x256xf32> to vector<8xf32>
    %1503 = vector.shape_cast %1502 : vector<8xf32> to vector<8x1xf32>
    %1504 = vector.extract_strided_slice %4 {offsets = [0, 0], sizes = [8, 1], strides = [1, 1]} : vector<8x8xf32> to vector<8x1xf32>
    %1505 = vector.extract_strided_slice %1503 {offsets = [0, 0], sizes = [1, 1], strides = [1, 1]} : vector<8x1xf32> to vector<1x1xf32>
    %1506 = vector.broadcast %1505 : vector<1x1xf32> to vector<8x1xf32>
    %1507 = arith.mulf %1504, %1506 : vector<8x1xf32>
    %1508 = vector.extract_strided_slice %4 {offsets = [0, 1], sizes = [8, 1], strides = [1, 1]} : vector<8x8xf32> to vector<8x1xf32>
    %1509 = vector.extract_strided_slice %1503 {offsets = [1, 0], sizes = [1, 1], strides = [1, 1]} : vector<8x1xf32> to vector<1x1xf32>
    %1510 = vector.broadcast %1509 : vector<1x1xf32> to vector<8x1xf32>
    %1511 = arith.mulf %1508, %1510 : vector<8x1xf32>
    %1512 = arith.addf %1507, %1511 : vector<8x1xf32>
    %1513 = vector.extract_strided_slice %4 {offsets = [0, 2], sizes = [8, 1], strides = [1, 1]} : vector<8x8xf32> to vector<8x1xf32>
    %1514 = vector.extract_strided_slice %1503 {offsets = [2, 0], sizes = [1, 1], strides = [1, 1]} : vector<8x1xf32> to vector<1x1xf32>
    %1515 = vector.broadcast %1514 : vector<1x1xf32> to vector<8x1xf32>
    %1516 = arith.mulf %1513, %1515 : vector<8x1xf32>
    %1517 = arith.addf %1512, %1516 : vector<8x1xf32>
    %1518 = vector.extract_strided_slice %4 {offsets = [0, 3], sizes = [8, 1], strides = [1, 1]} : vector<8x8xf32> to vector<8x1xf32>
    %1519 = vector.extract_strided_slice %1503 {offsets = [3, 0], sizes = [1, 1], strides = [1, 1]} : vector<8x1xf32> to vector<1x1xf32>
    %1520 = vector.broadcast %1519 : vector<1x1xf32> to vector<8x1xf32>
    %1521 = arith.mulf %1518, %1520 : vector<8x1xf32>
    %1522 = arith.addf %1517, %1521 : vector<8x1xf32>
    %1523 = vector.extract_strided_slice %4 {offsets = [0, 4], sizes = [8, 1], strides = [1, 1]} : vector<8x8xf32> to vector<8x1xf32>
    %1524 = vector.extract_strided_slice %1503 {offsets = [4, 0], sizes = [1, 1], strides = [1, 1]} : vector<8x1xf32> to vector<1x1xf32>
    %1525 = vector.broadcast %1524 : vector<1x1xf32> to vector<8x1xf32>
    %1526 = arith.mulf %1523, %1525 : vector<8x1xf32>
    %1527 = arith.addf %1522, %1526 : vector<8x1xf32>
    %1528 = vector.extract_strided_slice %4 {offsets = [0, 5], sizes = [8, 1], strides = [1, 1]} : vector<8x8xf32> to vector<8x1xf32>
    %1529 = vector.extract_strided_slice %1503 {offsets = [5, 0], sizes = [1, 1], strides = [1, 1]} : vector<8x1xf32> to vector<1x1xf32>
    %1530 = vector.broadcast %1529 : vector<1x1xf32> to vector<8x1xf32>
    %1531 = arith.mulf %1528, %1530 : vector<8x1xf32>
    %1532 = arith.addf %1527, %1531 : vector<8x1xf32>
    %1533 = vector.extract_strided_slice %4 {offsets = [0, 6], sizes = [8, 1], strides = [1, 1]} : vector<8x8xf32> to vector<8x1xf32>
    %1534 = vector.extract_strided_slice %1503 {offsets = [6, 0], sizes = [1, 1], strides = [1, 1]} : vector<8x1xf32> to vector<1x1xf32>
    %1535 = vector.broadcast %1534 : vector<1x1xf32> to vector<8x1xf32>
    %1536 = arith.mulf %1533, %1535 : vector<8x1xf32>
    %1537 = arith.addf %1532, %1536 : vector<8x1xf32>
    %1538 = vector.extract_strided_slice %4 {offsets = [0, 7], sizes = [8, 1], strides = [1, 1]} : vector<8x8xf32> to vector<8x1xf32>
    %1539 = vector.extract_strided_slice %1503 {offsets = [7, 0], sizes = [1, 1], strides = [1, 1]} : vector<8x1xf32> to vector<1x1xf32>
    %1540 = vector.broadcast %1539 : vector<1x1xf32> to vector<8x1xf32>
    %1541 = arith.mulf %1538, %1540 : vector<8x1xf32>
    %1542 = arith.addf %1537, %1541 : vector<8x1xf32>
    %1543 = arith.mulf %1500, %1500 : vector<8x256xf32>
    %cst_245 = arith.constant dense<0.000000e+00> : vector<8xf32>
    %1544 = vector.multi_reduction <add>, %1543, %cst_245 [1] : vector<8x256xf32> to vector<8xf32>
    %1545 = vector.shape_cast %1544 : vector<8xf32> to vector<8x1xf32>
    %1546 = vector.extract_strided_slice %4 {offsets = [0, 0], sizes = [8, 1], strides = [1, 1]} : vector<8x8xf32> to vector<8x1xf32>
    %1547 = vector.extract_strided_slice %1545 {offsets = [0, 0], sizes = [1, 1], strides = [1, 1]} : vector<8x1xf32> to vector<1x1xf32>
    %1548 = vector.broadcast %1547 : vector<1x1xf32> to vector<8x1xf32>
    %1549 = arith.mulf %1546, %1548 : vector<8x1xf32>
    %1550 = vector.extract_strided_slice %4 {offsets = [0, 1], sizes = [8, 1], strides = [1, 1]} : vector<8x8xf32> to vector<8x1xf32>
    %1551 = vector.extract_strided_slice %1545 {offsets = [1, 0], sizes = [1, 1], strides = [1, 1]} : vector<8x1xf32> to vector<1x1xf32>
    %1552 = vector.broadcast %1551 : vector<1x1xf32> to vector<8x1xf32>
    %1553 = arith.mulf %1550, %1552 : vector<8x1xf32>
    %1554 = arith.addf %1549, %1553 : vector<8x1xf32>
    %1555 = vector.extract_strided_slice %4 {offsets = [0, 2], sizes = [8, 1], strides = [1, 1]} : vector<8x8xf32> to vector<8x1xf32>
    %1556 = vector.extract_strided_slice %1545 {offsets = [2, 0], sizes = [1, 1], strides = [1, 1]} : vector<8x1xf32> to vector<1x1xf32>
    %1557 = vector.broadcast %1556 : vector<1x1xf32> to vector<8x1xf32>
    %1558 = arith.mulf %1555, %1557 : vector<8x1xf32>
    %1559 = arith.addf %1554, %1558 : vector<8x1xf32>
    %1560 = vector.extract_strided_slice %4 {offsets = [0, 3], sizes = [8, 1], strides = [1, 1]} : vector<8x8xf32> to vector<8x1xf32>
    %1561 = vector.extract_strided_slice %1545 {offsets = [3, 0], sizes = [1, 1], strides = [1, 1]} : vector<8x1xf32> to vector<1x1xf32>
    %1562 = vector.broadcast %1561 : vector<1x1xf32> to vector<8x1xf32>
    %1563 = arith.mulf %1560, %1562 : vector<8x1xf32>
    %1564 = arith.addf %1559, %1563 : vector<8x1xf32>
    %1565 = vector.extract_strided_slice %4 {offsets = [0, 4], sizes = [8, 1], strides = [1, 1]} : vector<8x8xf32> to vector<8x1xf32>
    %1566 = vector.extract_strided_slice %1545 {offsets = [4, 0], sizes = [1, 1], strides = [1, 1]} : vector<8x1xf32> to vector<1x1xf32>
    %1567 = vector.broadcast %1566 : vector<1x1xf32> to vector<8x1xf32>
    %1568 = arith.mulf %1565, %1567 : vector<8x1xf32>
    %1569 = arith.addf %1564, %1568 : vector<8x1xf32>
    %1570 = vector.extract_strided_slice %4 {offsets = [0, 5], sizes = [8, 1], strides = [1, 1]} : vector<8x8xf32> to vector<8x1xf32>
    %1571 = vector.extract_strided_slice %1545 {offsets = [5, 0], sizes = [1, 1], strides = [1, 1]} : vector<8x1xf32> to vector<1x1xf32>
    %1572 = vector.broadcast %1571 : vector<1x1xf32> to vector<8x1xf32>
    %1573 = arith.mulf %1570, %1572 : vector<8x1xf32>
    %1574 = arith.addf %1569, %1573 : vector<8x1xf32>
    %1575 = vector.extract_strided_slice %4 {offsets = [0, 6], sizes = [8, 1], strides = [1, 1]} : vector<8x8xf32> to vector<8x1xf32>
    %1576 = vector.extract_strided_slice %1545 {offsets = [6, 0], sizes = [1, 1], strides = [1, 1]} : vector<8x1xf32> to vector<1x1xf32>
    %1577 = vector.broadcast %1576 : vector<1x1xf32> to vector<8x1xf32>
    %1578 = arith.mulf %1575, %1577 : vector<8x1xf32>
    %1579 = arith.addf %1574, %1578 : vector<8x1xf32>
    %1580 = vector.extract_strided_slice %4 {offsets = [0, 7], sizes = [8, 1], strides = [1, 1]} : vector<8x8xf32> to vector<8x1xf32>
    %1581 = vector.extract_strided_slice %1545 {offsets = [7, 0], sizes = [1, 1], strides = [1, 1]} : vector<8x1xf32> to vector<1x1xf32>
    %1582 = vector.broadcast %1581 : vector<1x1xf32> to vector<8x1xf32>
    %1583 = arith.mulf %1580, %1582 : vector<8x1xf32>
    %1584 = arith.addf %1579, %1583 : vector<8x1xf32>
    %cst_246 = arith.constant 0.001953125 : f32
    %1585 = vector.broadcast %cst_246 : f32 to vector<8x1xf32>
    %1586 = arith.mulf %1542, %1585 : vector<8x1xf32>
    %cst_247 = arith.constant 0.001953125 : f32
    %1587 = vector.broadcast %cst_247 : f32 to vector<8x1xf32>
    %1588 = arith.mulf %1584, %1587 : vector<8x1xf32>
    %1589 = arith.mulf %1586, %1586 : vector<8x1xf32>
    %1590 = arith.subf %1588, %1589 : vector<8x1xf32>
    %cst_248 = arith.constant 9.99999974E-6 : f32
    %1591 = vector.broadcast %cst_248 : f32 to vector<8x1xf32>
    %1592 = arith.addf %1590, %1591 : vector<8x1xf32>
    %1593 = math.rsqrt %1592 : vector<8x1xf32>
    %1594 = vector.broadcast %1501 : vector<1x1xf32> to vector<8x1xf32>
    %1595 = arith.mulf %1594, %1593 : vector<8x1xf32>
    %1596 = vector.broadcast %1586 : vector<8x1xf32> to vector<8x256xf32>
    %1597 = arith.subf %1500, %1596 : vector<8x256xf32>
    %1598 = vector.broadcast %1595 : vector<8x1xf32> to vector<8x256xf32>
    %1599 = arith.mulf %1597, %1598 : vector<8x256xf32>
    %c0_249 = arith.constant 0 : index
    %c0_250 = arith.constant 0 : index
    %c0_251 = arith.constant 0 : index
    %1600 = vector.load %arg14[%c0_249, %c0_250, %c0_251] : memref<1x8x8xf32, #tpu.memory_space<vmem>>, vector<1x8x8xf32>
    %1601 = vector.shape_cast %1600 : vector<1x8x8xf32> to vector<8x8xf32>
    %1602 = vector.extract_strided_slice %1601 {offsets = [0, 0], sizes = [8, 1], strides = [1, 1]} : vector<8x8xf32> to vector<8x1xf32>
    %1603 = vector.extract_strided_slice %607 {offsets = [0, 0], sizes = [1, 256], strides = [1, 1]} : vector<8x256xf32> to vector<1x256xf32>
    %1604 = vector.broadcast %1602 : vector<8x1xf32> to vector<8x256xf32>
    %1605 = vector.broadcast %1603 : vector<1x256xf32> to vector<8x256xf32>
    %1606 = arith.mulf %1604, %1605 : vector<8x256xf32>
    %1607 = vector.extract_strided_slice %1601 {offsets = [0, 1], sizes = [8, 1], strides = [1, 1]} : vector<8x8xf32> to vector<8x1xf32>
    %1608 = vector.extract_strided_slice %607 {offsets = [1, 0], sizes = [1, 256], strides = [1, 1]} : vector<8x256xf32> to vector<1x256xf32>
    %1609 = vector.broadcast %1607 : vector<8x1xf32> to vector<8x256xf32>
    %1610 = vector.broadcast %1608 : vector<1x256xf32> to vector<8x256xf32>
    %1611 = arith.mulf %1609, %1610 : vector<8x256xf32>
    %1612 = arith.addf %1606, %1611 : vector<8x256xf32>
    %1613 = vector.extract_strided_slice %1601 {offsets = [0, 2], sizes = [8, 1], strides = [1, 1]} : vector<8x8xf32> to vector<8x1xf32>
    %1614 = vector.extract_strided_slice %607 {offsets = [2, 0], sizes = [1, 256], strides = [1, 1]} : vector<8x256xf32> to vector<1x256xf32>
    %1615 = vector.broadcast %1613 : vector<8x1xf32> to vector<8x256xf32>
    %1616 = vector.broadcast %1614 : vector<1x256xf32> to vector<8x256xf32>
    %1617 = arith.mulf %1615, %1616 : vector<8x256xf32>
    %1618 = arith.addf %1612, %1617 : vector<8x256xf32>
    %1619 = vector.extract_strided_slice %1601 {offsets = [0, 3], sizes = [8, 1], strides = [1, 1]} : vector<8x8xf32> to vector<8x1xf32>
    %1620 = vector.extract_strided_slice %607 {offsets = [3, 0], sizes = [1, 256], strides = [1, 1]} : vector<8x256xf32> to vector<1x256xf32>
    %1621 = vector.broadcast %1619 : vector<8x1xf32> to vector<8x256xf32>
    %1622 = vector.broadcast %1620 : vector<1x256xf32> to vector<8x256xf32>
    %1623 = arith.mulf %1621, %1622 : vector<8x256xf32>
    %1624 = arith.addf %1618, %1623 : vector<8x256xf32>
    %1625 = vector.extract_strided_slice %1601 {offsets = [0, 4], sizes = [8, 1], strides = [1, 1]} : vector<8x8xf32> to vector<8x1xf32>
    %1626 = vector.extract_strided_slice %607 {offsets = [4, 0], sizes = [1, 256], strides = [1, 1]} : vector<8x256xf32> to vector<1x256xf32>
    %1627 = vector.broadcast %1625 : vector<8x1xf32> to vector<8x256xf32>
    %1628 = vector.broadcast %1626 : vector<1x256xf32> to vector<8x256xf32>
    %1629 = arith.mulf %1627, %1628 : vector<8x256xf32>
    %1630 = arith.addf %1624, %1629 : vector<8x256xf32>
    %1631 = vector.extract_strided_slice %1601 {offsets = [0, 5], sizes = [8, 1], strides = [1, 1]} : vector<8x8xf32> to vector<8x1xf32>
    %1632 = vector.extract_strided_slice %607 {offsets = [5, 0], sizes = [1, 256], strides = [1, 1]} : vector<8x256xf32> to vector<1x256xf32>
    %1633 = vector.broadcast %1631 : vector<8x1xf32> to vector<8x256xf32>
    %1634 = vector.broadcast %1632 : vector<1x256xf32> to vector<8x256xf32>
    %1635 = arith.mulf %1633, %1634 : vector<8x256xf32>
    %1636 = arith.addf %1630, %1635 : vector<8x256xf32>
    %1637 = vector.extract_strided_slice %1601 {offsets = [0, 6], sizes = [8, 1], strides = [1, 1]} : vector<8x8xf32> to vector<8x1xf32>
    %1638 = vector.extract_strided_slice %607 {offsets = [6, 0], sizes = [1, 256], strides = [1, 1]} : vector<8x256xf32> to vector<1x256xf32>
    %1639 = vector.broadcast %1637 : vector<8x1xf32> to vector<8x256xf32>
    %1640 = vector.broadcast %1638 : vector<1x256xf32> to vector<8x256xf32>
    %1641 = arith.mulf %1639, %1640 : vector<8x256xf32>
    %1642 = arith.addf %1636, %1641 : vector<8x256xf32>
    %1643 = vector.extract_strided_slice %1601 {offsets = [0, 7], sizes = [8, 1], strides = [1, 1]} : vector<8x8xf32> to vector<8x1xf32>
    %1644 = vector.extract_strided_slice %607 {offsets = [7, 0], sizes = [1, 256], strides = [1, 1]} : vector<8x256xf32> to vector<1x256xf32>
    %1645 = vector.broadcast %1643 : vector<8x1xf32> to vector<8x256xf32>
    %1646 = vector.broadcast %1644 : vector<1x256xf32> to vector<8x256xf32>
    %1647 = arith.mulf %1645, %1646 : vector<8x256xf32>
    %1648 = arith.addf %1642, %1647 : vector<8x256xf32>
    %1649 = vector.extract_strided_slice %3 {offsets = [6, 0], sizes = [1, 1], strides = [1, 1]} : vector<8x1xf32> to vector<1x1xf32>
    %cst_252 = arith.constant dense<0.000000e+00> : vector<8xf32>
    %1650 = vector.multi_reduction <add>, %1648, %cst_252 [1] : vector<8x256xf32> to vector<8xf32>
    %1651 = vector.shape_cast %1650 : vector<8xf32> to vector<8x1xf32>
    %1652 = vector.extract_strided_slice %4 {offsets = [0, 0], sizes = [8, 1], strides = [1, 1]} : vector<8x8xf32> to vector<8x1xf32>
    %1653 = vector.extract_strided_slice %1651 {offsets = [0, 0], sizes = [1, 1], strides = [1, 1]} : vector<8x1xf32> to vector<1x1xf32>
    %1654 = vector.broadcast %1653 : vector<1x1xf32> to vector<8x1xf32>
    %1655 = arith.mulf %1652, %1654 : vector<8x1xf32>
    %1656 = vector.extract_strided_slice %4 {offsets = [0, 1], sizes = [8, 1], strides = [1, 1]} : vector<8x8xf32> to vector<8x1xf32>
    %1657 = vector.extract_strided_slice %1651 {offsets = [1, 0], sizes = [1, 1], strides = [1, 1]} : vector<8x1xf32> to vector<1x1xf32>
    %1658 = vector.broadcast %1657 : vector<1x1xf32> to vector<8x1xf32>
    %1659 = arith.mulf %1656, %1658 : vector<8x1xf32>
    %1660 = arith.addf %1655, %1659 : vector<8x1xf32>
    %1661 = vector.extract_strided_slice %4 {offsets = [0, 2], sizes = [8, 1], strides = [1, 1]} : vector<8x8xf32> to vector<8x1xf32>
    %1662 = vector.extract_strided_slice %1651 {offsets = [2, 0], sizes = [1, 1], strides = [1, 1]} : vector<8x1xf32> to vector<1x1xf32>
    %1663 = vector.broadcast %1662 : vector<1x1xf32> to vector<8x1xf32>
    %1664 = arith.mulf %1661, %1663 : vector<8x1xf32>
    %1665 = arith.addf %1660, %1664 : vector<8x1xf32>
    %1666 = vector.extract_strided_slice %4 {offsets = [0, 3], sizes = [8, 1], strides = [1, 1]} : vector<8x8xf32> to vector<8x1xf32>
    %1667 = vector.extract_strided_slice %1651 {offsets = [3, 0], sizes = [1, 1], strides = [1, 1]} : vector<8x1xf32> to vector<1x1xf32>
    %1668 = vector.broadcast %1667 : vector<1x1xf32> to vector<8x1xf32>
    %1669 = arith.mulf %1666, %1668 : vector<8x1xf32>
    %1670 = arith.addf %1665, %1669 : vector<8x1xf32>
    %1671 = vector.extract_strided_slice %4 {offsets = [0, 4], sizes = [8, 1], strides = [1, 1]} : vector<8x8xf32> to vector<8x1xf32>
    %1672 = vector.extract_strided_slice %1651 {offsets = [4, 0], sizes = [1, 1], strides = [1, 1]} : vector<8x1xf32> to vector<1x1xf32>
    %1673 = vector.broadcast %1672 : vector<1x1xf32> to vector<8x1xf32>
    %1674 = arith.mulf %1671, %1673 : vector<8x1xf32>
    %1675 = arith.addf %1670, %1674 : vector<8x1xf32>
    %1676 = vector.extract_strided_slice %4 {offsets = [0, 5], sizes = [8, 1], strides = [1, 1]} : vector<8x8xf32> to vector<8x1xf32>
    %1677 = vector.extract_strided_slice %1651 {offsets = [5, 0], sizes = [1, 1], strides = [1, 1]} : vector<8x1xf32> to vector<1x1xf32>
    %1678 = vector.broadcast %1677 : vector<1x1xf32> to vector<8x1xf32>
    %1679 = arith.mulf %1676, %1678 : vector<8x1xf32>
    %1680 = arith.addf %1675, %1679 : vector<8x1xf32>
    %1681 = vector.extract_strided_slice %4 {offsets = [0, 6], sizes = [8, 1], strides = [1, 1]} : vector<8x8xf32> to vector<8x1xf32>
    %1682 = vector.extract_strided_slice %1651 {offsets = [6, 0], sizes = [1, 1], strides = [1, 1]} : vector<8x1xf32> to vector<1x1xf32>
    %1683 = vector.broadcast %1682 : vector<1x1xf32> to vector<8x1xf32>
    %1684 = arith.mulf %1681, %1683 : vector<8x1xf32>
    %1685 = arith.addf %1680, %1684 : vector<8x1xf32>
    %1686 = vector.extract_strided_slice %4 {offsets = [0, 7], sizes = [8, 1], strides = [1, 1]} : vector<8x8xf32> to vector<8x1xf32>
    %1687 = vector.extract_strided_slice %1651 {offsets = [7, 0], sizes = [1, 1], strides = [1, 1]} : vector<8x1xf32> to vector<1x1xf32>
    %1688 = vector.broadcast %1687 : vector<1x1xf32> to vector<8x1xf32>
    %1689 = arith.mulf %1686, %1688 : vector<8x1xf32>
    %1690 = arith.addf %1685, %1689 : vector<8x1xf32>
    %1691 = arith.mulf %1648, %1648 : vector<8x256xf32>
    %cst_253 = arith.constant dense<0.000000e+00> : vector<8xf32>
    %1692 = vector.multi_reduction <add>, %1691, %cst_253 [1] : vector<8x256xf32> to vector<8xf32>
    %1693 = vector.shape_cast %1692 : vector<8xf32> to vector<8x1xf32>
    %1694 = vector.extract_strided_slice %4 {offsets = [0, 0], sizes = [8, 1], strides = [1, 1]} : vector<8x8xf32> to vector<8x1xf32>
    %1695 = vector.extract_strided_slice %1693 {offsets = [0, 0], sizes = [1, 1], strides = [1, 1]} : vector<8x1xf32> to vector<1x1xf32>
    %1696 = vector.broadcast %1695 : vector<1x1xf32> to vector<8x1xf32>
    %1697 = arith.mulf %1694, %1696 : vector<8x1xf32>
    %1698 = vector.extract_strided_slice %4 {offsets = [0, 1], sizes = [8, 1], strides = [1, 1]} : vector<8x8xf32> to vector<8x1xf32>
    %1699 = vector.extract_strided_slice %1693 {offsets = [1, 0], sizes = [1, 1], strides = [1, 1]} : vector<8x1xf32> to vector<1x1xf32>
    %1700 = vector.broadcast %1699 : vector<1x1xf32> to vector<8x1xf32>
    %1701 = arith.mulf %1698, %1700 : vector<8x1xf32>
    %1702 = arith.addf %1697, %1701 : vector<8x1xf32>
    %1703 = vector.extract_strided_slice %4 {offsets = [0, 2], sizes = [8, 1], strides = [1, 1]} : vector<8x8xf32> to vector<8x1xf32>
    %1704 = vector.extract_strided_slice %1693 {offsets = [2, 0], sizes = [1, 1], strides = [1, 1]} : vector<8x1xf32> to vector<1x1xf32>
    %1705 = vector.broadcast %1704 : vector<1x1xf32> to vector<8x1xf32>
    %1706 = arith.mulf %1703, %1705 : vector<8x1xf32>
    %1707 = arith.addf %1702, %1706 : vector<8x1xf32>
    %1708 = vector.extract_strided_slice %4 {offsets = [0, 3], sizes = [8, 1], strides = [1, 1]} : vector<8x8xf32> to vector<8x1xf32>
    %1709 = vector.extract_strided_slice %1693 {offsets = [3, 0], sizes = [1, 1], strides = [1, 1]} : vector<8x1xf32> to vector<1x1xf32>
    %1710 = vector.broadcast %1709 : vector<1x1xf32> to vector<8x1xf32>
    %1711 = arith.mulf %1708, %1710 : vector<8x1xf32>
    %1712 = arith.addf %1707, %1711 : vector<8x1xf32>
    %1713 = vector.extract_strided_slice %4 {offsets = [0, 4], sizes = [8, 1], strides = [1, 1]} : vector<8x8xf32> to vector<8x1xf32>
    %1714 = vector.extract_strided_slice %1693 {offsets = [4, 0], sizes = [1, 1], strides = [1, 1]} : vector<8x1xf32> to vector<1x1xf32>
    %1715 = vector.broadcast %1714 : vector<1x1xf32> to vector<8x1xf32>
    %1716 = arith.mulf %1713, %1715 : vector<8x1xf32>
    %1717 = arith.addf %1712, %1716 : vector<8x1xf32>
    %1718 = vector.extract_strided_slice %4 {offsets = [0, 5], sizes = [8, 1], strides = [1, 1]} : vector<8x8xf32> to vector<8x1xf32>
    %1719 = vector.extract_strided_slice %1693 {offsets = [5, 0], sizes = [1, 1], strides = [1, 1]} : vector<8x1xf32> to vector<1x1xf32>
    %1720 = vector.broadcast %1719 : vector<1x1xf32> to vector<8x1xf32>
    %1721 = arith.mulf %1718, %1720 : vector<8x1xf32>
    %1722 = arith.addf %1717, %1721 : vector<8x1xf32>
    %1723 = vector.extract_strided_slice %4 {offsets = [0, 6], sizes = [8, 1], strides = [1, 1]} : vector<8x8xf32> to vector<8x1xf32>
    %1724 = vector.extract_strided_slice %1693 {offsets = [6, 0], sizes = [1, 1], strides = [1, 1]} : vector<8x1xf32> to vector<1x1xf32>
    %1725 = vector.broadcast %1724 : vector<1x1xf32> to vector<8x1xf32>
    %1726 = arith.mulf %1723, %1725 : vector<8x1xf32>
    %1727 = arith.addf %1722, %1726 : vector<8x1xf32>
    %1728 = vector.extract_strided_slice %4 {offsets = [0, 7], sizes = [8, 1], strides = [1, 1]} : vector<8x8xf32> to vector<8x1xf32>
    %1729 = vector.extract_strided_slice %1693 {offsets = [7, 0], sizes = [1, 1], strides = [1, 1]} : vector<8x1xf32> to vector<1x1xf32>
    %1730 = vector.broadcast %1729 : vector<1x1xf32> to vector<8x1xf32>
    %1731 = arith.mulf %1728, %1730 : vector<8x1xf32>
    %1732 = arith.addf %1727, %1731 : vector<8x1xf32>
    %cst_254 = arith.constant 0.001953125 : f32
    %1733 = vector.broadcast %cst_254 : f32 to vector<8x1xf32>
    %1734 = arith.mulf %1690, %1733 : vector<8x1xf32>
    %cst_255 = arith.constant 0.001953125 : f32
    %1735 = vector.broadcast %cst_255 : f32 to vector<8x1xf32>
    %1736 = arith.mulf %1732, %1735 : vector<8x1xf32>
    %1737 = arith.mulf %1734, %1734 : vector<8x1xf32>
    %1738 = arith.subf %1736, %1737 : vector<8x1xf32>
    %cst_256 = arith.constant 9.99999974E-6 : f32
    %1739 = vector.broadcast %cst_256 : f32 to vector<8x1xf32>
    %1740 = arith.addf %1738, %1739 : vector<8x1xf32>
    %1741 = math.rsqrt %1740 : vector<8x1xf32>
    %1742 = vector.broadcast %1649 : vector<1x1xf32> to vector<8x1xf32>
    %1743 = arith.mulf %1742, %1741 : vector<8x1xf32>
    %1744 = vector.broadcast %1734 : vector<8x1xf32> to vector<8x256xf32>
    %1745 = arith.subf %1648, %1744 : vector<8x256xf32>
    %1746 = vector.broadcast %1743 : vector<8x1xf32> to vector<8x256xf32>
    %1747 = arith.mulf %1745, %1746 : vector<8x256xf32>
    %c0_257 = arith.constant 0 : index
    %c0_258 = arith.constant 0 : index
    %c0_259 = arith.constant 0 : index
    %1748 = vector.load %arg16[%c0_257, %c0_258, %c0_259] : memref<1x8x8xf32, #tpu.memory_space<vmem>>, vector<1x8x8xf32>
    %1749 = vector.shape_cast %1748 : vector<1x8x8xf32> to vector<8x8xf32>
    %1750 = vector.extract_strided_slice %1749 {offsets = [0, 0], sizes = [8, 1], strides = [1, 1]} : vector<8x8xf32> to vector<8x1xf32>
    %1751 = vector.extract_strided_slice %739 {offsets = [0, 0], sizes = [1, 256], strides = [1, 1]} : vector<8x256xf32> to vector<1x256xf32>
    %1752 = vector.broadcast %1750 : vector<8x1xf32> to vector<8x256xf32>
    %1753 = vector.broadcast %1751 : vector<1x256xf32> to vector<8x256xf32>
    %1754 = arith.mulf %1752, %1753 : vector<8x256xf32>
    %1755 = vector.extract_strided_slice %1749 {offsets = [0, 1], sizes = [8, 1], strides = [1, 1]} : vector<8x8xf32> to vector<8x1xf32>
    %1756 = vector.extract_strided_slice %739 {offsets = [1, 0], sizes = [1, 256], strides = [1, 1]} : vector<8x256xf32> to vector<1x256xf32>
    %1757 = vector.broadcast %1755 : vector<8x1xf32> to vector<8x256xf32>
    %1758 = vector.broadcast %1756 : vector<1x256xf32> to vector<8x256xf32>
    %1759 = arith.mulf %1757, %1758 : vector<8x256xf32>
    %1760 = arith.addf %1754, %1759 : vector<8x256xf32>
    %1761 = vector.extract_strided_slice %1749 {offsets = [0, 2], sizes = [8, 1], strides = [1, 1]} : vector<8x8xf32> to vector<8x1xf32>
    %1762 = vector.extract_strided_slice %739 {offsets = [2, 0], sizes = [1, 256], strides = [1, 1]} : vector<8x256xf32> to vector<1x256xf32>
    %1763 = vector.broadcast %1761 : vector<8x1xf32> to vector<8x256xf32>
    %1764 = vector.broadcast %1762 : vector<1x256xf32> to vector<8x256xf32>
    %1765 = arith.mulf %1763, %1764 : vector<8x256xf32>
    %1766 = arith.addf %1760, %1765 : vector<8x256xf32>
    %1767 = vector.extract_strided_slice %1749 {offsets = [0, 3], sizes = [8, 1], strides = [1, 1]} : vector<8x8xf32> to vector<8x1xf32>
    %1768 = vector.extract_strided_slice %739 {offsets = [3, 0], sizes = [1, 256], strides = [1, 1]} : vector<8x256xf32> to vector<1x256xf32>
    %1769 = vector.broadcast %1767 : vector<8x1xf32> to vector<8x256xf32>
    %1770 = vector.broadcast %1768 : vector<1x256xf32> to vector<8x256xf32>
    %1771 = arith.mulf %1769, %1770 : vector<8x256xf32>
    %1772 = arith.addf %1766, %1771 : vector<8x256xf32>
    %1773 = vector.extract_strided_slice %1749 {offsets = [0, 4], sizes = [8, 1], strides = [1, 1]} : vector<8x8xf32> to vector<8x1xf32>
    %1774 = vector.extract_strided_slice %739 {offsets = [4, 0], sizes = [1, 256], strides = [1, 1]} : vector<8x256xf32> to vector<1x256xf32>
    %1775 = vector.broadcast %1773 : vector<8x1xf32> to vector<8x256xf32>
    %1776 = vector.broadcast %1774 : vector<1x256xf32> to vector<8x256xf32>
    %1777 = arith.mulf %1775, %1776 : vector<8x256xf32>
    %1778 = arith.addf %1772, %1777 : vector<8x256xf32>
    %1779 = vector.extract_strided_slice %1749 {offsets = [0, 5], sizes = [8, 1], strides = [1, 1]} : vector<8x8xf32> to vector<8x1xf32>
    %1780 = vector.extract_strided_slice %739 {offsets = [5, 0], sizes = [1, 256], strides = [1, 1]} : vector<8x256xf32> to vector<1x256xf32>
    %1781 = vector.broadcast %1779 : vector<8x1xf32> to vector<8x256xf32>
    %1782 = vector.broadcast %1780 : vector<1x256xf32> to vector<8x256xf32>
    %1783 = arith.mulf %1781, %1782 : vector<8x256xf32>
    %1784 = arith.addf %1778, %1783 : vector<8x256xf32>
    %1785 = vector.extract_strided_slice %1749 {offsets = [0, 6], sizes = [8, 1], strides = [1, 1]} : vector<8x8xf32> to vector<8x1xf32>
    %1786 = vector.extract_strided_slice %739 {offsets = [6, 0], sizes = [1, 256], strides = [1, 1]} : vector<8x256xf32> to vector<1x256xf32>
    %1787 = vector.broadcast %1785 : vector<8x1xf32> to vector<8x256xf32>
    %1788 = vector.broadcast %1786 : vector<1x256xf32> to vector<8x256xf32>
    %1789 = arith.mulf %1787, %1788 : vector<8x256xf32>
    %1790 = arith.addf %1784, %1789 : vector<8x256xf32>
    %1791 = vector.extract_strided_slice %1749 {offsets = [0, 7], sizes = [8, 1], strides = [1, 1]} : vector<8x8xf32> to vector<8x1xf32>
    %1792 = vector.extract_strided_slice %739 {offsets = [7, 0], sizes = [1, 256], strides = [1, 1]} : vector<8x256xf32> to vector<1x256xf32>
    %1793 = vector.broadcast %1791 : vector<8x1xf32> to vector<8x256xf32>
    %1794 = vector.broadcast %1792 : vector<1x256xf32> to vector<8x256xf32>
    %1795 = arith.mulf %1793, %1794 : vector<8x256xf32>
    %1796 = arith.addf %1790, %1795 : vector<8x256xf32>
    %1797 = vector.extract_strided_slice %3 {offsets = [7, 0], sizes = [1, 1], strides = [1, 1]} : vector<8x1xf32> to vector<1x1xf32>
    %cst_260 = arith.constant dense<0.000000e+00> : vector<8xf32>
    %1798 = vector.multi_reduction <add>, %1796, %cst_260 [1] : vector<8x256xf32> to vector<8xf32>
    %1799 = vector.shape_cast %1798 : vector<8xf32> to vector<8x1xf32>
    %1800 = vector.extract_strided_slice %4 {offsets = [0, 0], sizes = [8, 1], strides = [1, 1]} : vector<8x8xf32> to vector<8x1xf32>
    %1801 = vector.extract_strided_slice %1799 {offsets = [0, 0], sizes = [1, 1], strides = [1, 1]} : vector<8x1xf32> to vector<1x1xf32>
    %1802 = vector.broadcast %1801 : vector<1x1xf32> to vector<8x1xf32>
    %1803 = arith.mulf %1800, %1802 : vector<8x1xf32>
    %1804 = vector.extract_strided_slice %4 {offsets = [0, 1], sizes = [8, 1], strides = [1, 1]} : vector<8x8xf32> to vector<8x1xf32>
    %1805 = vector.extract_strided_slice %1799 {offsets = [1, 0], sizes = [1, 1], strides = [1, 1]} : vector<8x1xf32> to vector<1x1xf32>
    %1806 = vector.broadcast %1805 : vector<1x1xf32> to vector<8x1xf32>
    %1807 = arith.mulf %1804, %1806 : vector<8x1xf32>
    %1808 = arith.addf %1803, %1807 : vector<8x1xf32>
    %1809 = vector.extract_strided_slice %4 {offsets = [0, 2], sizes = [8, 1], strides = [1, 1]} : vector<8x8xf32> to vector<8x1xf32>
    %1810 = vector.extract_strided_slice %1799 {offsets = [2, 0], sizes = [1, 1], strides = [1, 1]} : vector<8x1xf32> to vector<1x1xf32>
    %1811 = vector.broadcast %1810 : vector<1x1xf32> to vector<8x1xf32>
    %1812 = arith.mulf %1809, %1811 : vector<8x1xf32>
    %1813 = arith.addf %1808, %1812 : vector<8x1xf32>
    %1814 = vector.extract_strided_slice %4 {offsets = [0, 3], sizes = [8, 1], strides = [1, 1]} : vector<8x8xf32> to vector<8x1xf32>
    %1815 = vector.extract_strided_slice %1799 {offsets = [3, 0], sizes = [1, 1], strides = [1, 1]} : vector<8x1xf32> to vector<1x1xf32>
    %1816 = vector.broadcast %1815 : vector<1x1xf32> to vector<8x1xf32>
    %1817 = arith.mulf %1814, %1816 : vector<8x1xf32>
    %1818 = arith.addf %1813, %1817 : vector<8x1xf32>
    %1819 = vector.extract_strided_slice %4 {offsets = [0, 4], sizes = [8, 1], strides = [1, 1]} : vector<8x8xf32> to vector<8x1xf32>
    %1820 = vector.extract_strided_slice %1799 {offsets = [4, 0], sizes = [1, 1], strides = [1, 1]} : vector<8x1xf32> to vector<1x1xf32>
    %1821 = vector.broadcast %1820 : vector<1x1xf32> to vector<8x1xf32>
    %1822 = arith.mulf %1819, %1821 : vector<8x1xf32>
    %1823 = arith.addf %1818, %1822 : vector<8x1xf32>
    %1824 = vector.extract_strided_slice %4 {offsets = [0, 5], sizes = [8, 1], strides = [1, 1]} : vector<8x8xf32> to vector<8x1xf32>
    %1825 = vector.extract_strided_slice %1799 {offsets = [5, 0], sizes = [1, 1], strides = [1, 1]} : vector<8x1xf32> to vector<1x1xf32>
    %1826 = vector.broadcast %1825 : vector<1x1xf32> to vector<8x1xf32>
    %1827 = arith.mulf %1824, %1826 : vector<8x1xf32>
    %1828 = arith.addf %1823, %1827 : vector<8x1xf32>
    %1829 = vector.extract_strided_slice %4 {offsets = [0, 6], sizes = [8, 1], strides = [1, 1]} : vector<8x8xf32> to vector<8x1xf32>
    %1830 = vector.extract_strided_slice %1799 {offsets = [6, 0], sizes = [1, 1], strides = [1, 1]} : vector<8x1xf32> to vector<1x1xf32>
    %1831 = vector.broadcast %1830 : vector<1x1xf32> to vector<8x1xf32>
    %1832 = arith.mulf %1829, %1831 : vector<8x1xf32>
    %1833 = arith.addf %1828, %1832 : vector<8x1xf32>
    %1834 = vector.extract_strided_slice %4 {offsets = [0, 7], sizes = [8, 1], strides = [1, 1]} : vector<8x8xf32> to vector<8x1xf32>
    %1835 = vector.extract_strided_slice %1799 {offsets = [7, 0], sizes = [1, 1], strides = [1, 1]} : vector<8x1xf32> to vector<1x1xf32>
    %1836 = vector.broadcast %1835 : vector<1x1xf32> to vector<8x1xf32>
    %1837 = arith.mulf %1834, %1836 : vector<8x1xf32>
    %1838 = arith.addf %1833, %1837 : vector<8x1xf32>
    %1839 = arith.mulf %1796, %1796 : vector<8x256xf32>
    %cst_261 = arith.constant dense<0.000000e+00> : vector<8xf32>
    %1840 = vector.multi_reduction <add>, %1839, %cst_261 [1] : vector<8x256xf32> to vector<8xf32>
    %1841 = vector.shape_cast %1840 : vector<8xf32> to vector<8x1xf32>
    %1842 = vector.extract_strided_slice %4 {offsets = [0, 0], sizes = [8, 1], strides = [1, 1]} : vector<8x8xf32> to vector<8x1xf32>
    %1843 = vector.extract_strided_slice %1841 {offsets = [0, 0], sizes = [1, 1], strides = [1, 1]} : vector<8x1xf32> to vector<1x1xf32>
    %1844 = vector.broadcast %1843 : vector<1x1xf32> to vector<8x1xf32>
    %1845 = arith.mulf %1842, %1844 : vector<8x1xf32>
    %1846 = vector.extract_strided_slice %4 {offsets = [0, 1], sizes = [8, 1], strides = [1, 1]} : vector<8x8xf32> to vector<8x1xf32>
    %1847 = vector.extract_strided_slice %1841 {offsets = [1, 0], sizes = [1, 1], strides = [1, 1]} : vector<8x1xf32> to vector<1x1xf32>
    %1848 = vector.broadcast %1847 : vector<1x1xf32> to vector<8x1xf32>
    %1849 = arith.mulf %1846, %1848 : vector<8x1xf32>
    %1850 = arith.addf %1845, %1849 : vector<8x1xf32>
    %1851 = vector.extract_strided_slice %4 {offsets = [0, 2], sizes = [8, 1], strides = [1, 1]} : vector<8x8xf32> to vector<8x1xf32>
    %1852 = vector.extract_strided_slice %1841 {offsets = [2, 0], sizes = [1, 1], strides = [1, 1]} : vector<8x1xf32> to vector<1x1xf32>
    %1853 = vector.broadcast %1852 : vector<1x1xf32> to vector<8x1xf32>
    %1854 = arith.mulf %1851, %1853 : vector<8x1xf32>
    %1855 = arith.addf %1850, %1854 : vector<8x1xf32>
    %1856 = vector.extract_strided_slice %4 {offsets = [0, 3], sizes = [8, 1], strides = [1, 1]} : vector<8x8xf32> to vector<8x1xf32>
    %1857 = vector.extract_strided_slice %1841 {offsets = [3, 0], sizes = [1, 1], strides = [1, 1]} : vector<8x1xf32> to vector<1x1xf32>
    %1858 = vector.broadcast %1857 : vector<1x1xf32> to vector<8x1xf32>
    %1859 = arith.mulf %1856, %1858 : vector<8x1xf32>
    %1860 = arith.addf %1855, %1859 : vector<8x1xf32>
    %1861 = vector.extract_strided_slice %4 {offsets = [0, 4], sizes = [8, 1], strides = [1, 1]} : vector<8x8xf32> to vector<8x1xf32>
    %1862 = vector.extract_strided_slice %1841 {offsets = [4, 0], sizes = [1, 1], strides = [1, 1]} : vector<8x1xf32> to vector<1x1xf32>
    %1863 = vector.broadcast %1862 : vector<1x1xf32> to vector<8x1xf32>
    %1864 = arith.mulf %1861, %1863 : vector<8x1xf32>
    %1865 = arith.addf %1860, %1864 : vector<8x1xf32>
    %1866 = vector.extract_strided_slice %4 {offsets = [0, 5], sizes = [8, 1], strides = [1, 1]} : vector<8x8xf32> to vector<8x1xf32>
    %1867 = vector.extract_strided_slice %1841 {offsets = [5, 0], sizes = [1, 1], strides = [1, 1]} : vector<8x1xf32> to vector<1x1xf32>
    %1868 = vector.broadcast %1867 : vector<1x1xf32> to vector<8x1xf32>
    %1869 = arith.mulf %1866, %1868 : vector<8x1xf32>
    %1870 = arith.addf %1865, %1869 : vector<8x1xf32>
    %1871 = vector.extract_strided_slice %4 {offsets = [0, 6], sizes = [8, 1], strides = [1, 1]} : vector<8x8xf32> to vector<8x1xf32>
    %1872 = vector.extract_strided_slice %1841 {offsets = [6, 0], sizes = [1, 1], strides = [1, 1]} : vector<8x1xf32> to vector<1x1xf32>
    %1873 = vector.broadcast %1872 : vector<1x1xf32> to vector<8x1xf32>
    %1874 = arith.mulf %1871, %1873 : vector<8x1xf32>
    %1875 = arith.addf %1870, %1874 : vector<8x1xf32>
    %1876 = vector.extract_strided_slice %4 {offsets = [0, 7], sizes = [8, 1], strides = [1, 1]} : vector<8x8xf32> to vector<8x1xf32>
    %1877 = vector.extract_strided_slice %1841 {offsets = [7, 0], sizes = [1, 1], strides = [1, 1]} : vector<8x1xf32> to vector<1x1xf32>
    %1878 = vector.broadcast %1877 : vector<1x1xf32> to vector<8x1xf32>
    %1879 = arith.mulf %1876, %1878 : vector<8x1xf32>
    %1880 = arith.addf %1875, %1879 : vector<8x1xf32>
    %cst_262 = arith.constant 0.001953125 : f32
    %1881 = vector.broadcast %cst_262 : f32 to vector<8x1xf32>
    %1882 = arith.mulf %1838, %1881 : vector<8x1xf32>
    %cst_263 = arith.constant 0.001953125 : f32
    %1883 = vector.broadcast %cst_263 : f32 to vector<8x1xf32>
    %1884 = arith.mulf %1880, %1883 : vector<8x1xf32>
    %1885 = arith.mulf %1882, %1882 : vector<8x1xf32>
    %1886 = arith.subf %1884, %1885 : vector<8x1xf32>
    %cst_264 = arith.constant 9.99999974E-6 : f32
    %1887 = vector.broadcast %cst_264 : f32 to vector<8x1xf32>
    %1888 = arith.addf %1886, %1887 : vector<8x1xf32>
    %1889 = math.rsqrt %1888 : vector<8x1xf32>
    %1890 = vector.broadcast %1797 : vector<1x1xf32> to vector<8x1xf32>
    %1891 = arith.mulf %1890, %1889 : vector<8x1xf32>
    %1892 = vector.broadcast %1882 : vector<8x1xf32> to vector<8x256xf32>
    %1893 = arith.subf %1796, %1892 : vector<8x256xf32>
    %1894 = vector.broadcast %1891 : vector<8x1xf32> to vector<8x256xf32>
    %1895 = arith.mulf %1893, %1894 : vector<8x256xf32>
    %1896 = arith.addf %202, %301 : vector<8x256xf32>
    %1897 = vector.extract_strided_slice %3 {offsets = [3, 0], sizes = [1, 1], strides = [1, 1]} : vector<8x1xf32> to vector<1x1xf32>
    %1898 = vector.broadcast %1897 : vector<1x1xf32> to vector<8x256xf32>
    %1899 = arith.mulf %1898, %1 : vector<8x256xf32>
    %1900 = arith.addf %1896, %1899 : vector<8x256xf32>
    %1901 = arith.addf %1900, %1105 : vector<8x256xf32>
    %1902 = arith.addf %1901, %1599 : vector<8x256xf32>
    %1903 = arith.addf %1902, %1747 : vector<8x256xf32>
    %1904 = arith.addf %1903, %1895 : vector<8x256xf32>
    %c0_265 = arith.constant 0 : index
    %c0_266 = arith.constant 0 : index
    %c0_267 = arith.constant 0 : index
    %1905 = vector.load %arg17[%c0_265, %c0_266, %c0_267] : memref<1x8x256xf32, #tpu.memory_space<vmem>>, vector<1x8x256xf32>
    %1906 = vector.shape_cast %1905 : vector<1x8x256xf32> to vector<8x256xf32>
    %1907 = vector.shape_cast %1904 : vector<8x256xf32> to vector<1x8x256xf32>
    tpu.vector_store %arg17[%c0_265, %c0_266, %c0_267], %1907 {strides = array<i32>} : memref<1x8x256xf32, #tpu.memory_space<vmem>>, vector<1x8x256xf32>,
    return
  }
  func.func @transform_0(%arg0: i32) -> (i32, i32, i32) {
    %c0_i32 = arith.constant 0 : i32
    %c0_i32_0 = arith.constant 0 : i32
    %c0_i32_1 = arith.constant 0 : i32
    return %arg0, %c0_i32, %c0_i32_0 : i32, i32, i32
  }
  func.func @transform_1(%arg0: i32) -> (i32, i32) {
    %c0_i32 = arith.constant 0 : i32
    %c0_i32_0 = arith.constant 0 : i32
    %c0_i32_1 = arith.constant 0 : i32
    return %c0_i32, %c0_i32_0 : i32, i32
  }
  func.func @transform_2(%arg0: i32) -> (i32, i32) {
    %c0_i32 = arith.constant 0 : i32
    %c0_i32_0 = arith.constant 0 : i32
    %c0_i32_1 = arith.constant 0 : i32
    return %c0_i32, %c0_i32_0 : i32, i32
  }
  func.func @transform_3(%arg0: i32) -> (i32, i32, i32) {
    %c0_i32 = arith.constant 0 : i32
    %c0_i32_0 = arith.constant 0 : i32
    %c0_i32_1 = arith.constant 0 : i32
    return %arg0, %c0_i32, %c0_i32_0 : i32, i32, i32
  }
  func.func @transform_4(%arg0: i32) -> (i32, i32, i32) {
    %c0_i32 = arith.constant 0 : i32
    %c0_i32_0 = arith.constant 0 : i32
    %c0_i32_1 = arith.constant 0 : i32
    return %arg0, %c0_i32, %c0_i32_0 : i32, i32, i32
  }
  func.func @transform_5(%arg0: i32) -> (i32, i32, i32) {
    %c0_i32 = arith.constant 0 : i32
    %c0_i32_0 = arith.constant 0 : i32
    %c0_i32_1 = arith.constant 0 : i32
    return %arg0, %c0_i32, %c0_i32_0 : i32, i32, i32
  }
  func.func @transform_6(%arg0: i32) -> (i32, i32, i32) {
    %c0_i32 = arith.constant 0 : i32
    %c0_i32_0 = arith.constant 0 : i32
    %c0_i32_1 = arith.constant 0 : i32
    return %arg0, %c0_i32, %c0_i32_0 : i32, i32, i32
  }
  func.func @transform_7(%arg0: i32) -> (i32, i32, i32) {
    %c0_i32 = arith.constant 0 : i32
    %c0_i32_0 = arith.constant 0 : i32
    %c0_i32_1 = arith.constant 0 : i32
    return %arg0, %c0_i32, %c0_i32_0 : i32, i32, i32
  }
  func.func @transform_8(%arg0: i32) -> (i32, i32, i32) {
    %c0_i32 = arith.constant 0 : i32
    %c0_i32_0 = arith.constant 0 : i32
    %c0_i32_1 = arith.constant 0 : i32
    return %arg0, %c0_i32, %c0_i32_0 : i32, i32, i32
  }
  func.func @transform_9(%arg0: i32) -> (i32, i32, i32) {
    %c0_i32 = arith.constant 0 : i32
    %c0_i32_0 = arith.constant 0 : i32
    %c0_i32_1 = arith.constant 0 : i32
    return %arg0, %c0_i32, %c0_i32_0 : i32, i32, i32
  }
  func.func @transform_10(%arg0: i32) -> (i32, i32, i32) {
    %c0_i32 = arith.constant 0 : i32
    %c0_i32_0 = arith.constant 0 : i32
    %c0_i32_1 = arith.constant 0 : i32
    return %arg0, %c0_i32, %c0_i32_0 : i32, i32, i32
  }
  func.func @transform_11(%arg0: i32) -> (i32, i32, i32) {
    %c0_i32 = arith.constant 0 : i32
    %c0_i32_0 = arith.constant 0 : i32
    %c0_i32_1 = arith.constant 0 : i32
    return %arg0, %c0_i32, %c0_i32_0 : i32, i32, i32
  }
  func.func @transform_12(%arg0: i32) -> (i32, i32, i32) {
    %c0_i32 = arith.constant 0 : i32
    %c0_i32_0 = arith.constant 0 : i32
    %c0_i32_1 = arith.constant 0 : i32
    return %arg0, %c0_i32, %c0_i32_0 : i32, i32, i32
  }
  func.func @transform_13(%arg0: i32) -> (i32, i32, i32) {
    %c0_i32 = arith.constant 0 : i32
    %c0_i32_0 = arith.constant 0 : i32
    %c0_i32_1 = arith.constant 0 : i32
    return %arg0, %c0_i32, %c0_i32_0 : i32, i32, i32
  }
  func.func @transform_14(%arg0: i32) -> (i32, i32, i32) {
    %c0_i32 = arith.constant 0 : i32
    %c0_i32_0 = arith.constant 0 : i32
    %c0_i32_1 = arith.constant 0 : i32
    return %arg0, %c0_i32, %c0_i32_0 : i32, i32, i32
  }
  func.func @transform_15(%arg0: i32) -> (i32, i32, i32) {
    %c0_i32 = arith.constant 0 : i32
    %c0_i32_0 = arith.constant 0 : i32
    %c0_i32_1 = arith.constant 0 : i32
    return %arg0, %c0_i32, %c0_i32_0 : i32, i32, i32
  }
  func.func @transform_16(%arg0: i32) -> (i32, i32, i32) {
    %c0_i32 = arith.constant 0 : i32
    %c0_i32_0 = arith.constant 0 : i32
    %c0_i32_1 = arith.constant 0 : i32
    return %arg0, %c0_i32, %c0_i32_0 : i32, i32, i32
  }
}

</mosaic_0001>

<bundles_post_ra>
// kernel: _lambda_.1
= control target key start
LH: loop header
LB: loop body
LE: loop exit
PB: predicated region body
PF: predicated region fallthrough
CT: control target
= control target key end

     0   :  { %v8444_v1 = vmov 4   ;;  %v8443_v2 = vmov 12   ;;  %s8506_s24 = smov 16   ;;  %s8523_s25 = smov 17   ;;  %v8457_v10 = vmov 6   ;;  %v8451_v11 = vmov 1   ;;  %s8416_s3 = inlined_call_operand.vmem [shape: f32[1,8,256], index: 3, kind: input, shape index: {}]   ;;  %s8417_s4 = inlined_call_operand.vmem [shape: f32[1,8,9], index: 4, kind: input, shape index: {}]   ;;  %s8418_s8 = inlined_call_operand.vmem [shape: f32[1,8,25], index: 8, kind: input, shape index: {}]   ;;  %s8419_s12 = inlined_call_operand.vmem [shape: f32[1,8,9], index: 12, kind: input, shape index: {}]   ;;  %s8420_s14 = inlined_call_operand.vmem [shape: f32[1,8,25], index: 14, kind: input, shape index: {}]   ;;  %s8421_s1 = inlined_call_operand.vmem [shape: f32[41,256], index: 1, kind: input, shape index: {}]   ;;  %s8422_s2 = inlined_call_operand.vmem [shape: f32[8,8], index: 2, kind: input, shape index: {}]   ;;  %s8423_s5 = inlined_call_operand.vmem [shape: f32[1,8,8], index: 5, kind: input, shape index: {}]   ;;  %s8424_s0 = inlined_call_operand.vmem [shape: f32[1,8,1], index: 0, kind: input, shape index: {}]   ;;  %s8425_s6 = inlined_call_operand.vmem [shape: f32[1,8,9], index: 6, kind: input, shape index: {}]   ;;  %s8426_s7 = inlined_call_operand.vmem [shape: f32[1,8,8], index: 7, kind: input, shape index: {}]   ;;  %s8427_s9 = inlined_call_operand.vmem [shape: f32[1,8,8], index: 9, kind: input, shape index: {}]   ;;  %s8428_s10 = inlined_call_operand.vmem [shape: f32[1,8,25], index: 10, kind: input, shape index: {}]   ;;  %s8429_s11 = inlined_call_operand.vmem [shape: f32[1,8,8], index: 11, kind: input, shape index: {}]   ;;  %s8430_s13 = inlined_call_operand.vmem [shape: f32[1,8,8], index: 13, kind: input, shape index: {}]   ;;  %s8431_s15 = inlined_call_operand.vmem [shape: f32[1,8,8], index: 15, kind: input, shape index: {}]   ;;  %s8432_s16 = inlined_call_operand.vmem [shape: f32[1,8,256], index: 16, kind: output, shape index: {}]  }
   0x1   :  { %8798 = sst [smem:[#allocation159_spill]] %s8416_s3  ;;  %4557 = vset.pattern.permute.xlu1 %v8444_v1  ;;  %4558 = vset.pattern.permute.xlu0 %v8443_v2  ;;  %s8486_s28 = smov 15   ;;  %v4905_v4 = vld [vmem:[%s8417_s4] sm:$0xff]  ;;  %v8463_v12 = vmov 7   ;;  %v8449_v13 = vmov 2   ;;  %v61_v14 = vlaneseq  ;;  %v8455_v23 = vmov 0  }
   0x2   :  { %s8799_s23 = sld [smem:[#allocation159_spill]]  ;;  %s8499_s29 = smov 1   ;;  %v4910_v5 = vld [vmem:[%s8418_s8] sm:$0xff]  ;;  %v4452_v15 = vld [vmem:[%s8421_s1 + $0x16] ss:$8 sm:$0x3] }
   0x3   :  { %s4715_s30 = smov 127   ;;  %s8540_s3 = smov 113   ;;  %v4917_v6 = vld [vmem:[%s8419_s12] sm:$0xff]  ;;  %v4958_v16 = vshrl.u32 %v61_v14, 7  ;;  %vm108_vm0 = vcmp.gt.f32.partialorder %v4452_v15, 0.5  ;;  %v4966_v19 = vand.u32 127, %v61_v14 }
   0x4   :  { %s8546_s17 = smov 112   ;;  %s8440_s18 = smov 111   ;;  %v4929_v8 = vld [vmem:[%s8420_s14] sm:$0xff]  ;;  %v4451_v17 = vld [vmem:[%s8421_s1 + $0x15] ss:$8 sm:$0x3] }
   0x5   :  { %s8436_s19 = smov 34   ;;  %s8434_s22 = smov 33   ;;  %v4453_v18 = vld [vmem:[%s8421_s1 + $0x17] ss:$8 sm:$0x3]  ;;  %vm68_vm1 = vcmp.gt.f32.partialorder %v4451_v17, 0.5 }
   0x6   :  { %s8465_s26 = smov 31   ;;  %s8438_s27 = smov 32   ;;  %v4969_v20 = vsub.s32 0, %v4958_v16  ;;  %v4972_v21 = vsub.s32 1, %v4958_v16  ;;  %v109_v24 = vsel %vm108_vm0, 1, %v8455_v23  ;;  %vm148_vm2 = vcmp.gt.f32.partialorder %v4453_v18, 0.5 }
   0x7   :  { %v4454_v22 = vld [vmem:[%s8421_s1 + $0x23] ss:$8 sm:$0x3]  ;;  %v4455_v25 = vld [vmem:[%s8421_s1 + $0x24] ss:$8 sm:$0x3] }
   0x8   :  { %v4861_v0 = vld [vmem:[%s8799_s23] sm:$0xff]  ;;  %v4872_v3 = vld [vmem:[%s8799_s23 + $0x8] sm:$0xff]  ;;  %8800 = vst [vmem:[#allocation2_spill] sm:$0xff] %v4969_v20  ;;  %8801 = vst [vmem:[#allocation3_spill] sm:$0xff] %v4972_v21  ;;  %v69_v26 = vsel %vm68_vm1, 1, %v8455_v23  ;;  %vm188_vm3 = vcmp.gt.f32.partialorder %v4454_v22, 0.5  ;;  %v113_v28 = vrot.slane %v109_v24, %v4969_v20  ;;  %v117_v29 = vrot.slane %v109_v24, %v4972_v21 }
   0x9   :  { %99 = vrot.lane.b32.xlu1 %v4861_v0, %s8506_s24  ;;  %57 = vrot.lane.b32.xlu0 %v4861_v0, %s8523_s25  ;;  %v4920_v7 = vmax.f32 %v4861_v0, 0.0  ;;  %v4935_v9 = vmax.f32 %v4872_v3, 0.0  ;;  %v4456_v27 = vld [vmem:[%s8421_s1 + $0x30] ss:$8 sm:$0x3]  ;;  %vm8442_vm4 = vcmp.lt.s32.totalorder %v4966_v19, 16  ;;  %v4990_v31 = vrot.slane %v4452_v15, %v4969_v20 }
   0xa   :  { %v149_v30 = vsel %vm148_vm2, 1, %v8455_v23  ;;  %vm228_vm5 = vcmp.gt.f32.partialorder %v4455_v25, 0.5  ;;  %v4993_v32 = vrot.slane %v4452_v15, %v4972_v21  ;;  %vm63_vm6 = vcmp.lt.s32.totalorder %v4966_v19, 17  ;;  %v4457_v47 = vld [vmem:[%s8421_s1 + $0x31] ss:$8 sm:$0x3] }
   0xb   :  { %8802 = vst [vmem:[#allocation4_spill] sm:$0xff] %v4990_v31  ;;  %v73_v33 = vrot.slane %v69_v26, %v4969_v20  ;;  %v77_v36 = vrot.slane %v69_v26, %v4972_v21  ;;  %v4999_v37 = vrot.slane %v4451_v17, %v4969_v20  ;;  %v189_v38 = vsel %vm188_vm3, 1, %v8455_v23  ;;  %v4459_v60 = vld [vmem:[%s8421_s1 + $0x50] ss:$8 sm:$0x3]  ;;  %s8461_s20 = smov 30  }
   0xc   :  { %8803 = vst [vmem:[#allocation5_spill] sm:$0xff] %v4993_v32  ;;  %vm268_vm7 = vcmp.gt.f32.partialorder %v4456_v27, 0.5  ;;  %v5003_v39 = vrot.slane %v4451_v17, %v4972_v21  ;;  %vm8446_vm8 = vcmp.lt.s32.totalorder %v4966_v19, 15  ;;  %v153_v40 = vrot.slane %v149_v30, %v4969_v20  ;;  %v5067_v17 = vld [vmem:[%s8421_s1 + $0x32] ss:$8 sm:$0x3] }
   0xd   :  { %101 = vrot.lane.b32.xlu1 %v4872_v3, %s8506_s24  ;;  %59 = vrot.lane.b32.xlu0 %v4872_v3, %s8523_s25  ;;  %8804 = vst [vmem:[#allocation6_spill] sm:$0xff] %v4999_v37  ;;  %v157_v41 = vrot.slane %v149_v30, %v4972_v21  ;;  %v229_v42 = vsel %vm228_vm5, 1, %v8455_v23  ;;  %vm5009_vm9 = vcmp.eq.s32.totalorder %v113_v28, 1  ;;  %vm5013_vm10 = vcmp.eq.s32.totalorder %v117_v29, 1  ;;  %s8459_s21 = smov 18  }
   0xe   :  { %8805 = vst [vmem:[#allocation7_spill] sm:$0xff] %v5003_v39  ;;  %v5018_v45 = vrot.slane %v4453_v18, %v4969_v20  ;;  %v5021_v46 = vrot.slane %v4453_v18, %v4972_v21  ;;  %vm5026_vm11 = vcmp.eq.s32.totalorder %v73_v33, 1  ;;  %v193_v49 = vrot.slane %v189_v38, %v4969_v20 }
   0xf   :  { %v197_v50 = vrot.slane %v189_v38, %v4972_v21  ;;  %v269_v51 = vsel %vm268_vm7, 1, %v8455_v23  ;;  %vm5033_vm12 = vcmp.eq.s32.totalorder %v77_v36, 1  ;;  %vm8749_vm13 = vcmp.lt.s32.totalorder %v4966_v19, 1 }
  0x10   :  { %8810 = vst [vmem:[#allocation8_spill] sm:$0xff] %v5018_v45  ;;  %8811 = vst [vmem:[#allocation9_spill] sm:$0xff] %v5021_v46  ;;  %v5039_v55 = vrot.slane %v4454_v22, %v4969_v20  ;;  %v5042_v56 = vrot.slane %v4454_v22, %v4972_v21  ;;  %v233_v57 = vrot.slane %v229_v42, %v4969_v20  ;;  %vm5049_vm14 = vcmp.eq.s32.totalorder %v153_v40, 1 }
  0x11   :  { %141 = vrot.lane.b32.xlu1 %v4872_v3, %s8486_s28  ;;  %139 = vrot.lane.b32.xlu0 %v4861_v0, %s8486_s28  ;;  %vm5053_vm15 = vcmp.eq.s32.totalorder %v157_v41, 1  ;;  %v237_v62 = vrot.slane %v229_v42, %v4972_v21  ;;  %vm308_vm0 = vcmp.gt.f32.partialorder %v4457_v47, 0.5  ;;  %vm223_vm1 = vcmp.lt.s32.totalorder %v4966_v19, 127 }
  0x12   :  { %8816 = vst [vmem:[#allocation10_spill] sm:$0xff] %v5039_v55  ;;  %8817 = vst [vmem:[#allocation11_spill] sm:$0xff] %v5042_v56  ;;  %v5060_v63 = vrot.slane %v4455_v25, %v4969_v20  ;;  %v273_v14 = vrot.slane %v269_v51, %v4969_v20  ;;  %v277_v15 = vrot.slane %v269_v51, %v4972_v21  ;;  %vm5075_vm2 = vcmp.eq.s32.totalorder %v193_v49, 1 }
  0x13   :  { %vm5079_vm3 = vcmp.eq.s32.totalorder %v197_v50, 1  ;;  %v5087_v36 = vrot.slane %v4456_v27, %v4969_v20  ;;  %v5090_v38 = vrot.slane %v4456_v27, %v4972_v21  ;;  %v309_v40 = vsel %vm308_vm0, 1, %v8455_v23 }
  0x14   :  { %8822 = vst [vmem:[#allocation12_spill] sm:$0xff] %v5060_v63  ;;  %vm5098_vm5 = vcmp.eq.s32.totalorder %v233_v57, 1  ;;  %vm5102_vm7 = vcmp.eq.s32.totalorder %v237_v62, 1  ;;  %v5107_v27 = vrot.slane %v4457_v47, %v4969_v20  ;;  %vm5115_vm0 = vcmp.eq.s32.totalorder %v273_v14, 1 }
  0x15   :  { %181 = vrot.lane.b32.xlu1 %v4872_v3, %s8499_s29  ;;  %179 = vrot.lane.b32.xlu0 %v4861_v0, %s8499_s29  ;;  %8828 = vst [vmem:[#allocation14_spill] sm:$0xff] %v5087_v36  ;;  %8829 = vst [vmem:[#allocation15_spill] sm:$0xff] %v5090_v38  ;;  %v313_v54 = vrot.slane %v309_v40, %v4969_v20  ;;  %v5125_v57 = vrot.slane %v4457_v47, %v4972_v21 }
  0x16   :  { %8834 = vst [vmem:[#allocation16_spill] sm:$0xff] %v5107_v27  ;;  %v317_v47 = vrot.slane %v309_v40, %v4972_v21 }
  0x17   :  { %8839 = vst [vmem:[#allocation17_spill] sm:$0xff] %v5125_v57 }
  0x19   :  { %221 = vrot.lane.b32.xlu1 %v4872_v3, %s4715_s30  ;;  %219 = vrot.lane.b32.xlu0 %v4861_v0, %s4715_s30 }
  0x1d   :  { %261 = vrot.lane.b32.xlu1 %v4872_v3, %s8540_s3  ;;  %259 = vrot.lane.b32.xlu0 %v4861_v0, %s8540_s3 }
  0x21   :  { %301 = vrot.lane.b32.xlu1 %v4872_v3, %s8546_s17  ;;  %299 = vrot.lane.b32.xlu0 %v4861_v0, %s8546_s17 }
  0x25   :  { %341 = vrot.lane.b32.xlu1 %v4872_v3, %s8440_s18  ;;  %339 = vrot.lane.b32.xlu0 %v4861_v0, %s8440_s18  ;;  %s8493_s18 = smov 2  }
  0x29   :  { %768 = vperm.xlu1 %4557, %v4905_v4   ;;  %775 = vperm.xlu0 %4558, %v4910_v5  }
  0x2d   :  { %782 = vperm.xlu1 %4557, %v4917_v6   ;;  %794 = vrot.lane.b32.xlu0 %v4920_v7, %s8436_s19 }
  0x2e   :  { %4563 = vset.pattern.permute.xlu0 %v8444_v1 }
  0x31   :  { %4559 = vset.pattern.permute.xlu1 %v8443_v2  ;;  %840 = vrot.lane.b32.xlu0 %v4920_v7, %s8434_s22 }
  0x32   :  { %789 = vperm.xlu1 %4559, %v4929_v8  }
  0x35   :  { %916 = vrot.lane.b32.xlu0 %v4920_v7, %s8465_s26 }
  0x36   :  { %796 = vrot.lane.b32.xlu1 %v4935_v9, %s8436_s19  ;;  %s8453_s19 = smov 14  }
  0x37   :  { %4560 = vset.pattern.permute.xlu1 %v8457_v10 }
  0x3a   :  { %833 = vperm.xlu1 %4560, %v4929_v8  }
  0x3e   :  { %842 = vrot.lane.b32.xlu1 %v4935_v9, %s8434_s22  ;;  %s4736_s22 = smov 126  }
  0x3f   :  { %4561 = vset.pattern.permute.xlu1 %v8451_v11 }
  0x42   :  { %870 = vrot.lane.b32.xlu1 %v4920_v7, %s8438_s27 }
  0x46   :  { %872 = vrot.lane.b32.xlu1 %v4935_v9, %s8438_s27  ;;  %s8550_s27 = smov 125  }
  0x4a   :  { %901 = vperm.xlu1 %4561, %v4917_v6  }
  0x4e   :  { %4562 = vset.pattern.permute.xlu1 %v8463_v12 }
  0x4f   :  { %909 = vperm.xlu1 %4562, %v4929_v8  }
  0x53   :  { %4565 = vset.pattern.permute.xlu1 %v8449_v13 }
  0x7b   :  { %v100_v34 = vpop.permute.xlu1 %99  ;;  %v58_v35 = vpop.permute.xlu0 %57 }
  0x7f   :  { %v102_v52 = vpop.permute.xlu1 %101  ;;  %v60_v53 = vpop.permute.xlu0 %59 }
  0x80   :  { %v64_v58 = vsel %vm63_vm6, %v58_v35, %v60_v53  ;;  %v65_v59 = vsel %vm63_vm6, %v60_v53, %v58_v35  ;;  %v5084_v35 = vrot.slane %v4455_v25, %v4972_v21  ;;  %v104_v41 = vsel %vm8442_vm4, %v100_v34, %v102_v52 }
  0x81   :  { %v80_v18 = vsel %vm5026_vm11, %v65_v59, -inf  ;;  %v81_v22 = vsel %vm5033_vm12, %v64_v58, -inf  ;;  %v95_v24 = vmul.f32 %v4999_v37, %v65_v59  ;;  %v96_v26 = vmul.f32 %v5003_v39, %v64_v58 }
  0x82   :  { %8827 = vst [vmem:[#allocation13_spill] sm:$0xff] %v5084_v35  ;;  %v105_v42 = vsel %vm8442_vm4, %v102_v52, %v100_v34  ;;  %vm348_vm11 = vcmp.gt.f32.partialorder %v5067_v17, 0.5  ;;  %v82_v49 = vmax.f32 %v4861_v0, %v80_v18  ;;  %v83_v50 = vmax.f32 %v4872_v3, %v81_v22 }
  0x83   :  { %v142_v30 = vpop.permute.xlu1 %141  ;;  %v140_v33 = vpop.permute.xlu0 %139  ;;  %v97_v51 = vadd.f32 %v95_v24, %v4861_v0  ;;  %v98_v34 = vadd.f32 %v96_v26, %v4872_v3  ;;  %vm263_vm12 = vcmp.lt.s32.totalorder %v4966_v19, 113  ;;  %vm5119_vm4 = vcmp.eq.s32.totalorder %v277_v15, 1 }
  0x84   :  { %v135_v58 = vmul.f32 %v4990_v31, %v105_v42  ;;  %v136_v0 = vmul.f32 %v4993_v32, %v104_v41  ;;  %v144_v3 = vsel %vm8446_vm8, %v140_v33, %v142_v30  ;;  %v145_v59 = vsel %vm8446_vm8, %v142_v30, %v140_v33 }
  0x85   :  { %v120_v15 = vsel %vm5009_vm9, %v105_v42, -inf  ;;  %v121_v18 = vsel %vm5013_vm10, %v104_v41, -inf  ;;  %v5141_v22 = vsel %vm348_vm11, 1, %v8455_v23  ;;  %vm303_vm8 = vcmp.lt.s32.totalorder %v4966_v19, 112 }
  0x86   :  { %v122_v24 = vmax.f32 %v82_v49, %v120_v15  ;;  %v123_v26 = vmax.f32 %v83_v50, %v121_v18  ;;  %v137_v2 = vadd.f32 %v135_v58, %v97_v51  ;;  %v138_v1 = vadd.f32 %v136_v0, %v98_v34 }
  0x87   :  { %v182_v62 = vpop.permute.xlu1 %181  ;;  %v180_v14 = vpop.permute.xlu0 %179  ;;  %v175_v30 = vmul.f32 %v5018_v45, %v145_v59  ;;  %v176_v43 = vmul.f32 %v5021_v46, %v144_v3  ;;  %v160_v40 = vsel %vm5049_vm14, %v145_v59, -inf  ;;  %v161_v41 = vsel %vm5053_vm15, %v144_v3, -inf }
  0x88   :  { %v184_v44 = vsel %vm8749_vm13, %v180_v14, %v182_v62  ;;  %v185_v33 = vsel %vm8749_vm13, %v182_v62, %v180_v14  ;;  %v353_v50 = vrot.slane %v5141_v22, %v4969_v20  ;;  %v357_v51 = vrot.slane %v5141_v22, %v4972_v21 }
  0x89   :  { %vm5162_vm9 = vcmp.eq.s32.totalorder %v313_v54, 1  ;;  %vm5166_vm10 = vcmp.eq.s32.totalorder %v317_v47, 1  ;;  %v200_v0 = vsel %vm5075_vm2, %v185_v33, -inf  ;;  %v201_v3 = vsel %vm5079_vm3, %v184_v44, -inf }
  0x8a   :  { %v215_v59 = vmul.f32 %v5039_v55, %v185_v33  ;;  %v216_v62 = vmul.f32 %v5042_v56, %v184_v44  ;;  %vm8780_vm14 = vcmp.lt.s32.totalorder %v4966_v19, 111  ;;  %v162_v54 = vmax.f32 %v122_v24, %v160_v40 }
  0x8b   :  { %v222_v42 = vpop.permute.xlu1 %221  ;;  %v220_v49 = vpop.permute.xlu0 %219  ;;  %v163_v14 = vmax.f32 %v123_v26, %v161_v41  ;;  %v177_v15 = vadd.f32 %v175_v30, %v137_v2  ;;  %v178_v18 = vadd.f32 %v176_v43, %v138_v1  ;;  %v5199_v52 = vrot.slane %v5067_v17, %v4972_v21 }
  0x8c   :  { %v224_v34 = vsel %vm223_vm1, %v220_v49, %v222_v42  ;;  %v225_v58 = vsel %vm223_vm1, %v222_v42, %v220_v49  ;;  %v202_v49 = vmax.f32 %v162_v54, %v200_v0  ;;  %vm359_vm15 = vcmp.eq.s32.totalorder %v357_v51, 1 }
  0x8d   :  { %v240_v47 = vsel %vm5098_vm5, %v224_v34, -inf  ;;  %v241_v28 = vsel %vm5102_vm7, %v225_v58, -inf  ;;  %v255_v22 = vmul.f32 %v5060_v63, %v224_v34  ;;  %v256_v29 = vmul.f32 %v5084_v35, %v225_v58  ;;  %8845 = vst [vmem:[#allocation19_spill] sm:$0xff] %v5199_v52 }
  0x8e   :  { %v203_v44 = vmax.f32 %v163_v14, %v201_v3  ;;  %v217_v2 = vadd.f32 %v215_v59, %v177_v15  ;;  %v218_v48 = vadd.f32 %v216_v62, %v178_v18  ;;  %v242_v30 = vmax.f32 %v202_v49, %v240_v47 }
  0x8f   :  { %v262_v42 = vpop.permute.xlu1 %261  ;;  %v260_v33 = vpop.permute.xlu0 %259  ;;  %v5195_v59 = vrot.slane %v5067_v17, %v4969_v20  ;;  %vm798_vm2 = vcmp.lt.s32.totalorder %v4966_v19, 34  ;;  %vm874_vm3 = vcmp.lt.s32.totalorder %v4966_v19, 32  ;;  %vm950_vm5 = vcmp.lt.s32.totalorder %v4966_v19, 30 }
  0x90   :  { %v264_v24 = vsel %vm263_vm12, %v260_v33, %v262_v42  ;;  %v265_v1 = vsel %vm263_vm12, %v262_v42, %v260_v33  ;;  %v243_v43 = vmax.f32 %v203_v44, %v241_v28  ;;  %v257_v34 = vadd.f32 %v255_v22, %v217_v2 }
  0x91   :  { %v280_v25 = vsel %vm5115_vm0, %v264_v24, -inf  ;;  %v281_v26 = vsel %vm5119_vm4, %v265_v1, -inf  ;;  %v295_v40 = vmul.f32 %v5087_v36, %v264_v24  ;;  %v296_v41 = vmul.f32 %v5090_v38, %v265_v1  ;;  %8844 = vst [vmem:[#allocation18_spill] sm:$0xff] %v5195_v59 }
  0x92   :  { %v258_v58 = vadd.f32 %v256_v29, %v218_v48  ;;  %v282_v53 = vmax.f32 %v242_v30, %v280_v25  ;;  %v283_v62 = vmax.f32 %v243_v43, %v281_v26  ;;  %vm358_vm4 = vcmp.eq.s32.totalorder %v353_v50, 1 }
  0x93   :  { %v302_v0 = vpop.permute.xlu1 %301  ;;  %v300_v3 = vpop.permute.xlu0 %299  ;;  %v297_v17 = vadd.f32 %v295_v40, %v257_v34  ;;  %v385_v30 = vrot.slane %v4459_v60, %v4969_v20  ;;  %v389_v43 = vrot.slane %v4459_v60, %v4972_v21  ;;  %v8467_v60 = vmov 3  }
  0x94   :  { %v304_v54 = vsel %vm303_vm8, %v300_v3, %v302_v0  ;;  %v305_v14 = vsel %vm303_vm8, %v302_v0, %v300_v3  ;;  %v298_v22 = vadd.f32 %v296_v41, %v258_v58  ;;  %vm8748_vm7 = vcmp.lt.s32.totalorder %v4966_v19, 2 }
  0x95   :  { %v320_v15 = vsel %vm5162_vm9, %v304_v54, -inf  ;;  %v321_v18 = vsel %vm5166_vm10, %v305_v14, -inf  ;;  %v335_v47 = vmul.f32 %v5107_v27, %v304_v54  ;;  %v336_v28 = vmul.f32 %v5125_v57, %v305_v14 }
  0x96   :  { %v322_v29 = vmax.f32 %v282_v53, %v320_v15  ;;  %v323_v42 = vmax.f32 %v283_v62, %v321_v18  ;;  %v8469_v14 = vmov 8   ;;  %vm8747_vm11 = vcmp.lt.s32.totalorder %v4966_v19, 126 }
  0x97   :  { %v342_v33 = vpop.permute.xlu1 %341  ;;  %v340_v49 = vpop.permute.xlu0 %339  ;;  %v337_v44 = vadd.f32 %v335_v47, %v297_v17  ;;  %v338_v24 = vadd.f32 %v336_v28, %v298_v22  ;;  %v8448_v28 = vmov 9   ;;  %v8447_v22 = vmov 10  }
  0x98   :  { %v344_v61 = vsel %vm8780_vm14, %v340_v49, %v342_v33  ;;  %v345_v1 = vsel %vm8780_vm14, %v342_v33, %v340_v49  ;;  %vm8734_vm0 = vcmp.lt.s32.totalorder %v4966_v19, 98  ;;  %vm8722_vm9 = vcmp.lt.s32.totalorder %v4966_v19, 96 }
  0x99   :  { %v360_v2 = vsel %vm358_vm4, %v344_v61, -inf  ;;  %v361_v48 = vsel %vm359_vm15, %v345_v1, -inf  ;;  %v375_v50 = vmul.f32 %v5195_v59, %v344_v61  ;;  %v376_v51 = vmul.f32 %v5199_v52, %v345_v1 }
  0x9a   :  { %v5220_v25 = vmax.f32 %v322_v29, %v360_v2  ;;  %v5222_v26 = vmax.f32 %v323_v42, %v361_v48  ;;  %vm8718_vm10 = vcmp.lt.s32.totalorder %v4966_v19, 94  ;;  %vm8987_vm4 = vcmp.lt.s32.totalorder %v4966_v19, 16 }
  0x9b   :  { %v377_v40 = vadd.f32 %v375_v50, %v337_v44  ;;  %v378_v41 = vadd.f32 %v376_v51, %v338_v24  ;;  %vm8988_vm15 = vmmov %vm8987_vm4 }
  0x9c   :  { %8846 = vst [vmem:[#allocation20_spill] sm:$0xff] %v5220_v25  ;;  %8847 = vst [vmem:[#allocation21_spill] sm:$0xff] %v5222_v26  ;;  %v394_v34 = vadd.f32 %v5222_v26, %v5220_v25  ;;  %v472_v58 = vmul.f32 %v5220_v25, %v5220_v25  ;;  %v473_v0 = vmul.f32 %v5222_v26, %v5222_v26 }
  0x9d   :  { %v5232_v53 = vmul.f32 %v385_v30, %v377_v40  ;;  %v5234_v62 = vmul.f32 %v389_v43, %v378_v41  ;;  %v5316_v43 = vsub.s32 2, %v4958_v16  ;;  %v5323_v41 = vld [vmem:[%s8422_s2] sm:$0xff] }
  0x9e   :  { %395 = vadd.xlane.f32.xlu0 %v394_v34  ;;  %v474_v3 = vadd.f32 %v473_v0, %v472_v58 }
  0x9f   :  { %8848 = vst [vmem:[#allocation22_spill] sm:$0xff] %v5232_v53  ;;  %8849 = vst [vmem:[#allocation23_spill] sm:$0xff] %v5234_v62  ;;  %v577_v54 = vadd.f32 %v5234_v62, %v5232_v53  ;;  %v655_v15 = vmul.f32 %v5232_v53, %v5232_v53  ;;  %v656_v18 = vmul.f32 %v5234_v62, %v5234_v62 }
  0xa0   :  { %475 = vadd.xlane.f32.xlu1 %v474_v3  ;;  %8856 = vst [vmem:[#allocation30_spill] sm:$0xff] %v5316_v43 }
  0xa1   :  { %v657_v47 = vadd.f32 %v656_v18, %v655_v15  ;;  %v5335_v15 = vsub.s32 3, %v4958_v16 }
  0xa3   :  { %8857 = vst [vmem:[#allocation31_spill] sm:$0xff] %v5335_v15 }
  0xa4   :  { %578 = vadd.xlane.f32.xlu1 %v577_v54 }
  0xa8   :  { %v5281_v17 = vpop.permute.xlu1 %768  ;;  %v5299_v24 = vpop.permute.xlu0 %775 }
  0xa9   :  { %8852 = vst [vmem:[#allocation26_spill] sm:$0xff] %v5299_v24 }
  0xac   :  { %v5284_v29 = vpop.permute.xlu1 %782  ;;  %v5303_v1 = vpop.permute.xlu0 %794 }
  0xad   :  { %8850 = vst [vmem:[#allocation24_spill] sm:$0xff] %v5284_v29 }
  0xb0   :  { %v5307_v48 = vpop.permute.xlu0 %840 }
  0xb1   :  { %v5290_v42 = vpop.permute.xlu1 %789  ;;  %8853 = vst [vmem:[#allocation27_spill] sm:$0xff] %v5307_v48 }
  0xb4   :  { %969 = vperm.xlu0 %4563, %v4910_v5   ;;  %v5311_v51 = vpop.permute.xlu0 %916 }
  0xb5   :  { %918 = vrot.lane.b32.xlu1 %v4935_v9, %s8465_s26  ;;  %v5292_v33 = vpop.permute.xlu1 %796  ;;  %8855 = vst [vmem:[#allocation29_spill] sm:$0xff] %v5311_v51  ;;  %s8542_s26 = smov 121  }
  0xb8   :  { %4564 = vset.pattern.permute.xlu0 %v8449_v13  ;;  %v5357_v13 = vsub.s32 5, %v4958_v16 }
  0xb9   :  { %946 = vrot.lane.b32.xlu1 %v4920_v7, %s8461_s20  ;;  %893 = vperm.xlu0 %4564, %v4910_v5   ;;  %v5294_v49 = vpop.permute.xlu1 %833 }
  0xba   :  { %8859 = vst [vmem:[#allocation33_spill] sm:$0xff] %v5357_v13 }
  0xbd   :  { %948 = vrot.lane.b32.xlu1 %v4935_v9, %s8461_s20  ;;  %992 = vrot.lane.b32.xlu0 %v4920_v7, %s8459_s21  ;;  %v5297_v44 = vpop.permute.xlu1 %842  ;;  %s8544_s20 = smov 122  }
  0xbe   :  { %8851 = vst [vmem:[#allocation25_spill] sm:$0xff] %v5297_v44 }
  0xc1   :  { %977 = vperm.xlu1 %4565, %v4917_v6   ;;  %1048 = vrot.lane.b32.xlu0 %v4935_v9, %s8506_s24  ;;  %v5301_v61 = vpop.permute.xlu1 %870 }
  0xc5   :  { %4566 = vset.pattern.permute.xlu1 %v8469_v14  ;;  %1079 = vperm.xlu0 %4564, %v4905_v4   ;;  %v5305_v2 = vpop.permute.xlu1 %872 }
  0xc6   :  { %985 = vperm.xlu1 %4566, %v4929_v8  }
  0xc9   :  { %4571 = vset.pattern.permute.xlu0 %v8447_v22  ;;  %v5309_v50 = vpop.permute.xlu1 %901 }
  0xca   :  { %994 = vrot.lane.b32.xlu1 %v4935_v9, %s8459_s21  ;;  %8854 = vst [vmem:[#allocation28_spill] sm:$0xff] %v5309_v50  ;;  %s8548_s21 = smov 123  }
  0xcb   :  { %4567 = vset.pattern.permute.xlu1 %v8457_v10  ;;  %v5381_v10 = vsub.s32 7, %v4958_v16 }
  0xcd   :  { %8862 = vst [vmem:[#allocation36_spill] sm:$0xff] %v5381_v10 }
  0xce   :  { %1022 = vrot.lane.b32.xlu1 %v4920_v7, %s8523_s25  ;;  %v5313_v30 = vpop.permute.xlu1 %909 }
  0xd2   :  { %1024 = vrot.lane.b32.xlu1 %v4935_v9, %s8523_s25  ;;  %s8692_s25 = smov 95  }
  0xd6   :  { %1039 = vperm.xlu1 %4567, %v4910_v5  }
  0xda   :  { %1046 = vrot.lane.b32.xlu1 %v4920_v7, %s8506_s24  ;;  %s8696_s24 = smov 97  }
  0xdb   :  { %4568 = vset.pattern.permute.xlu1 %v8451_v11  ;;  %v5368_v11 = vsub.s32 6, %v4958_v16 }
  0xdd   :  { %8860 = vst [vmem:[#allocation34_spill] sm:$0xff] %v5368_v11 }
  0xde   :  { %1055 = vperm.xlu1 %4568, %v4905_v4  }
  0xe2   :  { %1070 = vrot.lane.b32.xlu1 %v4920_v7, %s8486_s28 }
  0xe3   :  { %4569 = vset.pattern.permute.xlu1 %v8469_v14 }
  0xe4   :  { %658 = vadd.xlane.f32.xlu0 %v657_v47 }
  0xe6   :  { %1072 = vrot.lane.b32.xlu1 %v4935_v9, %s8486_s28  ;;  %s8538_s28 = smov 114  }
  0xea   :  { %1087 = vperm.xlu1 %4569, %v4910_v5  }
  0xee   :  { %1094 = vrot.lane.b32.xlu1 %v4920_v7, %s8453_s19 }
  0xef   :  { %4570 = vset.pattern.permute.xlu1 %v8448_v28  ;;  %v5346_v28 = vsub.s32 4, %v4958_v16 }
  0xf1   :  { %8858 = vst [vmem:[#allocation32_spill] sm:$0xff] %v5346_v28 }
  0xf2   :  { %1117 = vperm.xlu1 %4570, %v4910_v5  }
  0xf6   :  { %4572 = vset.pattern.permute.xlu1 %v8467_v60 }
  0xfa   :  { %1096 = vrot.lane.b32.xlu0 %v4935_v9, %s8453_s19  ;;  %s4738_s19 = smov 124  }
  0xfe   :  { %1124 = vrot.lane.b32.xlu0 %v4920_v7, %s8493_s18 }
 0x12b   :  { %v5318_v40 = vpop.xlane.xlu0 %395 }
 0x12c   :  { %v405_v34 = vrot.slane %v5318_v40, %v4972_v21  ;;  %v415_v54 = vrot.slane %v5318_v40, %v5316_v43  ;;  %v425_v22 = vrot.slane %v5318_v40, %v5335_v15 }
 0x12d   :  { %v5327_v58 = vpop.xlane.xlu1 %475 }
 0x12e   :  { %v406_v0 = vmul.f32 %v405_v34, %v5323_v41  ;;  %v485_v3 = vrot.slane %v5327_v58, %v4972_v21  ;;  %v495_v47 = vrot.slane %v5327_v58, %v5316_v43  ;;  %v416_v34 = vmul.f32 %v415_v54, %v5323_v41 }
 0x12f   :  { %v435_v54 = vrot.slane %v5318_v40, %v5346_v28 }
 0x130   :  { %408 = vrot.lane.b32.xlu1 %v406_v0, %s4715_s30  ;;  %v486_v18 = vmul.f32 %v485_v3, %v5323_v41  ;;  %v496_v0 = vmul.f32 %v495_v47, %v5323_v41  ;;  %v505_v3 = vrot.slane %v5327_v58, %v5335_v15  ;;  %v515_v47 = vrot.slane %v5327_v58, %v5346_v28 }
 0x131   :  { %v5374_v23 = vpop.xlane.xlu1 %578 }
 0x132   :  { %488 = vrot.lane.b32.xlu0 %v486_v18, %s4715_s30  ;;  %v426_v18 = vmul.f32 %v425_v22, %v5323_v41  ;;  %v445_v22 = vrot.slane %v5318_v40, %v5357_v13  ;;  %8861 = vst [vmem:[#allocation35_spill] sm:$0xff] %v5374_v23  ;;  %v618_v14 = vrot.slane %v5374_v23, %v5346_v28 }
 0x133   :  { %v648_v25 = vrot.slane %v5374_v23, %v5381_v10 }
 0x134   :  { %418 = vrot.lane.b32.xlu1 %v416_v34, %s4736_s22  ;;  %v506_v34 = vmul.f32 %v505_v3, %v5323_v41  ;;  %v535_v3 = vrot.slane %v5327_v58, %v5368_v11 }
 0x135   :  { %v5391_v12 = vpop.permute.xlu1 %918 }
 0x136   :  { %498 = vrot.lane.b32.xlu0 %v496_v0, %s4736_s22  ;;  %v436_v0 = vmul.f32 %v435_v54, %v5323_v41  ;;  %v446_v54 = vmul.f32 %v445_v22, %v5323_v41  ;;  %v465_v22 = vrot.slane %v5318_v40, %v5381_v10  ;;  %8863 = vst [vmem:[#allocation37_spill] sm:$0xff] %v5391_v12 }
 0x138   :  { %428 = vrot.lane.b32.xlu1 %v426_v18, %s8550_s27  ;;  %v516_v18 = vmul.f32 %v515_v47, %v5323_v41  ;;  %v536_v47 = vmul.f32 %v535_v3, %v5323_v41  ;;  %v588_v3 = vrot.slane %v5374_v23, %v4972_v21 }
 0x139   :  { %v5405_v60 = vpop.permute.xlu1 %946 }
 0x13a   :  { %508 = vrot.lane.b32.xlu0 %v506_v34, %s8550_s27  ;;  %v455_v34 = vrot.slane %v5318_v40, %v5368_v11 }
 0x13c   :  { %438 = vrot.lane.b32.xlu1 %v436_v0, %s4738_s19  ;;  %v545_v0 = vrot.slane %v5327_v58, %v5381_v10 }
 0x13e   :  { %518 = vrot.lane.b32.xlu0 %v516_v18, %s4738_s19  ;;  %v456_v18 = vmul.f32 %v455_v34, %v5323_v41  ;;  %v546_v16 = vmul.f32 %v545_v0, %v5323_v41  ;;  %v525_v34 = vrot.slane %v5327_v58, %v5357_v13 }
 0x140   :  { %448 = vrot.lane.b32.xlu1 %v446_v54, %s8548_s21  ;;  %v466_v54 = vmul.f32 %v465_v22, %v5323_v41  ;;  %v526_v0 = vmul.f32 %v525_v34, %v5323_v41  ;;  %v619_v34 = vmul.f32 %v618_v14, %v5323_v41 }
 0x142   :  { %538 = vrot.lane.b32.xlu0 %v536_v47, %s8544_s20  ;;  %v589_v47 = vmul.f32 %v588_v3, %v5323_v41 }
 0x144   :  { %458 = vrot.lane.b32.xlu1 %v456_v18, %s8544_s20  ;;  %v598_v18 = vrot.slane %v5374_v23, %v5316_v43 }
 0x146   :  { %548 = vrot.lane.b32.xlu0 %v546_v16, %s8542_s26  ;;  %v599_v22 = vmul.f32 %v598_v18, %v5323_v41  ;;  %v608_v16 = vrot.slane %v5374_v23, %v5335_v15  ;;  %v5423_v18 = vpop.permute.xlu0 %969 }
 0x147   :  { %8864 = vst [vmem:[#allocation38_spill] sm:$0xff] %v5423_v18 }
 0x148   :  { %468 = vrot.lane.b32.xlu1 %v466_v54, %s8542_s26  ;;  %v5414_v54 = vpop.permute.xlu1 %948  ;;  %v609_v3 = vmul.f32 %v608_v16, %v5323_v41  ;;  %v638_v16 = vrot.slane %v5374_v23, %v5368_v11 }
 0x14a   :  { %591 = vrot.lane.b32.xlu0 %v589_v47, %s4715_s30  ;;  %v628_v47 = vrot.slane %v5374_v23, %v5357_v13  ;;  %v5432_v26 = vpop.permute.xlu0 %893  ;;  %v639_v14 = vmul.f32 %v638_v16, %v5323_v41 }
 0x14b   :  { %8866 = vst [vmem:[#allocation40_spill] sm:$0xff] %v5432_v26 }
 0x14c   :  { %528 = vrot.lane.b32.xlu1 %v526_v0, %s8548_s21  ;;  %v5425_v0 = vpop.permute.xlu1 %977 }
 0x14d   :  { %8865 = vst [vmem:[#allocation39_spill] sm:$0xff] %v5425_v0 }
 0x14e   :  { %601 = vrot.lane.b32.xlu0 %v599_v22, %s4736_s22  ;;  %v629_v22 = vmul.f32 %v628_v47, %v5323_v41  ;;  %v5441_v62 = vpop.permute.xlu0 %992 }
 0x14f   :  { %8867 = vst [vmem:[#allocation41_spill] sm:$0xff] %v5441_v62 }
 0x152   :  { %611 = vrot.lane.b32.xlu0 %v609_v3, %s8550_s27  ;;  %v5434_v3 = vpop.permute.xlu1 %985 }
 0x156   :  { %621 = vrot.lane.b32.xlu0 %v619_v34, %s4738_s19  ;;  %v649_v34 = vmul.f32 %v648_v25, %v5323_v41  ;;  %v5443_v47 = vpop.permute.xlu1 %994 }
 0x157   :  { %8868 = vst [vmem:[#allocation42_spill] sm:$0xff] %v5443_v47 }
 0x15a   :  { %631 = vrot.lane.b32.xlu0 %v629_v22, %s8548_s21  ;;  %v5446_v22 = vpop.permute.xlu0 %1048  ;;  %v5448_v53 = vpop.permute.xlu1 %1022 }
 0x15e   :  { %641 = vrot.lane.b32.xlu0 %v639_v14, %s8544_s20  ;;  %v5450_v18 = vpop.permute.xlu0 %1079  ;;  %v5452_v16 = vpop.permute.xlu1 %1024 }
 0x162   :  { %651 = vrot.lane.b32.xlu0 %v649_v34, %s8542_s26  ;;  %v5460_v62 = vpop.permute.xlu1 %1039 }
 0x163   :  { %8870 = vst [vmem:[#allocation44_spill] sm:$0xff] %v5460_v62 }
 0x166   :  { %v5471_v44 = vpop.permute.xlu1 %1046 }
 0x171   :  { %v5454_v26 = vpop.xlane.xlu0 %658 }
 0x172   :  { %8869 = vst [vmem:[#allocation43_spill] sm:$0xff] %v5454_v26  ;;  %v708_v14 = vrot.slane %v5454_v26, %v5357_v13  ;;  %v668_v25 = vrot.slane %v5454_v26, %v4972_v21  ;;  %v678_v12 = vrot.slane %v5454_v26, %v5316_v43  ;;  %v688_v24 = vrot.slane %v5454_v26, %v5335_v15 }
 0x173   :  { %v480_v13 = vrot.slane %v5327_v58, %v4969_v20  ;;  %v8553_v58 = vmov 16   ;;  %v8556_v43 = vmov 23  }
 0x174   :  { %v709_v34 = vmul.f32 %v708_v14, %v5323_v41  ;;  %v669_v47 = vmul.f32 %v668_v25, %v5323_v41  ;;  %v679_v51 = vmul.f32 %v678_v12, %v5323_v41  ;;  %v689_v14 = vmul.f32 %v688_v24, %v5323_v41 }
 0x175   :  { %v698_v25 = vrot.slane %v5454_v26, %v5346_v28  ;;  %v8484_v12 = vmov 13   ;;  %v8525_v28 = vmov 22   ;;  %v481_v15 = vmul.f32 %v480_v13, %v5323_v41 }
 0x176   :  { %711 = vrot.lane.b32.xlu0 %v709_v34, %s8548_s21  ;;  %671 = vrot.lane.b32.xlu1 %v669_v47, %s4715_s30  ;;  %v5482_v47 = vpop.permute.xlu1 %1055  ;;  %s4766_s21 = smov 62  }
 0x177   :  { %v699_v34 = vmul.f32 %v698_v25, %v5323_v41 }
 0x17a   :  { %1147 = vperm.xlu0 %4571, %v4910_v5   ;;  %681 = vrot.lane.b32.xlu1 %v679_v51, %s4736_s22  ;;  %v718_v51 = vrot.slane %v5454_v26, %v5368_v11  ;;  %v5493_v62 = vpop.permute.xlu1 %1070  ;;  %v8876_v11 = vmov 13  }
 0x17c   :  { %v719_v24 = vmul.f32 %v718_v51, %v5323_v41  ;;  %v8489_v51 = vmov 15  }
 0x17e   :  { %1170 = vrot.lane.b32.xlu0 %v4920_v7, %s8499_s29  ;;  %691 = vrot.lane.b32.xlu1 %v689_v14, %s8550_s27  ;;  %v728_v14 = vrot.slane %v5454_v26, %v5381_v10  ;;  %s4767_s27 = smov 60  }
 0x17f   :  { %4575 = vset.pattern.permute.xlu0 %v8484_v12  ;;  %v8488_v12 = vmov 14  }
 0x180   :  { %v729_v25 = vmul.f32 %v728_v14, %v5323_v41  ;;  %v8491_v14 = vmov 11  }
 0x182   :  { %1196 = vrot.lane.b32.xlu0 %v4935_v9, %s4715_s30  ;;  %701 = vrot.lane.b32.xlu1 %v699_v34, %s4738_s19  ;;  %v5501_v34 = vpop.permute.xlu1 %1072 }
 0x186   :  { %1211 = vperm.xlu0 %4575, %v4910_v5   ;;  %721 = vrot.lane.b32.xlu1 %v719_v24, %s8544_s20  ;;  %v5508_v24 = vpop.permute.xlu1 %1087  ;;  %s8879_s20 = smov 111  }
 0x187   :  { %8871 = vst [vmem:[#allocation45_spill] sm:$0xff] %v5508_v24  ;;  %v8874_v24 = vmov 8  }
 0x18a   :  { %4576 = vset.pattern.permute.xlu0 %v8488_v12  ;;  %731 = vrot.lane.b32.xlu1 %v729_v25, %s8542_s26  ;;  %v5513_v25 = vpop.permute.xlu1 %1094  ;;  %v8495_v12 = vmov 17   ;;  %s4759_s26 = smov 68  }
 0x18b   :  { %1241 = vperm.xlu0 %4576, %v4910_v5   ;;  %8872 = vst [vmem:[#allocation46_spill] sm:$0xff] %v5513_v25  ;;  %v5527_v25 = vpop.permute.xlu0 %1096 }
 0x18c   :  { %8875 = vst [vmem:[#allocation48_spill] sm:$0xff] %v5527_v25 }
 0x18e   :  { %1126 = vrot.lane.b32.xlu1 %v4935_v9, %s8493_s18  ;;  %s4748_s18 = smov 110  }
 0x18f   :  { %1264 = vrot.lane.b32.xlu0 %v4920_v7, %s8538_s28  ;;  %v5538_v25 = vpop.permute.xlu0 %1124 }
 0x190   :  { %4578 = vset.pattern.permute.xlu0 %v8489_v51  ;;  %v5522_v51 = vpop.permute.xlu1 %1117 }
 0x191   :  { %8873 = vst [vmem:[#allocation47_spill] sm:$0xff] %v5522_v51  ;;  %v8508_v51 = vmov 20  }
 0x192   :  { %1155 = vperm.xlu1 %4572, %v4917_v6  }
 0x193   :  { %1287 = vperm.xlu0 %4578, %v4910_v5  }
 0x196   :  { %4573 = vset.pattern.permute.xlu1 %v8491_v14 }
 0x197   :  { %1320 = vrot.lane.b32.xlu0 %v4935_v9, %s8546_s17  ;;  %1163 = vperm.xlu1 %4573, %v4929_v8  }
 0x198   :  { %4581 = vset.pattern.permute.xlu0 %v8495_v12  ;;  %v8504_v12 = vmov 5  }
 0x19b   :  { %1335 = vperm.xlu0 %4581, %v4910_v5   ;;  %1172 = vrot.lane.b32.xlu1 %v4935_v9, %s8499_s29  ;;  %s8698_s29 = smov 98  }
 0x19f   :  { %4582 = vset.pattern.permute.xlu0 %v8874_v24  ;;  %1187 = vperm.xlu1 %4573, %v4910_v5  }
 0x1a0   :  { %1351 = vperm.xlu0 %4582, %v4905_v4  }
 0x1a2   :  { %v409_v14 = vpop.permute.xlu1 %408 }
 0x1a3   :  { %1194 = vrot.lane.b32.xlu1 %v4920_v7, %s4715_s30 }
 0x1a4   :  { %1368 = vrot.lane.b32.xlu0 %v4935_v9, %s4748_s18  ;;  %4574 = vset.pattern.permute.xlu1 %v8504_v12  ;;  %v489_v12 = vpop.permute.xlu0 %488 }
 0x1a5   :  { %4585 = vset.pattern.permute.xlu0 %v8508_v51 }
 0x1a6   :  { %v419_v48 = vpop.permute.xlu1 %418 }
 0x1a7   :  { %1203 = vperm.xlu1 %4574, %v4905_v4   ;;  %v8519_v4 = vmov 21  }
 0x1a8   :  { %1396 = vrot.lane.b32.xlu0 %v4920_v7, %s8698_s29  ;;  %v499_v29 = vpop.permute.xlu0 %498 }
 0x1aa   :  { %v429_v0 = vpop.permute.xlu1 %428 }
 0x1ab   :  { %1218 = vrot.lane.b32.xlu1 %v4920_v7, %s4736_s22 }
 0x1ac   :  { %1419 = vperm.xlu0 %4585, %v4910_v5  }
 0x1ae   :  { %v439_v50 = vpop.permute.xlu1 %438 }
 0x1af   :  { %1220 = vrot.lane.b32.xlu1 %v4935_v9, %s4736_s22 }
 0x1b0   :  { %1442 = vrot.lane.b32.xlu0 %v4920_v7, %s8696_s24 }
 0x1b1   :  { %4588 = vset.pattern.permute.xlu0 %v8519_v4  ;;  %v400_v4 = vrot.slane %v5318_v40, %v4969_v20 }
 0x1b2   :  { %v449_v51 = vpop.permute.xlu1 %448 }
 0x1b3   :  { %1249 = vperm.xlu1 %4574, %v4917_v6   ;;  %v509_v6 = vpop.permute.xlu0 %508 }
 0x1b4   :  { %1465 = vperm.xlu0 %4588, %v4910_v5  }
 0x1b6   :  { %v459_v10 = vpop.permute.xlu1 %458 }
 0x1b7   :  { %4577 = vset.pattern.permute.xlu1 %v8876_v11  ;;  %v519_v13 = vpop.permute.xlu0 %518 }
 0x1b8   :  { %4589 = vset.pattern.permute.xlu0 %v8525_v28  ;;  %1257 = vperm.xlu1 %4577, %v4929_v8   ;;  %v401_v8 = vmul.f32 %v400_v4, %v5323_v41  ;;  %v491_v28 = vadd.f32 %v489_v12, %v481_v15  ;;  %v8554_v41 = vmov 24   ;;  %v5598_v4 = vld [vmem:[%s8423_s5] sm:$0xff]  ;;  %s4765_s5 = smov 64  }
 0x1b9   :  { %1495 = vperm.xlu0 %4589, %v4910_v5  }
 0x1ba   :  { %v469_v11 = vpop.permute.xlu1 %468  ;;  %v411_v40 = vadd.f32 %v409_v14, %v401_v8  ;;  %v501_v23 = vadd.f32 %v499_v29, %v491_v28  ;;  %v4697_v8 = vld [vmem:[%s8418_s8] sm:$0xff] }
 0x1bb   :  { %v539_v28 = vpop.permute.xlu0 %538 }
 0x1bc   :  { %1266 = vrot.lane.b32.xlu1 %v4935_v9, %s8538_s28  ;;  %v421_v26 = vadd.f32 %v419_v48, %v411_v40  ;;  %v511_v52 = vadd.f32 %v509_v6, %v501_v23  ;;  %v8877_v23 = vmov 3   ;;  %v8880_v40 = vmov 6   ;;  %s8690_s28 = smov 94  }
 0x1bd   :  { %1518 = vrot.lane.b32.xlu0 %v4920_v7, %s8692_s25  ;;  %4579 = vset.pattern.permute.xlu1 %v8553_v58 }
 0x1be   :  { %4592 = vset.pattern.permute.xlu0 %v8556_v43  ;;  %v529_v59 = vpop.permute.xlu1 %528  ;;  %v431_v57 = vadd.f32 %v429_v0, %v421_v26  ;;  %v521_v27 = vadd.f32 %v519_v13, %v511_v52  ;;  %v8878_v0 = vmov 7   ;;  %v8552_v13 = vmov 19  }
 0x1bf   :  { %v549_v26 = vpop.permute.xlu0 %548 }
 0x1c0   :  { %1294 = vrot.lane.b32.xlu1 %v4920_v7, %s8540_s3  ;;  %v441_v15 = vadd.f32 %v439_v50, %v431_v57  ;;  %v531_v12 = vadd.f32 %v529_v59, %v521_v27  ;;  %v4695_v57 = vld [vmem:[%s8417_s4] sm:$0xff]  ;;  %s4768_s4 = smov 36  }
 0x1c1   :  { %1541 = vperm.xlu0 %4592, %v4910_v5  }
 0x1c2   :  { %v451_v29 = vadd.f32 %v449_v51, %v441_v15  ;;  %v541_v48 = vadd.f32 %v539_v28, %v531_v12  ;;  %v5590_v51 = vld [vmem:[%s8420_s14] sm:$0xff] }
 0x1c3   :  { %v5612_v15 = vld [vmem:[%s8424_s0] sm:$0xff] }
 0x1c4   :  { %1296 = vrot.lane.b32.xlu1 %v4935_v9, %s8540_s3  ;;  %v461_v14 = vadd.f32 %v459_v10, %v451_v29  ;;  %v551_v27 = vadd.f32 %v549_v26, %v541_v48  ;;  %v561_v12 = vrot.slane %v5612_v15, %v4972_v21  ;;  %v8881_v29 = vmov 0   ;;  %s4764_s3 = smov 66  }
 0x1c5   :  { %4593 = vset.pattern.permute.xlu0 %v8554_v41 }
 0x1c6   :  { %1571 = vperm.xlu0 %4593, %v4910_v5   ;;  %v471_v52 = vadd.f32 %v469_v11, %v461_v14  ;;  %v553_v10 = vmul.f32 0.001953125, %v551_v27  ;;  %v8558_v11 = vmov 18  }
 0x1c8   :  { %1311 = vperm.xlu1 %4579, %v4910_v5   ;;  %v552_v59 = vmul.f32 0.001953125, %v471_v52  ;;  %v5625_v52 = vld [vmem:[%s8419_s12] sm:$0xff]  ;;  %s8694_s12 = smov 96  }
 0x1c9   :  { %8882 = vst [vmem:[#allocation49_spill] sm:$0xff] %v5625_v52 }
 0x1ca   :  { %4594 = vset.pattern.permute.xlu0 %v8877_v23 }
 0x1cb   :  { %939 = vperm.xlu0 %4594, %v4910_v5   ;;  %v554_v5 = vmul.f32 %v552_v59, %v552_v59 }
 0x1cc   :  { %1318 = vrot.lane.b32.xlu1 %v4920_v7, %s8546_s17  ;;  %s9068_s17 = smov 113  }
 0x1cd   :  { %4580 = vset.pattern.permute.xlu1 %v8878_v0  ;;  %v555_v50 = vsub.f32 %v553_v10, %v554_v5  ;;  %v5642_v10 = vpop.permute.xlu0 %591 }
 0x1cf   :  { %1179 = vperm.xlu0 %4594, %v4695_v57   ;;  %v556_v6 = vadd.f32 1e-05, %v555_v50 }
 0x1d0   :  { %1327 = vperm.xlu1 %4580, %v4695_v57  }
 0x1d1   :  { %4679 = vrsqrt.f32 %v556_v6  ;;  %v5654_v50 = vpop.permute.xlu0 %601 }
 0x1d3   :  { %1594 = vrot.lane.b32.xlu0 %v4920_v7, %s4759_s26 }
 0x1d4   :  { %1342 = vrot.lane.b32.xlu1 %v4920_v7, %s8879_s20 }
 0x1d5   :  { %4583 = vset.pattern.permute.xlu1 %v8558_v11 }
 0x1d7   :  { %1706 = vperm.xlu0 %4594, %v5590_v51  }
 0x1d8   :  { %1344 = vrot.lane.b32.xlu1 %v4935_v9, %s8879_s20 }
 0x1db   :  { %2087 = vperm.xlu0 %4594, %v5598_v4   ;;  %v4680_v28 = vpop.eup %4679 }
 0x1dc   :  { %1359 = vperm.xlu1 %4583, %v4697_v8   ;;  %v562_v48 = vmul.f32 %v4680_v28, %v561_v12  ;;  %v4462_v12 = vld [vmem:[%s8421_s1 + $0x10] ss:$8 sm:$0x3]  ;;  %v799_v28 = vsel %vm798_vm2, %v5303_v1, %v5292_v33 }
 0x1dd   :  { %v5682_v41 = vrot.slane %v4462_v12, %v4972_v21 }
 0x1df   :  { %4603 = vset.pattern.permute.xlu0 %v8880_v40  ;;  %8891 = vst [vmem:[#allocation57_spill] sm:$0xff] %v5682_v41 }
 0x1e0   :  { %1303 = vperm.xlu0 %4603, %v4695_v57   ;;  %1366 = vrot.lane.b32.xlu1 %v4920_v7, %s4748_s18 }
 0x1e1   :  { %4584 = vset.pattern.permute.xlu1 %v8552_v13  ;;  %v8888_v13 = vmov 17  }
 0x1e4   :  { %2135 = vperm.xlu0 %4603, %v5598_v4   ;;  %1389 = vperm.xlu1 %4584, %v4697_v8  }
 0x1e8   :  { %4606 = vset.pattern.permute.xlu0 %v8881_v29  ;;  %1398 = vrot.lane.b32.xlu1 %v4935_v9, %s8698_s29  ;;  %v5619_v14 = vpop.permute.xlu1 %671  ;;  %s9069_s29 = smov 112  }
 0x1e9   :  { %565 = vperm.xlu0 %4606, %v552_v59   ;;  %4586 = vset.pattern.permute.xlu1 %v8880_v40 }
 0x1ec   :  { %1427 = vperm.xlu1 %4586, %v5625_v52   ;;  %v5628_v26 = vpop.permute.xlu1 %681 }
 0x1ed   :  { %572 = vperm.xlu0 %4606, %v562_v48   ;;  %v800_v48 = vsel %vm798_vm2, %v5292_v33, %v5303_v1  ;;  %v875_v33 = vsel %vm874_vm3, %v5301_v61, %v5305_v2  ;;  %v876_v1 = vsel %vm874_vm3, %v5305_v2, %v5301_v61 }
 0x1ee   :  { %v5715_v2 = vmul.f32 %v5682_v41, %v875_v33  ;;  %v952_v33 = vsel %vm950_vm5, %v5414_v54, %v5405_v60 }
 0x1f0   :  { %4587 = vset.pattern.permute.xlu1 %v8553_v58  ;;  %v5632_v27 = vpop.permute.xlu1 %691  ;;  %v5679_v58 = vrot.slane %v4462_v12, %v4969_v20  ;;  %v4464_v12 = vld [vmem:[%s8421_s1 + $0x12] ss:$8 sm:$0x3]  ;;  %8896 = vst [vmem:[#allocation62_spill] sm:$0xff] %v5715_v2 }
 0x1f1   :  { %1435 = vperm.xlu1 %4587, %v5590_v51   ;;  %817 = vperm.xlu0 %4606, %v4697_v8   ;;  %8883 = vst [vmem:[#allocation50_spill] sm:$0xff] %v5632_v27  ;;  %v5722_v40 = vrot.slane %v4464_v12, %v4969_v20 }
 0x1f2   :  { %8890 = vst [vmem:[#allocation56_spill] sm:$0xff] %v5679_v58  ;;  %v5712_v61 = vmul.f32 %v5679_v58, %v876_v1  ;;  %v951_v1 = vsel %vm950_vm5, %v5405_v60, %v5414_v54  ;;  %v913_v60 = vmul.f32 %v5313_v30, %v5715_v2 }
 0x1f3   :  { %8897 = vst [vmem:[#allocation63_spill] sm:$0xff] %v5722_v40  ;;  %v5748_v54 = vmul.f32 %v5722_v40, %v952_v33 }
 0x1f4   :  { %v5640_v59 = vpop.permute.xlu1 %701  ;;  %8895 = vst [vmem:[#allocation61_spill] sm:$0xff] %v5712_v61 }
 0x1f5   :  { %1444 = vrot.lane.b32.xlu1 %v4935_v9, %s8696_s24  ;;  %1031 = vperm.xlu0 %4606, %v4695_v57   ;;  %8884 = vst [vmem:[#allocation51_spill] sm:$0xff] %v5640_v59  ;;  %v4460_v57 = vld [vmem:[%s8421_s1 + $0x6] ss:$8 sm:$0x3]  ;;  %8900 = vst [vmem:[#allocation66_spill] sm:$0xff] %v5748_v54  ;;  %s9280_s24 = smov 30  }
 0x1f6   :  { %4590 = vset.pattern.permute.xlu1 %v8878_v0  ;;  %v5657_v6 = vrot.slane %v4460_v57, %v4969_v20  ;;  %v5660_v8 = vrot.slane %v4460_v57, %v4972_v21 }
 0x1f8   :  { %v5650_v5 = vpop.permute.xlu1 %721  ;;  %8886 = vst [vmem:[#allocation53_spill] sm:$0xff] %v5657_v6  ;;  %8887 = vst [vmem:[#allocation54_spill] sm:$0xff] %v5660_v8  ;;  %v5685_v43 = vmul.f32 %v5657_v6, %v800_v48  ;;  %v5688_v11 = vmul.f32 %v5660_v8, %v799_v28  ;;  %v792_v28 = vmul.f32 %v5290_v42, %v4920_v7 }
 0x1f9   :  { %1472 = vrot.lane.b32.xlu1 %v4920_v7, %s8694_s12  ;;  %1616 = vperm.xlu0 %4606, %v5590_v51   ;;  %8885 = vst [vmem:[#allocation52_spill] sm:$0xff] %v5650_v5  ;;  %v793_v48 = vmul.f32 %v5290_v42, %v4935_v9  ;;  %v5725_v42 = vrot.slane %v4464_v12, %v4972_v21 }
 0x1fa   :  { %8892 = vst [vmem:[#allocation58_spill] sm:$0xff] %v5685_v43  ;;  %8893 = vst [vmem:[#allocation59_spill] sm:$0xff] %v5688_v11  ;;  %v836_v8 = vmul.f32 %v5294_v49, %v5685_v43  ;;  %v837_v6 = vmul.f32 %v5294_v49, %v5688_v11  ;;  %v4467_v49 = vld [vmem:[%s8421_s1 + $0x22] ss:$8 sm:$0x3] }
 0x1fb   :  { %8898 = vst [vmem:[#allocation64_spill] sm:$0xff] %v5725_v42  ;;  %v5751_v11 = vmul.f32 %v5725_v42, %v951_v1  ;;  %v5754_v43 = vrot.slane %v4467_v49, %v4969_v20 }
 0x1fc   :  { %v5676_v57 = vpop.permute.xlu1 %731  ;;  %v838_v41 = vadd.f32 %v836_v8, %v792_v28  ;;  %v839_v58 = vadd.f32 %v837_v6, %v793_v48  ;;  %v988_v28 = vmul.f32 %v5434_v3, %v5748_v54 }
 0x1fd   :  { %1474 = vrot.lane.b32.xlu1 %v4935_v9, %s8694_s12  ;;  %2041 = vperm.xlu0 %4606, %v5598_v4   ;;  %8889 = vst [vmem:[#allocation55_spill] sm:$0xff] %v5676_v57  ;;  %8901 = vst [vmem:[#allocation67_spill] sm:$0xff] %v5751_v11  ;;  %v5757_v57 = vrot.slane %v4467_v49, %v4972_v21  ;;  %v989_v48 = vmul.f32 %v5434_v3, %v5751_v11  ;;  %s9282_s12 = smov 14  }
 0x1fe   :  { %8902 = vst [vmem:[#allocation68_spill] sm:$0xff] %v5754_v43  ;;  %v915_v33 = vadd.f32 %v913_v60, %v839_v58  ;;  %v8908_v58 = vmov 18  }
 0x1ff   :  { %8903 = vst [vmem:[#allocation69_spill] sm:$0xff] %v5757_v57 }
 0x200   :  { %v1127_v23 = vpop.permute.xlu1 %1126 }
 0x201   :  { %1503 = vperm.xlu1 %4590, %v5625_v52   ;;  %v1129_v6 = vsel %vm8748_vm7, %v5538_v25, %v1127_v23 }
 0x202   :  { %v5779_v40 = vmul.f32 %v5757_v57, %v1129_v6 }
 0x204   :  { %8907 = vst [vmem:[#allocation73_spill] sm:$0xff] %v5779_v40 }
 0x205   :  { %4591 = vset.pattern.permute.xlu1 %v8888_v13  ;;  %v5698_v13 = vpop.permute.xlu0 %611 }
 0x206   :  { %1511 = vperm.xlu1 %4591, %v5590_v51   ;;  %8894 = vst [vmem:[#allocation60_spill] sm:$0xff] %v5698_v13 }
 0x209   :  { %v5740_v12 = vpop.permute.xlu0 %621 }
 0x20a   :  { %1520 = vrot.lane.b32.xlu1 %v4935_v9, %s8692_s25  ;;  %8899 = vst [vmem:[#allocation65_spill] sm:$0xff] %v5740_v12  ;;  %s9064_s25 = smov 1  }
 0x20b   :  { %4595 = vset.pattern.permute.xlu1 %v8874_v24  ;;  %v912_v24 = vmul.f32 %v5313_v30, %v5712_v61  ;;  %v1130_v30 = vsel %vm8748_vm7, %v1127_v23, %v5538_v25  ;;  %vm9124_vm7 = vcmp.lt.s32.totalorder %v4966_v19, 15 }
 0x20c   :  { %v5776_v42 = vmul.f32 %v5754_v43, %v1130_v30  ;;  %v8911_v30 = vmov 20  }
 0x20d   :  { %v914_v1 = vadd.f32 %v912_v24, %v838_v41  ;;  %v5773_v49 = vpop.permute.xlu0 %631 }
 0x20e   :  { %1548 = vrot.lane.b32.xlu1 %v4920_v7, %s8690_s28  ;;  %8905 = vst [vmem:[#allocation71_spill] sm:$0xff] %v5773_v49  ;;  %8906 = vst [vmem:[#allocation72_spill] sm:$0xff] %v5776_v42 }
 0x20f   :  { %v990_v23 = vadd.f32 %v988_v28, %v914_v1 }
 0x211   :  { %v5759_v8 = vpop.permute.xlu1 %1155  ;;  %v5787_v60 = vpop.permute.xlu0 %641 }
 0x212   :  { %8904 = vst [vmem:[#allocation70_spill] sm:$0xff] %v5759_v8  ;;  %1550 = vrot.lane.b32.xlu1 %v4935_v9, %s8690_s28  ;;  %v991_v8 = vadd.f32 %v989_v48, %v915_v33  ;;  %8909 = vst [vmem:[#allocation74_spill] sm:$0xff] %v5787_v60 }
 0x215   :  { %v5795_v28 = vpop.permute.xlu0 %651 }
 0x216   :  { %1579 = vperm.xlu1 %4595, %v5625_v52   ;;  %v1164_v25 = vpop.permute.xlu1 %1163  ;;  %8912 = vst [vmem:[#allocation76_spill] sm:$0xff] %v5795_v28 }
 0x217   :  { %v1166_v54 = vmul.f32 %v1164_v25, %v5776_v42  ;;  %v1167_v2 = vmul.f32 %v1164_v25, %v5779_v40 }
 0x219   :  { %v1168_v3 = vadd.f32 %v1166_v54, %v990_v23  ;;  %v1169_v24 = vadd.f32 %v1167_v2, %v991_v8  ;;  %v5800_v2 = vpop.permute.xlu0 %711  ;;  %v4468_v23 = vld [vmem:[%s8421_s1 + $0x25] ss:$8 sm:$0x3] }
 0x21a   :  { %4596 = vset.pattern.permute.xlu1 %v8908_v58  ;;  %v5785_v41 = vpop.permute.xlu1 %1172  ;;  %8913 = vst [vmem:[#allocation77_spill] sm:$0xff] %v5800_v2  ;;  %v5816_v57 = vrot.slane %v4468_v23, %v4969_v20  ;;  %v5819_v43 = vrot.slane %v4468_v23, %v4972_v21 }
 0x21b   :  { %1587 = vperm.xlu1 %4596, %v5590_v51  }
 0x21c   :  { %8915 = vst [vmem:[#allocation79_spill] sm:$0xff] %v5816_v57  ;;  %8916 = vst [vmem:[#allocation80_spill] sm:$0xff] %v5819_v43 }
 0x21d   :  { %v5805_v8 = vpop.permute.xlu0 %1147 }
 0x21e   :  { %v5790_v6 = vpop.permute.xlu1 %1187  ;;  %8914 = vst [vmem:[#allocation78_spill] sm:$0xff] %v5805_v8 }
 0x21f   :  { %8910 = vst [vmem:[#allocation75_spill] sm:$0xff] %v5790_v6  ;;  %1596 = vrot.lane.b32.xlu1 %v4935_v9, %s4759_s26  ;;  %s4771_s26 = smov 100  }
 0x220   :  { %4597 = vset.pattern.permute.xlu1 %v8911_v30 }
 0x221   :  { %v5808_v25 = vpop.permute.xlu0 %1170 }
 0x222   :  { %v5797_v48 = vpop.permute.xlu1 %1194 }
 0x223   :  { %1623 = vrot.lane.b32.xlu1 %v4920_v7, %s4764_s3 }
 0x225   :  { %v5828_v8 = vpop.permute.xlu0 %1196 }
 0x226   :  { %v5802_v54 = vpop.permute.xlu1 %1203 }
 0x227   :  { %1625 = vrot.lane.b32.xlu1 %v4935_v9, %s4764_s3  ;;  %s4769_s3 = smov 28  }
 0x22a   :  { %v1219_v1 = vpop.permute.xlu1 %1218 }
 0x22b   :  { %1653 = vrot.lane.b32.xlu1 %v4920_v7, %s4765_s5 }
 0x22e   :  { %v1221_v33 = vpop.permute.xlu1 %1220 }
 0x22f   :  { %1655 = vrot.lane.b32.xlu1 %v4935_v9, %s4765_s5  ;;  %v1223_v58 = vsel %vm8747_vm11, %v1219_v1, %v1221_v33  ;;  %v1224_v6 = vsel %vm8747_vm11, %v1221_v33, %v1219_v1  ;;  %v5839_v33 = vpop.permute.xlu0 %1211  ;;  %s4770_s5 = smov 4  }
 0x230   :  { %v5831_v40 = vmul.f32 %v5816_v57, %v1223_v58  ;;  %v5834_v42 = vmul.f32 %v5819_v43, %v1224_v6  ;;  %8920 = vst [vmem:[#allocation84_spill] sm:$0xff] %v5839_v33 }
 0x232   :  { %v5821_v30 = vpop.permute.xlu1 %1249  ;;  %8918 = vst [vmem:[#allocation82_spill] sm:$0xff] %v5831_v40  ;;  %8919 = vst [vmem:[#allocation83_spill] sm:$0xff] %v5834_v42 }
 0x233   :  { %8917 = vst [vmem:[#allocation81_spill] sm:$0xff] %v5821_v30  ;;  %1683 = vrot.lane.b32.xlu1 %v4920_v7, %s4766_s21  ;;  %v5847_v6 = vpop.permute.xlu0 %1241 }
 0x234   :  { %8922 = vst [vmem:[#allocation86_spill] sm:$0xff] %v5847_v6 }
 0x237   :  { %1685 = vrot.lane.b32.xlu1 %v4935_v9, %s4766_s21  ;;  %v1258_v23 = vpop.permute.xlu1 %1257  ;;  %s9058_s21 = smov 17  }
 0x238   :  { %v1260_v30 = vmul.f32 %v1258_v23, %v5831_v40  ;;  %v1261_v11 = vmul.f32 %v1258_v23, %v5834_v42 }
 0x23a   :  { %v1262_v61 = vadd.f32 %v1260_v30, %v1168_v3  ;;  %v1263_v1 = vadd.f32 %v1261_v11, %v1169_v24  ;;  %v5852_v3 = vpop.permute.xlu0 %1264 }
 0x23b   :  { %1713 = vrot.lane.b32.xlu1 %v4920_v7, %s4767_s27  ;;  %v5842_v52 = vpop.permute.xlu1 %1266  ;;  %8923 = vst [vmem:[#allocation87_spill] sm:$0xff] %v5852_v3 }
 0x23c   :  { %8921 = vst [vmem:[#allocation85_spill] sm:$0xff] %v5842_v52 }
 0x23e   :  { %v5860_v30 = vpop.permute.xlu0 %1287 }
 0x23f   :  { %1715 = vrot.lane.b32.xlu1 %v4935_v9, %s4767_s27  ;;  %v5845_v58 = vpop.permute.xlu1 %1294  ;;  %8925 = vst [vmem:[#allocation89_spill] sm:$0xff] %v5860_v30  ;;  %s4772_s27 = smov 92  }
 0x242   :  { %v5865_v57 = vpop.permute.xlu0 %1320 }
 0x243   :  { %1743 = vrot.lane.b32.xlu1 %v4920_v7, %s4768_s4  ;;  %v5850_v43 = vpop.permute.xlu1 %1296 }
 0x246   :  { %v5873_v33 = vpop.permute.xlu0 %1335 }
 0x247   :  { %1745 = vrot.lane.b32.xlu1 %v4935_v9, %s4768_s4  ;;  %v5855_v11 = vpop.permute.xlu1 %1311  ;;  %8926 = vst [vmem:[#allocation90_spill] sm:$0xff] %v5873_v33  ;;  %s9048_s4 = smov 123  }
 0x248   :  { %8924 = vst [vmem:[#allocation88_spill] sm:$0xff] %v5855_v11 }
 0x24a   :  { %v5879_v3 = vpop.permute.xlu0 %1351 }
 0x24b   :  { %1773 = vrot.lane.b32.xlu1 %v4920_v7, %s4769_s3  ;;  %v5858_v24 = vpop.permute.xlu1 %1318 }
 0x24e   :  { %v5888_v40 = vpop.permute.xlu0 %1368 }
 0x24f   :  { %1775 = vrot.lane.b32.xlu1 %v4935_v9, %s4769_s3  ;;  %v5863_v23 = vpop.permute.xlu1 %1327  ;;  %8930 = vst [vmem:[#allocation94_spill] sm:$0xff] %v5888_v40  ;;  %s9053_s3 = smov 122  }
 0x252   :  { %v1397_v5 = vpop.permute.xlu0 %1396 }
 0x253   :  { %1803 = vrot.lane.b32.xlu1 %v4920_v7, %s4770_s5  ;;  %v5868_v6 = vpop.permute.xlu1 %1342 }
 0x257   :  { %1805 = vrot.lane.b32.xlu1 %v4935_v9, %s4770_s5  ;;  %v5871_v11 = vpop.permute.xlu1 %1344  ;;  %s9056_s5 = smov 121  }
 0x25b   :  { %1833 = vrot.lane.b32.xlu1 %v4920_v7, %s4738_s19  ;;  %v5877_v30 = vpop.permute.xlu1 %1359 }
 0x25c   :  { %8927 = vst [vmem:[#allocation91_spill] sm:$0xff] %v5877_v30  ;;  %v4471_v30 = vld [vmem:[%s8421_s1 + $0x35] ss:$8 sm:$0x3] }
 0x25d   :  { %v5896_v28 = vrot.slane %v4471_v30, %v4969_v20 }
 0x25f   :  { %1835 = vrot.lane.b32.xlu1 %v4935_v9, %s4738_s19  ;;  %v5883_v52 = vpop.permute.xlu1 %1366  ;;  %8931 = vst [vmem:[#allocation95_spill] sm:$0xff] %v5896_v28 }
 0x260   :  { %8928 = vst [vmem:[#allocation92_spill] sm:$0xff] %v5883_v52  ;;  %v5899_v52 = vrot.slane %v4471_v30, %v4972_v21 }
 0x262   :  { %8932 = vst [vmem:[#allocation96_spill] sm:$0xff] %v5899_v52 }
 0x263   :  { %1863 = vrot.lane.b32.xlu1 %v4920_v7, %s4771_s26  ;;  %v5886_v42 = vpop.permute.xlu1 %1389 }
 0x264   :  { %8929 = vst [vmem:[#allocation93_spill] sm:$0xff] %v5886_v42 }
 0x267   :  { %1865 = vrot.lane.b32.xlu1 %v4935_v9, %s4771_s26  ;;  %v1399_v33 = vpop.permute.xlu1 %1398  ;;  %s9061_s26 = smov 15  }
 0x268   :  { %v1401_v40 = vsel %vm8734_vm0, %v1397_v5, %v1399_v33  ;;  %v1402_v60 = vsel %vm8734_vm0, %v1399_v33, %v1397_v5  ;;  %v8937_v5 = vmov 21   ;;  %v8939_v33 = vmov 23  }
 0x269   :  { %v5909_v2 = vmul.f32 %v5896_v28, %v1401_v40  ;;  %v5912_v49 = vmul.f32 %v5899_v52, %v1402_v60  ;;  %v5922_v60 = vpop.permute.xlu0 %1419  ;;  %vm8746_vm0 = vcmp.lt.s32.totalorder %v4966_v19, 114 }
 0x26a   :  { %8938 = vst [vmem:[#allocation101_spill] sm:$0xff] %v5922_v60 }
 0x26b   :  { %1893 = vrot.lane.b32.xlu1 %v4920_v7, %s4772_s27  ;;  %v5902_v42 = vpop.permute.xlu1 %1427  ;;  %8934 = vst [vmem:[#allocation98_spill] sm:$0xff] %v5909_v2  ;;  %8935 = vst [vmem:[#allocation99_spill] sm:$0xff] %v5912_v49 }
 0x26c   :  { %8933 = vst [vmem:[#allocation97_spill] sm:$0xff] %v5902_v42 }
 0x26f   :  { %1895 = vrot.lane.b32.xlu1 %v4935_v9, %s4772_s27  ;;  %s9035_s27 = smov 125  }
 0x270   :  { %v1436_v30 = vpop.permute.xlu1 %1435 }
 0x271   :  { %v1438_v12 = vmul.f32 %v1436_v30, %v5909_v2  ;;  %v1439_v59 = vmul.f32 %v1436_v30, %v5912_v49  ;;  %v4473_v30 = vld [vmem:[%s8421_s1 + $0x37] ss:$8 sm:$0x3]  ;;  %v8948_v2 = vmov 1  }
 0x273   :  { %v1440_v42 = vadd.f32 %v1438_v12, %v1262_v61  ;;  %v1441_v13 = vadd.f32 %v1439_v59, %v1263_v1  ;;  %1939 = vperm.xlu1 %4597, %v5590_v51   ;;  %v5930_v59 = vpop.permute.xlu0 %1442  ;;  %v5933_v61 = vrot.slane %v4473_v30, %v4969_v20  ;;  %v5936_v12 = vrot.slane %v4473_v30, %v4972_v21 }
 0x274   :  { %v5918_v27 = vpop.permute.xlu1 %1444  ;;  %8940 = vst [vmem:[#allocation102_spill] sm:$0xff] %v5930_v59 }
 0x275   :  { %8936 = vst [vmem:[#allocation100_spill] sm:$0xff] %v5918_v27  ;;  %8941 = vst [vmem:[#allocation103_spill] sm:$0xff] %v5933_v61 }
 0x276   :  { %8942 = vst [vmem:[#allocation104_spill] sm:$0xff] %v5936_v12 }
 0x277   :  { %4598 = vset.pattern.permute.xlu1 %v8937_v5  ;;  %v8944_v5 = vmov 24   ;;  %v5952_v30 = vpop.permute.xlu0 %1465 }
 0x278   :  { %1962 = vperm.xlu1 %4598, %v5590_v51   ;;  %v1473_v40 = vpop.permute.xlu1 %1472  ;;  %8947 = vst [vmem:[#allocation108_spill] sm:$0xff] %v5952_v30 }
 0x27c   :  { %4599 = vset.pattern.permute.xlu1 %v8939_v33  ;;  %v1475_v52 = vpop.permute.xlu1 %1474 }
 0x27d   :  { %2008 = vperm.xlu1 %4599, %v5590_v51   ;;  %v1477_v28 = vsel %vm8722_vm9, %v1473_v40, %v1475_v52  ;;  %v1478_v33 = vsel %vm8722_vm9, %v1475_v52, %v1473_v40  ;;  %vm996_vm9 = vcmp.lt.s32.totalorder %v4966_v19, 18 }
 0x27e   :  { %v5947_v60 = vmul.f32 %v5933_v61, %v1477_v28  ;;  %v5950_v59 = vmul.f32 %v5936_v12, %v1478_v33  ;;  %v5960_v28 = vpop.permute.xlu0 %1495  ;;  %v8951_v61 = vmov 2   ;;  %v8952_v12 = vmov 4  }
 0x27f   :  { %8950 = vst [vmem:[#allocation110_spill] sm:$0xff] %v5960_v28 }
 0x280   :  { %v5938_v1 = vpop.permute.xlu1 %1503  ;;  %8945 = vst [vmem:[#allocation106_spill] sm:$0xff] %v5947_v60  ;;  %8946 = vst [vmem:[#allocation107_spill] sm:$0xff] %v5950_v59 }
 0x281   :  { %8943 = vst [vmem:[#allocation105_spill] sm:$0xff] %v5938_v1  ;;  %4600 = vset.pattern.permute.xlu1 %v8944_v5 }
 0x282   :  { %2031 = vperm.xlu1 %4600, %v5590_v51   ;;  %v5965_v5 = vpop.permute.xlu0 %1518 }
 0x283   :  { %8953 = vst [vmem:[#allocation111_spill] sm:$0xff] %v5965_v5 }
 0x285   :  { %v1512_v27 = vpop.permute.xlu1 %1511 }
 0x286   :  { %v1514_v1 = vmul.f32 %v1512_v27, %v5947_v60  ;;  %v1515_v49 = vmul.f32 %v1512_v27, %v5950_v59  ;;  %4601 = vset.pattern.permute.xlu1 %v8948_v2  ;;  %v5986_v30 = vpop.permute.xlu0 %1541 }
 0x287   :  { %2055 = vperm.xlu1 %4601, %v5598_v4   ;;  %8957 = vst [vmem:[#allocation114_spill] sm:$0xff] %v5986_v30 }
 0x288   :  { %v1516_v52 = vadd.f32 %v1514_v1, %v1440_v42  ;;  %v1517_v40 = vadd.f32 %v1515_v49, %v1441_v13  ;;  %v4475_v13 = vld [vmem:[%s8421_s1 + $0x41] ss:$8 sm:$0x3]  ;;  %v8956_v1 = vmov 5  }
 0x289   :  { %v5958_v51 = vpop.permute.xlu1 %1520  ;;  %v5973_v42 = vrot.slane %v4475_v13, %v4969_v20  ;;  %v5976_v49 = vrot.slane %v4475_v13, %v4972_v21 }
 0x28a   :  { %8949 = vst [vmem:[#allocation109_spill] sm:$0xff] %v5958_v51 }
 0x28b   :  { %4602 = vset.pattern.permute.xlu1 %v8951_v61  ;;  %8954 = vst [vmem:[#allocation112_spill] sm:$0xff] %v5973_v42  ;;  %8955 = vst [vmem:[#allocation113_spill] sm:$0xff] %v5976_v49 }
 0x28c   :  { %2071 = vperm.xlu1 %4602, %v5598_v4  }
 0x28d   :  { %v1549_v33 = vpop.permute.xlu1 %1548 }
 0x290   :  { %4604 = vset.pattern.permute.xlu1 %v8952_v12 }
 0x291   :  { %2103 = vperm.xlu1 %4604, %v5598_v4   ;;  %v1551_v27 = vpop.permute.xlu1 %1550 }
 0x292   :  { %v1553_v5 = vsel %vm8718_vm10, %v1549_v33, %v1551_v27  ;;  %v1554_v51 = vsel %vm8718_vm10, %v1551_v27, %v1549_v33  ;;  %v5998_v33 = vpop.permute.xlu0 %1571  ;;  %vm1098_vm10 = vcmp.lt.s32.totalorder %v4966_v19, 14 }
 0x293   :  { %v5989_v2 = vmul.f32 %v5973_v42, %v1553_v5  ;;  %v5992_v13 = vmul.f32 %v5976_v49, %v1554_v51  ;;  %8960 = vst [vmem:[#allocation117_spill] sm:$0xff] %v5998_v33 }
 0x295   :  { %4605 = vset.pattern.permute.xlu1 %v8956_v1  ;;  %v5979_v28 = vpop.permute.xlu1 %1579  ;;  %8958 = vst [vmem:[#allocation115_spill] sm:$0xff] %v5989_v2  ;;  %8959 = vst [vmem:[#allocation116_spill] sm:$0xff] %v5992_v13 }
 0x296   :  { %2119 = vperm.xlu1 %4605, %v5598_v4   ;;  %v6009_v49 = vpop.permute.xlu0 %939 }
 0x297   :  { %8965 = vst [vmem:[#allocation122_spill] sm:$0xff] %v6009_v49 }
 0x29a   :  { %4607 = vset.pattern.permute.xlu1 %v8878_v0  ;;  %v1588_v1 = vpop.permute.xlu1 %1587  ;;  %v6013_v0 = vpop.permute.xlu0 %1179 }
 0x29b   :  { %v1590_v61 = vmul.f32 %v1588_v1, %v5989_v2  ;;  %v1591_v12 = vmul.f32 %v1588_v1, %v5992_v13  ;;  %2151 = vperm.xlu1 %4607, %v5598_v4  }
 0x29d   :  { %v6000_v27 = vadd.f32 %v1590_v61, %v1516_v52  ;;  %v6002_v30 = vadd.f32 %v1591_v12, %v1517_v40 }
 0x29e   :  { %v6004_v5 = vpop.permute.xlu1 %1596  ;;  %v6019_v61 = vpop.permute.xlu0 %1594 }
 0x29f   :  { %8961 = vst [vmem:[#allocation118_spill] sm:$0xff] %v6000_v27  ;;  %8962 = vst [vmem:[#allocation119_spill] sm:$0xff] %v6002_v30  ;;  %4608 = vset.pattern.permute.xlu1 %v8881_v29  ;;  %v4429_v27 = vrot.slane %v5612_v15, 3 }
 0x2a0   :  { %8963 = vst [vmem:[#allocation120_spill] sm:$0xff] %v6004_v5  ;;  %8969 = vst [vmem:[#allocation126_spill] sm:$0xff] %v6019_v61 }
 0x2a1   :  { %4491 = vpush %v4429_v27 }
 0x2a2   :  { %v6007_v51 = vpop.permute.xlu1 %1623  ;;  %v6023_v52 = vpop.permute.xlu0 %1706 }
 0x2a3   :  { %8964 = vst [vmem:[#allocation121_spill] sm:$0xff] %v6007_v51  ;;  %8971 = vst [vmem:[#allocation128_spill] sm:$0xff] %v6023_v52 }
 0x2a6   :  { %v6011_v42 = vpop.permute.xlu1 %1625  ;;  %v6030_v51 = vpop.permute.xlu0 %2087 }
 0x2a7   :  { %8966 = vst [vmem:[#allocation123_spill] sm:$0xff] %v6011_v42 }
 0x2aa   :  { %v6015_v1 = vpop.permute.xlu1 %1653 }
 0x2ab   :  { %8967 = vst [vmem:[#allocation124_spill] sm:$0xff] %v6015_v1  ;;  %v6034_v1 = vpop.permute.xlu0 %1303 }
 0x2ae   :  { %v6017_v4 = vpop.permute.xlu1 %1655 }
 0x2af   :  { %8968 = vst [vmem:[#allocation125_spill] sm:$0xff] %v6017_v4 }
 0x2b2   :  { %v6021_v12 = vpop.permute.xlu1 %1683 }
 0x2b3   :  { %8970 = vst [vmem:[#allocation127_spill] sm:$0xff] %v6021_v12  ;;  %v6040_v12 = vpop.permute.xlu0 %2135 }
 0x2b6   :  { %v6025_v40 = vpop.permute.xlu1 %1685 }
 0x2b7   :  { %8972 = vst [vmem:[#allocation129_spill] sm:$0xff] %v6025_v40  ;;  %v6044_v40 = vpop.permute.xlu0 %565 }
 0x2b8   :  { %8978 = vst [vmem:[#allocation135_spill] sm:$0xff] %v6044_v40  ;;  %v1027_v40 = vsel %vm63_vm6, %v5452_v16, %v5448_v53 }
 0x2ba   :  { %v6027_v30 = vpop.permute.xlu1 %1713 }
 0x2bb   :  { %8973 = vst [vmem:[#allocation130_spill] sm:$0xff] %v6027_v30  ;;  %v6050_v33 = vpop.permute.xlu0 %572 }
 0x2bc   :  { %8981 = vst [vmem:[#allocation138_spill] sm:$0xff] %v6050_v33  ;;  %v6069_v33 = vmul.f32 %v1027_v40, %v4999_v37  ;;  %v772_v40 = vmul.f32 %v5281_v17, %v4935_v9 }
 0x2be   :  { %v6032_v42 = vpop.permute.xlu1 %1715 }
 0x2bf   :  { %8974 = vst [vmem:[#allocation131_spill] sm:$0xff] %v6032_v42  ;;  %v6054_v42 = vpop.permute.xlu0 %817 }
 0x2c0   :  { %8983 = vst [vmem:[#allocation140_spill] sm:$0xff] %v6054_v42 }
 0x2c2   :  { %v6036_v4 = vpop.permute.xlu1 %1743 }
 0x2c3   :  { %8975 = vst [vmem:[#allocation132_spill] sm:$0xff] %v6036_v4  ;;  %v1026_v4 = vsel %vm63_vm6, %v5448_v53, %v5452_v16 }
 0x2c6   :  { %v6038_v61 = vpop.permute.xlu1 %1745 }
 0x2c7   :  { %8976 = vst [vmem:[#allocation133_spill] sm:$0xff] %v6038_v61 }
 0x2ca   :  { %v6042_v52 = vpop.permute.xlu1 %1773 }
 0x2cb   :  { %8977 = vst [vmem:[#allocation134_spill] sm:$0xff] %v6042_v52 }
 0x2ce   :  { %v6046_v30 = vpop.permute.xlu1 %1775 }
 0x2cf   :  { %8979 = vst [vmem:[#allocation136_spill] sm:$0xff] %v6046_v30  ;;  %v1051_v30 = vsel %vm8988_vm15, %v5446_v22, %v5471_v44 }
 0x2d0   :  { %v6091_v61 = vmul.f32 %v1051_v30, %v4990_v31 }
 0x2d2   :  { %v6048_v5 = vpop.permute.xlu1 %1803 }
 0x2d3   :  { %8980 = vst [vmem:[#allocation137_spill] sm:$0xff] %v6048_v5  ;;  %v1032_v5 = vpop.permute.xlu0 %1031 }
 0x2d4   :  { %v1034_v53 = vmul.f32 %v1032_v5, %v6069_v33 }
 0x2d6   :  { %v6052_v27 = vpop.permute.xlu1 %1805 }
 0x2d7   :  { %8982 = vst [vmem:[#allocation139_spill] sm:$0xff] %v6052_v27  ;;  %v6072_v27 = vmul.f32 %v1026_v4, %v5003_v39  ;;  %v771_v4 = vmul.f32 %v5281_v17, %v4920_v7  ;;  %v1058_v17 = vmul.f32 %v5482_v47, %v6091_v61 }
 0x2d9   :  { %8986 = vst [vmem:[#allocation143_spill] sm:$0xff] %v6072_v27  ;;  %v1035_v16 = vmul.f32 %v1032_v5, %v6072_v27  ;;  %v1036_v5 = vadd.f32 %v1034_v53, %v771_v4 }
 0x2da   :  { %v6056_v49 = vpop.permute.xlu1 %1833 }
 0x2db   :  { %8984 = vst [vmem:[#allocation141_spill] sm:$0xff] %v6056_v49  ;;  %v1050_v49 = vsel %vm8987_vm4, %v5471_v44, %v5446_v22  ;;  %vm8991_vm4 = vcmp.lt.s32.totalorder %v4966_v19, 15  ;;  %v1060_v31 = vadd.f32 %v1058_v17, %v1036_v5 }
 0x2dc   :  { %v6094_v39 = vmul.f32 %v1050_v49, %v4993_v32  ;;  %v1074_v44 = vsel %vm8991_vm4, %v5493_v62, %v5501_v34  ;;  %vm8992_vm15 = vmmov %vm8991_vm4  ;;  %vm844_vm4 = vcmp.lt.s32.totalorder %v4966_v19, 33 }
 0x2dd   :  { %v1075_v22 = vsel %vm8992_vm15, %v5501_v34, %v5493_v62  ;;  %v6114_v32 = vmul.f32 %v1074_v44, %v5021_v46  ;;  %v1174_v62 = vsel %vm8749_vm13, %v5808_v25, %v5785_v41  ;;  %vm920_vm15 = vcmp.lt.s32.totalorder %v4966_v19, 31 }
 0x2de   :  { %v6066_v52 = vpop.permute.xlu1 %1835  ;;  %8990 = vst [vmem:[#allocation145_spill] sm:$0xff] %v6094_v39  ;;  %v1059_v30 = vmul.f32 %v5482_v47, %v6094_v39  ;;  %v6111_v49 = vmul.f32 %v1075_v22, %v5018_v45  ;;  %v1175_v47 = vsel %vm8749_vm13, %v5785_v41, %v5808_v25  ;;  %v6142_v41 = vmul.f32 %v1174_v62, %v5042_v56  ;;  %v9101_v39 = vld [vmem:[#allocation40_spill] sm:$0xff] }
 0x2df   :  { %8985 = vst [vmem:[#allocation142_spill] sm:$0xff] %v6066_v52  ;;  %v1083_v53 = vmul.f32 %v5450_v18, %v6114_v32  ;;  %v6139_v4 = vmul.f32 %v1175_v47, %v5039_v55  ;;  %v1322_v47 = vsel %vm303_vm8, %v5858_v24, %v5865_v57 }
 0x2e0   :  { %v1082_v34 = vmul.f32 %v5450_v18, %v6111_v49 }
 0x2e1   :  { %v1182_v5 = vmul.f32 %v6013_v0, %v6139_v4 }
 0x2e2   :  { %v6084_v52 = vpop.permute.xlu1 %1863  ;;  %v1084_v25 = vadd.f32 %v1082_v34, %v1060_v31  ;;  %v1298_v31 = vsel %vm263_vm12, %v5845_v58, %v5850_v43  ;;  %v1323_v34 = vsel %vm303_vm8, %v5865_v57, %v5858_v24  ;;  %v1346_v24 = vsel %vm8780_vm14, %v5868_v6, %v5871_v11 }
 0x2e3   :  { %8989 = vst [vmem:[#allocation144_spill] sm:$0xff] %v6084_v52  ;;  %v1037_v52 = vadd.f32 %v1035_v16, %v772_v40  ;;  %v1199_v16 = vsel %vm223_vm1, %v5828_v8, %v5797_v48 }
 0x2e4   :  { %v6150_v22 = vmul.f32 %v1199_v16, %v5084_v35  ;;  %v9050_v35 = vld [vmem:[#allocation97_spill] sm:$0xff] }
 0x2e5   :  { %v1061_v42 = vadd.f32 %v1059_v30, %v1037_v52  ;;  %v1198_v52 = vsel %vm223_vm1, %v5797_v48, %v5828_v8  ;;  %v1183_v48 = vmul.f32 %v6013_v0, %v6142_v41  ;;  %v1184_v8 = vadd.f32 %v1182_v5, %v1084_v25 }
 0x2e6   :  { %v6104_v37 = vpop.permute.xlu1 %1865  ;;  %v6147_v18 = vmul.f32 %v1198_v52, %v5060_v63  ;;  %v1207_v0 = vmul.f32 %v5802_v54, %v6150_v22  ;;  %v9052_v63 = vld [vmem:[#allocation105_spill] sm:$0xff] }
 0x2e7   :  { %8993 = vst [vmem:[#allocation146_spill] sm:$0xff] %v6104_v37  ;;  %v1085_v40 = vadd.f32 %v1083_v53, %v1061_v42  ;;  %v1299_v42 = vsel %vm263_vm12, %v5850_v43, %v5845_v58  ;;  %v6179_v53 = vmul.f32 %v1298_v31, %v5087_v36 }
 0x2e8   :  { %v1206_v62 = vmul.f32 %v5802_v54, %v6147_v18  ;;  %v6182_v43 = vmul.f32 %v1299_v42, %v5090_v38  ;;  %v9000_v54 = vld [vmem:[#allocation16_spill] sm:$0xff] }
 0x2e9   :  { %v1185_v17 = vadd.f32 %v1183_v48, %v1085_v40  ;;  %8997 = vst [vmem:[#allocation150_spill] sm:$0xff] %v6179_v53  ;;  %v6187_v25 = vmul.f32 %v1322_v47, %v9000_v54  ;;  %v9002_v40 = vld [vmem:[#allocation17_spill] sm:$0xff]  ;;  %v1306_v48 = vmul.f32 %v6034_v1, %v6179_v53  ;;  %v9006_v47 = vld [vmem:[#allocation19_spill] sm:$0xff]  ;;  %v9028_v38 = vld [vmem:[#allocation36_spill] sm:$0xff] }
 0x2ea   :  { %v6116_v27 = vpop.permute.xlu1 %1893  ;;  %8998 = vst [vmem:[#allocation151_spill] sm:$0xff] %v6182_v43  ;;  %v1208_v58 = vadd.f32 %v1206_v62, %v1184_v8  ;;  %v6190_v5 = vmul.f32 %v1323_v34, %v9002_v40  ;;  %v1307_v57 = vmul.f32 %v6034_v1, %v6182_v43  ;;  %v1347_v8 = vsel %vm8780_vm14, %v5871_v11, %v5868_v6  ;;  %v9019_v40 = vld [vmem:[#allocation32_spill] sm:$0xff] }
 0x2eb   :  { %8994 = vst [vmem:[#allocation147_spill] sm:$0xff] %v6116_v27  ;;  %v1209_v52 = vadd.f32 %v1207_v0, %v1185_v17  ;;  %9001 = vst [vmem:[#allocation153_spill] sm:$0xff] %v6187_v25  ;;  %v1330_v42 = vmul.f32 %v5863_v23, %v6187_v25  ;;  %v9004_v0 = vld [vmem:[#allocation18_spill] sm:$0xff]  ;;  %v6212_v34 = vmul.f32 %v1347_v8, %v9006_v47  ;;  %v9012_v8 = vld [vmem:[#allocation35_spill] sm:$0xff] }
 0x2ec   :  { %9003 = vst [vmem:[#allocation154_spill] sm:$0xff] %v6190_v5  ;;  %v1308_v17 = vadd.f32 %v1306_v48, %v1208_v58  ;;  %v1331_v62 = vmul.f32 %v5863_v23, %v6190_v5  ;;  %v6209_v1 = vmul.f32 %v1346_v24, %v9004_v0  ;;  %v9009_v58 = vld [vmem:[#allocation43_spill] sm:$0xff]  ;;  %v6222_v23 = vpop.permute.xlu0 %1616 }
 0x2ed   :  { %v1309_v31 = vadd.f32 %v1307_v57, %v1209_v52  ;;  %9007 = vst [vmem:[#allocation156_spill] sm:$0xff] %v6212_v34  ;;  %v1355_v11 = vmul.f32 %v5879_v3, %v6212_v34  ;;  %v663_v52 = vrot.slane %v9009_v58, %v4969_v20  ;;  %9010 = vst [vmem:[#allocation43_spill] sm:$0xff] %v6222_v23  ;;  %v9013_v34 = vld [vmem:[#allocation30_spill] sm:$0xff] }
 0x2ee   :  { %v6144_v44 = vpop.permute.xlu1 %1895  ;;  %9005 = vst [vmem:[#allocation155_spill] sm:$0xff] %v6209_v1  ;;  %v1354_v6 = vmul.f32 %v5879_v3, %v6209_v1 }
 0x2ef   :  { %8995 = vst [vmem:[#allocation148_spill] sm:$0xff] %v6144_v44  ;;  %v1333_v27 = vadd.f32 %v1331_v62, %v1309_v31  ;;  %v6235_v31 = vld [vmem:[%s8422_s2] sm:$0xff] }
 0x2f0   :  { %v664_v3 = vmul.f32 %v6235_v31, %v663_v52 }
 0x2f1   :  { %v6228_v24 = vadd.f32 %v1355_v11, %v1333_v27 }
 0x2f2   :  { %v6156_v30 = vpop.permute.xlu1 %1939  ;;  %v674_v58 = vadd.f32 %v5619_v14, %v664_v3  ;;  %v9015_v3 = vld [vmem:[#allocation31_spill] sm:$0xff] }
 0x2f3   :  { %8996 = vst [vmem:[#allocation149_spill] sm:$0xff] %v6156_v30  ;;  %v1332_v30 = vadd.f32 %v1330_v42, %v1308_v17  ;;  %v583_v17 = vrot.slane %v9012_v8, %v4969_v20  ;;  %v2051_v62 = vrot.slane %v6228_v24, %v4969_v20  ;;  %v2042_v8 = vpop.permute.xlu0 %2041  ;;  %v2081_v5 = vrot.slane %v6228_v24, %v9013_v34 }
 0x2f4   :  { %v684_v44 = vadd.f32 %v5628_v26, %v674_v58  ;;  %v9017_v58 = vld [vmem:[#allocation51_spill] sm:$0xff] }
 0x2f5   :  { %v6226_v57 = vadd.f32 %v1354_v6, %v1332_v30  ;;  %v2065_v6 = vrot.slane %v6228_v24, %v4972_v21  ;;  %v584_v11 = vmul.f32 %v6235_v31, %v583_v17  ;;  %v2053_v23 = vmul.f32 %v2051_v62, %v2042_v8  ;;  %v9014_v17 = vld [vmem:[#allocation50_spill] sm:$0xff] }
 0x2f6   :  { %v694_v43 = vadd.f32 %v9014_v17, %v684_v44 }
 0x2f7   :  { %v6184_v16 = vpop.permute.xlu1 %1962  ;;  %v2047_v42 = vrot.slane %v6226_v57, %v4969_v20  ;;  %v2061_v27 = vrot.slane %v6226_v57, %v4972_v21  ;;  %v2077_v1 = vrot.slane %v6226_v57, %v9013_v34  ;;  %v2109_v54 = vrot.slane %v6226_v57, %v9019_v40 }
 0x2f8   :  { %8999 = vst [vmem:[#allocation152_spill] sm:$0xff] %v6184_v16  ;;  %v2157_v36 = vrot.slane %v6226_v57, %v9028_v38 }
 0x2f9   :  { %v2052_v37 = vmul.f32 %v2047_v42, %v2042_v8  ;;  %v704_v8 = vadd.f32 %v9017_v58, %v694_v43 }
 0x2fc   :  { %v6214_v16 = vpop.permute.xlu1 %2008 }
 0x2fd   :  { %9008 = vst [vmem:[#allocation157_spill] sm:$0xff] %v6214_v16  ;;  %v594_v16 = vadd.f32 %v5642_v10, %v584_v11  ;;  %v2097_v10 = vrot.slane %v6228_v24, %v9015_v3 }
 0x2ff   :  { %v604_v25 = vadd.f32 %v5654_v50, %v594_v16  ;;  %v9018_v50 = vld [vmem:[#allocation65_spill] sm:$0xff]  ;;  %v2099_v0 = vmul.f32 %v2097_v10, %v6030_v51  ;;  %v9024_v10 = vld [vmem:[#allocation34_spill] sm:$0xff] }
 0x301   :  { %v6224_v48 = vpop.permute.xlu1 %2031 }
 0x302   :  { %9011 = vst [vmem:[#allocation158_spill] sm:$0xff] %v6224_v48 }
 0x306   :  { %v2056_v30 = vpop.permute.xlu1 %2055 }
 0x307   :  { %v2066_v48 = vmul.f32 %v2061_v27, %v2056_v30  ;;  %v2067_v52 = vmul.f32 %v2065_v6, %v2056_v30  ;;  %v2093_v30 = vrot.slane %v6226_v57, %v9015_v3  ;;  %v9016_v6 = vld [vmem:[#allocation60_spill] sm:$0xff] }
 0x308   :  { %v614_v11 = vadd.f32 %v9016_v6, %v604_v25  ;;  %v9021_v25 = vld [vmem:[#allocation77_spill] sm:$0xff]  ;;  %v2145_v6 = vrot.slane %v6228_v24, %v9024_v10 }
 0x309   :  { %v2068_v26 = vadd.f32 %v2066_v48, %v2052_v37  ;;  %v2069_v42 = vadd.f32 %v2067_v52, %v2053_v23  ;;  %v2098_v17 = vmul.f32 %v2093_v30, %v6030_v51  ;;  %v2113_v37 = vrot.slane %v6228_v24, %v9019_v40 }
 0x30a   :  { %v624_v16 = vadd.f32 %v9018_v50, %v614_v11  ;;  %v714_v23 = vadd.f32 %v9021_v25, %v704_v8  ;;  %v9025_v11 = vld [vmem:[#allocation76_spill] sm:$0xff]  ;;  %v2147_v25 = vmul.f32 %v2145_v6, %v6040_v12 }
 0x30b   :  { %v2072_v14 = vpop.permute.xlu1 %2071 }
 0x30c   :  { %v2082_v62 = vmul.f32 %v2077_v1, %v2072_v14  ;;  %v2083_v27 = vmul.f32 %v2081_v5, %v2072_v14  ;;  %v9020_v5 = vld [vmem:[#allocation71_spill] sm:$0xff] }
 0x30d   :  { %v634_v1 = vadd.f32 %v9020_v5, %v624_v16 }
 0x30e   :  { %v2084_v53 = vadd.f32 %v2082_v62, %v2068_v26  ;;  %v2085_v47 = vadd.f32 %v2083_v27, %v2069_v42  ;;  %v9022_v26 = vld [vmem:[#allocation74_spill] sm:$0xff]  ;;  %v9023_v62 = vld [vmem:[#allocation33_spill] sm:$0xff]  ;;  %v2141_v27 = vrot.slane %v6226_v57, %v9024_v10 }
 0x30f   :  { %v644_v42 = vadd.f32 %v9022_v26, %v634_v1  ;;  %v2125_v30 = vrot.slane %v6226_v57, %v9023_v62  ;;  %v2129_v51 = vrot.slane %v6228_v24, %v9023_v62 }
 0x310   :  { %v2104_v44 = vpop.permute.xlu1 %2103  ;;  %v2100_v43 = vadd.f32 %v2098_v17, %v2084_v53  ;;  %v2101_v48 = vadd.f32 %v2099_v0, %v2085_v47  ;;  %v9026_v53 = vld [vmem:[#allocation52_spill] sm:$0xff]  ;;  %v2146_v1 = vmul.f32 %v2141_v27, %v6040_v12 }
 0x311   :  { %v2114_v52 = vmul.f32 %v2109_v54, %v2104_v44  ;;  %v2115_v14 = vmul.f32 %v2113_v37, %v2104_v44  ;;  %v654_v58 = vadd.f32 %v9025_v11, %v644_v42  ;;  %v724_v0 = vadd.f32 %v9026_v53, %v714_v23  ;;  %v9027_v44 = vld [vmem:[#allocation55_spill] sm:$0xff] }
 0x312   :  { %v2161_v23 = vrot.slane %v6228_v24, %v9028_v38  ;;  %v744_v24 = vrot.slane %v5612_v15, %v9013_v34 }
 0x313   :  { %v2116_v47 = vadd.f32 %v2114_v52, %v2100_v43  ;;  %v2117_v8 = vadd.f32 %v2115_v14, %v2101_v48  ;;  %v734_v17 = vadd.f32 %v9027_v44, %v724_v0  ;;  %v735_v26 = vmul.f32 0.001953125, %v654_v58 }
 0x315   :  { %v2120_v54 = vpop.permute.xlu1 %2119  ;;  %v736_v52 = vmul.f32 0.001953125, %v734_v17 }
 0x316   :  { %v2130_v50 = vmul.f32 %v2125_v30, %v2120_v54  ;;  %v2131_v16 = vmul.f32 %v2129_v51, %v2120_v54  ;;  %v737_v51 = vmul.f32 %v735_v26, %v735_v26 }
 0x318   :  { %v2132_v37 = vadd.f32 %v2130_v50, %v2116_v47  ;;  %v2133_v5 = vadd.f32 %v2131_v16, %v2117_v8  ;;  %v738_v27 = vsub.f32 %v736_v52, %v737_v51  ;;  %v9036_v52 = vld [vmem:[#allocation61_spill] sm:$0xff]  ;;  %v9038_v51 = vld [vmem:[#allocation62_spill] sm:$0xff] }
 0x31a   :  { %v2152_v42 = vpop.permute.xlu1 %2151  ;;  %v2148_v43 = vadd.f32 %v2146_v1, %v2132_v37  ;;  %v2149_v48 = vadd.f32 %v2147_v25, %v2133_v5  ;;  %v739_v57 = vadd.f32 1e-05, %v738_v27  ;;  %v9032_v1 = vld [vmem:[#allocation24_spill] sm:$0xff] }
 0x31b   :  { %v2162_v14 = vmul.f32 %v2157_v36, %v2152_v42  ;;  %v2163_v30 = vmul.f32 %v2161_v23, %v2152_v42  ;;  %v9029_v36 = vld [vmem:[#allocation49_spill] sm:$0xff]  ;;  %v785_v25 = vmul.f32 %v9032_v1, %v4920_v7  ;;  %v9033_v23 = vld [vmem:[#allocation58_spill] sm:$0xff] }
 0x31c   :  { %4681 = vrsqrt.f32 %v739_v57 }
 0x31d   :  { %v6289_v11 = vadd.f32 %v2162_v14, %v2148_v43  ;;  %v6291_v53 = vadd.f32 %v2163_v30, %v2149_v48  ;;  %v9034_v43 = vld [vmem:[#allocation59_spill] sm:$0xff]  ;;  %v9037_v14 = vld [vmem:[#allocation28_spill] sm:$0xff] }
 0x31e   :  { %v904_v30 = vmul.f32 %v9037_v14, %v9036_v52  ;;  %v905_v27 = vmul.f32 %v9037_v14, %v9038_v51 }
 0x31f   :  { %v2166_v12 = vadd.f32 %v6291_v53, %v6289_v11 }
 0x321   :  { %2167 = vadd.xlane.f32.xlu1 %v2166_v12 }
 0x326   :  { %v4682_v6 = vpop.eup %4681 }
 0x327   :  { %v745_v58 = vmul.f32 %v4682_v6, %v744_v24 }
 0x332   :  { %748 = vperm.xlu1 %4608, %v735_v26   ;;  %v786_v26 = vmul.f32 %v9032_v1, %v4935_v9 }
 0x336   :  { %755 = vperm.xlu1 %4608, %v745_v58   ;;  %v9039_v58 = vld [vmem:[#allocation66_spill] sm:$0xff] }
 0x33a   :  { %825 = vperm.xlu1 %4608, %v9029_v36   ;;  %v9040_v36 = vld [vmem:[#allocation39_spill] sm:$0xff] }
 0x3ae   :  { %v6298_v0 = vpop.xlane.xlu1 %2167 }
 0x3af   :  { %v2177_v54 = vrot.slane %v6298_v0, %v4972_v21  ;;  %v2187_v8 = vrot.slane %v6298_v0, %v9013_v34  ;;  %v2197_v16 = vrot.slane %v6298_v0, %v9015_v3  ;;  %v2207_v37 = vrot.slane %v6298_v0, %v9019_v40 }
 0x3b0   :  { %v2217_v6 = vrot.slane %v6298_v0, %v9023_v62  ;;  %v2227_v14 = vrot.slane %v6298_v0, %v9024_v10 }
 0x3b1   :  { %v2178_v47 = vmul.f32 %v6235_v31, %v2177_v54  ;;  %v2188_v15 = vmul.f32 %v6235_v31, %v2187_v8  ;;  %v2198_v17 = vmul.f32 %v6235_v31, %v2197_v16  ;;  %v2208_v24 = vmul.f32 %v6235_v31, %v2207_v37 }
 0x3b2   :  { %v6305_v50 = vpop.permute.xlu1 %748  ;;  %v980_v54 = vmul.f32 %v9040_v36, %v9039_v58 }
 0x3b3   :  { %9030 = vst [vmem:[#allocation35_spill] sm:$0xff] %v6305_v50  ;;  %2180 = vrot.lane.b32.xlu0 %v2178_v47, %s4715_s30  ;;  %v9041_v47 = vld [vmem:[#allocation67_spill] sm:$0xff]  ;;  %v9046_v50 = vld [vmem:[#allocation81_spill] sm:$0xff] }
 0x3b4   :  { %v981_v8 = vmul.f32 %v9040_v36, %v9041_v47 }
 0x3b6   :  { %v6311_v44 = vpop.permute.xlu1 %755 }
 0x3b7   :  { %9031 = vst [vmem:[#allocation50_spill] sm:$0xff] %v6311_v44  ;;  %2190 = vrot.lane.b32.xlu0 %v2188_v15, %s4736_s22  ;;  %v9045_v44 = vld [vmem:[#allocation82_spill] sm:$0xff] }
 0x3b8   :  { %v1252_v36 = vmul.f32 %v9046_v50, %v9045_v44  ;;  %v2237_v44 = vrot.slane %v6298_v0, %v9028_v38 }
 0x3ba   :  { %v826_v5 = vpop.permute.xlu1 %825 }
 0x3bb   :  { %v828_v42 = vmul.f32 %v826_v5, %v9033_v23  ;;  %v829_v48 = vmul.f32 %v826_v5, %v9034_v43  ;;  %2200 = vrot.lane.b32.xlu0 %v2198_v17, %s9035_s27  ;;  %v9042_v17 = vld [vmem:[#allocation72_spill] sm:$0xff]  ;;  %v9043_v5 = vld [vmem:[#allocation70_spill] sm:$0xff] }
 0x3bc   :  { %v1158_v1 = vmul.f32 %v9043_v5, %v9042_v17 }
 0x3bd   :  { %v830_v12 = vadd.f32 %v828_v42, %v785_v25  ;;  %v831_v57 = vadd.f32 %v829_v48, %v786_v26  ;;  %v9044_v25 = vld [vmem:[#allocation73_spill] sm:$0xff]  ;;  %v2218_v48 = vmul.f32 %v6235_v31, %v2217_v6 }
 0x3be   :  { %v1159_v26 = vmul.f32 %v9043_v5, %v9044_v25 }
 0x3bf   :  { %v906_v15 = vadd.f32 %v904_v30, %v830_v12  ;;  %v907_v16 = vadd.f32 %v905_v27, %v831_v57  ;;  %2210 = vrot.lane.b32.xlu0 %v2208_v24, %s4738_s19  ;;  %v9047_v30 = vld [vmem:[#allocation83_spill] sm:$0xff]  ;;  %v9049_v24 = vld [vmem:[#allocation98_spill] sm:$0xff] }
 0x3c0   :  { %v1253_v27 = vmul.f32 %v9046_v50, %v9047_v30  ;;  %v1430_v5 = vmul.f32 %v9050_v35, %v9049_v24  ;;  %v1506_v50 = vmul.f32 %v9052_v63, %v5947_v60 }
 0x3c1   :  { %v982_v37 = vadd.f32 %v980_v54, %v906_v15  ;;  %v983_v42 = vadd.f32 %v981_v8, %v907_v16  ;;  %v9051_v54 = vld [vmem:[#allocation99_spill] sm:$0xff]  ;;  %v2228_v16 = vmul.f32 %v6235_v31, %v2227_v14 }
 0x3c2   :  { %v1431_v8 = vmul.f32 %v9050_v35, %v9051_v54  ;;  %v1582_v35 = vmul.f32 %v5979_v28, %v5989_v2 }
 0x3c3   :  { %v1160_v12 = vadd.f32 %v1158_v1, %v982_v37  ;;  %v1161_v57 = vadd.f32 %v1159_v26, %v983_v42  ;;  %2220 = vrot.lane.b32.xlu0 %v2218_v48, %s9048_s4  ;;  %v1507_v1 = vmul.f32 %v9052_v63, %v5950_v59  ;;  %v1583_v42 = vmul.f32 %v5979_v28, %v5992_v13 }
 0x3c4   :  { %v2244_v63 = vmul.f32 %v6289_v11, %v6289_v11 }
 0x3c5   :  { %v1254_v6 = vadd.f32 %v1252_v36, %v1160_v12  ;;  %v1255_v15 = vadd.f32 %v1253_v27, %v1161_v57  ;;  %v2238_v36 = vmul.f32 %v6235_v31, %v2237_v44  ;;  %v2245_v57 = vmul.f32 %v6291_v53, %v6291_v53 }
 0x3c7   :  { %v1432_v26 = vadd.f32 %v1430_v5, %v1254_v6  ;;  %v1433_v37 = vadd.f32 %v1431_v8, %v1255_v15  ;;  %2230 = vrot.lane.b32.xlu0 %v2228_v16, %s9053_s3  ;;  %v2246_v5 = vadd.f32 %v2245_v57, %v2244_v63 }
 0x3c9   :  { %v1508_v48 = vadd.f32 %v1506_v50, %v1432_v26  ;;  %v1509_v14 = vadd.f32 %v1507_v1, %v1433_v37 }
 0x3cb   :  { %v6365_v27 = vadd.f32 %v1582_v35, %v1508_v48  ;;  %v6367_v12 = vadd.f32 %v1583_v42, %v1509_v14  ;;  %2240 = vrot.lane.b32.xlu0 %v2238_v36, %s9056_s5  ;;  %v2172_v14 = vrot.slane %v6298_v0, %v4969_v20 }
 0x3cd   :  { %9054 = vst [vmem:[#allocation60_spill] sm:$0xff] %v6365_v27  ;;  %9055 = vst [vmem:[#allocation51_spill] sm:$0xff] %v6367_v12  ;;  %v2173_v57 = vmul.f32 %v6235_v31, %v2172_v14 }
 0x3ea   :  { %2247 = vadd.xlane.f32.xlu0 %v2246_v5 }
 0x425   :  { %v2181_v8 = vpop.permute.xlu0 %2180 }
 0x426   :  { %v2183_v5 = vadd.f32 %v2181_v8, %v2173_v57 }
 0x429   :  { %v2191_v28 = vpop.permute.xlu0 %2190 }
 0x42a   :  { %v2193_v12 = vadd.f32 %v2191_v28, %v2183_v5 }
 0x42d   :  { %v2201_v6 = vpop.permute.xlu0 %2200 }
 0x42e   :  { %v2203_v0 = vadd.f32 %v2201_v6, %v2193_v12 }
 0x431   :  { %v2211_v15 = vpop.permute.xlu0 %2210 }
 0x435   :  { %v2221_v16 = vpop.permute.xlu0 %2220 }
 0x439   :  { %v2231_v44 = vpop.permute.xlu0 %2230 }
 0x43d   :  { %v2241_v50 = vpop.permute.xlu0 %2240 }
 0x477   :  { %v2248_v1 = vpop.xlane.xlu0 %2247 }
 0x478   :  { %v2297_v26 = vrot.slane %v2248_v1, %v9023_v62  ;;  %v2257_v37 = vrot.slane %v2248_v1, %v4972_v21  ;;  %v2267_v48 = vrot.slane %v2248_v1, %v9013_v34  ;;  %v2277_v63 = vrot.slane %v2248_v1, %v9015_v3  ;;  %v9087_v62 = vld [vmem:[#allocation26_spill] sm:$0xff] }
 0x479   :  { %v2317_v8 = vrot.slane %v2248_v1, %v9028_v38  ;;  %v4466_v38 = vld [vmem:[%s8421_s1 + $0x20] ss:$8 sm:$0x3]  ;;  %v779_v3 = vmul.f32 %v9087_v62, %v4935_v9 }
 0x47a   :  { %v2298_v35 = vmul.f32 %v6235_v31, %v2297_v26  ;;  %v2258_v42 = vmul.f32 %v6235_v31, %v2257_v37  ;;  %v2268_v36 = vmul.f32 %v6235_v31, %v2267_v48  ;;  %v2278_v26 = vmul.f32 %v6235_v31, %v2277_v63 }
 0x47b   :  { %v2287_v37 = vrot.slane %v2248_v1, %v9019_v40  ;;  %v2213_v48 = vadd.f32 %v2211_v15, %v2203_v0  ;;  %v2318_v28 = vmul.f32 %v6235_v31, %v2317_v8  ;;  %v2252_v15 = vrot.slane %v2248_v1, %v4969_v20 }
 0x47c   :  { %2300 = vrot.lane.b32.xlu0 %v2298_v35, %s9048_s4  ;;  %2260 = vrot.lane.b32.xlu1 %v2258_v42, %s4715_s30  ;;  %v2307_v42 = vrot.slane %v2248_v1, %v9024_v10  ;;  %v778_v40 = vmul.f32 %v9087_v62, %v4920_v7  ;;  %v9090_v7 = vld [vmem:[#allocation29_spill] sm:$0xff] }
 0x47d   :  { %v2288_v35 = vmul.f32 %v6235_v31, %v2287_v37  ;;  %v2223_v27 = vadd.f32 %v2221_v16, %v2213_v48  ;;  %v2253_v16 = vmul.f32 %v6235_v31, %v2252_v15 }
 0x47e   :  { %v2308_v14 = vmul.f32 %v6235_v31, %v2307_v42  ;;  %v2346_v31 = vld [vmem:[%s8425_s6] sm:$0xff]  ;;  %s9059_s6 = smov 16  }
 0x480   :  { %2270 = vrot.lane.b32.xlu1 %v2268_v36, %s4736_s22  ;;  %v2233_v36 = vadd.f32 %v2231_v44, %v2223_v27 }
 0x482   :  { %v2243_v63 = vadd.f32 %v2241_v50, %v2233_v36 }
 0x484   :  { %2280 = vrot.lane.b32.xlu1 %v2278_v26, %s9035_s27  ;;  %v2324_v12 = vmul.f32 0.001953125, %v2243_v63 }
 0x486   :  { %v2326_v36 = vmul.f32 %v2324_v12, %v2324_v12 }
 0x488   :  { %2290 = vrot.lane.b32.xlu1 %v2288_v35, %s4738_s19 }
 0x48c   :  { %2310 = vrot.lane.b32.xlu1 %v2308_v14, %s9053_s3 }
 0x490   :  { %2320 = vrot.lane.b32.xlu1 %v2318_v28, %s9056_s5 }
 0x494   :  { %2332 = vperm.xlu1 %4608, %v2324_v12  }
 0x4ee   :  { %v2261_v6 = vpop.permute.xlu1 %2260  ;;  %v2301_v35 = vpop.permute.xlu0 %2300 }
 0x4ef   :  { %v2263_v5 = vadd.f32 %v2261_v6, %v2253_v16  ;;  %v9057_v6 = vmov 4  }
 0x4f2   :  { %v2271_v57 = vpop.permute.xlu1 %2270 }
 0x4f3   :  { %v2273_v37 = vadd.f32 %v2271_v57, %v2263_v5 }
 0x4f6   :  { %v2281_v26 = vpop.permute.xlu1 %2280 }
 0x4f7   :  { %v2283_v0 = vadd.f32 %v2281_v26, %v2273_v37 }
 0x4fa   :  { %v2291_v27 = vpop.permute.xlu1 %2290 }
 0x4fb   :  { %v2293_v44 = vadd.f32 %v2291_v27, %v2283_v0  ;;  %v9063_v0 = vmov 7   ;;  %v4700_v27 = vld [vmem:[%s8418_s8] sm:$0xff]  ;;  %s9283_s8 = smov 2  }
 0x4fd   :  { %v2303_v50 = vadd.f32 %v2301_v35, %v2293_v44  ;;  %v9065_v44 = vmov 8   ;;  %v9066_v35 = vmov 2  }
 0x4fe   :  { %v2311_v42 = vpop.permute.xlu1 %2310 }
 0x4ff   :  { %v2313_v48 = vadd.f32 %v2311_v42, %v2303_v50  ;;  %v6442_v50 = vld [vmem:[%s8420_s14] sm:$0xff] }
 0x500   :  { %9067 = vst [vmem:[#allocation65_spill] sm:$0xff] %v6442_v50  ;;  %v2482_v42 = vld [vmem:[%s8426_s7] sm:$0xff]  ;;  %s9276_s7 = smov 32  }
 0x502   :  { %v2321_v14 = vpop.permute.xlu1 %2320 }
 0x503   :  { %v2323_v8 = vadd.f32 %v2321_v14, %v2313_v48  ;;  %v9070_v48 = vmov 5   ;;  %v9071_v14 = vmov 1  }
 0x505   :  { %v2325_v63 = vmul.f32 0.001953125, %v2323_v8 }
 0x507   :  { %v2327_v28 = vsub.f32 %v2325_v63, %v2326_v36 }
 0x509   :  { %v2328_v13 = vadd.f32 1e-05, %v2327_v28 }
 0x50b   :  { %4683 = vrsqrt.f32 %v2328_v13 }
 0x513   :  { %v2333_v15 = vpop.permute.xlu1 %2332 }
 0x514   :  { %v2335_v57 = vsub.f32 %v6289_v11, %v2333_v15  ;;  %v2336_v12 = vsub.f32 %v6291_v53, %v2333_v15  ;;  %v9060_v11 = vmov 3   ;;  %v9062_v53 = vmov 6  }
 0x515   :  { %v4684_v1 = vpop.eup %4683 }
 0x516   :  { %2339 = vperm.xlu1 %4608, %v4684_v1  }
 0x51a   :  { %4609 = vset.pattern.permute.xlu1 %v9057_v6 }
 0x51b   :  { %2349 = vperm.xlu1 %4609, %v2346_v31  }
 0x51f   :  { %4615 = vset.pattern.permute.xlu1 %v8881_v29  ;;  %v4463_v29 = vld [vmem:[%s8421_s1 + $0x11] ss:$8 sm:$0x3] }
 0x595   :  { %v2340_v16 = vpop.permute.xlu1 %2339 }
 0x596   :  { %v2342_v5 = vmul.f32 %v2340_v16, %v2335_v57  ;;  %v2343_v26 = vmul.f32 %v2340_v16, %v2336_v12 }
 0x598   :  { %v6407_v13 = vmax.f32 %v2342_v5, 0.0  ;;  %v6409_v37 = vmax.f32 %v2343_v26, 0.0 }
 0x59a   :  { %2356 = vrot.lane.b32.xlu1 %v6409_v37, %s9058_s21  ;;  %2354 = vrot.lane.b32.xlu0 %v6407_v13, %s9058_s21  ;;  %v6470_v8 = vpop.permute.xlu1 %2349 }
 0x59e   :  { %2370 = vrot.lane.b32.xlu1 %v6407_v13, %s9059_s6  ;;  %2363 = vperm.xlu0 %4606, %v2346_v31  }
 0x5a2   :  { %2372 = vrot.lane.b32.xlu1 %v6409_v37, %s9059_s6  ;;  %4610 = vset.pattern.permute.xlu0 %v9060_v11 }
 0x5a3   :  { %2411 = vperm.xlu0 %4610, %v2346_v31  }
 0x5a6   :  { %2386 = vrot.lane.b32.xlu1 %v6407_v13, %s9061_s26 }
 0x5a7   :  { %4611 = vset.pattern.permute.xlu0 %v9062_v53 }
 0x5a8   :  { %2443 = vperm.xlu0 %4611, %v2346_v31  }
 0x5aa   :  { %2388 = vrot.lane.b32.xlu1 %v6409_v37, %s9061_s26 }
 0x5ac   :  { %4612 = vset.pattern.permute.xlu0 %v9063_v0 }
 0x5ad   :  { %1063 = vperm.xlu0 %4612, %v4700_v27  }
 0x5ae   :  { %2402 = vrot.lane.b32.xlu1 %v6407_v13, %s9064_s25 }
 0x5b1   :  { %2459 = vperm.xlu0 %4612, %v2346_v31  }
 0x5b2   :  { %2404 = vrot.lane.b32.xlu1 %v6409_v37, %s9064_s25 }
 0x5b5   :  { %4613 = vset.pattern.permute.xlu0 %v9065_v44 }
 0x5b6   :  { %2418 = vrot.lane.b32.xlu1 %v6407_v13, %s4715_s30  ;;  %2475 = vperm.xlu0 %4613, %v2346_v31  }
 0x5ba   :  { %2420 = vrot.lane.b32.xlu1 %v6409_v37, %s4715_s30  ;;  %4614 = vset.pattern.permute.xlu0 %v9066_v35 }
 0x5bb   :  { %1676 = vperm.xlu0 %4614, %v6442_v50  }
 0x5be   :  { %2434 = vrot.lane.b32.xlu1 %v6407_v13, %s9068_s17 }
 0x5bf   :  { %2395 = vperm.xlu0 %4614, %v2346_v31  }
 0x5c2   :  { %2436 = vrot.lane.b32.xlu1 %v6409_v37, %s9068_s17 }
 0x5c3   :  { %2515 = vperm.xlu0 %4614, %v2482_v42  }
 0x5c6   :  { %2450 = vrot.lane.b32.xlu1 %v6407_v13, %s9069_s29 }
 0x5c7   :  { %4617 = vset.pattern.permute.xlu0 %v9070_v48 }
 0x5c8   :  { %1015 = vperm.xlu0 %4617, %v4700_v27  }
 0x5ca   :  { %2452 = vrot.lane.b32.xlu1 %v6409_v37, %s9069_s29 }
 0x5cc   :  { %1766 = vperm.xlu0 %4617, %v6442_v50  }
 0x5ce   :  { %2466 = vrot.lane.b32.xlu1 %v6407_v13, %s8879_s20 }
 0x5d0   :  { %2427 = vperm.xlu0 %4617, %v2346_v31  }
 0x5d2   :  { %2468 = vrot.lane.b32.xlu1 %v6409_v37, %s8879_s20 }
 0x5d4   :  { %2563 = vperm.xlu0 %4617, %v2482_v42  }
 0x5d6   :  { %2485 = vperm.xlu1 %4615, %v2482_v42  }
 0x5d8   :  { %4620 = vset.pattern.permute.xlu0 %v9071_v14 }
 0x5d9   :  { %863 = vperm.xlu0 %4620, %v4700_v27  }
 0x5da   :  { %4616 = vset.pattern.permute.xlu1 %v9071_v14 }
 0x5db   :  { %2499 = vperm.xlu1 %4616, %v2482_v42  }
 0x5dd   :  { %1646 = vperm.xlu0 %4620, %v6442_v50  }
 0x5df   :  { %4618 = vset.pattern.permute.xlu1 %v9060_v11 }
 0x5e0   :  { %2531 = vperm.xlu1 %4618, %v2482_v42  }
 0x5e1   :  { %2379 = vperm.xlu0 %4620, %v2346_v31  }
 0x5e4   :  { %4619 = vset.pattern.permute.xlu1 %v9057_v6  ;;  %v9083_v6 = vld [vmem:[#allocation27_spill] sm:$0xff] }
 0x5e5   :  { %2547 = vperm.xlu1 %4619, %v2482_v42  }
 0x5e9   :  { %4621 = vset.pattern.permute.xlu1 %v9062_v53  ;;  %v4461_v53 = vld [vmem:[%s8421_s1 + $0x7] ss:$8 sm:$0x3] }
 0x5ea   :  { %2579 = vperm.xlu1 %4621, %v2482_v42   ;;  %v6532_v48 = vrot.slane %v4461_v53, %v4972_v21 }
 0x5ec   :  { %9085 = vst [vmem:[#allocation28_spill] sm:$0xff] %v6532_v48 }
 0x5ee   :  { %4622 = vset.pattern.permute.xlu1 %v9063_v0  ;;  %v9084_v0 = vld [vmem:[#allocation25_spill] sm:$0xff] }
 0x5ef   :  { %2595 = vperm.xlu1 %4622, %v2482_v42   ;;  %v846_v11 = vsel %vm844_vm4, %v9084_v0, %v9083_v6  ;;  %v845_v34 = vsel %vm844_vm4, %v9083_v6, %v9084_v0  ;;  %v6570_v6 = vrot.slane %v4466_v38, %v4969_v20 }
 0x5f1   :  { %9093 = vst [vmem:[#allocation72_spill] sm:$0xff] %v6570_v6 }
 0x5f3   :  { %4623 = vset.pattern.permute.xlu1 %v9066_v35 }
 0x60c   :  { %v6472_v36 = vpop.permute.xlu1 %2356  ;;  %v6478_v1 = vpop.permute.xlu0 %2354 }
 0x610   :  { %v6474_v63 = vpop.permute.xlu1 %2370 }
 0x614   :  { %v6476_v28 = vpop.permute.xlu1 %2372 }
 0x618   :  { %v6480_v31 = vpop.permute.xlu1 %2386 }
 0x61c   :  { %v6484_v57 = vpop.permute.xlu1 %2388 }
 0x61d   :  { %v6482_v15 = vpop.permute.xlu0 %2363 }
 0x620   :  { %v6488_v16 = vpop.permute.xlu1 %2402 }
 0x622   :  { %v6486_v12 = vpop.permute.xlu0 %2411 }
 0x624   :  { %v6492_v26 = vpop.permute.xlu1 %2404 }
 0x627   :  { %v6490_v5 = vpop.permute.xlu0 %2443 }
 0x628   :  { %9072 = vst [vmem:[#allocation71_spill] sm:$0xff] %v6490_v5  ;;  %v6498_v44 = vpop.permute.xlu1 %2418 }
 0x62c   :  { %v6494_v27 = vpop.permute.xlu0 %1063  ;;  %v6502_v14 = vpop.permute.xlu1 %2420 }
 0x62d   :  { %9073 = vst [vmem:[#allocation77_spill] sm:$0xff] %v6494_v27  ;;  %v6602_v27 = vmul.f32 %v9101_v39, %v9036_v52 }
 0x630   :  { %v6496_v42 = vpop.permute.xlu0 %2459  ;;  %v6506_v59 = vpop.permute.xlu1 %2434 }
 0x631   :  { %9074 = vst [vmem:[#allocation74_spill] sm:$0xff] %v6496_v42  ;;  %9077 = vst [vmem:[#allocation55_spill] sm:$0xff] %v6506_v59  ;;  %v9091_v42 = vld [vmem:[#allocation37_spill] sm:$0xff] }
 0x632   :  { %v922_v9 = vsel %vm920_vm15, %v9091_v42, %v9090_v7  ;;  %v921_v5 = vsel %vm920_vm15, %v9090_v7, %v9091_v42  ;;  %v861_v7 = vmul.f32 %v6532_v48, %v845_v34  ;;  %v9100_v59 = vld [vmem:[#allocation41_spill] sm:$0xff]  ;;  %v6606_v34 = vmul.f32 %v9101_v39, %v9038_v51  ;;  %v9104_v48 = vld [vmem:[#allocation143_spill] sm:$0xff] }
 0x634   :  { %v6512_v24 = vpop.permute.xlu1 %2436 }
 0x635   :  { %v6500_v35 = vpop.permute.xlu0 %2475  ;;  %9080 = vst [vmem:[#allocation58_spill] sm:$0xff] %v6512_v24 }
 0x636   :  { %9075 = vst [vmem:[#allocation76_spill] sm:$0xff] %v6500_v35  ;;  %v6555_v35 = vrot.slane %v4463_v29, %v4972_v21 }
 0x638   :  { %v6537_v10 = vpop.permute.xlu1 %2450  ;;  %9089 = vst [vmem:[#allocation39_spill] sm:$0xff] %v6555_v35 }
 0x639   :  { %9086 = vst [vmem:[#allocation62_spill] sm:$0xff] %v6537_v10  ;;  %v9098_v10 = vld [vmem:[#allocation46_spill] sm:$0xff] }
 0x63a   :  { %v6504_v2 = vpop.permute.xlu0 %1676 }
 0x63b   :  { %9076 = vst [vmem:[#allocation52_spill] sm:$0xff] %v6504_v2  ;;  %v6524_v2 = vrot.slane %v4461_v53, %v4969_v20  ;;  %v4465_v53 = vld [vmem:[%s8421_s1 + $0x14] ss:$8 sm:$0x3] }
 0x63c   :  { %v6576_v0 = vrot.slane %v4465_v53, %v4969_v20 }
 0x63d   :  { %9082 = vst [vmem:[#allocation61_spill] sm:$0xff] %v6524_v2  ;;  %v860_v30 = vmul.f32 %v6524_v2, %v846_v11  ;;  %v9099_v2 = vld [vmem:[#allocation42_spill] sm:$0xff] }
 0x63e   :  { %v6508_v60 = vpop.permute.xlu0 %2395  ;;  %9095 = vst [vmem:[#allocation73_spill] sm:$0xff] %v6576_v0  ;;  %v998_v24 = vsel %vm996_vm9, %v9099_v2, %v9100_v59 }
 0x63f   :  { %9078 = vst [vmem:[#allocation49_spill] sm:$0xff] %v6508_v60  ;;  %v6579_v60 = vrot.slane %v4465_v53, %v4972_v21  ;;  %v997_v53 = vsel %vm996_vm9, %v9100_v59, %v9099_v2  ;;  %v6627_v51 = vmul.f32 %v6576_v0, %v998_v24 }
 0x641   :  { %9096 = vst [vmem:[#allocation81_spill] sm:$0xff] %v6579_v60 }
 0x642   :  { %v6510_v54 = vpop.permute.xlu0 %2515 }
 0x643   :  { %9079 = vst [vmem:[#allocation24_spill] sm:$0xff] %v6510_v54  ;;  %v6544_v54 = vrot.slane %v4463_v29, %v4969_v20  ;;  %v6573_v29 = vrot.slane %v4466_v38, %v4972_v21 }
 0x645   :  { %9088 = vst [vmem:[#allocation66_spill] sm:$0xff] %v6544_v54  ;;  %9094 = vst [vmem:[#allocation70_spill] sm:$0xff] %v6573_v29  ;;  %v936_v38 = vmul.f32 %v6544_v54, %v922_v9  ;;  %v6615_v54 = vpop.permute.xlu1 %2452 }
 0x647   :  { %v6521_v50 = vpop.permute.xlu0 %1015 }
 0x648   :  { %9081 = vst [vmem:[#allocation59_spill] sm:$0xff] %v6521_v50  ;;  %v937_v50 = vmul.f32 %v6555_v35, %v921_v5  ;;  %v9103_v5 = vld [vmem:[#allocation44_spill] sm:$0xff] }
 0x649   :  { %v6634_v35 = vmul.f32 %v9103_v5, %v6069_v33  ;;  %v9108_v33 = vld [vmem:[#allocation85_spill] sm:$0xff] }
 0x64b   :  { %v6562_v62 = vpop.permute.xlu0 %1766 }
 0x64c   :  { %9092 = vst [vmem:[#allocation67_spill] sm:$0xff] %v6562_v62  ;;  %v9097_v62 = vld [vmem:[#allocation48_spill] sm:$0xff] }
 0x64d   :  { %v1099_v11 = vsel %vm1098_vm10, %v9098_v10, %v9097_v62  ;;  %v1100_v42 = vsel %vm1098_vm10, %v9097_v62, %v9098_v10  ;;  %v9102_v10 = vld [vmem:[#allocation38_spill] sm:$0xff] }
 0x64e   :  { %v6610_v9 = vmul.f32 %v9102_v10, %v9039_v58  ;;  %v4469_v62 = vld [vmem:[%s8421_s1 + $0x27] ss:$8 sm:$0x3]  ;;  %v6621_v59 = vmul.f32 %v9102_v10, %v9041_v47  ;;  %v1114_v52 = vmul.f32 %v6570_v6, %v1100_v42  ;;  %v1115_v39 = vmul.f32 %v6573_v29, %v1099_v11  ;;  %v9105_v42 = vld [vmem:[#allocation45_spill] sm:$0xff] }
 0x64f   :  { %v6617_v2 = vpop.permute.xlu0 %2427  ;;  %v6630_v58 = vmul.f32 %v6579_v60, %v997_v53  ;;  %v6638_v47 = vmul.f32 %v9103_v5, %v9104_v48  ;;  %v6642_v10 = vmul.f32 %v9105_v42, %v6111_v49  ;;  %v6646_v11 = vmul.f32 %v9105_v42, %v6114_v32  ;;  %v9109_v29 = vld [vmem:[#allocation87_spill] sm:$0xff]  ;;  %v9110_v5 = vld [vmem:[#allocation140_spill] sm:$0xff] }
 0x650   :  { %v6649_v24 = vrot.slane %v4469_v62, %v4969_v20  ;;  %v6652_v53 = vrot.slane %v4469_v62, %v4972_v21  ;;  %v1269_v48 = vsel %vm8746_vm0, %v9109_v29, %v9108_v33  ;;  %v1270_v49 = vsel %vm8746_vm0, %v9108_v33, %v9109_v29  ;;  %v9112_v62 = vld [vmem:[#allocation47_spill] sm:$0xff]  ;;  %v9113_v21 = vld [vmem:[#allocation78_spill] sm:$0xff] }
 0x651   :  { %v820_v32 = vmul.f32 %v9110_v5, %v9033_v23  ;;  %v821_v42 = vmul.f32 %v9110_v5, %v9034_v43  ;;  %v6669_v60 = vmul.f32 %v9112_v62, %v1114_v52  ;;  %v6672_v0 = vmul.f32 %v9112_v62, %v1115_v39  ;;  %v9114_v23 = vld [vmem:[#allocation75_spill] sm:$0xff]  ;;  %v9119_v62 = vld [vmem:[#allocation122_spill] sm:$0xff] }
 0x652   :  { %9106 = vst [vmem:[#allocation97_spill] sm:$0xff] %v6649_v24  ;;  %9107 = vst [vmem:[#allocation105_spill] sm:$0xff] %v6652_v53  ;;  %v6676_v20 = vmul.f32 %v9113_v21, %v9042_v17  ;;  %v6680_v29 = vmul.f32 %v9113_v21, %v9044_v25  ;;  %v6684_v33 = vmul.f32 %v9114_v23, %v6139_v4  ;;  %v6698_v21 = vpop.permute.xlu1 %2466  ;;  %v9117_v25 = vld [vmem:[#allocation84_spill] sm:$0xff]  ;;  %vm9122_vm0 = vcmp.lt.s32.totalorder %v4966_v19, 16 }
 0x653   :  { %v6666_v6 = vpop.permute.xlu0 %2563  ;;  %v6688_v43 = vmul.f32 %v9114_v23, %v6142_v41  ;;  %v2358_v52 = vsel %vm63_vm6, %v6478_v1, %v6472_v36  ;;  %v2359_v17 = vsel %vm63_vm6, %v6472_v36, %v6478_v1  ;;  %v6702_v4 = vmul.f32 %v9117_v25, %v6147_v18  ;;  %v9121_v18 = vld [vmem:[#allocation7_spill] sm:$0xff]  ;;  %vm9123_vm11 = vmmov %vm9122_vm0 }
 0x654   :  { %9111 = vst [vmem:[#allocation27_spill] sm:$0xff] %v6666_v6  ;;  %9115 = vst [vmem:[#allocation25_spill] sm:$0xff] %v6684_v33  ;;  %v6706_v41 = vmul.f32 %v9117_v25, %v6150_v22  ;;  %v6709_v39 = vmul.f32 %v6649_v24, %v1269_v48  ;;  %v6712_v5 = vmul.f32 %v6652_v53, %v1270_v49  ;;  %v9139_v24 = vld [vmem:[#allocation16_spill] sm:$0xff] }
 0x655   :  { %9116 = vst [vmem:[#allocation26_spill] sm:$0xff] %v6688_v43  ;;  %9118 = vst [vmem:[#allocation29_spill] sm:$0xff] %v6702_v4  ;;  %v942_v23 = vmul.f32 %v9119_v62, %v936_v38  ;;  %v943_v36 = vmul.f32 %v9119_v62, %v937_v50  ;;  %v822_v1 = vadd.f32 %v820_v32, %v778_v40  ;;  %v9120_v43 = vld [vmem:[#allocation6_spill] sm:$0xff]  ;;  %v9126_v62 = vld [vmem:[#allocation4_spill] sm:$0xff] }
 0x656   :  { %v823_v6 = vadd.f32 %v821_v42, %v779_v3  ;;  %v2360_v33 = vmul.f32 %v2359_v17, %v9120_v43  ;;  %v2361_v4 = vmul.f32 %v2358_v52, %v9121_v18  ;;  %v2406_v22 = vsel %vm8749_vm13, %v6488_v16, %v6492_v26 }
 0x657   :  { %v2407_v48 = vsel %vm8749_vm13, %v6492_v26, %v6488_v16  ;;  %v2374_v40 = vsel %vm9122_vm0, %v6474_v63, %v6476_v28  ;;  %v2375_v3 = vsel %vm9123_vm11, %v6476_v28, %v6474_v63  ;;  %v2390_v32 = vsel %vm9124_vm7, %v6480_v31, %v6484_v57  ;;  %vm9125_vm13 = vmmov %vm9124_vm7 }
 0x658   :  { %v864_v49 = vpop.permute.xlu0 %863  ;;  %v2391_v16 = vsel %vm9125_vm13, %v6484_v57, %v6480_v31  ;;  %v2366_v26 = vmul.f32 %v6482_v15, %v2360_v33  ;;  %v2367_v42 = vmul.f32 %v6482_v15, %v2361_v4  ;;  %v2408_v52 = vmul.f32 %v2407_v48, %v5039_v55  ;;  %v9127_v31 = vld [vmem:[#allocation5_spill] sm:$0xff] }
 0x659   :  { %v866_v50 = vmul.f32 %v864_v49, %v860_v30  ;;  %v867_v38 = vmul.f32 %v864_v49, %v861_v7  ;;  %v2409_v63 = vmul.f32 %v2406_v22, %v5042_v56  ;;  %v2469_v30 = vpop.permute.xlu1 %2468  ;;  %v2352_v17 = vmul.f32 %v6470_v8, %v6407_v13 }
 0x65a   :  { %v2353_v25 = vmul.f32 %v6470_v8, %v6409_v37  ;;  %v2376_v49 = vmul.f32 %v2375_v3, %v9126_v62  ;;  %v2377_v57 = vmul.f32 %v2374_v40, %v9127_v31  ;;  %v2422_v15 = vsel %vm223_vm1, %v6498_v44, %v6502_v14 }
 0x65b   :  { %v868_v28 = vadd.f32 %v866_v50, %v822_v1  ;;  %v869_v7 = vadd.f32 %v867_v38, %v823_v6  ;;  %v2423_v6 = vsel %vm223_vm1, %v6502_v14, %v6498_v44  ;;  %v2392_v8 = vmul.f32 %v2391_v16, %v5018_v45  ;;  %v9128_v44 = vld [vmem:[#allocation77_spill] sm:$0xff] }
 0x65c   :  { %v6752_v33 = vpop.permute.xlu0 %1646  ;;  %v2393_v4 = vmul.f32 %v2390_v32, %v5021_v46  ;;  %v2368_v1 = vadd.f32 %v2366_v26, %v2352_v17  ;;  %v2369_v22 = vadd.f32 %v2367_v42, %v2353_v25  ;;  %v2414_v48 = vmul.f32 %v6486_v12, %v2408_v52  ;;  %v9132_v42 = vld [vmem:[#allocation59_spill] sm:$0xff] }
 0x65d   :  { %v898_v13 = vadd.f32 %v6602_v27, %v868_v28  ;;  %v899_v37 = vadd.f32 %v6606_v34, %v869_v7  ;;  %v2415_v40 = vmul.f32 %v6486_v12, %v2409_v63  ;;  %v6768_v38 = vpop.permute.xlu1 %2485  ;;  %v1066_v14 = vmul.f32 %v9128_v44, %v6091_v61  ;;  %v9129_v27 = vld [vmem:[#allocation145_spill] sm:$0xff]  ;;  %v9130_v28 = vld [vmem:[#allocation12_spill] sm:$0xff]  ;;  %v9133_v63 = vld [vmem:[#allocation58_spill] sm:$0xff] }
 0x65e   :  { %v1067_v34 = vmul.f32 %v9128_v44, %v9129_v27  ;;  %v2424_v16 = vmul.f32 %v2422_v15, %v9130_v28  ;;  %v9131_v7 = vld [vmem:[#allocation13_spill] sm:$0xff]  ;;  %v1018_v52 = vmul.f32 %v9132_v42, %v6627_v51  ;;  %v1019_v12 = vmul.f32 %v9132_v42, %v6630_v58  ;;  %v9134_v61 = vld [vmem:[#allocation55_spill] sm:$0xff]  ;;  %v9135_v51 = vld [vmem:[#allocation62_spill] sm:$0xff] }
 0x65f   :  { %v944_v3 = vadd.f32 %v942_v23, %v898_v13  ;;  %v945_v50 = vadd.f32 %v943_v36, %v899_v37  ;;  %v2425_v32 = vmul.f32 %v2423_v6, %v9131_v7  ;;  %v2438_v17 = vsel %vm263_vm12, %v9134_v61, %v9133_v63  ;;  %v9136_v37 = vld [vmem:[#allocation49_spill] sm:$0xff] }
 0x660   :  { %v2380_v26 = vpop.permute.xlu0 %2379  ;;  %v2439_v25 = vsel %vm263_vm12, %v9133_v63, %v9134_v61  ;;  %v2454_v58 = vsel %vm303_vm8, %v9135_v51, %v6615_v54  ;;  %vm8774_vm13 = vcmp.lt.s32.totalorder %v4966_v19, 110  ;;  %vm8768_vm7 = vcmp.lt.s32.totalorder %v4966_v19, 97 }
 0x661   :  { %v974_v23 = vadd.f32 %v6610_v9, %v944_v3  ;;  %v975_v36 = vadd.f32 %v6621_v59, %v945_v50  ;;  %v2382_v15 = vmul.f32 %v2380_v26, %v2376_v49  ;;  %v2383_v6 = vmul.f32 %v2380_v26, %v2377_v57  ;;  %v9137_v49 = vld [vmem:[#allocation14_spill] sm:$0xff]  ;;  %v9138_v26 = vld [vmem:[#allocation15_spill] sm:$0xff]  ;;  %v2500_v53 = vpop.permute.xlu1 %2499 }
 0x662   :  { %v2455_v9 = vsel %vm303_vm8, %v6615_v54, %v9135_v51  ;;  %v2398_v3 = vmul.f32 %v9136_v37, %v2392_v8  ;;  %v2399_v50 = vmul.f32 %v9136_v37, %v2393_v4  ;;  %v2440_v57 = vmul.f32 %v2438_v17, %v9137_v49  ;;  %v9140_v54 = vld [vmem:[#allocation17_spill] sm:$0xff] }
 0x663   :  { %v1020_v59 = vadd.f32 %v1018_v52, %v974_v23  ;;  %v1021_v13 = vadd.f32 %v1019_v12, %v975_v36  ;;  %v2384_v44 = vadd.f32 %v2382_v15, %v2368_v1  ;;  %v2385_v27 = vadd.f32 %v2383_v6, %v2369_v22 }
 0x664   :  { %v2441_v42 = vmul.f32 %v2439_v25, %v9138_v26  ;;  %v2456_v7 = vmul.f32 %v2454_v58, %v9139_v24  ;;  %v2457_v52 = vmul.f32 %v2455_v9, %v9140_v54  ;;  %v2470_v8 = vsel %vm8780_vm14, %v6698_v21, %v2469_v30  ;;  %v9141_v25 = vld [vmem:[#allocation71_spill] sm:$0xff]  ;;  %v9142_v9 = vld [vmem:[#allocation18_spill] sm:$0xff] }
 0x665   :  { %v1044_v63 = vadd.f32 %v6634_v35, %v1020_v59  ;;  %v1045_v61 = vadd.f32 %v6638_v47, %v1021_v13  ;;  %v2400_v12 = vadd.f32 %v2398_v3, %v2384_v44  ;;  %v2401_v23 = vadd.f32 %v2399_v50, %v2385_v27  ;;  %v9143_v13 = vld [vmem:[#allocation19_spill] sm:$0xff]  ;;  %v2532_v3 = vpop.permute.xlu1 %2531 }
 0x666   :  { %v2471_v4 = vsel %vm8780_vm14, %v2469_v30, %v6698_v21  ;;  %v2430_v35 = vmul.f32 %v6617_v2, %v2424_v16  ;;  %v2431_v47 = vmul.f32 %v6617_v2, %v2425_v32  ;;  %v2446_v15 = vmul.f32 %v9141_v25, %v2440_v57  ;;  %v9145_v16 = vld [vmem:[#allocation86_spill] sm:$0xff]  ;;  %v9146_v2 = vld [vmem:[#allocation83_spill] sm:$0xff]  ;;  %v9148_v57 = vld [vmem:[#allocation89_spill] sm:$0xff] }
 0x667   :  { %v1068_v1 = vadd.f32 %v1066_v14, %v1044_v63  ;;  %v1069_v22 = vadd.f32 %v1067_v34, %v1045_v61  ;;  %v2416_v36 = vadd.f32 %v2414_v48, %v2400_v12  ;;  %v2417_v17 = vadd.f32 %v2415_v40, %v2401_v23  ;;  %v9144_v34 = vld [vmem:[#allocation82_spill] sm:$0xff] }
 0x668   :  { %v2447_v6 = vmul.f32 %v9141_v25, %v2441_v42  ;;  %v2472_v59 = vmul.f32 %v2470_v8, %v9142_v9  ;;  %v2473_v21 = vmul.f32 %v2471_v4, %v9143_v13  ;;  %v1244_v37 = vmul.f32 %v9145_v16, %v9144_v34  ;;  %v9150_v4 = vld [vmem:[#allocation150_spill] sm:$0xff]  ;;  %v9161_v34 = vld [vmem:[#allocation29_spill] sm:$0xff] }
 0x669   :  { %v1092_v51 = vadd.f32 %v6642_v10, %v1068_v1  ;;  %v1093_v58 = vadd.f32 %v6646_v11, %v1069_v22  ;;  %v2432_v30 = vadd.f32 %v2430_v35, %v2416_v36  ;;  %v2433_v14 = vadd.f32 %v2431_v47, %v2417_v17  ;;  %v9147_v10 = vld [vmem:[#allocation74_spill] sm:$0xff]  ;;  %v9152_v22 = vld [vmem:[#allocation151_spill] sm:$0xff]  ;;  %v9155_v17 = vld [vmem:[#allocation153_spill] sm:$0xff] }
 0x66a   :  { %v1245_v48 = vmul.f32 %v9145_v16, %v9146_v2  ;;  %v2462_v50 = vmul.f32 %v9147_v10, %v2456_v7  ;;  %v2463_v11 = vmul.f32 %v9147_v10, %v2457_v52  ;;  %v1290_v42 = vmul.f32 %v9148_v57, %v6709_v39  ;;  %v9151_v52 = vld [vmem:[#allocation88_spill] sm:$0xff]  ;;  %v9153_v39 = vld [vmem:[#allocation25_spill] sm:$0xff]  ;;  %v9154_v36 = vld [vmem:[#allocation26_spill] sm:$0xff] }
 0x66b   :  { %v1122_v40 = vadd.f32 %v6669_v60, %v1092_v51  ;;  %v1123_v32 = vadd.f32 %v6672_v0, %v1093_v58  ;;  %v2448_v44 = vadd.f32 %v2446_v15, %v2432_v30  ;;  %v2449_v27 = vadd.f32 %v2447_v6, %v2433_v14  ;;  %v9149_v60 = vld [vmem:[#allocation76_spill] sm:$0xff]  ;;  %v9158_v58 = vld [vmem:[#allocation155_spill] sm:$0xff] }
 0x66c   :  { %v1291_v63 = vmul.f32 %v9148_v57, %v6712_v5  ;;  %v2478_v23 = vmul.f32 %v9149_v60, %v2472_v59  ;;  %v2479_v0 = vmul.f32 %v9149_v60, %v2473_v21  ;;  %v1314_v1 = vmul.f32 %v9151_v52, %v9150_v4  ;;  %v9159_v59 = vld [vmem:[#allocation91_spill] sm:$0xff]  ;;  %v9160_v30 = vld [vmem:[#allocation156_spill] sm:$0xff] }
 0x66d   :  { %v1152_v61 = vadd.f32 %v6676_v20, %v1122_v40  ;;  %v1153_v12 = vadd.f32 %v6680_v29, %v1123_v32  ;;  %v2464_v8 = vadd.f32 %v2462_v50, %v2448_v44  ;;  %v2465_v7 = vadd.f32 %v2463_v11, %v2449_v27  ;;  %v9156_v20 = vld [vmem:[#allocation90_spill] sm:$0xff]  ;;  %v2548_v40 = vpop.permute.xlu1 %2547  ;;  %v9163_v11 = vld [vmem:[#allocation3_spill] sm:$0xff] }
 0x66e   :  { %v1315_v35 = vmul.f32 %v9151_v52, %v9152_v22  ;;  %v1338_v25 = vmul.f32 %v9156_v20, %v9155_v17  ;;  %v9157_v29 = vld [vmem:[#allocation154_spill] sm:$0xff]  ;;  %v1362_v21 = vmul.f32 %v9159_v59, %v9158_v58  ;;  %v1363_v14 = vmul.f32 %v9159_v59, %v9160_v30  ;;  %v9165_v22 = vld [vmem:[#allocation24_spill] sm:$0xff] }
 0x66f   :  { %v1192_v47 = vadd.f32 %v9153_v39, %v1152_v61  ;;  %v1193_v5 = vadd.f32 %v9154_v36, %v1153_v12  ;;  %v1339_v15 = vmul.f32 %v9156_v20, %v9157_v29  ;;  %v2480_v6 = vadd.f32 %v2478_v23, %v2464_v8  ;;  %v9162_v32 = vld [vmem:[#allocation2_spill] sm:$0xff]  ;;  %v9167_v58 = vld [vmem:[#allocation32_spill] sm:$0xff] }
 0x670   :  { %v2481_v51 = vadd.f32 %v2479_v0, %v2465_v7  ;;  %v9164_v12 = vld [vmem:[#allocation30_spill] sm:$0xff]  ;;  %vm8767_vm11 = vcmp.lt.s32.totalorder %v4966_v19, 95  ;;  %vm1598_vm0 = vcmp.lt.s32.totalorder %v4966_v19, 68  ;;  %vm1807_vm14 = vcmp.lt.s32.totalorder %v4966_v19, 4 }
 0x671   :  { %v1216_v16 = vadd.f32 %v9161_v34, %v1192_v47  ;;  %v1217_v2 = vadd.f32 %v6706_v41, %v1193_v5  ;;  %v2491_v10 = vrot.slane %v2480_v6, %v9162_v32  ;;  %v2505_v44 = vrot.slane %v2480_v6, %v9163_v11  ;;  %v2580_v30 = vpop.permute.xlu1 %2579 }
 0x672   :  { %v2495_v50 = vrot.slane %v2481_v51, %v9162_v32  ;;  %v2509_v27 = vrot.slane %v2481_v51, %v9163_v11  ;;  %v2521_v60 = vrot.slane %v2480_v6, %v9164_v12  ;;  %v2525_v23 = vrot.slane %v2481_v51, %v9164_v12 }
 0x673   :  { %v1246_v57 = vadd.f32 %v1244_v37, %v1216_v16  ;;  %v1247_v61 = vadd.f32 %v1245_v48, %v1217_v2  ;;  %v2496_v0 = vmul.f32 %v2491_v10, %v6768_v38  ;;  %v2510_v41 = vmul.f32 %v2505_v44, %v2500_v53  ;;  %v9166_v37 = vld [vmem:[#allocation31_spill] sm:$0xff] }
 0x674   :  { %v2497_v8 = vmul.f32 %v2495_v50, %v6768_v38  ;;  %v2511_v7 = vmul.f32 %v2509_v27, %v2500_v53  ;;  %v2526_v39 = vmul.f32 %v2521_v60, %v9165_v22  ;;  %v2527_v47 = vmul.f32 %v2525_v23, %v9165_v22  ;;  %v9169_v23 = vld [vmem:[#allocation34_spill] sm:$0xff] }
 0x675   :  { %v1292_v4 = vadd.f32 %v1290_v42, %v1246_v57  ;;  %v1293_v52 = vadd.f32 %v1291_v63, %v1247_v61  ;;  %v2512_v36 = vadd.f32 %v2510_v41, %v2496_v0  ;;  %v2537_v48 = vrot.slane %v2480_v6, %v9166_v37  ;;  %v9168_v57 = vld [vmem:[#allocation33_spill] sm:$0xff] }
 0x676   :  { %v2513_v5 = vadd.f32 %v2511_v7, %v2497_v8  ;;  %v2541_v17 = vrot.slane %v2481_v51, %v9166_v37  ;;  %v2553_v59 = vrot.slane %v2480_v6, %v9167_v58  ;;  %v2557_v38 = vrot.slane %v2481_v51, %v9167_v58 }
 0x677   :  { %v1316_v20 = vadd.f32 %v1314_v1, %v1292_v4  ;;  %v1317_v29 = vadd.f32 %v1315_v35, %v1293_v52  ;;  %v2528_v53 = vadd.f32 %v2526_v39, %v2512_v36  ;;  %v2542_v63 = vmul.f32 %v2537_v48, %v2532_v3  ;;  %v2596_v52 = vpop.permute.xlu1 %2595 }
 0x678   :  { %v2529_v42 = vadd.f32 %v2527_v47, %v2513_v5  ;;  %v2543_v34 = vmul.f32 %v2541_v17, %v2532_v3  ;;  %v2558_v10 = vmul.f32 %v2553_v59, %v2548_v40  ;;  %v2559_v50 = vmul.f32 %v2557_v38, %v2548_v40  ;;  %v9170_v3 = vld [vmem:[#allocation27_spill] sm:$0xff]  ;;  %v9171_v47 = vld [vmem:[#allocation36_spill] sm:$0xff] }
 0x679   :  { %v1340_v16 = vadd.f32 %v1338_v25, %v1316_v20  ;;  %v1341_v2 = vadd.f32 %v1339_v15, %v1317_v29  ;;  %v2544_v44 = vadd.f32 %v2542_v63, %v2528_v53  ;;  %v2569_v61 = vrot.slane %v2480_v6, %v9168_v57 }
 0x67a   :  { %v2545_v27 = vadd.f32 %v2543_v34, %v2529_v42  ;;  %v2573_v1 = vrot.slane %v2481_v51, %v9168_v57  ;;  %v2585_v0 = vrot.slane %v2480_v6, %v9169_v23  ;;  %v2589_v8 = vrot.slane %v2481_v51, %v9169_v23 }
 0x67b   :  { %v6868_v35 = vadd.f32 %v1362_v21, %v1340_v16  ;;  %v1365_v60 = vadd.f32 %v1363_v14, %v1341_v2  ;;  %v2560_v41 = vadd.f32 %v2558_v10, %v2544_v44  ;;  %v2574_v25 = vmul.f32 %v2569_v61, %v9170_v3  ;;  %v9178_v16 = vld [vmem:[#allocation65_spill] sm:$0xff]  ;;  %v9183_v61 = vld [vmem:[#allocation94_spill] sm:$0xff] }
 0x67c   :  { %v2561_v7 = vadd.f32 %v2559_v50, %v2545_v27  ;;  %v2575_v15 = vmul.f32 %v2573_v1, %v9170_v3  ;;  %v2590_v40 = vmul.f32 %v2585_v0, %v2580_v30  ;;  %v2591_v4 = vmul.f32 %v2589_v8, %v2580_v30  ;;  %v4470_v50 = vld [vmem:[%s8421_s1 + $0x33] ss:$8 sm:$0x3]  ;;  %v4472_v3 = vld [vmem:[%s8421_s1 + $0x36] ss:$8 sm:$0x3] }
 0x67d   :  { %v2576_v22 = vadd.f32 %v2574_v25, %v2560_v41  ;;  %v2601_v36 = vrot.slane %v2480_v6, %v9171_v47  ;;  %v2605_v21 = vrot.slane %v2481_v51, %v9171_v47  ;;  %v2793_v51 = vld [vmem:[%s8427_s9] sm:$0xff]  ;;  %v9174_v53 = vmov 5   ;;  %v9184_v1 = vld [vmem:[#allocation92_spill] sm:$0xff]  ;;  %s9281_s9 = smov 18  }
 0x67e   :  { %v2577_v39 = vadd.f32 %v2575_v15, %v2561_v7  ;;  %v9175_v42 = vmov 3   ;;  %v9176_v63 = vmov 7   ;;  %v9177_v34 = vmov 4   ;;  %v9185_v15 = vld [vmem:[#allocation93_spill] sm:$0xff] }
 0x67f   :  { %v2592_v14 = vadd.f32 %v2590_v40, %v2576_v22  ;;  %v2606_v48 = vmul.f32 %v2601_v36, %v2596_v52  ;;  %v2607_v17 = vmul.f32 %v2605_v21, %v2596_v52  ;;  %v9179_v2 = vmov 0   ;;  %v9189_v36 = vld [vmem:[#allocation102_spill] sm:$0xff] }
 0x680   :  { %v2593_v5 = vadd.f32 %v2591_v4, %v2577_v39  ;;  %v9180_v10 = vmov 6   ;;  %v6902_v44 = vrot.slane %v4470_v50, %v9162_v32  ;;  %v6905_v27 = vrot.slane %v4470_v50, %v9163_v11  ;;  %v9188_v39 = vld [vmem:[#allocation100_spill] sm:$0xff] }
 0x681   :  { %v6876_v20 = vadd.f32 %v2606_v48, %v2592_v14  ;;  %v1371_v0 = vsel %vm8774_vm13, %v9184_v1, %v9183_v61  ;;  %v1372_v8 = vsel %vm8774_vm13, %v9183_v61, %v9184_v1  ;;  %v6926_v52 = vrot.slane %v4472_v3, %v9162_v32  ;;  %v4474_v61 = vld [vmem:[%s8421_s1 + $0x40] ss:$8 sm:$0x3] }
 0x682   :  { %v6878_v29 = vadd.f32 %v2607_v17, %v2593_v5  ;;  %9181 = vst [vmem:[#allocation46_spill] sm:$0xff] %v6902_v44  ;;  %9182 = vst [vmem:[#allocation42_spill] sm:$0xff] %v6905_v27  ;;  %v1386_v41 = vmul.f32 %v6902_v44, %v1371_v0  ;;  %v1387_v7 = vmul.f32 %v6905_v27, %v1372_v8  ;;  %vm1747_vm13 = vcmp.lt.s32.totalorder %v4966_v19, 36 }
 0x683   :  { %9172 = vst [vmem:[#allocation37_spill] sm:$0xff] %v6876_v20  ;;  %v2688_v38 = vmul.f32 %v6876_v20, %v6876_v20  ;;  %9186 = vst [vmem:[#allocation41_spill] sm:$0xff] %v6926_v52  ;;  %v6929_v22 = vrot.slane %v4472_v3, %v9163_v11  ;;  %v1447_v21 = vsel %vm8768_vm7, %v9189_v36, %v9188_v39 }
 0x684   :  { %9173 = vst [vmem:[#allocation48_spill] sm:$0xff] %v6878_v29  ;;  %v2610_v59 = vadd.f32 %v6878_v29, %v6876_v20  ;;  %v2689_v30 = vmul.f32 %v6878_v29, %v6878_v29  ;;  %v1392_v40 = vmul.f32 %v9185_v15, %v1386_v41  ;;  %v1393_v4 = vmul.f32 %v9185_v15, %v1387_v7  ;;  %v9196_v15 = vld [vmem:[#allocation109_spill] sm:$0xff] }
 0x685   :  { %9187 = vst [vmem:[#allocation40_spill] sm:$0xff] %v6929_v22  ;;  %v1448_v14 = vsel %vm8768_vm7, %v9188_v39, %v9189_v36  ;;  %v6953_v41 = vrot.slane %v4474_v61, %v9162_v32  ;;  %v6956_v7 = vrot.slane %v4474_v61, %v9163_v11  ;;  %v9201_v61 = vld [vmem:[#allocation114_spill] sm:$0xff]  ;;  %vm1687_vm7 = vcmp.lt.s32.totalorder %v4966_v19, 62 }
 0x686   :  { %2611 = vadd.xlane.f32.xlu0 %v2610_v59  ;;  %v2690_v6 = vadd.f32 %v2689_v30, %v2688_v38  ;;  %v1394_v5 = vadd.f32 %v1392_v40, %v6868_v35  ;;  %v1395_v48 = vadd.f32 %v1393_v4, %v1365_v60  ;;  %v9190_v59 = vld [vmem:[#allocation98_spill] sm:$0xff]  ;;  %v9191_v38 = vld [vmem:[#allocation101_spill] sm:$0xff]  ;;  %v1463_v50 = vmul.f32 %v6929_v22, %v1448_v14  ;;  %v9193_v60 = vld [vmem:[#allocation108_spill] sm:$0xff] }
 0x687   :  { %v1422_v30 = vmul.f32 %v9191_v38, %v9190_v59  ;;  %9194 = vst [vmem:[#allocation38_spill] sm:$0xff] %v6953_v41  ;;  %9195 = vst [vmem:[#allocation44_spill] sm:$0xff] %v6956_v7  ;;  %v9197_v40 = vld [vmem:[#allocation111_spill] sm:$0xff]  ;;  %v9198_v14 = vld [vmem:[#allocation106_spill] sm:$0xff] }
 0x688   :  { %2691 = vadd.xlane.f32.xlu1 %v2690_v6  ;;  %v9192_v6 = vld [vmem:[#allocation99_spill] sm:$0xff]  ;;  %v1469_v8 = vmul.f32 %v9193_v60, %v1463_v50  ;;  %v1523_v4 = vsel %vm8767_vm11, %v9197_v40, %v9196_v15  ;;  %v1524_v39 = vsel %vm8767_vm11, %v9196_v15, %v9197_v40  ;;  %vm1627_vm11 = vcmp.lt.s32.totalorder %v4966_v19, 66 }
 0x689   :  { %v1424_v1 = vadd.f32 %v1422_v30, %v1394_v5  ;;  %v9199_v5 = vld [vmem:[#allocation110_spill] sm:$0xff]  ;;  %v9200_v59 = vld [vmem:[#allocation107_spill] sm:$0xff]  ;;  %v1538_v30 = vmul.f32 %v6953_v41, %v1523_v4 }
 0x68a   :  { %v9202_v40 = vld [vmem:[#allocation115_spill] sm:$0xff] }
 0x699   :  { %2826 = vperm.xlu1 %4623, %v2793_v51  }
 0x69c   :  { %2810 = vperm.xlu0 %4620, %v2793_v51  }
 0x69d   :  { %4626 = vset.pattern.permute.xlu1 %v9174_v53 }
 0x69e   :  { %2874 = vperm.xlu1 %4626, %v2793_v51  }
 0x6a0   :  { %4624 = vset.pattern.permute.xlu0 %v9175_v42 }
 0x6a1   :  { %2842 = vperm.xlu0 %4624, %v2793_v51  }
 0x6a2   :  { %4629 = vset.pattern.permute.xlu1 %v9176_v63 }
 0x6a3   :  { %2906 = vperm.xlu1 %4629, %v2793_v51  }
 0x6a5   :  { %4625 = vset.pattern.permute.xlu0 %v9177_v34 }
 0x6a6   :  { %1736 = vperm.xlu0 %4625, %v9178_v16   ;;  %v1462_v16 = vmul.f32 %v6926_v52, %v1447_v21 }
 0x6a7   :  { %4630 = vset.pattern.permute.xlu1 %v9179_v2 }
 0x6a8   :  { %v1468_v0 = vmul.f32 %v9193_v60, %v1462_v16  ;;  %v1544_v60 = vmul.f32 %v9201_v61, %v1538_v30 }
 0x6aa   :  { %2858 = vperm.xlu0 %4625, %v2793_v51   ;;  %v1470_v36 = vadd.f32 %v1468_v0, %v1424_v1 }
 0x6ae   :  { %4627 = vset.pattern.permute.xlu0 %v9180_v10 }
 0x6af   :  { %2890 = vperm.xlu0 %4627, %v2793_v51  }
 0x6b3   :  { %4628 = vset.pattern.permute.xlu0 %v9179_v2 }
 0x6b4   :  { %2796 = vperm.xlu0 %4628, %v2793_v51   ;;  %v1423_v51 = vmul.f32 %v9191_v38, %v9192_v6  ;;  %v1499_v38 = vmul.f32 %v9199_v5, %v9200_v59  ;;  %v1539_v6 = vmul.f32 %v6956_v7, %v1524_v39  ;;  %v9204_v59 = vld [vmem:[#allocation116_spill] sm:$0xff] }
 0x6b6   :  { %v1425_v35 = vadd.f32 %v1423_v51, %v1395_v48  ;;  %v1498_v48 = vmul.f32 %v9199_v5, %v9198_v14  ;;  %v1545_v15 = vmul.f32 %v9201_v61, %v1539_v6  ;;  %v9203_v14 = vld [vmem:[#allocation117_spill] sm:$0xff] }
 0x6b7   :  { %v1574_v5 = vmul.f32 %v9203_v14, %v9202_v40  ;;  %v1575_v4 = vmul.f32 %v9203_v14, %v9204_v59 }
 0x6b8   :  { %v1471_v21 = vadd.f32 %v1469_v8, %v1425_v35  ;;  %v1500_v16 = vadd.f32 %v1498_v48, %v1470_v36 }
 0x6ba   :  { %v1501_v50 = vadd.f32 %v1499_v38, %v1471_v21  ;;  %v1546_v35 = vadd.f32 %v1544_v60, %v1500_v16 }
 0x6bc   :  { %v1547_v0 = vadd.f32 %v1545_v15, %v1501_v50  ;;  %v1576_v39 = vadd.f32 %v1574_v5, %v1546_v35 }
 0x6be   :  { %v1577_v29 = vadd.f32 %v1575_v4, %v1547_v0  ;;  %v2816_v21 = vrot.slane %v1576_v39, %v9163_v11  ;;  %v2802_v38 = vrot.slane %v1576_v39, %v9162_v32  ;;  %v2832_v6 = vrot.slane %v1576_v39, %v9164_v12 }
 0x6bf   :  { %v2848_v0 = vrot.slane %v1576_v39, %v9166_v37  ;;  %v2864_v41 = vrot.slane %v1576_v39, %v9167_v58 }
 0x6c0   :  { %v2820_v48 = vrot.slane %v1577_v29, %v9163_v11  ;;  %v2806_v30 = vrot.slane %v1577_v29, %v9162_v32  ;;  %v2836_v16 = vrot.slane %v1577_v29, %v9164_v12  ;;  %v2852_v40 = vrot.slane %v1577_v29, %v9166_v37 }
 0x6c1   :  { %v2868_v22 = vrot.slane %v1577_v29, %v9167_v58 }
 0x713   :  { %v6921_v25 = vpop.xlane.xlu0 %2611 }
 0x715   :  { %v6976_v8 = vpop.xlane.xlu1 %2691 }
 0x719   :  { %v2827_v36 = vpop.permute.xlu1 %2826 }
 0x71a   :  { %v2837_v14 = vmul.f32 %v2832_v6, %v2827_v36  ;;  %v2838_v5 = vmul.f32 %v2836_v16, %v2827_v36  ;;  %v2896_v36 = vrot.slane %v1576_v39, %v9169_v23  ;;  %v2900_v16 = vrot.slane %v1577_v29, %v9169_v23 }
 0x71b   :  { %v2811_v17 = vpop.permute.xlu0 %2810 }
 0x71c   :  { %v2821_v61 = vmul.f32 %v2816_v21, %v2811_v17  ;;  %v2822_v60 = vmul.f32 %v2820_v48, %v2811_v17  ;;  %v2880_v17 = vrot.slane %v1576_v39, %v9168_v57  ;;  %v2884_v48 = vrot.slane %v1577_v29, %v9168_v57 }
 0x71d   :  { %v2875_v7 = vpop.permute.xlu1 %2874 }
 0x720   :  { %v2843_v3 = vpop.permute.xlu0 %2842 }
 0x721   :  { %v2853_v52 = vmul.f32 %v2848_v0, %v2843_v3  ;;  %v2854_v27 = vmul.f32 %v2852_v40, %v2843_v3  ;;  %v2912_v3 = vrot.slane %v1576_v39, %v9171_v47  ;;  %v2916_v0 = vrot.slane %v1577_v29, %v9171_v47 }
 0x722   :  { %v2907_v40 = vpop.permute.xlu1 %2906 }
 0x725   :  { %v6972_v51 = vpop.permute.xlu0 %1736 }
 0x729   :  { %v2859_v1 = vpop.permute.xlu0 %2858 }
 0x72e   :  { %v2891_v20 = vpop.permute.xlu0 %2890 }
 0x733   :  { %v2797_v50 = vpop.permute.xlu0 %2796 }
 0x734   :  { %v2807_v15 = vmul.f32 %v2802_v38, %v2797_v50  ;;  %v2808_v35 = vmul.f32 %v2806_v30, %v2797_v50  ;;  %v2869_v38 = vmul.f32 %v2864_v41, %v2859_v1  ;;  %v2870_v30 = vmul.f32 %v2868_v22, %v2859_v1 }
 0x735   :  { %v2917_v22 = vmul.f32 %v2912_v3, %v2907_v40 }
 0x736   :  { %v2823_v59 = vadd.f32 %v2821_v61, %v2807_v15  ;;  %v2824_v4 = vadd.f32 %v2822_v60, %v2808_v35  ;;  %v2885_v61 = vmul.f32 %v2880_v17, %v2875_v7  ;;  %v2886_v60 = vmul.f32 %v2884_v48, %v2875_v7 }
 0x738   :  { %v2839_v44 = vadd.f32 %v2837_v14, %v2823_v59  ;;  %v2840_v21 = vadd.f32 %v2838_v5, %v2824_v4  ;;  %v2901_v14 = vmul.f32 %v2896_v36, %v2891_v20  ;;  %v2902_v5 = vmul.f32 %v2900_v16, %v2891_v20  ;;  %v7009_v20 = vld [vmem:[%s8422_s2] sm:$0xff] }
 0x73a   :  { %v2855_v50 = vadd.f32 %v2853_v52, %v2839_v44  ;;  %v2856_v6 = vadd.f32 %v2854_v27, %v2840_v21  ;;  %v2918_v44 = vmul.f32 %v2916_v0, %v2907_v40 }
 0x73c   :  { %v2871_v15 = vadd.f32 %v2869_v38, %v2855_v50  ;;  %v2872_v35 = vadd.f32 %v2870_v30, %v2856_v6 }
 0x73e   :  { %v2887_v59 = vadd.f32 %v2885_v61, %v2871_v15  ;;  %v2888_v41 = vadd.f32 %v2886_v60, %v2872_v35 }
 0x740   :  { %v2903_v27 = vadd.f32 %v2901_v14, %v2887_v59  ;;  %v2904_v52 = vadd.f32 %v2902_v5, %v2888_v41 }
 0x742   :  { %v6998_v1 = vadd.f32 %v2917_v22, %v2903_v27  ;;  %v7000_v4 = vadd.f32 %v2918_v44, %v2904_v52  ;;  %v2621_v52 = vrot.slane %v6921_v25, %v9163_v11 }
 0x744   :  { %v2921_v7 = vadd.f32 %v7000_v4, %v6998_v1  ;;  %v2999_v15 = vmul.f32 %v6998_v1, %v6998_v1  ;;  %v3000_v35 = vmul.f32 %v7000_v4, %v7000_v4 }
 0x746   :  { %2922 = vadd.xlane.f32.xlu1 %v2921_v7  ;;  %v3001_v3 = vadd.f32 %v3000_v35, %v2999_v15 }
 0x7d3   :  { %v2923_v39 = vpop.xlane.xlu1 %2922 }
 0x7d4   :  { %v2952_v29 = vrot.slane %v2923_v39, %v9166_v37  ;;  %v2932_v21 = vrot.slane %v2923_v39, %v9163_v11  ;;  %v2972_v38 = vrot.slane %v2923_v39, %v9168_v57  ;;  %v2942_v30 = vrot.slane %v2923_v39, %v9164_v12 }
 0x7d5   :  { %v2982_v36 = vrot.slane %v2923_v39, %v9169_v23  ;;  %v2992_v61 = vrot.slane %v2923_v39, %v9171_v47  ;;  %v2962_v0 = vrot.slane %v2923_v39, %v9167_v58  ;;  %v2927_v59 = vrot.slane %v2923_v39, %v9162_v32 }
 0x7d6   :  { %v2953_v17 = vmul.f32 %v7009_v20, %v2952_v29  ;;  %v2933_v48 = vmul.f32 %v7009_v20, %v2932_v21  ;;  %v2973_v50 = vmul.f32 %v7009_v20, %v2972_v38  ;;  %v2943_v6 = vmul.f32 %v7009_v20, %v2942_v30 }
 0x7d7   :  { %v2983_v16 = vmul.f32 %v7009_v20, %v2982_v36  ;;  %v2993_v60 = vmul.f32 %v7009_v20, %v2992_v61  ;;  %v2963_v40 = vmul.f32 %v7009_v20, %v2962_v0  ;;  %v2928_v22 = vmul.f32 %v7009_v20, %v2927_v59 }
 0x7d8   :  { %2955 = vrot.lane.b32.xlu1 %v2953_v17, %s9035_s27  ;;  %2935 = vrot.lane.b32.xlu0 %v2933_v48, %s4715_s30  ;;  %v2701_v39 = vrot.slane %v6976_v8, %v9163_v11  ;;  %v2622_v30 = vmul.f32 %v7009_v20, %v2621_v52  ;;  %v2741_v0 = vrot.slane %v6976_v8, %v9168_v57 }
 0x7da   :  { %v2702_v38 = vmul.f32 %v7009_v20, %v2701_v39 }
 0x7dc   :  { %2975 = vrot.lane.b32.xlu1 %v2973_v50, %s9048_s4  ;;  %2945 = vrot.lane.b32.xlu0 %v2943_v6, %s4736_s22  ;;  %v2721_v50 = vrot.slane %v6976_v8, %v9166_v37  ;;  %v2631_v6 = vrot.slane %v6921_v25, %v9164_v12 }
 0x7de   :  { %v2722_v35 = vmul.f32 %v7009_v20, %v2721_v50 }
 0x7e0   :  { %2985 = vrot.lane.b32.xlu1 %v2983_v16, %s9053_s3 }
 0x7e4   :  { %2995 = vrot.lane.b32.xlu1 %v2993_v60, %s9056_s5  ;;  %v2641_v60 = vrot.slane %v6921_v25, %v9166_v37 }
 0x7e6   :  { %v2642_v59 = vmul.f32 %v7009_v20, %v2641_v60  ;;  %v2711_v60 = vrot.slane %v6976_v8, %v9164_v12 }
 0x7fb   :  { %3002 = vadd.xlane.f32.xlu0 %v3001_v3  ;;  %v2632_v3 = vmul.f32 %v7009_v20, %v2631_v6 }
 0x811   :  { %2965 = vrot.lane.b32.xlu0 %v2963_v40, %s4738_s19  ;;  %v2651_v40 = vrot.slane %v6921_v25, %v9167_v58 }
 0x84a   :  { %v2936_v14 = vpop.permute.xlu0 %2935  ;;  %v2956_v17 = vpop.permute.xlu1 %2955 }
 0x84b   :  { %v2938_v7 = vadd.f32 %v2936_v14, %v2928_v22 }
 0x84e   :  { %v2946_v5 = vpop.permute.xlu0 %2945  ;;  %v2976_v61 = vpop.permute.xlu1 %2975 }
 0x84f   :  { %v2948_v48 = vadd.f32 %v2946_v5, %v2938_v7  ;;  %v2742_v5 = vmul.f32 %v7009_v20, %v2741_v0  ;;  %v9206_v0 = vmov 1  }
 0x851   :  { %v2958_v16 = vadd.f32 %v2956_v17, %v2948_v48 }
 0x888   :  { %v7035_v41 = vpop.xlane.xlu0 %3002 }
 0x889   :  { %v3022_v44 = vrot.slane %v7035_v41, %v9164_v12  ;;  %v3012_v27 = vrot.slane %v7035_v41, %v9163_v11  ;;  %v3042_v22 = vrot.slane %v7035_v41, %v9167_v58 }
 0x88b   :  { %v3023_v29 = vmul.f32 %v7009_v20, %v3022_v44  ;;  %v3013_v21 = vmul.f32 %v7009_v20, %v3012_v27  ;;  %v2986_v44 = vpop.permute.xlu1 %2985  ;;  %v2661_v27 = vrot.slane %v6921_v25, %v9168_v57  ;;  %v3043_v7 = vmul.f32 %v7009_v20, %v3042_v22 }
 0x88c   :  { %v2966_v36 = vpop.permute.xlu0 %2965  ;;  %v3032_v22 = vrot.slane %v7035_v41, %v9166_v37 }
 0x88d   :  { %3025 = vrot.lane.b32.xlu0 %v3023_v29, %s4736_s22  ;;  %3015 = vrot.lane.b32.xlu1 %v3013_v21, %s4715_s30  ;;  %v2968_v15 = vadd.f32 %v2966_v36, %v2958_v16  ;;  %v2652_v29 = vmul.f32 %v7009_v20, %v2651_v40  ;;  %v3062_v21 = vrot.slane %v7035_v41, %v9169_v23 }
 0x88e   :  { %v2681_v36 = vrot.slane %v6921_v25, %v9171_v47 }
 0x88f   :  { %v2978_v14 = vadd.f32 %v2976_v61, %v2968_v15  ;;  %v2996_v39 = vpop.permute.xlu1 %2995  ;;  %v3063_v48 = vmul.f32 %v7009_v20, %v3062_v21  ;;  %v7099_v61 = vld [vmem:[%s8428_s10] sm:$0xff]  ;;  %v9205_v15 = vmov 12   ;;  %v3072_v21 = vrot.slane %v7035_v41, %v9171_v47 }
 0x890   :  { %v2682_v16 = vmul.f32 %v7009_v20, %v2681_v36  ;;  %v9212_v36 = vmov 13  }
 0x891   :  { %2704 = vrot.lane.b32.xlu0 %v2702_v38, %s4715_s30  ;;  %2624 = vrot.lane.b32.xlu1 %v2622_v30, %s4715_s30  ;;  %v2988_v52 = vadd.f32 %v2986_v44, %v2978_v14  ;;  %v2662_v38 = vmul.f32 %v7009_v20, %v2661_v27  ;;  %v2671_v30 = vrot.slane %v6921_v25, %v9169_v23 }
 0x892   :  { %v2751_v14 = vrot.slane %v6976_v8, %v9169_v23  ;;  %v3033_v44 = vmul.f32 %v7009_v20, %v3032_v22  ;;  %v3052_v27 = vrot.slane %v7035_v41, %v9168_v57 }
 0x893   :  { %v2998_v17 = vadd.f32 %v2996_v39, %v2988_v52  ;;  %v2672_v50 = vmul.f32 %v7009_v20, %v2671_v30  ;;  %v2761_v52 = vrot.slane %v6976_v8, %v9171_v47  ;;  %v3073_v39 = vmul.f32 %v7009_v20, %v3072_v21 }
 0x894   :  { %v9210_v30 = vmov 10  }
 0x895   :  { %2724 = vrot.lane.b32.xlu0 %v2722_v35, %s9035_s27  ;;  %2634 = vrot.lane.b32.xlu1 %v2632_v3, %s4736_s22  ;;  %v7089_v6 = vmul.f32 0.001953125, %v2998_v17  ;;  %v2712_v35 = vmul.f32 %v7009_v20, %v2711_v60  ;;  %v2731_v3 = vrot.slane %v6976_v8, %v9167_v58  ;;  %v9208_v17 = vmov 8  }
 0x896   :  { %v9214_v60 = vmov 15  }
 0x897   :  { %v2732_v40 = vmul.f32 %v7009_v20, %v2731_v3 }
 0x899   :  { %2744 = vrot.lane.b32.xlu0 %v2742_v5, %s9048_s4  ;;  %2644 = vrot.lane.b32.xlu1 %v2642_v59, %s9035_s27  ;;  %v9207_v5 = vmov 2   ;;  %v2752_v59 = vmul.f32 %v7009_v20, %v2751_v14  ;;  %v9215_v14 = vmov 16  }
 0x89d   :  { %3045 = vrot.lane.b32.xlu0 %v3043_v7, %s4738_s19  ;;  %2654 = vrot.lane.b32.xlu1 %v2652_v29, %s4738_s19  ;;  %v3053_v7 = vmul.f32 %v7009_v20, %v3052_v27  ;;  %v2762_v29 = vmul.f32 %v7009_v20, %v2761_v52 }
 0x8a1   :  { %3065 = vrot.lane.b32.xlu0 %v3063_v48, %s9053_s3  ;;  %2664 = vrot.lane.b32.xlu1 %v2662_v38, %s9048_s4  ;;  %v9209_v48 = vmov 9   ;;  %v7152_v38 = vld [vmem:[%s8420_s14] sm:$0xff]  ;;  %s9279_s14 = smov 31  }
 0x8a5   :  { %2674 = vrot.lane.b32.xlu1 %v2672_v50, %s9053_s3  ;;  %3087 = vperm.xlu0 %4628, %v7089_v6   ;;  %v9211_v50 = vmov 11  }
 0x8a9   :  { %2684 = vrot.lane.b32.xlu1 %v2682_v16, %s9056_s5  ;;  %4631 = vset.pattern.permute.xlu0 %v9205_v15  ;;  %v9213_v16 = vmov 14  }
 0x8aa   :  { %3104 = vperm.xlu0 %4631, %v7099_v61  }
 0x8ad   :  { %2714 = vrot.lane.b32.xlu1 %v2712_v35, %s4736_s22 }
 0x8ae   :  { %4632 = vset.pattern.permute.xlu0 %v9206_v0 }
 0x8af   :  { %3134 = vperm.xlu0 %4632, %v7099_v61  }
 0x8b1   :  { %2734 = vrot.lane.b32.xlu1 %v2732_v40, %s4738_s19 }
 0x8b3   :  { %4633 = vset.pattern.permute.xlu0 %v9207_v5 }
 0x8b4   :  { %3150 = vperm.xlu0 %4633, %v7099_v61  }
 0x8b5   :  { %2754 = vrot.lane.b32.xlu1 %v2752_v59, %s9053_s3 }
 0x8b8   :  { %4634 = vset.pattern.permute.xlu0 %v9175_v42 }
 0x8b9   :  { %3035 = vrot.lane.b32.xlu1 %v3033_v44, %s9035_s27  ;;  %3166 = vperm.xlu0 %4634, %v7099_v61   ;;  %v9216_v44 = vmov 17  }
 0x8bd   :  { %3055 = vrot.lane.b32.xlu1 %v3053_v7, %s9048_s4  ;;  %2764 = vrot.lane.b32.xlu0 %v2762_v29, %s9056_s5 }
 0x8be   :  { %4635 = vset.pattern.permute.xlu0 %v9177_v34 }
 0x8c1   :  { %3075 = vrot.lane.b32.xlu1 %v3073_v39, %s9056_s5  ;;  %3182 = vperm.xlu0 %4635, %v7099_v61  }
 0x8c5   :  { %4636 = vset.pattern.permute.xlu0 %v9174_v53 }
 0x8c6   :  { %3198 = vperm.xlu0 %4636, %v7099_v61  }
 0x8ca   :  { %4637 = vset.pattern.permute.xlu0 %v9180_v10 }
 0x8cb   :  { %3214 = vperm.xlu0 %4637, %v7099_v61  }
 0x8cf   :  { %4638 = vset.pattern.permute.xlu0 %v9176_v63 }
 0x8d0   :  { %3230 = vperm.xlu0 %4638, %v7099_v61  }
 0x8d4   :  { %4639 = vset.pattern.permute.xlu0 %v9208_v17 }
 0x8d5   :  { %3246 = vperm.xlu0 %4639, %v7099_v61  }
 0x8d9   :  { %4640 = vset.pattern.permute.xlu0 %v9209_v48 }
 0x8da   :  { %1796 = vperm.xlu0 %4640, %v7152_v38  }
 0x8de   :  { %3262 = vperm.xlu0 %4640, %v7099_v61  }
 0x8e2   :  { %4641 = vset.pattern.permute.xlu0 %v9210_v30  ;;  %v3007_v30 = vrot.slane %v7035_v41, %v9162_v32 }
 0x8e3   :  { %1826 = vperm.xlu0 %4641, %v7152_v38  }
 0x8e7   :  { %3278 = vperm.xlu0 %4641, %v7099_v61  }
 0x8eb   :  { %4642 = vset.pattern.permute.xlu0 %v9211_v50 }
 0x8ec   :  { %3294 = vperm.xlu0 %4642, %v7099_v61  }
 0x8f0   :  { %4643 = vset.pattern.permute.xlu0 %v9212_v36  ;;  %v2696_v36 = vrot.slane %v6976_v8, %v9162_v32 }
 0x8f1   :  { %3310 = vperm.xlu0 %4643, %v7099_v61  }
 0x8f2   :  { %v2697_v23 = vmul.f32 %v7009_v20, %v2696_v36 }
 0x8f5   :  { %4644 = vset.pattern.permute.xlu0 %v9213_v16 }
 0x8f6   :  { %1856 = vperm.xlu0 %4644, %v7152_v38  }
 0x8fa   :  { %3326 = vperm.xlu0 %4644, %v7099_v61  }
 0x8fe   :  { %4645 = vset.pattern.permute.xlu0 %v9214_v60  ;;  %v3008_v60 = vmul.f32 %v7009_v20, %v3007_v30 }
 0x8ff   :  { %v3016_v15 = vpop.permute.xlu1 %3015  ;;  %1886 = vperm.xlu0 %4645, %v7152_v38   ;;  %v3026_v35 = vpop.permute.xlu0 %3025 }
 0x900   :  { %v3018_v47 = vadd.f32 %v3016_v15, %v3008_v60 }
 0x902   :  { %v3028_v13 = vadd.f32 %v3026_v35, %v3018_v47 }
 0x903   :  { %v2625_v3 = vpop.permute.xlu1 %2624  ;;  %3342 = vperm.xlu0 %4645, %v7099_v61   ;;  %v2705_v59 = vpop.permute.xlu0 %2704 }
 0x904   :  { %v2707_v12 = vadd.f32 %v2705_v59, %v2697_v23 }
 0x907   :  { %v2635_v40 = vpop.permute.xlu1 %2634  ;;  %4646 = vset.pattern.permute.xlu0 %v9215_v14  ;;  %v2725_v27 = vpop.permute.xlu0 %2724  ;;  %v2616_v14 = vrot.slane %v6921_v25, %v9162_v32 }
 0x908   :  { %3358 = vperm.xlu0 %4646, %v7099_v61  }
 0x909   :  { %v2617_v37 = vmul.f32 %v7009_v20, %v2616_v14  ;;  %v9221_v14 = vmov 22  }
 0x90b   :  { %v2645_v22 = vpop.permute.xlu1 %2644  ;;  %v2745_v29 = vpop.permute.xlu0 %2744  ;;  %v2627_v9 = vadd.f32 %v2625_v3, %v2617_v37 }
 0x90c   :  { %4647 = vset.pattern.permute.xlu0 %v9216_v44 }
 0x90d   :  { %3374 = vperm.xlu0 %4647, %v7099_v61   ;;  %v2637_v30 = vadd.f32 %v2635_v40, %v2627_v9 }
 0x90f   :  { %v2655_v52 = vpop.permute.xlu1 %2654  ;;  %v3046_v39 = vpop.permute.xlu0 %3045  ;;  %v2647_v25 = vadd.f32 %v2645_v22, %v2637_v30 }
 0x911   :  { %4648 = vset.pattern.permute.xlu0 %v9179_v2  ;;  %v2657_v36 = vadd.f32 %v2655_v52, %v2647_v25  ;;  %v9223_v25 = vmov 23  }
 0x912   :  { %3118 = vperm.xlu0 %4648, %v7099_v61  }
 0x913   :  { %v2665_v7 = vpop.permute.xlu1 %2664  ;;  %v3066_v50 = vpop.permute.xlu0 %3065 }
 0x914   :  { %v2667_v55 = vadd.f32 %v2665_v7, %v2657_v36  ;;  %v4704_v7 = vld [vmem:[%s8424_s0] sm:$0xff] }
 0x917   :  { %v2675_v21 = vpop.permute.xlu1 %2674 }
 0x918   :  { %v2677_v37 = vadd.f32 %v2675_v21, %v2667_v55 }
 0x91b   :  { %v2685_v17 = vpop.permute.xlu1 %2684 }
 0x91f   :  { %v2715_v48 = vpop.permute.xlu1 %2714 }
 0x920   :  { %v2717_v8 = vadd.f32 %v2715_v48, %v2707_v12  ;;  %v9219_v48 = vmov 20  }
 0x922   :  { %v2727_v28 = vadd.f32 %v2725_v27, %v2717_v8 }
 0x923   :  { %v2735_v16 = vpop.permute.xlu1 %2734 }
 0x924   :  { %v7182_v44 = vpop.permute.xlu0 %3087  ;;  %v2737_v20 = vadd.f32 %v2735_v16, %v2727_v28 }
 0x926   :  { %v2747_v9 = vadd.f32 %v2745_v29, %v2737_v20  ;;  %v2777_v29 = vrot.slane %v4704_v7, %v9167_v58 }
 0x927   :  { %v2755_v57 = vpop.permute.xlu1 %2754 }
 0x928   :  { %v2757_v40 = vadd.f32 %v2755_v57, %v2747_v9 }
 0x929   :  { %v7186_v41 = vpop.permute.xlu0 %3104 }
 0x92b   :  { %v3036_v54 = vpop.permute.xlu1 %3035 }
 0x92c   :  { %v3038_v24 = vadd.f32 %v3036_v54, %v3028_v13  ;;  %v3081_v54 = vmul.f32 %v7089_v6, %v7089_v6 }
 0x92e   :  { %v3048_v26 = vadd.f32 %v3046_v39, %v3038_v24  ;;  %v7188_v49 = vpop.permute.xlu0 %3134  ;;  %v2687_v24 = vadd.f32 %v2685_v17, %v2677_v37  ;;  %v9217_v39 = vmov 18   ;;  %v9218_v17 = vmov 19  }
 0x92f   :  { %v3056_v15 = vpop.permute.xlu1 %3055 }
 0x930   :  { %v3058_v60 = vadd.f32 %v3056_v15, %v3048_v26  ;;  %v7196_v26 = vmul.f32 0.001953125, %v2687_v24 }
 0x932   :  { %v3068_v56 = vadd.f32 %v3066_v50, %v3058_v60  ;;  %v9220_v50 = vmov 21   ;;  %v9225_v60 = vmov 24  }
 0x933   :  { %v3076_v23 = vpop.permute.xlu1 %3075  ;;  %v7190_v59 = vpop.permute.xlu0 %3150 }
 0x934   :  { %v3078_v47 = vadd.f32 %v3076_v23, %v3068_v56  ;;  %v2770_v56 = vmul.f32 %v7196_v26, %v7196_v26  ;;  %v7251_v23 = vld [vmem:[%s8431_s15] sm:$0xff]  ;;  %s9273_s15 = smov 33  }
 0x936   :  { %v3080_v12 = vmul.f32 0.001953125, %v3078_v47 }
 0x938   :  { %v3082_v13 = vsub.f32 %v3080_v12, %v3081_v54  ;;  %v7194_v35 = vpop.permute.xlu0 %3166 }
 0x93a   :  { %v3083_v3 = vadd.f32 1e-05, %v3082_v13 }
 0x93c   :  { %4685 = vrsqrt.f32 %v3083_v3  ;;  %v2765_v28 = vpop.permute.xlu0 %2764  ;;  %v1601_v3 = vld [vmem:[%s8421_s1] ss:$8 sm:$0x3] }
 0x93d   :  { %v2767_v22 = vadd.f32 %v2765_v28, %v2757_v40  ;;  %v1606_v28 = vrot.slane %v1601_v3, %v9162_v32 }
 0x93f   :  { %v2769_v55 = vmul.f32 0.001953125, %v2767_v22  ;;  %v1610_v22 = vrot.slane %v1601_v3, %v9163_v11 }
 0x940   :  { %v7212_v16 = vpop.permute.xlu0 %3182 }
 0x941   :  { %v2771_v27 = vsub.f32 %v2769_v55, %v2770_v56  ;;  %v9232_v56 = vld [vmem:[#allocation120_spill] sm:$0xff]  ;;  %v9233_v55 = vld [vmem:[#allocation126_spill] sm:$0xff] }
 0x943   :  { %v2772_v52 = vadd.f32 1e-05, %v2771_v27  ;;  %v7286_v27 = vsel %vm1598_vm0, %v9233_v55, %v9232_v56 }
 0x944   :  { %9234 = vst [vmem:[#allocation84_spill] sm:$0xff] %v7286_v27 }
 0x945   :  { %4687 = vrsqrt.f32 %v2772_v52  ;;  %v7217_v8 = vpop.permute.xlu0 %3198  ;;  %v7290_v52 = vsel %vm1598_vm0, %v9232_v56, %v9233_v55  ;;  %vm1657_vm0 = vcmp.lt.s32.totalorder %v4966_v19, 64  ;;  %v7326_v56 = vld [vmem:[%s8421_s1 + $0x5] ss:$8 sm:$0x3] }
 0x946   :  { %v4686_v6 = vpop.eup %4685  ;;  %9235 = vst [vmem:[#allocation122_spill] sm:$0xff] %v7290_v52 }
 0x947   :  { %3094 = vperm.xlu1 %4630, %v4686_v6   ;;  %v4476_v6 = vld [vmem:[%s8421_s1 + $0x1] ss:$8 sm:$0x3] }
 0x94a   :  { %v7220_v30 = vpop.permute.xlu0 %3214 }
 0x94b   :  { %9222 = vst [vmem:[#allocation143_spill] sm:$0xff] %v7220_v30  ;;  %v9261_v30 = vld [vmem:[#allocation132_spill] sm:$0xff] }
 0x94f   :  { %v4688_v21 = vpop.eup %4687  ;;  %v7224_v15 = vpop.permute.xlu0 %3230 }
 0x950   :  { %v2778_v57 = vmul.f32 %v4688_v21, %v2777_v29  ;;  %9224 = vst [vmem:[#allocation45_spill] sm:$0xff] %v7224_v15  ;;  %v4477_v29 = vld [vmem:[%s8421_s1 + $0x2] ss:$8 sm:$0x3]  ;;  %v1613_v21 = vmul.f32 %v1606_v28, %v7290_v52 }
 0x951   :  { %v1666_v28 = vrot.slane %v4477_v29, %v9162_v32 }
 0x952   :  { %2788 = vperm.xlu0 %4648, %v2778_v57   ;;  %v1614_v57 = vmul.f32 %v1610_v22, %v7286_v27  ;;  %v1670_v22 = vrot.slane %v4477_v29, %v9163_v11 }
 0x954   :  { %v7234_v36 = vpop.permute.xlu0 %3246 }
 0x955   :  { %9226 = vst [vmem:[#allocation85_spill] sm:$0xff] %v7234_v36 }
 0x956   :  { %4649 = vset.pattern.permute.xlu0 %v9217_v39  ;;  %v1636_v39 = vrot.slane %v4476_v6, %v9162_v32 }
 0x957   :  { %3390 = vperm.xlu0 %4649, %v7099_v61  }
 0x959   :  { %v7239_v20 = vpop.permute.xlu0 %1796 }
 0x95b   :  { %4650 = vset.pattern.permute.xlu0 %v9218_v17  ;;  %v1640_v17 = vrot.slane %v4476_v6, %v9163_v11 }
 0x95c   :  { %1916 = vperm.xlu0 %4650, %v7152_v38  }
 0x95d   :  { %v7253_v47 = vpop.permute.xlu0 %3262 }
 0x95e   :  { %9227 = vst [vmem:[#allocation87_spill] sm:$0xff] %v7253_v47 }
 0x960   :  { %3406 = vperm.xlu0 %4650, %v7099_v61  }
 0x962   :  { %v7256_v37 = vpop.permute.xlu0 %1826 }
 0x964   :  { %4651 = vset.pattern.permute.xlu0 %v9219_v48  ;;  %v4478_v48 = vld [vmem:[%s8421_s1 + $0x3] ss:$8 sm:$0x3] }
 0x965   :  { %3422 = vperm.xlu0 %4651, %v7099_v61   ;;  %v1696_v55 = vrot.slane %v4478_v48, %v9162_v32  ;;  %v1700_v6 = vrot.slane %v4478_v48, %v9163_v11 }
 0x966   :  { %v7260_v12 = vpop.permute.xlu0 %3278 }
 0x967   :  { %9228 = vst [vmem:[#allocation140_spill] sm:$0xff] %v7260_v12  ;;  %v9252_v12 = vld [vmem:[#allocation119_spill] sm:$0xff] }
 0x969   :  { %4652 = vset.pattern.permute.xlu0 %v9220_v50  ;;  %v4479_v50 = vld [vmem:[%s8421_s1 + $0x4] ss:$8 sm:$0x3] }
 0x96a   :  { %3438 = vperm.xlu0 %4652, %v7099_v61   ;;  %v1730_v48 = vrot.slane %v4479_v50, %v9163_v11 }
 0x96b   :  { %v7264_v54 = vpop.permute.xlu0 %3294 }
 0x96c   :  { %9229 = vst [vmem:[#allocation47_spill] sm:$0xff] %v7264_v54 }
 0x96e   :  { %4653 = vset.pattern.permute.xlu0 %v9221_v14  ;;  %v9237_v14 = vld [vmem:[#allocation123_spill] sm:$0xff] }
 0x96f   :  { %1985 = vperm.xlu0 %4653, %v7152_v38   ;;  %v7231_v38 = vld [vmem:[%s8429_s11] sm:$0xff]  ;;  %s9262_s11 = smov 34  }
 0x970   :  { %v7269_v24 = vpop.permute.xlu0 %3310 }
 0x971   :  { %9230 = vst [vmem:[#allocation78_spill] sm:$0xff] %v7269_v24  ;;  %v9248_v24 = vld [vmem:[#allocation127_spill] sm:$0xff] }
 0x973   :  { %3454 = vperm.xlu0 %4653, %v7099_v61  }
 0x975   :  { %v7272_v9 = vpop.permute.xlu0 %1856 }
 0x977   :  { %4654 = vset.pattern.permute.xlu0 %v9223_v25  ;;  %v9238_v25 = vld [vmem:[#allocation121_spill] sm:$0xff] }
 0x978   :  { %3470 = vperm.xlu0 %4654, %v7099_v61   ;;  %v7317_v3 = vsel %vm1627_vm11, %v9237_v14, %v9238_v25 }
 0x979   :  { %v7274_v13 = vpop.permute.xlu0 %3326  ;;  %9240 = vst [vmem:[#allocation77_spill] sm:$0xff] %v7317_v3  ;;  %v1643_v29 = vmul.f32 %v1636_v39, %v7317_v3  ;;  %v9243_v39 = vld [vmem:[#allocation125_spill] sm:$0xff] }
 0x97a   :  { %9231 = vst [vmem:[#allocation75_spill] sm:$0xff] %v7274_v13 }
 0x97c   :  { %4655 = vset.pattern.permute.xlu0 %v9225_v60  ;;  %v7313_v60 = vsel %vm1627_vm11, %v9238_v25, %v9237_v14  ;;  %vm1717_vm11 = vcmp.lt.s32.totalorder %v4966_v19, 60  ;;  %v1726_v14 = vrot.slane %v4479_v50, %v9162_v32  ;;  %v9241_v25 = vld [vmem:[#allocation43_spill] sm:$0xff] }
 0x97d   :  { %3486 = vperm.xlu0 %4655, %v7099_v61   ;;  %v7244_v61 = vld [vmem:[%s8430_s13] sm:$0xff]  ;;  %9239 = vst [vmem:[#allocation7_spill] sm:$0xff] %v7313_v60  ;;  %v1619_v52 = vmul.f32 %v9241_v25, %v1613_v21  ;;  %v1620_v27 = vmul.f32 %v9241_v25, %v1614_v57  ;;  %v1644_v58 = vmul.f32 %v1640_v17, %v7313_v60  ;;  %v9244_v25 = vld [vmem:[#allocation124_spill] sm:$0xff] }
 0x97e   :  { %v7280_v40 = vpop.permute.xlu0 %1886  ;;  %v1756_v21 = vrot.slane %v7326_v56, %v9162_v32  ;;  %v1760_v57 = vrot.slane %v7326_v56, %v9163_v11  ;;  %v7353_v17 = vsel %vm1657_vm0, %v9244_v25, %v9243_v39  ;;  %v7359_v3 = vsel %vm1657_vm0, %v9243_v39, %v9244_v25  ;;  %v7364_v50 = vld [vmem:[%s8421_s1 + $0x21] ss:$8 sm:$0x3] }
 0x97f   :  { %9245 = vst [vmem:[#allocation59_spill] sm:$0xff] %v7353_v17  ;;  %9246 = vst [vmem:[#allocation58_spill] sm:$0xff] %v7359_v3  ;;  %v1649_v60 = vmul.f32 %v6752_v33, %v1643_v29  ;;  %v1650_v56 = vmul.f32 %v6752_v33, %v1644_v58  ;;  %vm1777_vm0 = vcmp.lt.s32.totalorder %v4966_v19, 28  ;;  %v9251_v58 = vld [vmem:[#allocation118_spill] sm:$0xff]  ;;  %v1622_v47 = vadd.f32 %v1620_v27, %v9252_v12 }
 0x980   :  { %v1621_v29 = vadd.f32 %v1619_v52, %v9251_v58  ;;  %v1673_v36 = vmul.f32 %v1666_v28, %v7359_v3  ;;  %v1674_v15 = vmul.f32 %v1670_v22, %v7353_v17  ;;  %v4483_v52 = vld [vmem:[%s8421_s1 + $0x26] ss:$8 sm:$0x3] }
 0x981   :  { %4657 = vset.pattern.permute.xlu0 %v9207_v5  ;;  %v1652_v12 = vadd.f32 %v1650_v56, %v1622_v47  ;;  %v9254_v22 = vld [vmem:[#allocation131_spill] sm:$0xff]  ;;  %v9255_v3 = vld [vmem:[#allocation130_spill] sm:$0xff]  ;;  %v1820_v47 = vrot.slane %v7364_v50, %v9163_v11 }
 0x982   :  { %3526 = vperm.xlu0 %4657, %v7231_v38   ;;  %v7296_v7 = vpop.permute.xlu0 %3342  ;;  %v1651_v58 = vadd.f32 %v1649_v60, %v1621_v29  ;;  %v7405_v17 = vsel %vm1717_vm11, %v9255_v3, %v9254_v22 }
 0x983   :  { %9236 = vst [vmem:[#allocation6_spill] sm:$0xff] %v7296_v7  ;;  %v7339_v7 = vld [vmem:[%s8421_s1 + $0x13] ss:$8 sm:$0x3]  ;;  %9256 = vst [vmem:[#allocation71_spill] sm:$0xff] %v7405_v17 }
 0x984   :  { %v1786_v25 = vrot.slane %v7339_v7, %v9162_v32  ;;  %v1790_v33 = vrot.slane %v7339_v7, %v9163_v11 }
 0x986   :  { %4660 = vset.pattern.permute.xlu0 %v9174_v53 }
 0x987   :  { %3574 = vperm.xlu0 %4660, %v7231_v38   ;;  %v7341_v13 = vpop.permute.xlu0 %3358 }
 0x988   :  { %9242 = vst [vmem:[#allocation145_spill] sm:$0xff] %v7341_v13  ;;  %v9247_v13 = vld [vmem:[#allocation129_spill] sm:$0xff] }
 0x989   :  { %v7372_v54 = vsel %vm1687_vm7, %v9248_v24, %v9247_v13  ;;  %v7378_v39 = vsel %vm1687_vm7, %v9247_v13, %v9248_v24  ;;  %v1816_v24 = vrot.slane %v7364_v50, %v9162_v32  ;;  %v3090_v13 = vsub.f32 %v6998_v1, %v7182_v44 }
 0x98a   :  { %9249 = vst [vmem:[#allocation55_spill] sm:$0xff] %v7372_v54  ;;  %9250 = vst [vmem:[#allocation62_spill] sm:$0xff] %v7378_v39  ;;  %v1703_v46 = vmul.f32 %v1696_v55, %v7378_v39  ;;  %v1704_v7 = vmul.f32 %v1700_v6, %v7372_v54  ;;  %v7411_v1 = vsel %vm1717_vm11, %v9254_v22, %v9255_v3  ;;  %vm1837_vm7 = vcmp.lt.s32.totalorder %v4966_v19, 124  ;;  %v9258_v6 = vld [vmem:[#allocation52_spill] sm:$0xff] }
 0x98b   :  { %4663 = vset.pattern.permute.xlu0 %v9179_v2  ;;  %9257 = vst [vmem:[#allocation82_spill] sm:$0xff] %v7411_v1  ;;  %v3091_v55 = vsub.f32 %v7000_v4, %v7182_v44  ;;  %v1679_v56 = vmul.f32 %v9258_v6, %v1673_v36  ;;  %v1680_v29 = vmul.f32 %v9258_v6, %v1674_v15  ;;  %v4484_v44 = vld [vmem:[%s8421_s1 + $0x34] ss:$8 sm:$0x3]  ;;  %vm9328_vm11 = vcmp.lt.s32.totalorder %v4966_v19, 126 }
 0x98c   :  { %3807 = vperm.xlu0 %4663, %v7244_v61   ;;  %v7399_v28 = vpop.permute.xlu0 %3374  ;;  %v1846_v39 = vrot.slane %v4483_v52, %v9162_v32  ;;  %v1850_v54 = vrot.slane %v4483_v52, %v9163_v11  ;;  %v1733_v22 = vmul.f32 %v1726_v14, %v7411_v1  ;;  %v1734_v4 = vmul.f32 %v1730_v48, %v7405_v17  ;;  %v9259_v36 = vld [vmem:[#allocation128_spill] sm:$0xff]  ;;  %v9260_v6 = vld [vmem:[#allocation133_spill] sm:$0xff] }
 0x98d   :  { %9253 = vst [vmem:[#allocation49_spill] sm:$0xff] %v7399_v28  ;;  %v1681_v50 = vadd.f32 %v1679_v56, %v1651_v58  ;;  %v1709_v45 = vmul.f32 %v9259_v36, %v1703_v46  ;;  %v1710_v15 = vmul.f32 %v9259_v36, %v1704_v7  ;;  %v1748_v52 = vsel %vm1747_vm13, %v9261_v30, %v9260_v6  ;;  %v9263_v48 = vld [vmem:[#allocation136_spill] sm:$0xff]  ;;  %v9264_v58 = vld [vmem:[#allocation134_spill] sm:$0xff]  ;;  %v9266_v36 = vld [vmem:[#allocation137_spill] sm:$0xff] }
 0x98e   :  { %v1749_v14 = vsel %vm1747_vm13, %v9260_v6, %v9261_v30  ;;  %v1778_v46 = vsel %vm1777_vm0, %v9264_v58, %v9263_v48  ;;  %v1779_v7 = vsel %vm1777_vm0, %v9263_v48, %v9264_v58  ;;  %vm1867_vm13 = vcmp.lt.s32.totalorder %v4966_v19, 100 }
 0x98f   :  { %v1876_v30 = vrot.slane %v4484_v44, %v9162_v32  ;;  %v1763_v48 = vmul.f32 %v1756_v21, %v1749_v14  ;;  %v1764_v58 = vmul.f32 %v1760_v57, %v1748_v52  ;;  %v1793_v1 = vmul.f32 %v1786_v25, %v1779_v7  ;;  %v9269_v57 = vld [vmem:[#allocation146_spill] sm:$0xff]  ;;  %v9270_v25 = vld [vmem:[#allocation144_spill] sm:$0xff] }
 0x990   :  { %4118 = vperm.xlu0 %4663, %v7251_v23   ;;  %v1794_v17 = vmul.f32 %v1790_v33, %v1778_v46  ;;  %v1868_v33 = vsel %vm1867_vm13, %v9270_v25, %v9269_v57  ;;  %vm9331_vm0 = vcmp.lt.s32.totalorder %v4966_v19, 114 }
 0x991   :  { %v1799_v46 = vmul.f32 %v7239_v20, %v1793_v1 }
 0x992   :  { %v1800_v7 = vmul.f32 %v7239_v20, %v1794_v17  ;;  %v1883_v20 = vmul.f32 %v1876_v30, %v1868_v33 }
 0x994   :  { %4667 = vset.pattern.permute.xlu0 %v9175_v42 }
 0x995   :  { %3853 = vperm.xlu0 %4667, %v7244_v61  }
 0x999   :  { %4164 = vperm.xlu0 %4667, %v7251_v23  }
 0x99d   :  { %4671 = vset.pattern.permute.xlu0 %v9177_v34 }
 0x99e   :  { %4180 = vperm.xlu0 %4671, %v7251_v23  }
 0x9a2   :  { %4674 = vset.pattern.permute.xlu0 %v9176_v63 }
 0x9a3   :  { %3917 = vperm.xlu0 %4674, %v7244_v61  }
 0x9a7   :  { %4677 = vset.pattern.permute.xlu0 %v9179_v2 }
 0x9c6   :  { %v3095_v27 = vpop.permute.xlu1 %3094 }
 0x9c7   :  { %v3097_v60 = vmul.f32 %v3095_v27, %v3090_v13  ;;  %v3098_v28 = vmul.f32 %v3095_v27, %v3091_v55  ;;  %v1682_v13 = vadd.f32 %v1680_v29, %v1652_v12  ;;  %v1739_v12 = vmul.f32 %v6972_v51, %v1733_v22  ;;  %v7451_v55 = vpop.permute.xlu0 %3118  ;;  %v9265_v29 = vld [vmem:[#allocation139_spill] sm:$0xff] }
 0x9c8   :  { %v1740_v27 = vmul.f32 %v6972_v51, %v1734_v4  ;;  %v1808_v6 = vsel %vm1807_vm14, %v9266_v36, %v9265_v29  ;;  %v1809_v51 = vsel %vm1807_vm14, %v9265_v29, %v9266_v36  ;;  %v1711_v22 = vadd.f32 %v1709_v45, %v1681_v50 }
 0x9c9   :  { %v7422_v3 = vmax.f32 %v3097_v60, 0.0  ;;  %v1880_v60 = vrot.slane %v4484_v44, %v9163_v11  ;;  %v7456_v56 = vmax.f32 %v3098_v28, 0.0  ;;  %v1712_v4 = vadd.f32 %v1710_v15, %v1682_v13  ;;  %v9267_v28 = vld [vmem:[#allocation142_spill] sm:$0xff]  ;;  %v9268_v44 = vld [vmem:[#allocation141_spill] sm:$0xff]  ;;  %v9271_v15 = vld [vmem:[#allocation67_spill] sm:$0xff] }
 0x9ca   :  { %v1838_v31 = vsel %vm1837_vm7, %v9268_v44, %v9267_v28  ;;  %v1839_v62 = vsel %vm1837_vm7, %v9267_v28, %v9268_v44  ;;  %v1741_v29 = vadd.f32 %v1739_v12, %v1711_v22  ;;  %v1823_v50 = vmul.f32 %v1816_v24, %v1809_v51  ;;  %v9275_v28 = vld [vmem:[#allocation147_spill] sm:$0xff]  ;;  %vm9332_vm7 = vmmov %vm9331_vm0 }
 0x9cb   :  { %3109 = vrot.lane.b32.xlu1 %v7422_v3, %s9262_s11  ;;  %v1742_v45 = vadd.f32 %v1740_v27, %v1712_v4  ;;  %v1824_v21 = vmul.f32 %v1820_v47, %v1808_v6  ;;  %v1869_v13 = vsel %vm1867_vm13, %v9269_v57, %v9270_v25  ;;  %v1769_v52 = vmul.f32 %v9271_v15, %v1763_v48  ;;  %v4485_v47 = vld [vmem:[%s8421_s1 + $0x42] ss:$8 sm:$0x3] }
 0x9cc   :  { %v1770_v14 = vmul.f32 %v9271_v15, %v1764_v58  ;;  %v1853_v12 = vmul.f32 %v1846_v39, %v1838_v31  ;;  %v1854_v27 = vmul.f32 %v1850_v54, %v1839_v62  ;;  %vm1897_vm14 = vcmp.lt.s32.totalorder %v4966_v19, 92  ;;  %v9274_v58 = vld [vmem:[#allocation148_spill] sm:$0xff] }
 0x9cd   :  { %v1771_v36 = vadd.f32 %v1769_v52, %v1741_v29  ;;  %v1829_v51 = vmul.f32 %v7256_v37, %v1823_v50  ;;  %v1830_v1 = vmul.f32 %v7256_v37, %v1824_v21  ;;  %v1884_v17 = vmul.f32 %v1880_v60, %v1869_v13 }
 0x9ce   :  { %v1772_v6 = vadd.f32 %v1770_v14, %v1742_v45  ;;  %v1906_v22 = vrot.slane %v4485_v47, %v9162_v32  ;;  %v1910_v4 = vrot.slane %v4485_v47, %v9163_v11  ;;  %v1859_v62 = vmul.f32 %v7272_v9, %v1853_v12 }
 0x9cf   :  { %3111 = vrot.lane.b32.xlu1 %v7456_v56, %s9262_s11  ;;  %v1801_v48 = vadd.f32 %v1799_v46, %v1771_v36  ;;  %v1860_v54 = vmul.f32 %v7272_v9, %v1854_v27  ;;  %v1898_v44 = vsel %vm1897_vm14, %v9275_v28, %v9274_v58  ;;  %v1899_v37 = vsel %vm1897_vm14, %v9274_v58, %v9275_v28 }
 0x9d0   :  { %v1802_v31 = vadd.f32 %v1800_v7, %v1772_v6  ;;  %v1889_v29 = vmul.f32 %v7280_v40, %v1883_v20  ;;  %v1890_v9 = vmul.f32 %v7280_v40, %v1884_v17  ;;  %v1913_v21 = vmul.f32 %v1906_v22, %v1898_v44 }
 0x9d1   :  { %v7488_v24 = vpop.permute.xlu0 %2788  ;;  %v1831_v30 = vadd.f32 %v1829_v51, %v1801_v48  ;;  %v1914_v57 = vmul.f32 %v1910_v4, %v1899_v37  ;;  %vm9347_vm13 = vcmp.lt.s32.totalorder %v4966_v19, 110 }
 0x9d2   :  { %9272 = vst [vmem:[#allocation86_spill] sm:$0xff] %v7488_v24  ;;  %v1832_v60 = vadd.f32 %v1830_v1, %v1802_v31  ;;  %vm9348_vm14 = vmmov %vm9347_vm13 }
 0x9d3   :  { %3125 = vrot.lane.b32.xlu1 %v7422_v3, %s9273_s15  ;;  %v1861_v45 = vadd.f32 %v1859_v62, %v1831_v30 }
 0x9d4   :  { %v1862_v50 = vadd.f32 %v1860_v54, %v1832_v60 }
 0x9d5   :  { %v1891_v33 = vadd.f32 %v1889_v29, %v1861_v45 }
 0x9d6   :  { %v7502_v39 = vpop.permute.xlu0 %3390  ;;  %v1892_v13 = vadd.f32 %v1890_v9, %v1862_v50 }
 0x9d7   :  { %3127 = vrot.lane.b32.xlu1 %v7456_v56, %s9273_s15 }
 0x9db   :  { %v1917_v25 = vpop.permute.xlu0 %1916  ;;  %3141 = vrot.lane.b32.xlu1 %v7422_v3, %s9276_s7 }
 0x9dc   :  { %v1919_v15 = vmul.f32 %v1917_v25, %v1913_v21  ;;  %v1920_v52 = vmul.f32 %v1917_v25, %v1914_v57 }
 0x9de   :  { %v7518_v14 = vadd.f32 %v1919_v15, %v1891_v33  ;;  %v7520_v46 = vadd.f32 %v1920_v52, %v1892_v13  ;;  %v9291_v33 = vld [vmem:[#allocation53_spill] sm:$0xff]  ;;  %v9292_v15 = vld [vmem:[#allocation54_spill] sm:$0xff] }
 0x9df   :  { %3143 = vrot.lane.b32.xlu1 %v7456_v56, %s9276_s7 }
 0x9e0   :  { %9277 = vst [vmem:[#allocation83_spill] sm:$0xff] %v7518_v14  ;;  %9278 = vst [vmem:[#allocation74_spill] sm:$0xff] %v7520_v46  ;;  %v9296_v14 = vld [vmem:[#allocation57_spill] sm:$0xff] }
 0x9e3   :  { %3157 = vrot.lane.b32.xlu1 %v7422_v3, %s9279_s14 }
 0x9e7   :  { %3159 = vrot.lane.b32.xlu1 %v7456_v56, %s9279_s14 }
 0x9eb   :  { %3173 = vrot.lane.b32.xlu1 %v7422_v3, %s9280_s24 }
 0x9ef   :  { %3175 = vrot.lane.b32.xlu1 %v7456_v56, %s9280_s24 }
 0x9f3   :  { %3189 = vrot.lane.b32.xlu1 %v7422_v3, %s9281_s9 }
 0x9f7   :  { %3191 = vrot.lane.b32.xlu1 %v7456_v56, %s9281_s9 }
 0x9fb   :  { %3205 = vrot.lane.b32.xlu1 %v7422_v3, %s9058_s21 }
 0x9ff   :  { %3207 = vrot.lane.b32.xlu1 %v7456_v56, %s9058_s21  ;;  %s9284_s21 = smov 114  }
 0xa03   :  { %3221 = vrot.lane.b32.xlu1 %v7422_v3, %s9059_s6 }
 0xa07   :  { %3223 = vrot.lane.b32.xlu1 %v7456_v56, %s9059_s6  ;;  %s9289_s6 = smov 94  }
 0xa0b   :  { %3237 = vrot.lane.b32.xlu1 %v7422_v3, %s9061_s26 }
 0xa0f   :  { %3239 = vrot.lane.b32.xlu1 %v7456_v56, %s9061_s26 }
 0xa13   :  { %3253 = vrot.lane.b32.xlu1 %v7422_v3, %s9282_s12 }
 0xa17   :  { %3255 = vrot.lane.b32.xlu1 %v7456_v56, %s9282_s12 }
 0xa1b   :  { %3269 = vrot.lane.b32.xlu1 %v7422_v3, %s9283_s8 }
 0xa1f   :  { %3271 = vrot.lane.b32.xlu1 %v7456_v56, %s9283_s8 }
 0xa23   :  { %3285 = vrot.lane.b32.xlu1 %v7422_v3, %s9064_s25 }
 0xa27   :  { %3287 = vrot.lane.b32.xlu1 %v7456_v56, %s9064_s25  ;;  %s9285_s25 = smov 98  }
 0xa2b   :  { %3301 = vrot.lane.b32.xlu1 %v7422_v3, %s4715_s30 }
 0xa2f   :  { %3303 = vrot.lane.b32.xlu1 %v7456_v56, %s4715_s30 }
 0xa33   :  { %3317 = vrot.lane.b32.xlu1 %v7422_v3, %s4736_s22 }
 0xa37   :  { %2781 = vperm.xlu1 %4630, %v7196_v26  }
 0xa3b   :  { %3319 = vrot.lane.b32.xlu1 %v7456_v56, %s4736_s22 }
 0xa3d   :  { %v7569_v40 = vpop.permute.xlu1 %3109 }
 0xa3f   :  { %3333 = vrot.lane.b32.xlu1 %v7422_v3, %s9284_s21 }
 0xa41   :  { %v7573_v7 = vpop.permute.xlu1 %3111 }
 0xa43   :  { %3335 = vrot.lane.b32.xlu1 %v7456_v56, %s9284_s21 }
 0xa45   :  { %v7577_v47 = vpop.permute.xlu1 %3125 }
 0xa47   :  { %3349 = vrot.lane.b32.xlu1 %v7422_v3, %s9068_s17 }
 0xa49   :  { %v7581_v12 = vpop.permute.xlu1 %3127 }
 0xa4a   :  { %v3130_v24 = vsel %vm844_vm4, %v7581_v12, %v7577_v47 }
 0xa4b   :  { %3351 = vrot.lane.b32.xlu1 %v7456_v56, %s9068_s17 }
 0xa4d   :  { %v7585_v26 = vpop.permute.xlu1 %3141 }
 0xa4f   :  { %3365 = vrot.lane.b32.xlu1 %v7422_v3, %s9069_s29 }
 0xa51   :  { %v7589_v27 = vpop.permute.xlu1 %3143 }
 0xa53   :  { %3367 = vrot.lane.b32.xlu1 %v7456_v56, %s9069_s29  ;;  %s9286_s29 = smov 97  }
 0xa55   :  { %v7593_v36 = vpop.permute.xlu1 %3157 }
 0xa57   :  { %3381 = vrot.lane.b32.xlu1 %v7422_v3, %s8879_s20 }
 0xa59   :  { %v7597_v6 = vpop.permute.xlu1 %3159 }
 0xa5b   :  { %3383 = vrot.lane.b32.xlu1 %v7456_v56, %s8879_s20  ;;  %s9287_s20 = smov 96  }
 0xa5d   :  { %v7601_v51 = vpop.permute.xlu1 %3173 }
 0xa5f   :  { %3397 = vrot.lane.b32.xlu1 %v7422_v3, %s4748_s18 }
 0xa61   :  { %v7605_v1 = vpop.permute.xlu1 %3175 }
 0xa63   :  { %3399 = vrot.lane.b32.xlu1 %v7456_v56, %s4748_s18  ;;  %s9288_s18 = smov 95  }
 0xa65   :  { %v7609_v20 = vpop.permute.xlu1 %3189 }
 0xa67   :  { %3413 = vrot.lane.b32.xlu1 %v7422_v3, %s9285_s25 }
 0xa69   :  { %v7613_v17 = vpop.permute.xlu1 %3191 }
 0xa6b   :  { %3415 = vrot.lane.b32.xlu1 %v7456_v56, %s9285_s25 }
 0xa6d   :  { %v7617_v22 = vpop.permute.xlu1 %3205 }
 0xa6f   :  { %3429 = vrot.lane.b32.xlu1 %v7422_v3, %s9286_s29 }
 0xa71   :  { %v7621_v4 = vpop.permute.xlu1 %3207 }
 0xa73   :  { %3431 = vrot.lane.b32.xlu1 %v7456_v56, %s9286_s29 }
 0xa75   :  { %v7625_v48 = vpop.permute.xlu1 %3221 }
 0xa77   :  { %3445 = vrot.lane.b32.xlu1 %v7422_v3, %s9287_s20 }
 0xa79   :  { %v7629_v31 = vpop.permute.xlu1 %3223 }
 0xa7b   :  { %3447 = vrot.lane.b32.xlu1 %v7456_v56, %s9287_s20 }
 0xa7d   :  { %v7633_v62 = vpop.permute.xlu1 %3237 }
 0xa7f   :  { %3461 = vrot.lane.b32.xlu1 %v7422_v3, %s9288_s18 }
 0xa81   :  { %v7637_v54 = vpop.permute.xlu1 %3239 }
 0xa83   :  { %3463 = vrot.lane.b32.xlu1 %v7456_v56, %s9288_s18 }
 0xa85   :  { %v7641_v58 = vpop.permute.xlu1 %3253 }
 0xa87   :  { %3477 = vrot.lane.b32.xlu1 %v7422_v3, %s9289_s6 }
 0xa89   :  { %v7645_v28 = vpop.permute.xlu1 %3255 }
 0xa8b   :  { %3479 = vrot.lane.b32.xlu1 %v7456_v56, %s9289_s6 }
 0xa8d   :  { %v7649_v44 = vpop.permute.xlu1 %3269 }
 0xa8f   :  { %3496 = vperm.xlu1 %4630, %v7231_v38  }
 0xa91   :  { %v7653_v37 = vpop.permute.xlu1 %3271 }
 0xa93   :  { %4656 = vset.pattern.permute.xlu1 %v9206_v0 }
 0xa94   :  { %3510 = vperm.xlu1 %4656, %v7231_v38  }
 0xa95   :  { %v7658_v30 = vpop.permute.xlu1 %3285 }
 0xa98   :  { %4658 = vset.pattern.permute.xlu1 %v9175_v42 }
 0xa99   :  { %3542 = vperm.xlu1 %4658, %v7231_v38   ;;  %v7662_v60 = vpop.permute.xlu1 %3287 }
 0xa9d   :  { %4659 = vset.pattern.permute.xlu1 %v9177_v34  ;;  %v7666_v29 = vpop.permute.xlu1 %3301 }
 0xa9e   :  { %3558 = vperm.xlu1 %4659, %v7231_v38  }
 0xaa1   :  { %v7670_v42 = vpop.permute.xlu1 %3303 }
 0xaa2   :  { %4661 = vset.pattern.permute.xlu1 %v9180_v10 }
 0xaa3   :  { %3590 = vperm.xlu1 %4661, %v7231_v38  }
 0xaa5   :  { %v7675_v9 = vpop.permute.xlu1 %3317 }
 0xaa7   :  { %4662 = vset.pattern.permute.xlu1 %v9176_v63 }
 0xaa8   :  { %3606 = vperm.xlu1 %4662, %v7231_v38  }
 0xaac   :  { %4664 = vset.pattern.permute.xlu1 %v9206_v0 }
 0xaad   :  { %3821 = vperm.xlu1 %4664, %v7244_v61  }
 0xab1   :  { %4665 = vset.pattern.permute.xlu1 %v9207_v5 }
 0xab2   :  { %3837 = vperm.xlu1 %4665, %v7244_v61  }
 0xab6   :  { %4666 = vset.pattern.permute.xlu1 %v9206_v0  ;;  %v7679_v45 = vpop.permute.xlu1 %2781 }
 0xab7   :  { %9290 = vst [vmem:[#allocation89_spill] sm:$0xff] %v7679_v45  ;;  %4132 = vperm.xlu1 %4666, %v7251_v23   ;;  %v9295_v45 = vld [vmem:[#allocation56_spill] sm:$0xff] }
 0xaba   :  { %v7682_v50 = vpop.permute.xlu1 %3319 }
 0xabb   :  { %4668 = vset.pattern.permute.xlu1 %v9207_v5  ;;  %v3114_v5 = vsel %vm798_vm2, %v7573_v7, %v7569_v40 }
 0xabc   :  { %4148 = vperm.xlu1 %4668, %v7251_v23   ;;  %v3115_v13 = vmul.f32 %v3114_v5, %v9291_v33  ;;  %v9294_v33 = vld [vmem:[#allocation28_spill] sm:$0xff] }
 0xabe   :  { %v7686_v38 = vpop.permute.xlu1 %3333 }
 0xac0   :  { %4669 = vset.pattern.permute.xlu1 %v9177_v34  ;;  %v3113_v34 = vsel %vm798_vm2, %v7569_v40, %v7573_v7  ;;  %v3146_v40 = vsel %vm874_vm3, %v7589_v27, %v7585_v26 }
 0xac1   :  { %3869 = vperm.xlu1 %4669, %v7244_v61   ;;  %v3116_v52 = vmul.f32 %v3113_v34, %v9292_v15  ;;  %v9293_v34 = vld [vmem:[#allocation61_spill] sm:$0xff]  ;;  %v3147_v46 = vmul.f32 %v3146_v40, %v9295_v45  ;;  %v9299_v40 = vld [vmem:[#allocation63_spill] sm:$0xff] }
 0xac2   :  { %v7690_v21 = vpop.permute.xlu1 %3335  ;;  %v3131_v5 = vmul.f32 %v3130_v24, %v9293_v34  ;;  %v3162_v24 = vsel %vm920_vm15, %v7597_v6, %v7593_v36 }
 0xac5   :  { %4670 = vset.pattern.permute.xlu1 %v9174_v53 }
 0xac6   :  { %3885 = vperm.xlu1 %4670, %v7244_v61   ;;  %v7694_v0 = vpop.permute.xlu1 %3349 }
 0xaca   :  { %4672 = vset.pattern.permute.xlu1 %v9180_v10  ;;  %v7697_v57 = vpop.permute.xlu1 %3351 }
 0xacb   :  { %3901 = vperm.xlu1 %4672, %v7244_v61   ;;  %v3129_v61 = vsel %vm844_vm4, %v7577_v47, %v7581_v12  ;;  %v3121_v47 = vmul.f32 %v7451_v55, %v3115_v13  ;;  %v3122_v12 = vmul.f32 %v7451_v55, %v3116_v52  ;;  %v3108_v55 = vmul.f32 %v7186_v41, %v7456_v56  ;;  %v9297_v56 = vld [vmem:[#allocation66_spill] sm:$0xff]  ;;  %v9298_v52 = vld [vmem:[#allocation39_spill] sm:$0xff] }
 0xacc   :  { %v3132_v15 = vmul.f32 %v3129_v61, %v9294_v33  ;;  %v3177_v13 = vsel %vm950_vm5, %v7601_v51, %v7605_v1 }
 0xacd   :  { %v3124_v61 = vadd.f32 %v3122_v12, %v3108_v55  ;;  %v9302_v12 = vld [vmem:[#allocation81_spill] sm:$0xff] }
 0xace   :  { %v7708_v25 = vpop.permute.xlu1 %3365  ;;  %v3138_v45 = vmul.f32 %v7188_v49, %v3132_v15 }
 0xacf   :  { %4673 = vset.pattern.permute.xlu1 %v9174_v53  ;;  %v3145_v53 = vsel %vm874_vm3, %v7585_v26, %v7589_v27  ;;  %v3161_v26 = vsel %vm920_vm15, %v7593_v36, %v7597_v6  ;;  %v3178_v36 = vsel %vm950_vm5, %v7605_v1, %v7601_v51  ;;  %v3163_v6 = vmul.f32 %v3162_v24, %v9297_v56 }
 0xad0   :  { %4196 = vperm.xlu1 %4673, %v7251_v23   ;;  %v3148_v11 = vmul.f32 %v3145_v53, %v9296_v14  ;;  %v3137_v14 = vmul.f32 %v7188_v49, %v3131_v5  ;;  %v3153_v53 = vmul.f32 %v7190_v59, %v3147_v46  ;;  %v3179_v34 = vmul.f32 %v3178_v36, %v9299_v40  ;;  %v9300_v5 = vld [vmem:[#allocation64_spill] sm:$0xff] }
 0xad1   :  { %v3180_v33 = vmul.f32 %v3177_v13, %v9300_v5  ;;  %v3193_v51 = vsel %vm996_vm9, %v7609_v20, %v7613_v17  ;;  %v3194_v1 = vsel %vm996_vm9, %v7613_v17, %v7609_v20  ;;  %v3210_v20 = vsel %vm63_vm6, %v7621_v4, %v7617_v22  ;;  %v9301_v17 = vld [vmem:[#allocation73_spill] sm:$0xff]  ;;  %v9310_v40 = vld [vmem:[#allocation8_spill] sm:$0xff] }
 0xad2   :  { %v7730_v7 = vpop.permute.xlu1 %3367  ;;  %v3154_v49 = vmul.f32 %v7190_v59, %v3148_v11  ;;  %v3169_v59 = vmul.f32 %v7194_v35, %v3163_v6  ;;  %vm9305_vm3 = vcmp.lt.s32.totalorder %v4966_v19, 15  ;;  %v9307_v6 = vld [vmem:[#allocation4_spill] sm:$0xff]  ;;  %v9311_v5 = vld [vmem:[#allocation9_spill] sm:$0xff]  ;;  %vm9313_vm9 = vcmp.lt.s32.totalorder %v4966_v19, 2 }
 0xad3   :  { %vm9306_vm5 = vmmov %vm9305_vm3 }
 0xad4   :  { %4675 = vset.pattern.permute.xlu1 %v9180_v10  ;;  %v3107_v10 = vmul.f32 %v7186_v41, %v7422_v3  ;;  %v3164_v41 = vmul.f32 %v3161_v26, %v9298_v52  ;;  %v3196_v26 = vmul.f32 %v3193_v51, %v9302_v12  ;;  %vm9314_vm4 = vmmov %vm9313_vm9 }
 0xad5   :  { %4212 = vperm.xlu1 %4675, %v7251_v23  }
 0xad6   :  { %v7752_v27 = vpop.permute.xlu1 %3381  ;;  %v3123_v3 = vadd.f32 %v3121_v47, %v3107_v10  ;;  %v3170_v15 = vmul.f32 %v7194_v35, %v3164_v41  ;;  %v3209_v47 = vsel %vm63_vm6, %v7617_v22, %v7621_v4  ;;  %v3185_v10 = vmul.f32 %v7212_v16, %v3179_v34  ;;  %v9308_v41 = vld [vmem:[#allocation5_spill] sm:$0xff] }
 0xad7   :  { %v3186_v35 = vmul.f32 %v7212_v16, %v3180_v33  ;;  %v3212_v13 = vmul.f32 %v3209_v47, %v9121_v18  ;;  %vm9303_vm6 = vcmp.lt.s32.totalorder %v4966_v19, 16  ;;  %v3242_v18 = vsel %vm9306_vm5, %v7637_v54, %v7633_v62 }
 0xad8   :  { %v3139_v11 = vadd.f32 %v3137_v14, %v3123_v3  ;;  %v3225_v22 = vsel %vm9303_vm6, %v7625_v48, %v7629_v31  ;;  %vm9304_vm2 = vmmov %vm9303_vm6  ;;  %v3243_v34 = vmul.f32 %v3242_v18, %v9310_v40  ;;  %v3274_v47 = vsel %vm9314_vm4, %v7653_v37, %v7649_v44  ;;  %v9326_v40 = vld [vmem:[#allocation12_spill] sm:$0xff] }
 0xad9   :  { %4676 = vset.pattern.permute.xlu1 %v9176_v63  ;;  %v3140_v63 = vadd.f32 %v3138_v45, %v3124_v61  ;;  %v3211_v45 = vmul.f32 %v3210_v20, %v9120_v43  ;;  %v3226_v4 = vsel %vm9304_vm2, %v7629_v31, %v7625_v48  ;;  %v3241_v43 = vsel %vm9305_vm3, %v7633_v62, %v7637_v54 }
 0xada   :  { %4228 = vperm.xlu1 %4676, %v7251_v23   ;;  %v7780_v46 = vpop.permute.xlu1 %3383  ;;  %v3195_v23 = vmul.f32 %v3194_v1, %v9301_v17  ;;  %v3155_v24 = vadd.f32 %v3153_v53, %v3139_v11  ;;  %v3227_v52 = vmul.f32 %v3226_v4, %v9307_v6  ;;  %v3228_v48 = vmul.f32 %v3225_v22, %v9308_v41  ;;  %v9309_v53 = vld [vmem:[#allocation143_spill] sm:$0xff]  ;;  %v9312_v11 = vld [vmem:[#allocation45_spill] sm:$0xff]  ;;  %v9315_v17 = vld [vmem:[#allocation72_spill] sm:$0xff] }
 0xadb   :  { %v3156_v55 = vadd.f32 %v3154_v49, %v3140_v63  ;;  %v3218_v49 = vmul.f32 %v9309_v53, %v3212_v13  ;;  %v3244_v33 = vmul.f32 %v3241_v43, %v9311_v5  ;;  %v3257_v62 = vsel %vm1098_vm10, %v7641_v58, %v7645_v28  ;;  %v9319_v13 = vld [vmem:[#allocation69_spill] sm:$0xff]  ;;  %v9324_v41 = vld [vmem:[#allocation11_spill] sm:$0xff] }
 0xadc   :  { %v3171_v36 = vadd.f32 %v3169_v59, %v3155_v24  ;;  %v3201_v56 = vmul.f32 %v7217_v8, %v3195_v23  ;;  %v3258_v54 = vsel %vm1098_vm10, %v7645_v28, %v7641_v58  ;;  %v3233_v63 = vmul.f32 %v9312_v11, %v3227_v52  ;;  %v9316_v28 = vld [vmem:[#allocation70_spill] sm:$0xff]  ;;  %v9317_v24 = vld [vmem:[#allocation85_spill] sm:$0xff] }
 0xadd   :  { %v3172_v16 = vadd.f32 %v3170_v15, %v3156_v55  ;;  %v3234_v59 = vmul.f32 %v9312_v11, %v3228_v48  ;;  %v3273_v15 = vsel %vm9313_vm9, %v7649_v44, %v7653_v37  ;;  %v3259_v58 = vmul.f32 %v3258_v54, %v9315_v17  ;;  %v9327_v5 = vld [vmem:[#allocation13_spill] sm:$0xff]  ;;  %v9334_v17 = vld [vmem:[#allocation80_spill] sm:$0xff] }
 0xade   :  { %v7796_v14 = vpop.permute.xlu1 %3397  ;;  %4678 = vset.pattern.permute.xlu1 %v9179_v2  ;;  %v3202_v2 = vmul.f32 %v7217_v8, %v3196_v26  ;;  %v3187_v3 = vadd.f32 %v3185_v10, %v3171_v36  ;;  %v3217_v8 = vmul.f32 %v9309_v53, %v3211_v45  ;;  %v3260_v23 = vmul.f32 %v3257_v62, %v9316_v28  ;;  %v9325_v53 = vld [vmem:[#allocation140_spill] sm:$0xff] }
 0xadf   :  { %v3188_v61 = vadd.f32 %v3186_v35, %v3172_v16  ;;  %v3249_v55 = vmul.f32 %v9317_v24, %v3243_v34  ;;  %v3250_v10 = vmul.f32 %v9317_v24, %v3244_v33  ;;  %v9318_v35 = vld [vmem:[#allocation68_spill] sm:$0xff]  ;;  %v3276_v22 = vmul.f32 %v3273_v15, %v9319_v13 }
 0xae0   :  { %v3203_v51 = vadd.f32 %v3201_v56, %v3187_v3  ;;  %v3275_v45 = vmul.f32 %v3274_v47, %v9318_v35  ;;  %vm9320_vm10 = vcmp.lt.s32.totalorder %v4966_v19, 1  ;;  %v7863_v56 = vpop.permute.xlu0 %3406  ;;  %v3305_v6 = vsel %vm223_vm1, %v7666_v29, %v7670_v42 }
 0xae1   :  { %v3204_v1 = vadd.f32 %v3202_v2, %v3188_v61  ;;  %v3289_v44 = vsel %vm9320_vm10, %v7658_v30, %v7662_v60  ;;  %vm9321_vm15 = vmmov %vm9320_vm10  ;;  %v9322_v2 = vld [vmem:[#allocation87_spill] sm:$0xff]  ;;  %v3307_v34 = vmul.f32 %v3305_v6, %v9326_v40  ;;  %v3321_v62 = vsel %vm9328_vm11, %v7675_v9, %v7682_v50 }
 0xae2   :  { %v7821_v31 = vpop.permute.xlu1 %3399  ;;  %v3219_v12 = vadd.f32 %v3217_v8, %v3203_v51  ;;  %v3290_v37 = vsel %vm9321_vm15, %v7662_v60, %v7658_v30  ;;  %v3265_v43 = vmul.f32 %v9322_v2, %v3259_v58  ;;  %v3266_v18 = vmul.f32 %v9322_v2, %v3260_v23  ;;  %v9323_v60 = vld [vmem:[#allocation10_spill] sm:$0xff] }
 0xae3   :  { %v3220_v26 = vadd.f32 %v3218_v49, %v3204_v1  ;;  %v3306_v30 = vsel %vm223_vm1, %v7670_v42, %v7666_v29  ;;  %v3291_v52 = vmul.f32 %v3290_v37, %v9323_v60  ;;  %v3292_v48 = vmul.f32 %v3289_v44, %v9324_v41  ;;  %vm9329_vm1 = vmmov %vm9328_vm11  ;;  %v9330_v1 = vld [vmem:[#allocation47_spill] sm:$0xff] }
 0xae4   :  { %v3235_v4 = vadd.f32 %v3233_v63, %v3219_v12  ;;  %v3281_v8 = vmul.f32 %v9325_v53, %v3275_v45  ;;  %v3282_v49 = vmul.f32 %v9325_v53, %v3276_v22  ;;  %v3308_v33 = vmul.f32 %v3306_v30, %v9327_v5  ;;  %v7899_v47 = vpop.permute.xlu0 %3422  ;;  %v9335_v12 = vld [vmem:[#allocation78_spill] sm:$0xff]  ;;  %v9337_v45 = vld [vmem:[#allocation105_spill] sm:$0xff]  ;;  %v9338_v37 = vld [vmem:[#allocation75_spill] sm:$0xff] }
 0xae5   :  { %v3236_v36 = vadd.f32 %v3234_v59, %v3220_v26  ;;  %v3322_v29 = vsel %vm9329_vm1, %v7682_v50, %v7675_v9  ;;  %v3297_v11 = vmul.f32 %v9330_v1, %v3291_v52  ;;  %v3298_v63 = vmul.f32 %v9330_v1, %v3292_v48  ;;  %v9333_v9 = vld [vmem:[#allocation79_spill] sm:$0xff]  ;;  %v9341_v48 = vld [vmem:[#allocation6_spill] sm:$0xff]  ;;  %v9342_v53 = vld [vmem:[#allocation16_spill] sm:$0xff] }
 0xae6   :  { %v7845_v20 = vpop.permute.xlu1 %3413  ;;  %v3251_v3 = vadd.f32 %v3249_v55, %v3235_v4  ;;  %v3337_v59 = vsel %vm9331_vm0, %v7686_v38, %v7690_v21  ;;  %v3338_v15 = vsel %vm9332_vm7, %v7690_v21, %v7686_v38  ;;  %v3323_v50 = vmul.f32 %v3321_v62, %v9333_v9  ;;  %v9340_v30 = vld [vmem:[#allocation15_spill] sm:$0xff]  ;;  %v9351_v9 = vld [vmem:[#allocation49_spill] sm:$0xff] }
 0xae7   :  { %v3252_v61 = vadd.f32 %v3250_v10, %v3236_v36  ;;  %v3324_v58 = vmul.f32 %v3322_v29, %v9334_v17  ;;  %v3313_v26 = vmul.f32 %v9335_v12, %v3307_v34  ;;  %v3314_v24 = vmul.f32 %v9335_v12, %v3308_v33  ;;  %v9336_v10 = vld [vmem:[#allocation97_spill] sm:$0xff]  ;;  %v9353_v12 = vld [vmem:[#allocation42_spill] sm:$0xff] }
 0xae8   :  { %v3267_v54 = vadd.f32 %v3265_v43, %v3251_v3  ;;  %v3339_v35 = vmul.f32 %v3337_v59, %v9336_v10  ;;  %v3340_v13 = vmul.f32 %v3338_v15, %v9337_v45  ;;  %v3353_v38 = vsel %vm263_vm12, %v7694_v0, %v7697_v57  ;;  %v3439_v60 = vpop.permute.xlu0 %3438  ;;  %v9346_v33 = vld [vmem:[#allocation145_spill] sm:$0xff] }
 0xae9   :  { %v3268_v51 = vadd.f32 %v3266_v18, %v3252_v61  ;;  %v3354_v21 = vsel %vm263_vm12, %v7697_v57, %v7694_v0  ;;  %v3329_v4 = vmul.f32 %v9338_v37, %v3323_v50  ;;  %v3330_v36 = vmul.f32 %v9338_v37, %v3324_v58  ;;  %v9339_v18 = vld [vmem:[#allocation14_spill] sm:$0xff]  ;;  %v9358_v37 = vld [vmem:[#allocation95_spill] sm:$0xff] }
 0xaea   :  { %v7861_v16 = vpop.permute.xlu1 %3415  ;;  %v3283_v28 = vadd.f32 %v3281_v8, %v3267_v54  ;;  %v3369_v2 = vsel %vm303_vm8, %v7708_v25, %v7730_v7  ;;  %v3370_v43 = vsel %vm303_vm8, %v7730_v7, %v7708_v25  ;;  %v3355_v6 = vmul.f32 %v3353_v38, %v9339_v18 }
 0xaeb   :  { %v3284_v23 = vadd.f32 %v3282_v49, %v3268_v51  ;;  %v3356_v0 = vmul.f32 %v3354_v21, %v9340_v30  ;;  %v3345_v3 = vmul.f32 %v9341_v48, %v3339_v35  ;;  %v3346_v61 = vmul.f32 %v9341_v48, %v3340_v13  ;;  %v9343_v49 = vld [vmem:[#allocation17_spill] sm:$0xff] }
 0xaec   :  { %v3299_v22 = vadd.f32 %v3297_v11, %v3283_v28  ;;  %v3371_v8 = vmul.f32 %v3369_v2, %v9342_v53  ;;  %v3372_v40 = vmul.f32 %v3370_v43, %v9343_v49  ;;  %vm9344_vm8 = vcmp.lt.s32.totalorder %v4966_v19, 111  ;;  %v9349_v11 = vld [vmem:[#allocation18_spill] sm:$0xff]  ;;  %v7953_v58 = vpop.permute.xlu0 %1985  ;;  %v9366_v53 = vld [vmem:[#allocation103_spill] sm:$0xff] }
 0xaed   :  { %v3300_v44 = vadd.f32 %v3298_v63, %v3284_v23  ;;  %v3385_v25 = vsel %vm9344_vm8, %v7752_v27, %v7780_v46  ;;  %vm9345_vm12 = vmmov %vm9344_vm8  ;;  %v3361_v62 = vmul.f32 %v9346_v33, %v3355_v6  ;;  %v3362_v29 = vmul.f32 %v9346_v33, %v3356_v0  ;;  %v9352_v28 = vld [vmem:[#allocation46_spill] sm:$0xff]  ;;  %v9362_v6 = vld [vmem:[#allocation41_spill] sm:$0xff] }
 0xaee   :  { %v3430_v42 = vpop.permute.xlu1 %3429  ;;  %v3315_v52 = vadd.f32 %v3313_v26, %v3299_v22  ;;  %v3386_v7 = vsel %vm9345_vm12, %v7780_v46, %v7752_v27  ;;  %v3401_v54 = vsel %vm9347_vm13, %v7796_v14, %v7821_v31  ;;  %v3402_v51 = vsel %vm9348_vm14, %v7821_v31, %v7796_v14  ;;  %v9350_v27 = vld [vmem:[#allocation19_spill] sm:$0xff] }
 0xaef   :  { %v3316_v41 = vadd.f32 %v3314_v24, %v3300_v44  ;;  %v3387_v63 = vmul.f32 %v3385_v25, %v9349_v11  ;;  %v3388_v46 = vmul.f32 %v3386_v7, %v9350_v27  ;;  %v3377_v50 = vmul.f32 %v9351_v9, %v3371_v8 }
 0xaf0   :  { %v3331_v34 = vadd.f32 %v3329_v4, %v3315_v52  ;;  %v3378_v17 = vmul.f32 %v9351_v9, %v3372_v40  ;;  %v3403_v23 = vmul.f32 %v3401_v54, %v9352_v28  ;;  %v3404_v26 = vmul.f32 %v3402_v51, %v9353_v12 }
 0xaf1   :  { %v3332_v5 = vadd.f32 %v3330_v36, %v3316_v41  ;;  %vm9354_vm6 = vcmp.lt.s32.totalorder %v4966_v19, 98  ;;  %v3393_v45 = vmul.f32 %v7502_v39, %v3387_v63  ;;  %v3394_v13 = vmul.f32 %v7502_v39, %v3388_v46  ;;  %v9359_v36 = vld [vmem:[#allocation96_spill] sm:$0xff] }
 0xaf2   :  { %v3432_v55 = vpop.permute.xlu1 %3431  ;;  %v3347_v59 = vadd.f32 %v3345_v3, %v3331_v34  ;;  %v3417_v14 = vsel %vm9354_vm6, %v7845_v20, %v7861_v16  ;;  %vm9355_vm2 = vmmov %vm9354_vm6  ;;  %vm9356_vm3 = vcmp.lt.s32.totalorder %v4966_v19, 97  ;;  %v3410_v43 = vmul.f32 %v7863_v56, %v3404_v26  ;;  %v9373_v26 = vld [vmem:[#allocation113_spill] sm:$0xff] }
 0xaf3   :  { %v3348_v15 = vadd.f32 %v3346_v61, %v3332_v5  ;;  %v3418_v31 = vsel %vm9355_vm2, %v7861_v16, %v7845_v20  ;;  %v3433_v38 = vsel %vm9356_vm3, %v3430_v42, %v3432_v55  ;;  %vm9357_vm5 = vmmov %vm9356_vm3  ;;  %v3419_v4 = vmul.f32 %v3417_v14, %v9358_v37  ;;  %v3455_v20 = vpop.permute.xlu0 %3454  ;;  %v9368_v5 = vld [vmem:[#allocation38_spill] sm:$0xff] }
 0xaf4   :  { %v3363_v24 = vadd.f32 %v3361_v62, %v3347_v59  ;;  %v3434_v21 = vsel %vm9357_vm5, %v3432_v55, %v3430_v42  ;;  %v3420_v2 = vmul.f32 %v3418_v31, %v9359_v36  ;;  %v3409_v16 = vmul.f32 %v7863_v56, %v3403_v23  ;;  %v9363_v42 = vld [vmem:[#allocation40_spill] sm:$0xff] }
 0xaf5   :  { %v3364_v10 = vadd.f32 %v3362_v29, %v3348_v15  ;;  %vm9360_vm9 = vcmp.lt.s32.totalorder %v4966_v19, 96  ;;  %v3435_v30 = vmul.f32 %v3433_v38, %v9362_v6  ;;  %v3436_v55 = vmul.f32 %v3434_v21, %v9363_v42  ;;  %v9369_v62 = vld [vmem:[#allocation44_spill] sm:$0xff] }
 0xaf6   :  { %v3446_v57 = vpop.permute.xlu1 %3445  ;;  %v3379_v22 = vadd.f32 %v3377_v50, %v3363_v24  ;;  %vm9361_vm4 = vmmov %vm9360_vm9  ;;  %vm9364_vm10 = vcmp.lt.s32.totalorder %v4966_v19, 95  ;;  %v3425_v56 = vmul.f32 %v7899_v47, %v3419_v4  ;;  %v3426_v61 = vmul.f32 %v7899_v47, %v3420_v2  ;;  %v9372_v23 = vld [vmem:[#allocation112_spill] sm:$0xff]  ;;  %v9375_v2 = vld [vmem:[#allocation30_spill] sm:$0xff] }
 0xaf7   :  { %v3380_v44 = vadd.f32 %v3378_v17, %v3364_v10  ;;  %vm9365_vm15 = vmmov %vm9364_vm10  ;;  %v3441_v7 = vmul.f32 %v3439_v60, %v3435_v30  ;;  %v3442_v34 = vmul.f32 %v3439_v60, %v3436_v55  ;;  %v3471_v51 = vpop.permute.xlu0 %3470  ;;  %vm9370_vm11 = vcmp.lt.s32.totalorder %v4966_v19, 94  ;;  %v9374_v19 = vld [vmem:[#allocation3_spill] sm:$0xff] }
 0xaf8   :  { %v3395_v52 = vadd.f32 %v3393_v45, %v3379_v22  ;;  %vm9371_vm1 = vmmov %vm9370_vm11 }
 0xaf9   :  { %v3396_v41 = vadd.f32 %v3394_v13, %v3380_v44 }
 0xafa   :  { %v3448_v1 = vpop.permute.xlu1 %3447  ;;  %v3411_v40 = vadd.f32 %v3409_v16, %v3395_v52  ;;  %v9376_v52 = vld [vmem:[#allocation31_spill] sm:$0xff] }
 0xafb   :  { %v3449_v39 = vsel %vm9360_vm9, %v3446_v57, %v3448_v1  ;;  %v3450_v18 = vsel %vm9361_vm4, %v3448_v1, %v3446_v57  ;;  %v9367_v57 = vld [vmem:[#allocation104_spill] sm:$0xff]  ;;  %v3412_v25 = vadd.f32 %v3410_v43, %v3396_v41  ;;  %v3487_v31 = vpop.permute.xlu0 %3486 }
 0xafc   :  { %v3451_v8 = vmul.f32 %v3449_v39, %v9366_v53  ;;  %v3452_v49 = vmul.f32 %v3450_v18, %v9367_v57  ;;  %v3427_v1 = vadd.f32 %v3425_v56, %v3411_v40 }
 0xafd   :  { %v3428_v11 = vadd.f32 %v3426_v61, %v3412_v25 }
 0xafe   :  { %v3462_v35 = vpop.permute.xlu1 %3461  ;;  %v3457_v63 = vmul.f32 %v3455_v20, %v3451_v8  ;;  %v3458_v27 = vmul.f32 %v3455_v20, %v3452_v49  ;;  %v3443_v46 = vadd.f32 %v3441_v7, %v3427_v1  ;;  %v9377_v49 = vld [vmem:[#allocation32_spill] sm:$0xff] }
 0xaff   :  { %v3444_v47 = vadd.f32 %v3442_v34, %v3428_v11  ;;  %v3527_v55 = vpop.permute.xlu0 %3526  ;;  %v9378_v34 = vld [vmem:[#allocation33_spill] sm:$0xff] }
 0xb00   :  { %v3459_v17 = vadd.f32 %v3457_v63, %v3443_v46  ;;  %v9379_v46 = vld [vmem:[#allocation34_spill] sm:$0xff] }
 0xb01   :  { %v3460_v28 = vadd.f32 %v3458_v27, %v3444_v47 }
 0xb02   :  { %v3464_v0 = vpop.permute.xlu1 %3463 }
 0xb03   :  { %v3465_v48 = vsel %vm9364_vm10, %v3462_v35, %v3464_v0  ;;  %v3466_v3 = vsel %vm9365_vm15, %v3464_v0, %v3462_v35  ;;  %v3575_v63 = vpop.permute.xlu0 %3574 }
 0xb04   :  { %v3467_v33 = vmul.f32 %v3465_v48, %v9368_v5  ;;  %v3468_v29 = vmul.f32 %v3466_v3, %v9369_v62 }
 0xb06   :  { %v3478_v54 = vpop.permute.xlu1 %3477  ;;  %v3473_v59 = vmul.f32 %v3471_v51, %v3467_v33  ;;  %v3474_v15 = vmul.f32 %v3471_v51, %v3468_v29 }
 0xb08   :  { %v3475_v24 = vadd.f32 %v3473_v59, %v3459_v17  ;;  %v3476_v10 = vadd.f32 %v3474_v15, %v3460_v28 }
 0xb0a   :  { %v3480_v9 = vpop.permute.xlu1 %3479 }
 0xb0b   :  { %v3481_v50 = vsel %vm9370_vm11, %v3478_v54, %v3480_v9  ;;  %v3482_v60 = vsel %vm9371_vm1, %v3480_v9, %v3478_v54 }
 0xb0c   :  { %v3483_v12 = vmul.f32 %v3481_v50, %v9372_v23  ;;  %v3484_v14 = vmul.f32 %v3482_v60, %v9373_v26  ;;  %v9380_v23 = vld [vmem:[#allocation36_spill] sm:$0xff] }
 0xb0e   :  { %v3489_v35 = vmul.f32 %v3487_v31, %v3483_v12  ;;  %v3490_v45 = vmul.f32 %v3487_v31, %v3484_v14  ;;  %v3497_v13 = vpop.permute.xlu1 %3496 }
 0xb10   :  { %v3491_v38 = vadd.f32 %v3489_v35, %v3475_v24  ;;  %v3492_v21 = vadd.f32 %v3490_v45, %v3476_v10  ;;  %v4486_v45 = vld [vmem:[%s8421_s1 + $0x43] ss:$8 sm:$0x3] }
 0xb12   :  { %v3506_v22 = vrot.slane %v3492_v21, %v9162_v32  ;;  %v3502_v44 = vrot.slane %v3491_v38, %v9162_v32  ;;  %v3520_v37 = vrot.slane %v3492_v21, %v9374_v19  ;;  %v3516_v4 = vrot.slane %v3491_v38, %v9374_v19 }
 0xb13   :  { %v3511_v36 = vpop.permute.xlu1 %3510  ;;  %v3536_v20 = vrot.slane %v3492_v21, %v9375_v2  ;;  %v3532_v16 = vrot.slane %v3491_v38, %v9375_v2  ;;  %v3552_v41 = vrot.slane %v3492_v21, %v9376_v52  ;;  %v3548_v56 = vrot.slane %v3491_v38, %v9376_v52 }
 0xb14   :  { %v3507_v43 = vmul.f32 %v3502_v44, %v3497_v13  ;;  %v3508_v39 = vmul.f32 %v3506_v22, %v3497_v13  ;;  %v3521_v18 = vmul.f32 %v3516_v4, %v3511_v36  ;;  %v3522_v6 = vmul.f32 %v3520_v37, %v3511_v36 }
 0xb15   :  { %v3538_v0 = vmul.f32 %v3536_v20, %v3527_v55  ;;  %v3537_v3 = vmul.f32 %v3532_v16, %v3527_v55  ;;  %v3568_v40 = vrot.slane %v3492_v21, %v9377_v49  ;;  %v3564_v25 = vrot.slane %v3491_v38, %v9377_v49  ;;  %v4488_v20 = vld [vmem:[%s8421_s1 + $0x45] ss:$8 sm:$0x3] }
 0xb16   :  { %v3523_v30 = vadd.f32 %v3521_v18, %v3507_v43  ;;  %v3524_v42 = vadd.f32 %v3522_v6, %v3508_v39  ;;  %v3584_v5 = vrot.slane %v3492_v21, %v9378_v34  ;;  %v3580_v33 = vrot.slane %v3491_v38, %v9378_v34  ;;  %v9381_v39 = vld [vmem:[#allocation84_spill] sm:$0xff]  ;;  %v9382_v6 = vld [vmem:[#allocation122_spill] sm:$0xff] }
 0xb17   :  { %v3600_v47 = vrot.slane %v3492_v21, %v9379_v46  ;;  %v3596_v9 = vrot.slane %v3491_v38, %v9379_v46  ;;  %v3616_v12 = vrot.slane %v3492_v21, %v9380_v23  ;;  %v3612_v26 = vrot.slane %v3491_v38, %v9380_v23  ;;  %v4487_v38 = vld [vmem:[%s8421_s1 + $0x44] ss:$8 sm:$0x3]  ;;  %v3808_v21 = vpop.permute.xlu0 %3807 }
 0xb18   :  { %v3543_v48 = vpop.permute.xlu1 %3542  ;;  %v3540_v61 = vadd.f32 %v3538_v0, %v3524_v42  ;;  %v3539_v53 = vadd.f32 %v3537_v3, %v3523_v30  ;;  %v3586_v27 = vmul.f32 %v3584_v5, %v3575_v63  ;;  %v3585_v15 = vmul.f32 %v3580_v33, %v3575_v63  ;;  %v9387_v5 = vld [vmem:[#allocation74_spill] sm:$0xff] }
 0xb19   :  { %v3553_v8 = vmul.f32 %v3548_v56, %v3543_v48  ;;  %v3554_v57 = vmul.f32 %v3552_v41, %v3543_v48  ;;  %v1929_v44 = vrot.slane %v4486_v45, %v9162_v32  ;;  %v1933_v37 = vrot.slane %v4486_v45, %v9374_v19  ;;  %v4489_v41 = vld [vmem:[%s8421_s1 + $0x46] ss:$8 sm:$0x3]  ;;  %v9383_v48 = vld [vmem:[#allocation149_spill] sm:$0xff] }
 0xb1a   :  { %v1952_v16 = vrot.slane %v4487_v38, %v9162_v32  ;;  %v1956_v43 = vrot.slane %v4487_v38, %v9374_v19  ;;  %v1975_v42 = vrot.slane %v4488_v20, %v9162_v32  ;;  %v1979_v55 = vrot.slane %v4488_v20, %v9374_v19  ;;  %v4490_v63 = vld [vmem:[%s8421_s1 + $0x47] ss:$8 sm:$0x3]  ;;  %v9395_v20 = vld [vmem:[#allocation157_spill] sm:$0xff] }
 0xb1b   :  { %v3555_v62 = vadd.f32 %v3553_v8, %v3539_v53  ;;  %v3556_v29 = vadd.f32 %v3554_v57, %v3540_v61  ;;  %v1936_v18 = vmul.f32 %v1929_v44, %v9381_v39  ;;  %v1937_v30 = vmul.f32 %v1933_v37, %v9382_v6  ;;  %v8041_v61 = vpop.permute.xlu0 %4118  ;;  %v9384_v53 = vld [vmem:[#allocation7_spill] sm:$0xff]  ;;  %v9385_v57 = vld [vmem:[#allocation77_spill] sm:$0xff]  ;;  %v9393_v44 = vld [vmem:[#allocation60_spill] sm:$0xff] }
 0xb1c   :  { %v1959_v8 = vmul.f32 %v1952_v16, %v9384_v53  ;;  %v3827_v37 = vrot.slane %v9393_v44, %v9374_v19  ;;  %v9394_v38 = vld [vmem:[#allocation51_spill] sm:$0xff]  ;;  %v3813_v39 = vrot.slane %v9393_v44, %v9162_v32 }
 0xb1d   :  { %v3559_v7 = vpop.permute.xlu1 %3558  ;;  %v1942_v3 = vmul.f32 %v9383_v48, %v1936_v18  ;;  %v1943_v56 = vmul.f32 %v9383_v48, %v1937_v30  ;;  %v3817_v18 = vrot.slane %v9394_v38, %v9162_v32 }
 0xb1e   :  { %v3569_v54 = vmul.f32 %v3564_v25, %v3559_v7  ;;  %v3570_v51 = vmul.f32 %v3568_v40, %v3559_v7  ;;  %v1960_v40 = vmul.f32 %v1956_v43, %v9385_v57  ;;  %v9386_v25 = vld [vmem:[#allocation83_spill] sm:$0xff] }
 0xb1f   :  { %v1944_v7 = vadd.f32 %v1942_v3, %v9386_v25  ;;  %v1945_v33 = vadd.f32 %v1943_v56, %v9387_v5  ;;  %v9397_v3 = vld [vmem:[#allocation82_spill] sm:$0xff]  ;;  %v3819_v25 = vmul.f32 %v3817_v18, %v3808_v21 }
 0xb20   :  { %v3571_v1 = vadd.f32 %v3569_v54, %v3555_v62  ;;  %v3572_v11 = vadd.f32 %v3570_v51, %v3556_v29  ;;  %v9388_v62 = vld [vmem:[#allocation59_spill] sm:$0xff]  ;;  %v9389_v54 = vld [vmem:[#allocation58_spill] sm:$0xff] }
 0xb21   :  { %v1982_v29 = vmul.f32 %v1975_v42, %v9388_v62  ;;  %v1983_v51 = vmul.f32 %v1979_v55, %v9389_v54  ;;  %v3843_v42 = vrot.slane %v9393_v44, %v9375_v2  ;;  %v3847_v55 = vrot.slane %v9394_v38, %v9375_v2 }
 0xb22   :  { %v3591_v59 = vpop.permute.xlu1 %3590  ;;  %v3588_v50 = vadd.f32 %v3586_v27, %v3572_v11  ;;  %v3587_v60 = vadd.f32 %v3585_v15, %v3571_v1  ;;  %v1998_v1 = vrot.slane %v4489_v41, %v9162_v32  ;;  %v2002_v11 = vrot.slane %v4489_v41, %v9374_v19  ;;  %v9390_v27 = vld [vmem:[#allocation152_spill] sm:$0xff]  ;;  %v9396_v41 = vld [vmem:[#allocation71_spill] sm:$0xff] }
 0xb23   :  { %v3601_v17 = vmul.f32 %v3596_v9, %v3591_v59  ;;  %v3602_v28 = vmul.f32 %v3600_v47, %v3591_v59  ;;  %v1965_v47 = vmul.f32 %v9390_v27, %v1959_v8  ;;  %v1966_v59 = vmul.f32 %v9390_v27, %v1960_v40 }
 0xb24   :  { %v1988_v15 = vmul.f32 %v7953_v58, %v1982_v29  ;;  %v1989_v9 = vmul.f32 %v7953_v58, %v1983_v51  ;;  %v3831_v58 = vrot.slane %v9394_v38, %v9374_v19  ;;  %v3818_v40 = vmul.f32 %v3813_v39, %v3808_v21 }
 0xb25   :  { %v3603_v31 = vadd.f32 %v3601_v17, %v3587_v60  ;;  %v3604_v24 = vadd.f32 %v3602_v28, %v3588_v50  ;;  %v1967_v60 = vadd.f32 %v1965_v47, %v1944_v7  ;;  %v1968_v17 = vadd.f32 %v1966_v59, %v1945_v33  ;;  %v3854_v28 = vpop.permute.xlu0 %3853  ;;  %v9398_v33 = vld [vmem:[#allocation158_spill] sm:$0xff] }
 0xb26   :  { %v3863_v27 = vrot.slane %v9394_v38, %v9376_v52  ;;  %v3879_v59 = vrot.slane %v9394_v38, %v9377_v49 }
 0xb27   :  { %v3607_v14 = vpop.permute.xlu1 %3606  ;;  %v1991_v45 = vadd.f32 %v1989_v9, %v1968_v17  ;;  %v3923_v9 = vrot.slane %v9393_v44, %v9380_v23  ;;  %v3891_v17 = vrot.slane %v9393_v44, %v9378_v34 }
 0xb28   :  { %v3617_v10 = vmul.f32 %v3612_v26, %v3607_v14  ;;  %v3618_v35 = vmul.f32 %v3616_v12, %v3607_v14  ;;  %v2021_v12 = vrot.slane %v4490_v63, %v9162_v32  ;;  %v2025_v26 = vrot.slane %v4490_v63, %v9374_v19  ;;  %v9391_v14 = vld [vmem:[#allocation55_spill] sm:$0xff] }
 0xb29   :  { %v8078_v57 = vpop.permute.xlu0 %4164  ;;  %v3859_v63 = vrot.slane %v9393_v44, %v9376_v52 }
 0xb2a   :  { %v8016_v13 = vadd.f32 %v3617_v10, %v3603_v31  ;;  %v8018_v22 = vadd.f32 %v3618_v35, %v3604_v24  ;;  %v2005_v31 = vmul.f32 %v1998_v1, %v9391_v14  ;;  %v9392_v24 = vld [vmem:[#allocation62_spill] sm:$0xff]  ;;  %v1990_v35 = vadd.f32 %v1988_v15, %v1967_v60 }
 0xb2b   :  { %v2006_v10 = vmul.f32 %v2002_v11, %v9392_v24  ;;  %v2028_v48 = vmul.f32 %v2021_v12, %v9396_v41  ;;  %v2029_v56 = vmul.f32 %v2025_v26, %v9397_v3  ;;  %v3927_v60 = vrot.slane %v9394_v38, %v9380_v23 }
 0xb2c   :  { %v3822_v4 = vpop.permute.xlu1 %3821  ;;  %v3621_v36 = vadd.f32 %v8018_v22, %v8016_v13  ;;  %v2011_v16 = vmul.f32 %v9395_v20, %v2005_v31  ;;  %v3895_v12 = vrot.slane %v9394_v38, %v9378_v34  ;;  %v3864_v26 = vmul.f32 %v3859_v63, %v3854_v28 }
 0xb2d   :  { %v2012_v43 = vmul.f32 %v9395_v20, %v2006_v10  ;;  %v3832_v6 = vmul.f32 %v3827_v37, %v3822_v4  ;;  %v3833_v30 = vmul.f32 %v3831_v58, %v3822_v4  ;;  %v2034_v4 = vmul.f32 %v9398_v33, %v2028_v48  ;;  %v8094_v15 = vpop.permute.xlu0 %4180 }
 0xb2e   :  { %3622 = vadd.xlane.f32.xlu0 %v3621_v36  ;;  %v2013_v53 = vadd.f32 %v2011_v16, %v1990_v35  ;;  %v2035_v62 = vmul.f32 %v9398_v33, %v2029_v56  ;;  %v3865_v14 = vmul.f32 %v3863_v27, %v3854_v28  ;;  %v3907_v41 = vrot.slane %v9393_v44, %v9379_v46 }
 0xb2f   :  { %v2014_v8 = vadd.f32 %v2012_v43, %v1991_v45  ;;  %v3834_v54 = vadd.f32 %v3832_v6, %v3818_v40  ;;  %v3835_v51 = vadd.f32 %v3833_v30, %v3819_v25  ;;  %v3911_v48 = vrot.slane %v9394_v38, %v9379_v46 }
 0xb30   :  { %v8082_v1 = vadd.f32 %v2034_v4, %v2013_v53 }
 0xb31   :  { %v3838_v0 = vpop.permute.xlu1 %3837  ;;  %v8084_v11 = vadd.f32 %v2035_v62, %v2014_v8  ;;  %v3918_v53 = vpop.permute.xlu0 %3917 }
 0xb32   :  { %v3848_v7 = vmul.f32 %v3843_v42, %v3838_v0  ;;  %v3849_v5 = vmul.f32 %v3847_v55, %v3838_v0  ;;  %v3875_v0 = vrot.slane %v9393_v44, %v9377_v49  ;;  %v4124_v35 = vrot.slane %v8082_v1, %v9162_v32 }
 0xb33   :  { %v4128_v45 = vrot.slane %v8084_v11, %v9162_v32  ;;  %v4138_v37 = vrot.slane %v8082_v1, %v9374_v19  ;;  %v4142_v58 = vrot.slane %v8084_v11, %v9374_v19  ;;  %v4154_v6 = vrot.slane %v8082_v1, %v9375_v2 }
 0xb34   :  { %v3850_v21 = vadd.f32 %v3848_v7, %v3834_v54  ;;  %v3851_v47 = vadd.f32 %v3849_v5, %v3835_v51  ;;  %v4158_v30 = vrot.slane %v8084_v11, %v9375_v2  ;;  %v4129_v3 = vmul.f32 %v4124_v35, %v8041_v61 }
 0xb35   :  { %v4130_v56 = vmul.f32 %v4128_v45, %v8041_v61  ;;  %v3929_v54 = vmul.f32 %v3927_v60, %v3918_v53  ;;  %v4170_v38 = vrot.slane %v8082_v1, %v9376_v52  ;;  %v4174_v61 = vrot.slane %v8084_v11, %v9376_v52 }
 0xb36   :  { %v4133_v50 = vpop.permute.xlu1 %4132  ;;  %v3866_v20 = vadd.f32 %v3864_v26, %v3850_v21  ;;  %v3867_v16 = vadd.f32 %v3865_v14, %v3851_v47  ;;  %v4190_v60 = vrot.slane %v8084_v11, %v9377_v49  ;;  %v4222_v35 = vrot.slane %v8084_v11, %v9379_v46 }
 0xb37   :  { %v4143_v28 = vmul.f32 %v4138_v37, %v4133_v50  ;;  %v4144_v18 = vmul.f32 %v4142_v58, %v4133_v50 }
 0xb38   :  { %v4192_v37 = vmul.f32 %v4190_v60, %v8094_v15 }
 0xb39   :  { %v4145_v4 = vadd.f32 %v4143_v28, %v4129_v3  ;;  %v4146_v62 = vadd.f32 %v4144_v18, %v4130_v56 }
 0xb3b   :  { %v4149_v36 = vpop.permute.xlu1 %4148 }
 0xb3c   :  { %v4159_v50 = vmul.f32 %v4154_v6, %v4149_v36  ;;  %v4160_v8 = vmul.f32 %v4158_v30, %v4149_v36 }
 0xb3e   :  { %v4161_v63 = vadd.f32 %v4159_v50, %v4145_v4  ;;  %v4162_v27 = vadd.f32 %v4160_v8, %v4146_v62 }
 0xb40   :  { %v3870_v29 = vpop.permute.xlu1 %3869 }
 0xb41   :  { %v3880_v31 = vmul.f32 %v3875_v0, %v3870_v29  ;;  %v3881_v24 = vmul.f32 %v3879_v59, %v3870_v29  ;;  %v3928_v29 = vmul.f32 %v3923_v9, %v3918_v53  ;;  %v4175_v0 = vmul.f32 %v4170_v38, %v8078_v57 }
 0xb42   :  { %v4176_v59 = vmul.f32 %v4174_v61, %v8078_v57  ;;  %v4186_v9 = vrot.slane %v8082_v1, %v9377_v49  ;;  %v4202_v57 = vrot.slane %v8082_v1, %v9378_v34 }
 0xb43   :  { %v3882_v42 = vadd.f32 %v3880_v31, %v3866_v20  ;;  %v3883_v55 = vadd.f32 %v3881_v24, %v3867_v16  ;;  %v4177_v14 = vadd.f32 %v4175_v0, %v4161_v63  ;;  %v4206_v24 = vrot.slane %v8084_v11, %v9378_v34 }
 0xb44   :  { %v4178_v31 = vadd.f32 %v4176_v59, %v4162_v27  ;;  %v4191_v45 = vmul.f32 %v4186_v9, %v8094_v15 }
 0xb45   :  { %v3886_v10 = vpop.permute.xlu1 %3885 }
 0xb46   :  { %v3896_v43 = vmul.f32 %v3891_v17, %v3886_v10  ;;  %v3897_v39 = vmul.f32 %v3895_v12, %v3886_v10  ;;  %v4218_v10 = vrot.slane %v8082_v1, %v9379_v46  ;;  %v4194_v28 = vadd.f32 %v4192_v37, %v4178_v31 }
 0xb48   :  { %v3898_v25 = vadd.f32 %v3896_v43, %v3882_v42  ;;  %v3899_v7 = vadd.f32 %v3897_v39, %v3883_v55  ;;  %v4193_v39 = vadd.f32 %v4191_v45, %v4177_v14  ;;  %v4234_v55 = vrot.slane %v8082_v1, %v9380_v23 }
 0xb4a   :  { %v3902_v40 = vpop.permute.xlu1 %3901 }
 0xb4b   :  { %v3912_v5 = vmul.f32 %v3907_v41, %v3902_v40  ;;  %v3913_v33 = vmul.f32 %v3911_v48, %v3902_v40  ;;  %v4238_v41 = vrot.slane %v8084_v11, %v9380_v23  ;;  %v8167_v11 = vld [vmem:[%s8422_s2] sm:$0xff] }
 0xb4d   :  { %v3914_v44 = vadd.f32 %v3912_v5, %v3898_v25  ;;  %v3915_v51 = vadd.f32 %v3913_v33, %v3899_v7 }
 0xb4f   :  { %v8126_v36 = vadd.f32 %v3928_v29, %v3914_v44  ;;  %v8128_v21 = vadd.f32 %v3929_v54, %v3915_v51  ;;  %v4197_v47 = vpop.permute.xlu1 %4196  ;;  %v3699_v44 = vmul.f32 %v8016_v13, %v8016_v13  ;;  %v3700_v51 = vmul.f32 %v8018_v22, %v8018_v22 }
 0xb50   :  { %v4207_v58 = vmul.f32 %v4202_v57, %v4197_v47  ;;  %v4208_v20 = vmul.f32 %v4206_v24, %v4197_v47 }
 0xb51   :  { %v3932_v17 = vadd.f32 %v8128_v21, %v8126_v36  ;;  %v4010_v12 = vmul.f32 %v8126_v36, %v8126_v36  ;;  %v4011_v26 = vmul.f32 %v8128_v21, %v8128_v21  ;;  %v3701_v38 = vadd.f32 %v3700_v51, %v3699_v44 }
 0xb52   :  { %v4209_v30 = vadd.f32 %v4207_v58, %v4193_v39  ;;  %v4210_v42 = vadd.f32 %v4208_v20, %v4194_v28 }
 0xb53   :  { %3933 = vadd.xlane.f32.xlu0 %v3932_v17  ;;  %v4012_v43 = vadd.f32 %v4011_v26, %v4010_v12 }
 0xb54   :  { %v4213_v16 = vpop.permute.xlu1 %4212 }
 0xb55   :  { %v4223_v18 = vmul.f32 %v4218_v10, %v4213_v16  ;;  %v4224_v6 = vmul.f32 %v4222_v35, %v4213_v16 }
 0xb57   :  { %4013 = vadd.xlane.f32.xlu0 %v4012_v43  ;;  %v4225_v3 = vadd.f32 %v4223_v18, %v4209_v30  ;;  %v4226_v15 = vadd.f32 %v4224_v6, %v4210_v42 }
 0xb59   :  { %v4229_v48 = vpop.permute.xlu1 %4228 }
 0xb5a   :  { %v4239_v56 = vmul.f32 %v4234_v55, %v4229_v48  ;;  %v4240_v53 = vmul.f32 %v4238_v41, %v4229_v48 }
 0xb5c   :  { %v8156_v50 = vadd.f32 %v4239_v56, %v4225_v3  ;;  %v8158_v8 = vadd.f32 %v4240_v53, %v4226_v15 }
 0xb5e   :  { %v4243_v40 = vadd.f32 %v8158_v8, %v8156_v50  ;;  %v4321_v61 = vmul.f32 %v8156_v50, %v8156_v50  ;;  %v4322_v63 = vmul.f32 %v8158_v8, %v8158_v8 }
 0xb60   :  { %4244 = vadd.xlane.f32.xlu0 %v4243_v40  ;;  %v4323_v27 = vadd.f32 %v4322_v63, %v4321_v61 }
 0xbbb   :  { %v3623_v25 = vpop.xlane.xlu0 %3622 }
 0xbbc   :  { %v3642_v7 = vrot.slane %v3623_v25, %v9375_v2  ;;  %v3632_v1 = vrot.slane %v3623_v25, %v9374_v19  ;;  %v3672_v4 = vrot.slane %v3623_v25, %v9378_v34  ;;  %v3692_v29 = vrot.slane %v3623_v25, %v9380_v23 }
 0xbbd   :  { %v3652_v47 = vrot.slane %v3623_v25, %v9376_v52  ;;  %v3662_v59 = vrot.slane %v3623_v25, %v9377_v49  ;;  %v3682_v60 = vrot.slane %v3623_v25, %v9379_v46  ;;  %v3627_v31 = vrot.slane %v3623_v25, %v9162_v32 }
 0xbbe   :  { %v3643_v5 = vmul.f32 %v8167_v11, %v3642_v7  ;;  %v3633_v33 = vmul.f32 %v8167_v11, %v3632_v1  ;;  %v3673_v62 = vmul.f32 %v8167_v11, %v3672_v4  ;;  %v3693_v54 = vmul.f32 %v8167_v11, %v3692_v29 }
 0xbbf   :  { %v3653_v0 = vmul.f32 %v8167_v11, %v3652_v47  ;;  %v3663_v9 = vmul.f32 %v8167_v11, %v3662_v59  ;;  %v3683_v17 = vmul.f32 %v8167_v11, %v3682_v60  ;;  %v3628_v45 = vmul.f32 %v8167_v11, %v3627_v31 }
 0xbc0   :  { %3645 = vrot.lane.b32.xlu0 %v3643_v5, %s4736_s22  ;;  %3635 = vrot.lane.b32.xlu1 %v3633_v33, %s4715_s30 }
 0xbc4   :  { %3675 = vrot.lane.b32.xlu0 %v3673_v62, %s9048_s4 }
 0xbc8   :  { %3695 = vrot.lane.b32.xlu0 %v3693_v54, %s9056_s5 }
 0xbe0   :  { %v8196_v12 = vpop.xlane.xlu0 %3933 }
 0xbe1   :  { %v3953_v54 = vrot.slane %v8196_v12, %v9375_v2 }
 0xbe3   :  { %v3954_v44 = vmul.f32 %v8167_v11, %v3953_v54 }
 0xbe4   :  { %3702 = vadd.xlane.f32.xlu1 %v3701_v38  ;;  %v8198_v14 = vpop.xlane.xlu0 %4013 }
 0xbe5   :  { %v4033_v61 = vrot.slane %v8198_v14, %v9375_v2 }
 0xbe7   :  { %v4034_v63 = vmul.f32 %v8167_v11, %v4033_v61  ;;  %v8298_v61 = vld [vmem:[%s8424_s0] sm:$0xff]  ;;  %s4492_s0 = spop %4491 }
 0xbe8   :  { %4324 = vadd.xlane.f32.xlu1 %v4323_v27 }
 0xbed   :  { %v8207_v35 = vpop.xlane.xlu0 %4244 }
 0xbee   :  { %v4254_v51 = vrot.slane %v8207_v35, %v9374_v19 }
 0xbf0   :  { %v4255_v38 = vmul.f32 %v8167_v11, %v4254_v51 }
 0xbf9   :  { %3655 = vrot.lane.b32.xlu1 %v3653_v0, %s9035_s27  ;;  %v4043_v0 = vrot.slane %v8198_v14, %v9376_v52 }
 0xbfb   :  { %v4044_v59 = vmul.f32 %v8167_v11, %v4043_v0  ;;  %v3943_v0 = vrot.slane %v8196_v12, %v9374_v19 }
 0xbfd   :  { %3665 = vrot.lane.b32.xlu1 %v3663_v9, %s4738_s19 }
 0xc01   :  { %3685 = vrot.lane.b32.xlu1 %v3683_v17, %s9053_s3  ;;  %v4053_v17 = vrot.slane %v8198_v14, %v9377_v49 }
 0xc32   :  { %v3636_v26 = vpop.permute.xlu1 %3635  ;;  %v3646_v28 = vpop.permute.xlu0 %3645 }
 0xc33   :  { %v3638_v39 = vadd.f32 %v3636_v26, %v3628_v45  ;;  %v4054_v26 = vmul.f32 %v8167_v11, %v4053_v17 }
 0xc35   :  { %v3648_v41 = vadd.f32 %v3646_v28, %v3638_v39 }
 0xc36   :  { %v3676_v53 = vpop.permute.xlu0 %3675 }
 0xc3a   :  { %v3696_v4 = vpop.permute.xlu0 %3695 }
 0xc71   :  { %v8201_v57 = vpop.xlane.xlu1 %3702 }
 0xc72   :  { %v3722_v24 = vrot.slane %v8201_v57, %v9375_v2  ;;  %v3712_v10 = vrot.slane %v8201_v57, %v9374_v19  ;;  %v3742_v20 = vrot.slane %v8201_v57, %v9377_v49  ;;  %v3732_v16 = vrot.slane %v8201_v57, %v9376_v52 }
 0xc73   :  { %v3762_v30 = vrot.slane %v8201_v57, %v9379_v46  ;;  %v3752_v42 = vrot.slane %v8201_v57, %v9378_v34  ;;  %v3772_v56 = vrot.slane %v8201_v57, %v9380_v23 }
 0xc74   :  { %v3723_v37 = vmul.f32 %v8167_v11, %v3722_v24  ;;  %v3713_v58 = vmul.f32 %v8167_v11, %v3712_v10  ;;  %v3743_v18 = vmul.f32 %v8167_v11, %v3742_v20  ;;  %v3733_v6 = vmul.f32 %v8167_v11, %v3732_v16 }
 0xc75   :  { %v8216_v43 = vpop.xlane.xlu1 %4324  ;;  %v3763_v3 = vmul.f32 %v8167_v11, %v3762_v30  ;;  %v3753_v15 = vmul.f32 %v8167_v11, %v3752_v42  ;;  %v3773_v1 = vmul.f32 %v8167_v11, %v3772_v56  ;;  %v4063_v10 = vrot.slane %v8198_v14, %v9378_v34 }
 0xc76   :  { %3725 = vrot.lane.b32.xlu0 %v3723_v37, %s4736_s22  ;;  %3715 = vrot.lane.b32.xlu1 %v3713_v58, %s4715_s30  ;;  %v4334_v27 = vrot.slane %v8216_v43, %v9374_v19  ;;  %v4344_v9 = vrot.slane %v8216_v43, %v9375_v2  ;;  %v4354_v31 = vrot.slane %v8216_v43, %v9376_v52 }
 0xc77   :  { %v4064_v45 = vmul.f32 %v8167_v11, %v4063_v10  ;;  %v4364_v37 = vrot.slane %v8216_v43, %v9377_v49  ;;  %v4073_v20 = vrot.slane %v8198_v14, %v9379_v46  ;;  %v4374_v39 = vrot.slane %v8216_v43, %v9378_v34 }
 0xc78   :  { %v4335_v47 = vmul.f32 %v8167_v11, %v4334_v27  ;;  %v4345_v60 = vmul.f32 %v8167_v11, %v4344_v9  ;;  %v4355_v24 = vmul.f32 %v8167_v11, %v4354_v31  ;;  %v4394_v30 = vrot.slane %v8216_v43, %v9380_v23 }
 0xc79   :  { %v3656_v55 = vpop.permute.xlu1 %3655  ;;  %v4365_v58 = vmul.f32 %v8167_v11, %v4364_v37  ;;  %v4074_v16 = vmul.f32 %v8167_v11, %v4073_v20  ;;  %v4375_v28 = vmul.f32 %v8167_v11, %v4374_v39  ;;  %v4274_v10 = vrot.slane %v8207_v35, %v9376_v52 }
 0xc7a   :  { %3745 = vrot.lane.b32.xlu0 %v3743_v18, %s4738_s19  ;;  %3735 = vrot.lane.b32.xlu1 %v3733_v6, %s9035_s27  ;;  %v3658_v48 = vadd.f32 %v3656_v55, %v3648_v41  ;;  %v4314_v18 = vrot.slane %v8207_v35, %v9380_v23  ;;  %v4395_v42 = vmul.f32 %v8167_v11, %v4394_v30 }
 0xc7b   :  { %v3707_v55 = vrot.slane %v8201_v57, %v9162_v32  ;;  %v4294_v39 = vrot.slane %v8207_v35, %v9378_v34 }
 0xc7c   :  { %v4315_v6 = vmul.f32 %v8167_v11, %v4314_v18 }
 0xc7d   :  { %v3666_v40 = vpop.permute.xlu1 %3665  ;;  %v3708_v41 = vmul.f32 %v8167_v11, %v3707_v55  ;;  %v4384_v55 = vrot.slane %v8216_v43, %v9379_v46 }
 0xc7e   :  { %v3668_v25 = vadd.f32 %v3666_v40, %v3658_v48  ;;  %3765 = vrot.lane.b32.xlu0 %v3763_v3, %s9053_s3  ;;  %3755 = vrot.lane.b32.xlu1 %v3753_v15, %s9048_s4 }
 0xc80   :  { %v3678_v7 = vadd.f32 %v3676_v53, %v3668_v25 }
 0xc81   :  { %v3686_v5 = vpop.permute.xlu1 %3685 }
 0xc82   :  { %v3688_v33 = vadd.f32 %v3686_v5, %v3678_v7  ;;  %3775 = vrot.lane.b32.xlu1 %v3773_v1, %s9056_s5 }
 0xc84   :  { %v3698_v62 = vadd.f32 %v3696_v4, %v3688_v33 }
 0xc86   :  { %v3779_v29 = vmul.f32 0.001953125, %v3698_v62 }
 0xc88   :  { %3792 = vperm.xlu0 %4677, %v3779_v29   ;;  %v3781_v51 = vmul.f32 %v3779_v29, %v3779_v29  ;;  %v4023_v29 = vrot.slane %v8198_v14, %v9374_v19  ;;  %v3973_v19 = vrot.slane %v8196_v12, %v9377_v49 }
 0xc8a   :  { %v4024_v9 = vmul.f32 %v8167_v11, %v4023_v29 }
 0xc8c   :  { %3956 = vrot.lane.b32.xlu0 %v3954_v44, %s4736_s22 }
 0xc90   :  { %4257 = vrot.lane.b32.xlu0 %v4255_v38, %s4715_s30 }
 0xc94   :  { %4036 = vrot.lane.b32.xlu0 %v4034_v63, %s4736_s22  ;;  %v3788_v63 = vrot.slane %v8298_v61, %v9378_v34 }
 0xc98   :  { %4337 = vrot.lane.b32.xlu0 %v4335_v47, %s4715_s30 }
 0xc9c   :  { %4046 = vrot.lane.b32.xlu0 %v4044_v59, %s9035_s27  ;;  %v3944_v59 = vmul.f32 %v8167_v11, %v3943_v0 }
 0xca0   :  { %4347 = vrot.lane.b32.xlu0 %v4345_v60, %s4736_s22  ;;  %v3963_v60 = vrot.slane %v8196_v12, %v9376_v52  ;;  %v3993_v52 = vrot.slane %v8196_v12, %v9379_v46 }
 0xca2   :  { %v3964_v17 = vmul.f32 %v8167_v11, %v3963_v60 }
 0xca4   :  { %4056 = vrot.lane.b32.xlu0 %v4054_v26, %s4738_s19  ;;  %v4264_v26 = vrot.slane %v8207_v35, %v9375_v2  ;;  %v3983_v2 = vrot.slane %v8196_v12, %v9378_v34  ;;  %v4083_v34 = vrot.slane %v8198_v14, %v9380_v23 }
 0xca6   :  { %v4265_v31 = vmul.f32 %v8167_v11, %v4264_v26  ;;  %v3984_v37 = vmul.f32 %v8167_v11, %v3983_v2 }
 0xca8   :  { %4357 = vrot.lane.b32.xlu0 %v4355_v24, %s9035_s27  ;;  %v3974_v24 = vmul.f32 %v8167_v11, %v3973_v19 }
 0xcac   :  { %4066 = vrot.lane.b32.xlu0 %v4064_v45, %s9048_s4  ;;  %v4275_v45 = vmul.f32 %v8167_v11, %v4274_v10 }
 0xcb0   :  { %4367 = vrot.lane.b32.xlu0 %v4365_v58, %s4738_s19  ;;  %v4284_v58 = vrot.slane %v8207_v35, %v9377_v49  ;;  %v4003_v49 = vrot.slane %v8196_v12, %v9380_v23 }
 0xcb2   :  { %v4285_v20 = vmul.f32 %v8167_v11, %v4284_v58  ;;  %v4004_v18 = vmul.f32 %v8167_v11, %v4003_v49 }
 0xcb4   :  { %4076 = vrot.lane.b32.xlu0 %v4074_v16, %s9053_s3  ;;  %v3994_v16 = vmul.f32 %v8167_v11, %v3993_v52  ;;  %v4329_v52 = vrot.slane %v8216_v43, %v9162_v32 }
 0xcb8   :  { %4377 = vrot.lane.b32.xlu0 %v4375_v28, %s9048_s4  ;;  %v4295_v28 = vmul.f32 %v8167_v11, %v4294_v39 }
 0xcbc   :  { %4317 = vrot.lane.b32.xlu0 %v4315_v6, %s9056_s5  ;;  %v4304_v6 = vrot.slane %v8207_v35, %v9379_v46 }
 0xcbe   :  { %v4305_v30 = vmul.f32 %v8167_v11, %v4304_v6 }
 0xcc0   :  { %4397 = vrot.lane.b32.xlu0 %v4395_v42, %s9056_s5  ;;  %v4084_v42 = vmul.f32 %v8167_v11, %v4083_v34 }
 0xce8   :  { %v3716_v48 = vpop.permute.xlu1 %3715  ;;  %v3726_v3 = vpop.permute.xlu0 %3725 }
 0xce9   :  { %v3718_v15 = vadd.f32 %v3716_v48, %v3708_v41  ;;  %v4385_v41 = vmul.f32 %v8167_v11, %v4384_v55 }
 0xceb   :  { %v3728_v56 = vadd.f32 %v3726_v3, %v3718_v15 }
 0xcec   :  { %v3736_v53 = vpop.permute.xlu1 %3735  ;;  %v3746_v40 = vpop.permute.xlu0 %3745 }
 0xced   :  { %v3738_v25 = vadd.f32 %v3736_v53, %v3728_v56 }
 0xcef   :  { %v3748_v7 = vadd.f32 %v3746_v40, %v3738_v25 }
 0xcf0   :  { %v3756_v1 = vpop.permute.xlu1 %3755  ;;  %v3766_v33 = vpop.permute.xlu0 %3765 }
 0xcf1   :  { %v3758_v5 = vadd.f32 %v3756_v1, %v3748_v7 }
 0xcf3   :  { %v3768_v4 = vadd.f32 %v3766_v33, %v3758_v5 }
 0xcf4   :  { %v3776_v62 = vpop.permute.xlu1 %3775 }
 0xcf5   :  { %v3778_v54 = vadd.f32 %v3776_v62, %v3768_v4 }
 0xcf7   :  { %v3780_v44 = vmul.f32 0.001953125, %v3778_v54 }
 0xcf9   :  { %v3782_v38 = vsub.f32 %v3780_v44, %v3781_v51 }
 0xcfb   :  { %v3783_v57 = vadd.f32 1e-05, %v3782_v38 }
 0xcfd   :  { %4689 = vrsqrt.f32 %v3783_v57 }
 0xd07   :  { %v4690_v27 = vpop.eup %4689  ;;  %v3793_v48 = vpop.permute.xlu0 %3792 }
 0xd08   :  { %v3789_v47 = vmul.f32 %v4690_v27, %v3788_v63  ;;  %v3795_v40 = vsub.f32 %v8016_v13, %v3793_v48  ;;  %v3796_v25 = vsub.f32 %v8018_v22, %v3793_v48  ;;  %v3938_v13 = vrot.slane %v8196_v12, %v9162_v32 }
 0xd09   :  { %v4018_v22 = vrot.slane %v8198_v14, %v9162_v32 }
 0xd0a   :  { %3799 = vperm.xlu1 %4678, %v3789_v47  }
 0xd0b   :  { %v3957_v3 = vpop.permute.xlu0 %3956  ;;  %v4019_v29 = vmul.f32 %v8167_v11, %v4018_v22 }
 0xd0e   :  { %3946 = vrot.lane.b32.xlu1 %v3944_v59, %s4715_s30  ;;  %v3939_v59 = vmul.f32 %v8167_v11, %v3938_v13 }
 0xd0f   :  { %v4258_v15 = vpop.permute.xlu0 %4257 }
 0xd12   :  { %4026 = vrot.lane.b32.xlu1 %v4024_v9, %s4715_s30 }
 0xd13   :  { %v4037_v56 = vpop.permute.xlu0 %4036 }
 0xd16   :  { %3966 = vrot.lane.b32.xlu1 %v3964_v17, %s9035_s27 }
 0xd17   :  { %v4338_v53 = vpop.permute.xlu0 %4337 }
 0xd1a   :  { %4267 = vrot.lane.b32.xlu1 %v4265_v31, %s4736_s22  ;;  %v4249_v31 = vrot.slane %v8207_v35, %v9162_v32 }
 0xd1b   :  { %v4047_v33 = vpop.permute.xlu0 %4046 }
 0xd1c   :  { %v4250_v12 = vmul.f32 %v8167_v11, %v4249_v31 }
 0xd1e   :  { %3976 = vrot.lane.b32.xlu1 %v3974_v24, %s4738_s19  ;;  %v4260_v2 = vadd.f32 %v4258_v15, %v4250_v12  ;;  %v9401_v12 = vld [vmem:[#allocation23_spill] sm:$0xff] }
 0xd1f   :  { %v4348_v62 = vpop.permute.xlu0 %4347 }
 0xd22   :  { %4277 = vrot.lane.b32.xlu1 %v4275_v45, %s9035_s27 }
 0xd23   :  { %v4057_v51 = vpop.permute.xlu0 %4056 }
 0xd26   :  { %3986 = vrot.lane.b32.xlu1 %v3984_v37, %s9048_s4 }
 0xd27   :  { %v4358_v57 = vpop.permute.xlu0 %4357 }
 0xd2a   :  { %4287 = vrot.lane.b32.xlu1 %v4285_v20, %s4738_s19 }
 0xd2b   :  { %v4067_v47 = vpop.permute.xlu0 %4066 }
 0xd2e   :  { %3996 = vrot.lane.b32.xlu1 %v3994_v16, %s9053_s3 }
 0xd2f   :  { %v4368_v17 = vpop.permute.xlu0 %4367 }
 0xd32   :  { %4297 = vrot.lane.b32.xlu1 %v4295_v28, %s9048_s4 }
 0xd33   :  { %v4077_v14 = vpop.permute.xlu0 %4076 }
 0xd36   :  { %4006 = vrot.lane.b32.xlu1 %v4004_v18, %s9056_s5 }
 0xd37   :  { %v4378_v35 = vpop.permute.xlu0 %4377 }
 0xd3a   :  { %4307 = vrot.lane.b32.xlu1 %v4305_v30, %s9053_s3  ;;  %v4330_v30 = vmul.f32 %v8167_v11, %v4329_v52 }
 0xd3b   :  { %v4318_v32 = vpop.permute.xlu0 %4317 }
 0xd3c   :  { %v4340_v55 = vadd.f32 %v4338_v53, %v4330_v30 }
 0xd3e   :  { %4086 = vrot.lane.b32.xlu1 %v4084_v42, %s9056_s5 }
 0xd3f   :  { %v4398_v13 = vpop.permute.xlu0 %4397 }
 0xd42   :  { %4387 = vrot.lane.b32.xlu1 %v4385_v41, %s9053_s3 }
 0xd89   :  { %v3800_v7 = vpop.permute.xlu1 %3799 }
 0xd8a   :  { %v8360_v1 = vmul.f32 %v3800_v7, %v3795_v40  ;;  %v8362_v5 = vmul.f32 %v3800_v7, %v3796_v25 }
 0xd8d   :  { %v3947_v4 = vpop.permute.xlu1 %3946 }
 0xd8e   :  { %v3949_v9 = vadd.f32 %v3947_v4, %v3939_v59 }
 0xd90   :  { %v3959_v24 = vadd.f32 %v3957_v3, %v3949_v9 }
 0xd91   :  { %v4027_v54 = vpop.permute.xlu1 %4026 }
 0xd92   :  { %v4029_v60 = vadd.f32 %v4027_v54, %v4019_v29  ;;  %v4099_v29 = vrot.slane %v8298_v61, %v9379_v46  ;;  %v9404_v46 = vld [vmem:[#allocation21_spill] sm:$0xff] }
 0xd94   :  { %v4039_v19 = vadd.f32 %v4037_v56, %v4029_v60  ;;  %v4350_v56 = vadd.f32 %v4348_v62, %v4340_v55  ;;  %v4707_v55 = vld [vmem:[%s8799_s23] sm:$0xff] }
 0xd95   :  { %v3967_v44 = vpop.permute.xlu1 %3966 }
 0xd96   :  { %v3969_v45 = vadd.f32 %v3967_v44, %v3959_v24  ;;  %v4049_v37 = vadd.f32 %v4047_v33, %v4039_v19  ;;  %v4360_v43 = vadd.f32 %v4358_v57, %v4350_v56  ;;  %v9399_v19 = vld [vmem:[#allocation35_spill] sm:$0xff]  ;;  %v9400_v24 = vld [vmem:[#allocation22_spill] sm:$0xff] }
 0xd97   :  { %v9410_v56 = vld [vmem:[#allocation86_spill] sm:$0xff] }
 0xd98   :  { %v4059_v18 = vadd.f32 %v4057_v51, %v4049_v37  ;;  %v4370_v4 = vadd.f32 %v4368_v17, %v4360_v43  ;;  %v4410_v17 = vrot.slane %v8298_v61, %v9380_v23  ;;  %v4431_v61 = vstv %s4492_s0 }
 0xd99   :  { %v4268_v38 = vpop.permute.xlu1 %4267 }
 0xd9a   :  { %v4270_v16 = vadd.f32 %v4268_v38, %v4260_v2  ;;  %v4069_v3 = vadd.f32 %v4067_v47, %v4059_v18  ;;  %v4380_v51 = vadd.f32 %v4378_v35, %v4370_v4  ;;  %v9403_v2 = vld [vmem:[#allocation20_spill] sm:$0xff]  ;;  %v9408_v18 = vld [vmem:[#allocation37_spill] sm:$0xff] }
 0xd9c   :  { %v4079_v7 = vadd.f32 %v4077_v14, %v4069_v3  ;;  %v9402_v14 = vld [vmem:[#allocation135_spill] sm:$0xff] }
 0xd9d   :  { %v3977_v63 = vpop.permute.xlu1 %3976  ;;  %v568_v37 = vsub.f32 %v9403_v2, %v9402_v14 }
 0xd9e   :  { %v3979_v58 = vadd.f32 %v3977_v63, %v3969_v45  ;;  %v752_v45 = vsub.f32 %v9401_v12, %v9399_v19 }
 0xda1   :  { %v4278_v27 = vpop.permute.xlu1 %4277 }
 0xda2   :  { %v4280_v28 = vadd.f32 %v4278_v27, %v4270_v16  ;;  %v9406_v16 = vld [vmem:[#allocation138_spill] sm:$0xff] }
 0xda5   :  { %v3987_v0 = vpop.permute.xlu1 %3986 }
 0xda6   :  { %v3989_v39 = vadd.f32 %v3987_v0, %v3979_v58  ;;  %v569_v58 = vsub.f32 %v9404_v46, %v9402_v14 }
 0xda9   :  { %v4288_v26 = vpop.permute.xlu1 %4287 }
 0xdaa   :  { %v4290_v34 = vadd.f32 %v4288_v26, %v4280_v28  ;;  %v576_v28 = vmul.f32 %v9406_v16, %v569_v58 }
 0xdad   :  { %v3997_v10 = vpop.permute.xlu1 %3996 }
 0xdae   :  { %v3999_v49 = vadd.f32 %v3997_v10, %v3989_v39  ;;  %v751_v10 = vsub.f32 %v9400_v24, %v9399_v19  ;;  %v575_v39 = vmul.f32 %v9406_v16, %v568_v37 }
 0xdb1   :  { %v4298_v20 = vpop.permute.xlu1 %4297 }
 0xdb2   :  { %v4300_v41 = vadd.f32 %v4298_v20, %v4290_v34  ;;  %v9405_v20 = vld [vmem:[#allocation50_spill] sm:$0xff] }
 0xdb3   :  { %v758_v52 = vmul.f32 %v9405_v20, %v751_v10  ;;  %v759_v23 = vmul.f32 %v9405_v20, %v752_v45 }
 0xdb5   :  { %v4007_v6 = vpop.permute.xlu1 %4006  ;;  %v4426_v34 = vadd.f32 %v758_v52, %v575_v39 }
 0xdb6   :  { %v4009_v42 = vadd.f32 %v4007_v6, %v3999_v49  ;;  %v9407_v49 = vld [vmem:[#allocation89_spill] sm:$0xff]  ;;  %v9409_v6 = vld [vmem:[#allocation48_spill] sm:$0xff] }
 0xdb7   :  { %v2784_v35 = vsub.f32 %v9408_v18, %v9407_v49  ;;  %v2785_v30 = vsub.f32 %v9409_v6, %v9407_v49 }
 0xdb8   :  { %v4090_v48 = vmul.f32 0.001953125, %v4009_v42  ;;  %v4427_v42 = vadd.f32 %v759_v23, %v576_v28 }
 0xdb9   :  { %v4308_v15 = vpop.permute.xlu1 %4307 }
 0xdba   :  { %v4310_v40 = vadd.f32 %v4308_v15, %v4300_v41  ;;  %4103 = vperm.xlu1 %4678, %v4090_v48   ;;  %v4092_v11 = vmul.f32 %v4090_v48, %v4090_v48  ;;  %v4433_v41 = vmul.f32 %v4707_v55, %v4431_v61  ;;  %v4708_v48 = vld [vmem:[%s8799_s23 + $0x8] sm:$0xff] }
 0xdbb   :  { %v4434_v3 = vmul.f32 %v4708_v48, %v4431_v61 }
 0xdbc   :  { %v4320_v25 = vadd.f32 %v4318_v32, %v4310_v40  ;;  %v2791_v40 = vmul.f32 %v9410_v56, %v2784_v35  ;;  %v2792_v32 = vmul.f32 %v9410_v56, %v2785_v30 }
 0xdbd   :  { %v4087_v33 = vpop.permute.xlu1 %4086 }
 0xdbe   :  { %v4401_v54 = vmul.f32 0.001953125, %v4320_v25  ;;  %v4089_v44 = vadd.f32 %v4087_v33, %v4079_v7  ;;  %v4435_v25 = vadd.f32 %v4433_v41, %v4426_v34  ;;  %v4436_v7 = vadd.f32 %v4434_v3, %v4427_v42 }
 0xdc0   :  { %v4091_v38 = vmul.f32 0.001953125, %v4089_v44  ;;  %4414 = vperm.xlu1 %4678, %v4401_v54   ;;  %v4403_v47 = vmul.f32 %v4401_v54, %v4401_v54  ;;  %v4437_v44 = vadd.f32 %v4435_v25, %v2791_v40 }
 0xdc1   :  { %v4388_v53 = vpop.permute.xlu1 %4387 }
 0xdc2   :  { %v4093_v63 = vsub.f32 %v4091_v38, %v4092_v11  ;;  %v4390_v27 = vadd.f32 %v4388_v53, %v4380_v51  ;;  %v4438_v51 = vadd.f32 %v4436_v7, %v2792_v32  ;;  %v4439_v53 = vadd.f32 %v4437_v44, %v8360_v1 }
 0xdc4   :  { %v4094_v22 = vadd.f32 1e-05, %v4093_v63  ;;  %v4400_v62 = vadd.f32 %v4398_v13, %v4390_v27  ;;  %v4440_v63 = vadd.f32 %v4438_v51, %v8362_v5 }
 0xdc6   :  { %4691 = vrsqrt.f32 %v4094_v22  ;;  %v4402_v0 = vmul.f32 0.001953125, %v4400_v62 }
 0xdc8   :  { %v4404_v57 = vsub.f32 %v4402_v0, %v4403_v47 }
 0xdca   :  { %v4405_v59 = vadd.f32 1e-05, %v4404_v57 }
 0xdcc   :  { %4693 = vrsqrt.f32 %v4405_v59 }
 0xdd0   :  { %v4692_v9 = vpop.eup %4691 }
 0xdd1   :  { %v4100_v60 = vmul.f32 %v4692_v9, %v4099_v29 }
 0xdd3   :  { %4110 = vperm.xlu0 %4677, %v4100_v60  }
 0xdd6   :  { %v4694_v26 = vpop.eup %4693 }
 0xdd7   :  { %v4411_v31 = vmul.f32 %v4694_v26, %v4410_v17 }
 0xdd9   :  { %4421 = vperm.xlu0 %4677, %v4411_v31  }
 0xe39   :  { %v4104_v15 = vpop.permute.xlu1 %4103 }
 0xe3a   :  { %v4106_v33 = vsub.f32 %v8126_v36, %v4104_v15  ;;  %v4107_v4 = vsub.f32 %v8128_v21, %v4104_v15 }
 0xe3f   :  { %v4415_v54 = vpop.permute.xlu1 %4414 }
 0xe40   :  { %v4417_v27 = vsub.f32 %v8156_v50, %v4415_v54  ;;  %v4418_v13 = vsub.f32 %v8158_v8, %v4415_v54 }
 0xe52   :  { %v4111_v43 = vpop.permute.xlu0 %4110 }
 0xe53   :  { %v4113_v11 = vmul.f32 %v4111_v43, %v4106_v33  ;;  %v4114_v38 = vmul.f32 %v4111_v43, %v4107_v4 }
 0xe55   :  { %v4441_v62 = vadd.f32 %v4439_v53, %v4113_v11  ;;  %v4442_v47 = vadd.f32 %v4440_v63, %v4114_v38 }
 0xe58   :  { %v4422_v22 = vpop.permute.xlu0 %4421 }
 0xe59   :  { %v4424_v0 = vmul.f32 %v4422_v22, %v4417_v27  ;;  %v4425_v36 = vmul.f32 %v4422_v22, %v4418_v13 }
 0xe5b   :  { %v4443_v57 = vadd.f32 %v4441_v62, %v4424_v0  ;;  %v4444_v21 = vadd.f32 %v4442_v47, %v4425_v36 }
 0xe5d   :  { %4445 = vst [vmem:[%s8432_s16] sm:$0xff] %v4443_v57  ;;  %4446 = vst [vmem:[%s8432_s16 + $0x8] sm:$0xff] %v4444_v21 }

</bundles_post_ra>
